<compile_context>
chip_gen: v5e
topology: v5e:2x2
jax: 0.10.0
libtpu: 0.0.40
codegen_flags: <defaults>
</compile_context>

<pallas_src>
import jax
import jax.numpy as jnp
import numpy as np
from jax.experimental import pallas as pl
from jax.experimental.pallas import tpu as pltpu

D_IN = 100 * 100 * 3          # 30000, fixed by the first nn.Linear
D_PAD = 240 * 128             # 30720 -> lane aligned, splits nicely
N_SPLIT = 2                   # leading parallel axis -> both TCs on v7x
K_PER_SPLIT = D_PAD // N_SPLIT    # 15360
TK = 5120                     # 3 reduction steps per split; 5.24 MB bf16 w1 tile
K_STEPS = K_PER_SPLIT // TK   # 3
H1 = 512


# --------------- Kernel 1: fc1 partial accumulation (K split across cores) ---
def fc1_partial_kernel(x_ref, w1_ref, part_ref):
    k = pl.program_id(1)

    @pl.when(k == 0)
    def _():
        part_ref[...] = jnp.zeros_like(part_ref)

    # bf16 x bf16 -> f32 accumulation on the MXU
    part_ref[...] += jnp.dot(x_ref[...], w1_ref[...],
                             preferred_element_type=jnp.float32)


# --------------- Kernel 2: combine partials + fc2..fc6 + softmax (VMEM) ------
def tail_kernel(part_ref, b1_ref,
                w2_ref, b2_ref, w3_ref, b3_ref, w4_ref, b4_ref,
                w5_ref, b5_ref, w6_ref, b6_ref, o_ref):
    p = part_ref[...]                                  # (N_SPLIT, B, 512) f32
    h = jnp.maximum(p[0] + p[1] + b1_ref[...], 0.0)
    for w_r, b_r in ((w2_ref, b2_ref), (w3_ref, b3_ref),
                     (w4_ref, b4_ref), (w5_ref, b5_ref)):
        h = jnp.maximum(
            jnp.dot(h.astype(jnp.bfloat16), w_r[...],
                    preferred_element_type=jnp.float32) + b_r[...], 0.0)
    logits = jnp.dot(h.astype(jnp.bfloat16), w6_ref[...],
                     preferred_element_type=jnp.float32) + b6_ref[...]
    # Softmax over dim=1 (the 2 classes)
    m = jnp.max(logits, axis=1, keepdims=True)
    e = jnp.exp(logits - m)
    o_ref[...] = e / jnp.sum(e, axis=1, keepdims=True)


# --------------- One-time parameter preprocessing (hoisted out of forward) ---
def prepare_params(params):
    """Pad w1 to D_PAD rows, cast all weights to bf16, ONCE (not per call)."""
    p = {}
    p['w1_pad'] = jnp.pad(
        params['w1'], ((0, D_PAD - D_IN), (0, 0))).astype(jnp.bfloat16)
    p['b1'] = params['b1'].astype(jnp.float32)
    for i in range(2, 7):
        p[f'w{i}'] = params[f'w{i}'].astype(jnp.bfloat16)
        p[f'b{i}'] = params[f'b{i}'].astype(jnp.float32)   # tiny; keep f32
    return p


# --------------- Wrapper ------------------------------------------------------
def neural_net_forward(x, prepped):
    B = x.shape[0]
    # torch.reshape(input, (-1, 100*100*3)); cast to bf16 BEFORE padding.
    x_b = x.reshape(B, D_IN).astype(jnp.bfloat16)
    x_pad = jnp.pad(x_b, ((0, 0), (0, D_PAD - D_IN)))

    partials = pl.pallas_call(
        fc1_partial_kernel,
        out_shape=jax.ShapeDtypeStruct((N_SPLIT, B, H1), jnp.float32),
        grid_spec=pltpu.PrefetchScalarGridSpec(
            num_scalar_prefetch=0,
            grid=(N_SPLIT, K_STEPS),
            in_specs=[
                # x: (B, TK) bf16 tile, K index = c*K_STEPS + k
                pl.BlockSpec((B, TK), lambda c, k: (0, c * K_STEPS + k)),
                # w1: (TK, 512) bf16 tile
                pl.BlockSpec((TK, H1), lambda c, k: (c * K_STEPS + k, 0)),
            ],
            # Each core-slice owns its own (B, 512) partial slab; block index is
            # constant over the "arbitrary" k axis -> VMEM-resident accumulator.
            out_specs=pl.BlockSpec((None, B, H1), lambda c, k: (c, 0, 0)),
        ),
        compiler_params=pltpu.CompilerParams(
            dimension_semantics=("parallel", "arbitrary"),
            vmem_limit_bytes=32 << 20,   # need ~10.6 MB; safe on v5e/v6e/v7x
        ),
    )(x_pad, prepped['w1_pad'])

    # Tiny combine + tail kernel: everything whole-array in VMEM (<1 MB).
    return pl.pallas_call(
        tail_kernel,
        out_shape=jax.ShapeDtypeStruct((B, 2), jnp.float32),
    )(partials, prepped['b1'],
      prepped['w2'], prepped['b2'], prepped['w3'], prepped['b3'],
      prepped['w4'], prepped['b4'], prepped['w5'], prepped['b5'],
      prepped['w6'], prepped['b6'])


# --------------- Deterministic parameter init (PyTorch-Linear-like) ----------
def init_params(key):
    dims = [(D_IN, 512), (512, 512), (512, 256), (256, 128), (128, 64), (64, 2)]
    params = {}
    for i, (fan_in, fan_out) in enumerate(dims, start=1):
        key, k1, k2 = jax.random.split(key, 3)
        bound = 1.0 / float(np.sqrt(fan_in))
        params[f'w{i}'] = jax.random.uniform(
            k1, (fan_in, fan_out), jnp.float32, -bound, bound)
        params[f'b{i}'] = jax.random.uniform(
            k2, (1, fan_out), jnp.float32, -bound, bound)
    return params


# --------------- Pure-JAX reference (mirrors the kernel's bf16 operands) -----
def ref_forward(x, params):
    B = x.shape[0]
    h = x.reshape(B, D_IN).astype(jnp.float32)

    def bdot(a, w):
        a_b = a.astype(jnp.bfloat16).astype(jnp.float32)
        w_b = w.astype(jnp.bfloat16).astype(jnp.float32)
        return jnp.dot(a_b, w_b, precision=jax.lax.Precision.HIGHEST)

    h = jnp.maximum(bdot(h, params['w1']) + params['b1'], 0.0)
    for i in range(2, 6):
        h = jnp.maximum(bdot(h, params[f'w{i}']) + params[f'b{i}'], 0.0)
    logits = bdot(h, params['w6']) + params['b6']
    return jax.nn.softmax(logits, axis=1)


if __name__ == "__main__":
    key = jax.random.PRNGKey(0)
    kp, kx = jax.random.split(key)
    params = init_params(kp)
    prepped = prepare_params(params)            # hoisted pad + bf16 casts
    x = jax.random.normal(kx, (2, 3, 100, 100), jnp.float32)  # NCHW

    fwd = jax.jit(neural_net_forward)
    out = jax.block_until_ready(fwd(x, prepped))

    ref = jax.block_until_ready(ref_forward(x, params))
    # Tolerance relaxed vs 1e-5 because operands are streamed/computed in bf16
    # (accumulation stays f32 in both kernel and reference).
    np.testing.assert_allclose(np.asarray(out), np.asarray(ref),
                               rtol=1e-2, atol=1e-2)
    print("KERNEL_OK")
</pallas_src>

<mosaic_0001>
module attributes {stable_mosaic.version = 11 : i64} {
  func.func @tail_kernel(%arg0: memref<2x2x512xf32, #tpu.memory_space<vmem>>, %arg1: memref<1x512xf32, #tpu.memory_space<vmem>>, %arg2: memref<512x512xbf16, #tpu.memory_space<vmem>>, %arg3: memref<1x512xf32, #tpu.memory_space<vmem>>, %arg4: memref<512x256xbf16, #tpu.memory_space<vmem>>, %arg5: memref<1x256xf32, #tpu.memory_space<vmem>>, %arg6: memref<256x128xbf16, #tpu.memory_space<vmem>>, %arg7: memref<1x128xf32, #tpu.memory_space<vmem>>, %arg8: memref<128x64xbf16, #tpu.memory_space<vmem>>, %arg9: memref<1x64xf32, #tpu.memory_space<vmem>>, %arg10: memref<64x2xbf16, #tpu.memory_space<vmem>>, %arg11: memref<1x2xf32, #tpu.memory_space<vmem>>, %arg12: memref<2x2xf32, #tpu.memory_space<vmem>>) attributes {dimension_semantics = [], scalar_prefetch = 0 : i64, scratch_operands = 0 : i64, tpu.core_type = #tpu.core_type<tc>} {
    %c0 = arith.constant 0 : index
    %c0_0 = arith.constant 0 : index
    %c0_1 = arith.constant 0 : index
    %0 = vector.load %arg0[%c0, %c0_0, %c0_1] : memref<2x2x512xf32, #tpu.memory_space<vmem>>, vector<2x2x512xf32>
    %1 = vector.extract_strided_slice %0 {offsets = [0, 0, 0], sizes = [1, 2, 512], strides = [1, 1, 1]} : vector<2x2x512xf32> to vector<1x2x512xf32>
    %2 = vector.shape_cast %1 : vector<1x2x512xf32> to vector<2x512xf32>
    %3 = vector.extract_strided_slice %0 {offsets = [1, 0, 0], sizes = [1, 2, 512], strides = [1, 1, 1]} : vector<2x2x512xf32> to vector<1x2x512xf32>
    %4 = vector.shape_cast %3 : vector<1x2x512xf32> to vector<2x512xf32>
    %5 = arith.addf %2, %4 : vector<2x512xf32>
    %c0_2 = arith.constant 0 : index
    %c0_3 = arith.constant 0 : index
    %6 = vector.load %arg1[%c0_2, %c0_3] : memref<1x512xf32, #tpu.memory_space<vmem>>, vector<1x512xf32>
    %7 = vector.broadcast %6 : vector<1x512xf32> to vector<2x512xf32>
    %8 = arith.addf %5, %7 : vector<2x512xf32>
    %cst = arith.constant 0.000000e+00 : f32
    %9 = vector.broadcast %cst : f32 to vector<2x512xf32>
    %10 = arith.maximumf %8, %9 : vector<2x512xf32>
    %11 = arith.truncf %10 : vector<2x512xf32> to vector<2x512xbf16>
    %c0_4 = arith.constant 0 : index
    %c0_5 = arith.constant 0 : index
    %12 = vector.load %arg2[%c0_4, %c0_5] : memref<512x512xbf16, #tpu.memory_space<vmem>>, vector<512x512xbf16>
    %cst_6 = arith.constant dense<0.000000e+00> : vector<2x512xf32>
    %13 = tpu.matmul %11, %12, %cst_6 {dimension_numbers = #tpu.dot_dimension_numbers<[1], [0], [0], [1], [0, 0, 1, 1], [], []>} : vector<2x512xbf16>, vector<512x512xbf16>, vector<2x512xf32> -> vector<2x512xf32>
    %c0_7 = arith.constant 0 : index
    %c0_8 = arith.constant 0 : index
    %14 = vector.load %arg3[%c0_7, %c0_8] : memref<1x512xf32, #tpu.memory_space<vmem>>, vector<1x512xf32>
    %15 = vector.broadcast %14 : vector<1x512xf32> to vector<2x512xf32>
    %16 = arith.addf %13, %15 : vector<2x512xf32>
    %cst_9 = arith.constant 0.000000e+00 : f32
    %17 = vector.broadcast %cst_9 : f32 to vector<2x512xf32>
    %18 = arith.maximumf %16, %17 : vector<2x512xf32>
    %19 = arith.truncf %18 : vector<2x512xf32> to vector<2x512xbf16>
    %c0_10 = arith.constant 0 : index
    %c0_11 = arith.constant 0 : index
    %20 = vector.load %arg4[%c0_10, %c0_11] : memref<512x256xbf16, #tpu.memory_space<vmem>>, vector<512x256xbf16>
    %cst_12 = arith.constant dense<0.000000e+00> : vector<2x256xf32>
    %21 = tpu.matmul %19, %20, %cst_12 {dimension_numbers = #tpu.dot_dimension_numbers<[1], [0], [0], [1], [0, 0, 1, 1], [], []>} : vector<2x512xbf16>, vector<512x256xbf16>, vector<2x256xf32> -> vector<2x256xf32>
    %c0_13 = arith.constant 0 : index
    %c0_14 = arith.constant 0 : index
    %22 = vector.load %arg5[%c0_13, %c0_14] : memref<1x256xf32, #tpu.memory_space<vmem>>, vector<1x256xf32>
    %23 = vector.broadcast %22 : vector<1x256xf32> to vector<2x256xf32>
    %24 = arith.addf %21, %23 : vector<2x256xf32>
    %cst_15 = arith.constant 0.000000e+00 : f32
    %25 = vector.broadcast %cst_15 : f32 to vector<2x256xf32>
    %26 = arith.maximumf %24, %25 : vector<2x256xf32>
    %27 = arith.truncf %26 : vector<2x256xf32> to vector<2x256xbf16>
    %c0_16 = arith.constant 0 : index
    %c0_17 = arith.constant 0 : index
    %28 = vector.load %arg6[%c0_16, %c0_17] : memref<256x128xbf16, #tpu.memory_space<vmem>>, vector<256x128xbf16>
    %cst_18 = arith.constant dense<0.000000e+00> : vector<2x128xf32>
    %29 = tpu.matmul %27, %28, %cst_18 {dimension_numbers = #tpu.dot_dimension_numbers<[1], [0], [0], [1], [0, 0, 1, 1], [], []>} : vector<2x256xbf16>, vector<256x128xbf16>, vector<2x128xf32> -> vector<2x128xf32>
    %c0_19 = arith.constant 0 : index
    %c0_20 = arith.constant 0 : index
    %30 = vector.load %arg7[%c0_19, %c0_20] : memref<1x128xf32, #tpu.memory_space<vmem>>, vector<1x128xf32>
    %31 = vector.broadcast %30 : vector<1x128xf32> to vector<2x128xf32>
    %32 = arith.addf %29, %31 : vector<2x128xf32>
    %cst_21 = arith.constant 0.000000e+00 : f32
    %33 = vector.broadcast %cst_21 : f32 to vector<2x128xf32>
    %34 = arith.maximumf %32, %33 : vector<2x128xf32>
    %35 = arith.truncf %34 : vector<2x128xf32> to vector<2x128xbf16>
    %c0_22 = arith.constant 0 : index
    %c0_23 = arith.constant 0 : index
    %36 = vector.load %arg8[%c0_22, %c0_23] : memref<128x64xbf16, #tpu.memory_space<vmem>>, vector<128x64xbf16>
    %cst_24 = arith.constant dense<0.000000e+00> : vector<2x64xf32>
    %37 = tpu.matmul %35, %36, %cst_24 {dimension_numbers = #tpu.dot_dimension_numbers<[1], [0], [0], [1], [0, 0, 1, 1], [], []>} : vector<2x128xbf16>, vector<128x64xbf16>, vector<2x64xf32> -> vector<2x64xf32>
    %c0_25 = arith.constant 0 : index
    %c0_26 = arith.constant 0 : index
    %38 = vector.load %arg9[%c0_25, %c0_26] : memref<1x64xf32, #tpu.memory_space<vmem>>, vector<1x64xf32>
    %39 = vector.broadcast %38 : vector<1x64xf32> to vector<2x64xf32>
    %40 = arith.addf %37, %39 : vector<2x64xf32>
    %cst_27 = arith.constant 0.000000e+00 : f32
    %41 = vector.broadcast %cst_27 : f32 to vector<2x64xf32>
    %42 = arith.maximumf %40, %41 : vector<2x64xf32>
    %43 = arith.truncf %42 : vector<2x64xf32> to vector<2x64xbf16>
    %c0_28 = arith.constant 0 : index
    %c0_29 = arith.constant 0 : index
    %44 = vector.load %arg10[%c0_28, %c0_29] : memref<64x2xbf16, #tpu.memory_space<vmem>>, vector<64x2xbf16>
    %cst_30 = arith.constant dense<0.000000e+00> : vector<2x2xf32>
    %45 = tpu.matmul %43, %44, %cst_30 {dimension_numbers = #tpu.dot_dimension_numbers<[1], [0], [0], [1], [0, 0, 1, 1], [], []>} : vector<2x64xbf16>, vector<64x2xbf16>, vector<2x2xf32> -> vector<2x2xf32>
    %c0_31 = arith.constant 0 : index
    %c0_32 = arith.constant 0 : index
    %46 = vector.load %arg11[%c0_31, %c0_32] : memref<1x2xf32, #tpu.memory_space<vmem>>, vector<1x2xf32>
    %47 = vector.broadcast %46 : vector<1x2xf32> to vector<2x2xf32>
    %48 = arith.addf %45, %47 : vector<2x2xf32>
    %cst_33 = arith.constant dense<0xFF800000> : vector<2xf32>
    %49 = vector.multi_reduction <maximumf>, %48, %cst_33 [1] : vector<2x2xf32> to vector<2xf32>
    %50 = vector.shape_cast %49 : vector<2xf32> to vector<2x1xf32>
    %51 = vector.broadcast %50 : vector<2x1xf32> to vector<2x2xf32>
    %52 = arith.subf %48, %51 : vector<2x2xf32>
    %53 = math.exp %52 : vector<2x2xf32>
    %cst_34 = arith.constant dense<0.000000e+00> : vector<2xf32>
    %54 = vector.multi_reduction <add>, %53, %cst_34 [1] : vector<2x2xf32> to vector<2xf32>
    %55 = vector.shape_cast %54 : vector<2xf32> to vector<2x1xf32>
    %56 = vector.broadcast %55 : vector<2x1xf32> to vector<2x2xf32>
    %57 = arith.divf %53, %56 : vector<2x2xf32>
    %c0_35 = arith.constant 0 : index
    %c0_36 = arith.constant 0 : index
    %58 = vector.load %arg12[%c0_35, %c0_36] : memref<2x2xf32, #tpu.memory_space<vmem>>, vector<2x2xf32>
    tpu.vector_store %arg12[%c0_35, %c0_36], %57 {strides = array<i32>} : memref<2x2xf32, #tpu.memory_space<vmem>>, vector<2x2xf32>,
    return
  }
}

module attributes {stable_mosaic.version = 11 : i64} {
  func.func @fc1_partial_kernel(%arg0: i32, %arg1: i32, %arg2: memref<2x5120xbf16, #tpu.memory_space<vmem>>, %arg3: memref<5120x512xbf16, #tpu.memory_space<vmem>>, %arg4: memref<1x2x512xf32, #tpu.memory_space<vmem>>) attributes {dimension_semantics = [#tpu.dimension_semantics<parallel>, #tpu.dimension_semantics<arbitrary>], iteration_bounds = array<i64: 2, 3>, scalar_prefetch = 0 : i64, scratch_operands = 0 : i64, tpu.core_type = #tpu.core_type<tc>, window_params = [{transform_indices = @transform_0, window_bounds = array<i64: 2, 5120>}, {transform_indices = @transform_1, window_bounds = array<i64: 5120, 512>}, {transform_indices = @transform_2, window_bounds = array<i64: 1, 2, 512>}]} {
    %c0_i32 = arith.constant 0 : i32
    %0 = arith.cmpi eq, %arg1, %c0_i32 : i32
    %1 = arith.extui %0 : i1 to i32
    %c0_i32_0 = arith.constant 0 : i32
    %2 = arith.cmpi ne, %1, %c0_i32_0 : i32
    scf.if %2 {
      %cst_10 = arith.constant 0.000000e+00 : f32
      %12 = vector.broadcast %cst_10 : f32 to vector<2x512xf32>
      %c0_11 = arith.constant 0 : index
      %c0_12 = arith.constant 0 : index
      %c0_13 = arith.constant 0 : index
      %13 = vector.load %arg4[%c0_11, %c0_12, %c0_13] : memref<1x2x512xf32, #tpu.memory_space<vmem>>, vector<1x2x512xf32>
      %14 = vector.shape_cast %13 : vector<1x2x512xf32> to vector<2x512xf32>
      %15 = vector.shape_cast %12 : vector<2x512xf32> to vector<1x2x512xf32>
      tpu.vector_store %arg4[%c0_11, %c0_12, %c0_13], %15 {strides = array<i32>} : memref<1x2x512xf32, #tpu.memory_space<vmem>>, vector<1x2x512xf32>,
    } else {
    }
    %c0 = arith.constant 0 : index
    %c0_1 = arith.constant 0 : index
    %c0_2 = arith.constant 0 : index
    %3 = vector.load %arg4[%c0, %c0_1, %c0_2] : memref<1x2x512xf32, #tpu.memory_space<vmem>>, vector<1x2x512xf32>
    %4 = vector.shape_cast %3 : vector<1x2x512xf32> to vector<2x512xf32>
    %c0_3 = arith.constant 0 : index
    %c0_4 = arith.constant 0 : index
    %5 = vector.load %arg2[%c0_3, %c0_4] : memref<2x5120xbf16, #tpu.memory_space<vmem>>, vector<2x5120xbf16>
    %c0_5 = arith.constant 0 : index
    %c0_6 = arith.constant 0 : index
    %6 = vector.load %arg3[%c0_5, %c0_6] : memref<5120x512xbf16, #tpu.memory_space<vmem>>, vector<5120x512xbf16>
    %cst = arith.constant dense<0.000000e+00> : vector<2x512xf32>
    %7 = tpu.matmul %5, %6, %cst {dimension_numbers = #tpu.dot_dimension_numbers<[1], [0], [0], [1], [0, 0, 1, 1], [], []>} : vector<2x5120xbf16>, vector<5120x512xbf16>, vector<2x512xf32> -> vector<2x512xf32>
    %8 = arith.addf %4, %7 : vector<2x512xf32>
    %c0_7 = arith.constant 0 : index
    %c0_8 = arith.constant 0 : index
    %c0_9 = arith.constant 0 : index
    %9 = vector.load %arg4[%c0_7, %c0_8, %c0_9] : memref<1x2x512xf32, #tpu.memory_space<vmem>>, vector<1x2x512xf32>
    %10 = vector.shape_cast %9 : vector<1x2x512xf32> to vector<2x512xf32>
    %11 = vector.shape_cast %8 : vector<2x512xf32> to vector<1x2x512xf32>
    tpu.vector_store %arg4[%c0_7, %c0_8, %c0_9], %11 {strides = array<i32>} : memref<1x2x512xf32, #tpu.memory_space<vmem>>, vector<1x2x512xf32>,
    return
  }
  func.func @transform_0(%arg0: i32, %arg1: i32) -> (i32, i32) {
    %c3_i32 = arith.constant 3 : i32
    %0 = arith.muli %arg0, %c3_i32 : i32
    %1 = arith.addi %0, %arg1 : i32
    %c0_i32 = arith.constant 0 : i32
    %c0_i32_0 = arith.constant 0 : i32
    return %c0_i32, %1 : i32, i32
  }
  func.func @transform_1(%arg0: i32, %arg1: i32) -> (i32, i32) {
    %c3_i32 = arith.constant 3 : i32
    %0 = arith.muli %arg0, %c3_i32 : i32
    %1 = arith.addi %0, %arg1 : i32
    %c0_i32 = arith.constant 0 : i32
    %c0_i32_0 = arith.constant 0 : i32
    return %1, %c0_i32 : i32, i32
  }
  func.func @transform_2(%arg0: i32, %arg1: i32) -> (i32, i32, i32) {
    %c0_i32 = arith.constant 0 : i32
    %c0_i32_0 = arith.constant 0 : i32
    %c0_i32_1 = arith.constant 0 : i32
    return %arg0, %c0_i32, %c0_i32_0 : i32, i32, i32
  }
}

</mosaic_0001>

<bundles_post_ra>
// kernel: neural_net_forward.3
= control target key start
LH: loop header
LB: loop body
LE: loop exit
PB: predicated region body
PF: predicated region fallthrough
CT: control target
= control target key end

     0   :  { %17 = vsyncpa [#allocation3], 0  ;;  %s3605_s0 = inlined_call_operand.vmem [shape: f32[2,2,512], index: 0, kind: input, shape index: {}]   ;;  %s3606_s1 = inlined_call_operand.hbm [shape: f32[1,512], index: 1, kind: input, shape index: {}]   ;;  %s3607_s2 = inlined_call_operand.hbm [shape: bf16[512,512], index: 2, kind: input, shape index: {}]   ;;  %s3608_s3 = inlined_call_operand.hbm [shape: f32[1,512], index: 3, kind: input, shape index: {}]   ;;  %s3609_s4 = inlined_call_operand.hbm [shape: bf16[512,256], index: 4, kind: input, shape index: {}]   ;;  %s3610_s5 = inlined_call_operand.hbm [shape: f32[1,256], index: 5, kind: input, shape index: {}]   ;;  %s3611_s6 = inlined_call_operand.hbm [shape: bf16[256,128], index: 6, kind: input, shape index: {}]   ;;  %s3612_s7 = inlined_call_operand.hbm [shape: f32[1,128], index: 7, kind: input, shape index: {}]   ;;  %s3613_s8 = inlined_call_operand.vmem [shape: bf16[128,64], index: 8, kind: input, shape index: {}]   ;;  %s3614_s9 = inlined_call_operand.hbm [shape: f32[1,64], index: 9, kind: input, shape index: {}]   ;;  %s3615_s10 = inlined_call_operand.vmem [shape: bf16[64,2], index: 10, kind: input, shape index: {}]   ;;  %s3616_s11 = inlined_call_operand.hbm [shape: f32[1,2], index: 11, kind: input, shape index: {}]   ;;  %s3617_s12 = inlined_call_operand.hbm [shape: f32[2,2], index: 12, kind: output, shape index: {}]  }
   0x1   :  { %18 = vsyncpa [#allocation6], 0 }
   0x2   :  { %19 = vsyncpa [#allocation9], 0 }
   0x3   :  { %20 = vsyncpa [#allocation12], 0 }
   0x4   :  { %21 = vsyncpa [#allocation15], 0  ;;  %s40_s23 = sshll.u32 %s3607_s2, 4  ;;  %s41_s23 = int_to_ptr.hbm [resolvable:$true] %s40_s23 }
   0x5   :  { %22 = vsyncpa [#allocation4], 0  ;;  %s3417_s24 = smov [#allocation5]   ;;  %s64_s28 = sshll.u32 %s3609_s4, 4  ;;  %s65_s28 = int_to_ptr.hbm [resolvable:$true] %s64_s28 }
   0x6   :  { %s42_s25 = sshll.u32 %s3417_s24, 4  ;;  %s3418_s29 = smov 256   ;;  %s43_s25 = int_to_ptr.vmem [resolvable:$true] %s42_s25 }
   0x7   :  { %s3419_s30 = smov 16   ;;  %s3420_s13 = smov [#allocation8]  }
   0x8   :  { %48 = dma.hbm_to_vmem [thread:$0]  %s41_s23, 16384, %s43_s25, [#allocation6], %s3418_s29, %s3418_s29, %s3419_s30  }
   0x9   :  { %s66_s14 = sshll.u32 %s3420_s13, 4  ;;  %s3421_s15 = smov 128   ;;  %s67_s14 = int_to_ptr.vmem [resolvable:$true] %s66_s14 }
   0xa   :  { %s3422_s16 = smov 8   ;;  %s88_s18 = sshll.u32 %s3611_s6, 4  ;;  %s89_s18 = int_to_ptr.hbm [resolvable:$true] %s88_s18 }
   0xb   :  { %72 = dma.hbm_to_vmem [thread:$0]  %s65_s28, 8192, %s67_s14, [#allocation9], %s3421_s15, %s3421_s15, %s3422_s16  }
   0xc   :  { %s3423_s19 = smov [#allocation11]   ;;  %s115_s22 = sshll.u32 %s3614_s9, 4  ;;  %s116_s22 = int_to_ptr.hbm [resolvable:$true] %s115_s22 }
   0xd   :  { %s90_s20 = sshll.u32 %s3423_s19, 4  ;;  %s3424_s23 = smov 64   ;;  %s91_s20 = int_to_ptr.vmem [resolvable:$true] %s90_s20 }
   0xe   :  { %s3425_s24 = smov 4   ;;  %s3426_s25 = smov [#allocation14]  }
   0xf   :  { %96 = dma.hbm_to_vmem [thread:$0]  %s89_s18, 2048, %s91_s20, [#allocation12], %s3424_s23, %s3424_s23, %s3425_s24  }
  0x10   :  { %s117_s26 = sshll.u32 %s3426_s25, 4  ;;  %s30_s29 = sshll.u32 %s3606_s1, 4  ;;  %s118_s26 = int_to_ptr.vmem [resolvable:$true] %s117_s26  ;;  %s31_s29 = int_to_ptr.hbm [resolvable:$true] %s30_s29 }
  0x11   :  { %120 = dma.hbm_to_vmem [thread:$0]  %s116_s22, 16, %s118_s26, [#allocation15]  }
  0x12   :  { %s54_s13 = sshll.u32 %s3608_s3, 4  ;;  %s3427_s14 = smov [#allocation2]   ;;  %s55_s13 = int_to_ptr.hbm [resolvable:$true] %s54_s13 }
  0x13   :  { %s32_s15 = sshll.u32 %s3427_s14, 4  ;;  %s3428_s9 = smov [#allocation7]   ;;  %s33_s15 = int_to_ptr.vmem [resolvable:$true] %s32_s15 }
  0x14   :  { %35 = dma.hbm_to_vmem [thread:$0]  %s31_s29, 64, %s33_s15, [#allocation3]  }
  0x15   :  { %s56_s16 = sshll.u32 %s3428_s9, 4  ;;  %s78_s18 = sshll.u32 %s3610_s5, 4  ;;  %s57_s16 = int_to_ptr.vmem [resolvable:$true] %s56_s16  ;;  %s79_s18 = int_to_ptr.hbm [resolvable:$true] %s78_s18 }
  0x16   :  { %59 = dma.hbm_to_vmem [thread:$0]  %s55_s13, 64, %s57_s16, [#allocation6]  }
  0x17   :  { %s102_s20 = sshll.u32 %s3612_s7, 4  ;;  %s3429_s21 = smov [#allocation10]   ;;  %s103_s20 = int_to_ptr.hbm [resolvable:$true] %s102_s20 }
  0x18   :  { %s80_s3 = sshll.u32 %s3429_s21, 4  ;;  %s3430_s4 = smov [#allocation13]   ;;  %s81_s3 = int_to_ptr.vmem [resolvable:$true] %s80_s3 }
  0x19   :  { %83 = dma.hbm_to_vmem [thread:$0]  %s79_s18, 32, %s81_s3, [#allocation9]  }
  0x1a   :  { %s104_s22 = sshll.u32 %s3430_s4, 4  ;;  %s128_s25 = sshll.u32 %s3616_s11, 4  ;;  %s105_s22 = int_to_ptr.vmem [resolvable:$true] %s104_s22  ;;  %s129_s25 = int_to_ptr.hbm [resolvable:$true] %s128_s25 }
  0x1b   :  { %107 = dma.hbm_to_vmem [thread:$0]  %s103_s20, 16, %s105_s22, [#allocation12]  }
  0x1c   :  { %s3431_s5 = smov [#allocation16]  }
  0x1d   :  { %s130_s26 = sshll.u32 %s3431_s5, 4  ;;  %s131_s26 = int_to_ptr.vmem [resolvable:$true] %s130_s26 }
  0x1e   :  { %133 = dma.hbm_to_vmem [thread:$0]  %s129_s25, 16, %s131_s26, [#allocation15]  }
  0x1f   :  { %3405 = dma.done.wait [#allocation3], 64  }
  0x20   :  { %3406 = vsyncadd [#allocation3], 4294967232 }
  0x21   :  { %3407 = dma.done.wait [#allocation6], 16448  }
  0x22   :  { %3408 = vsyncadd [#allocation6], 4294950848 }
  0x23   :  { %3409 = dma.done.wait [#allocation9], 8224  }
  0x24   :  { %3410 = vsyncadd [#allocation9], 4294959072 }
  0x25   :  { %3411 = dma.done.wait [#allocation12], 2064  }
  0x26   :  { %3412 = vsyncadd [#allocation12], 4294965232 }
  0x27   :  { %3413 = dma.done.wait [#allocation15], 32  }
  0x28   :  { %3414 = vsyncadd [#allocation15], 4294967264  ;;  %v2155_v0 = vld [vmem:[#allocation5 + $0xe0] sm:$0xf]  ;;  %v2952_v1 = vld [vmem:[#allocation5 + $0xec] sm:$0xf0] }
  0x29   :  { %v2283_v2 = vld [vmem:[#allocation5 + $0x1e0] sm:$0xf]  ;;  %v2156_v3 = vor.u32 %v2952_v1, %v2155_v0  ;;  %v2984_v4 = vld [vmem:[#allocation5 + $0x1ec] sm:$0xf0]  ;;  %vm183_vm0 = vcmask 1041408   ;;  %vm185_vm1 = vcmask 1045508  }
  0x2a   :  { %v2411_v5 = vld [vmem:[#allocation5 + $0x2e0] sm:$0xf]  ;;  %v3016_v6 = vld [vmem:[#allocation5 + $0x2ec] sm:$0xf0]  ;;  %v2284_v7 = vor.u32 %v2984_v4, %v2283_v2  ;;  %vm187_vm2 = vcmask 1043456   ;;  %vm1977_vm3 = vcmask 523264  }
  0x2b   :  { %v2412_v8 = vor.u32 %v3016_v6, %v2411_v5  ;;  %v2539_v9 = vld [vmem:[#allocation5 + $0x3e0] sm:$0xf]  ;;  %v3048_v10 = vld [vmem:[#allocation5 + $0x3ec] sm:$0xf0]  ;;  %984 = vmatpush.bf16.msra.mxu0 %v2156_v3  ;;  %vm1994_vm4 = vcmask 9216   ;;  %s2027_s27 = sshll.u32 %s3617_s12, 4  ;;  %s2028_s27 = int_to_ptr.hbm [resolvable:$true] %s2027_s27 }
  0x2c   :  { %v2139_v11 = vld [vmem:[#allocation5 + $0xc0] sm:$0xf]  ;;  %v2540_v12 = vor.u32 %v3048_v10, %v2539_v9  ;;  %v2948_v13 = vld [vmem:[#allocation5 + $0xcc] sm:$0xf0]  ;;  %997 = vmatpush.bf16.msra.mxu1 %v2284_v7 }
  0x2d   :  { %v2267_v14 = vld [vmem:[#allocation5 + $0x1c0] sm:$0xf]  ;;  %v2980_v15 = vld [vmem:[#allocation5 + $0x1cc] sm:$0xf0]  ;;  %1010 = vmatpush.bf16.msra.mxu2 %v2412_v8  ;;  %v2140_v16 = vor.u32 %v2948_v13, %v2139_v11 }
  0x2e   :  { %v2268_v17 = vor.u32 %v2980_v15, %v2267_v14  ;;  %v2395_v18 = vld [vmem:[#allocation5 + $0x2c0] sm:$0xf]  ;;  %v3012_v19 = vld [vmem:[#allocation5 + $0x2cc] sm:$0xf0]  ;;  %1023 = vmatpush.bf16.msra.mxu3 %v2540_v12 }
  0x2f   :  { %v2523_v20 = vld [vmem:[#allocation5 + $0x3c0] sm:$0xf]  ;;  %v2396_v21 = vor.u32 %v3012_v19, %v2395_v18  ;;  %v3044_v22 = vld [vmem:[#allocation5 + $0x3cc] sm:$0xf0]  ;;  %985 = vmatpush.bf16.msra.mxu0 %v2140_v16 }
  0x30   :  { %v2123_v23 = vld [vmem:[#allocation5 + $0xa0] sm:$0xf]  ;;  %v2944_v24 = vld [vmem:[#allocation5 + $0xac] sm:$0xf0]  ;;  %v2524_v25 = vor.u32 %v3044_v22, %v2523_v20  ;;  %998 = vmatpush.bf16.msra.mxu1 %v2268_v17 }
  0x31   :  { %v2251_v26 = vld [vmem:[#allocation5 + $0x1a0] sm:$0xf]  ;;  %v2976_v27 = vld [vmem:[#allocation5 + $0x1ac] sm:$0xf0]  ;;  %v2124_v29 = vor.u32 %v2944_v24, %v2123_v23  ;;  %1011 = vmatpush.bf16.msra.mxu2 %v2396_v21 }
  0x32   :  { %v2379_v28 = vld [vmem:[#allocation5 + $0x2a0] sm:$0xf]  ;;  %v3008_v30 = vld [vmem:[#allocation5 + $0x2ac] sm:$0xf0]  ;;  %v2252_v33 = vor.u32 %v2976_v27, %v2251_v26  ;;  %1024 = vmatpush.bf16.msra.mxu3 %v2524_v25 }
  0x33   :  { %v2507_v31 = vld [vmem:[#allocation5 + $0x3a0] sm:$0xf]  ;;  %v3040_v32 = vld [vmem:[#allocation5 + $0x3ac] sm:$0xf0]  ;;  %v2380_v34 = vor.u32 %v3008_v30, %v2379_v28  ;;  %986 = vmatpush.bf16.msra.mxu0 %v2124_v29  ;;  %v2950_v28 = vld [vmem:[#allocation5 + $0xe4] sm:$0xf] }
  0x34   :  { %v2107_v35 = vld [vmem:[#allocation5 + $0x80] sm:$0xf]  ;;  %v2940_v36 = vld [vmem:[#allocation5 + $0x8c] sm:$0xf0]  ;;  %v2508_v38 = vor.u32 %v3040_v32, %v2507_v31  ;;  %999 = vmatpush.bf16.msra.mxu1 %v2252_v33  ;;  %v2157_v29 = vld [vmem:[#allocation5 + $0xf0] sm:$0xf0] }
  0x35   :  { %v2235_v37 = vld [vmem:[#allocation5 + $0x180] sm:$0xf]  ;;  %v2972_v39 = vld [vmem:[#allocation5 + $0x18c] sm:$0xf0]  ;;  %v2108_v44 = vor.u32 %v2940_v36, %v2107_v35  ;;  %1012 = vmatpush.bf16.msra.mxu2 %v2380_v34  ;;  %v2982_v30 = vld [vmem:[#allocation5 + $0x1e4] sm:$0xf] }
  0x36   :  { %v2363_v40 = vld [vmem:[#allocation5 + $0x280] sm:$0xf]  ;;  %v3004_v41 = vld [vmem:[#allocation5 + $0x28c] sm:$0xf0]  ;;  %v2236_v45 = vor.u32 %v2972_v39, %v2235_v37  ;;  %1025 = vmatpush.bf16.msra.mxu3 %v2508_v38  ;;  %v2285_v31 = vld [vmem:[#allocation5 + $0x1f0] sm:$0xf0] }
  0x37   :  { %v2491_v42 = vld [vmem:[#allocation5 + $0x380] sm:$0xf]  ;;  %v3036_v43 = vld [vmem:[#allocation5 + $0x38c] sm:$0xf0]  ;;  %v2364_v46 = vor.u32 %v3004_v41, %v2363_v40  ;;  %987 = vmatpush.bf16.msra.mxu0 %v2108_v44  ;;  %v3014_v32 = vld [vmem:[#allocation5 + $0x2e4] sm:$0xf] }
  0x38   :  { %v2091_v47 = vld [vmem:[#allocation5 + $0x60] sm:$0xf]  ;;  %v2936_v48 = vld [vmem:[#allocation5 + $0x6c] sm:$0xf0]  ;;  %v2492_v50 = vor.u32 %v3036_v43, %v2491_v42  ;;  %1000 = vmatpush.bf16.msra.mxu1 %v2236_v45  ;;  %v2413_v33 = vld [vmem:[#allocation5 + $0x2f0] sm:$0xf0] }
  0x39   :  { %v2219_v49 = vld [vmem:[#allocation5 + $0x160] sm:$0xf]  ;;  %v2968_v51 = vld [vmem:[#allocation5 + $0x16c] sm:$0xf0]  ;;  %v2092_v56 = vor.u32 %v2936_v48, %v2091_v47  ;;  %1013 = vmatpush.bf16.msra.mxu2 %v2364_v46  ;;  %v3046_v37 = vld [vmem:[#allocation5 + $0x3e4] sm:$0xf]  ;;  %v2160_v47 = vor.u32 %v2950_v28, %v2157_v29  ;;  %v2288_v48 = vor.u32 %v2982_v30, %v2285_v31 }
  0x3a   :  { %v2347_v52 = vld [vmem:[#allocation5 + $0x260] sm:$0xf]  ;;  %v3000_v53 = vld [vmem:[#allocation5 + $0x26c] sm:$0xf0]  ;;  %v2220_v57 = vor.u32 %v2968_v51, %v2219_v49  ;;  %1026 = vmatpush.bf16.msra.mxu3 %v2492_v50  ;;  %v2541_v38 = vld [vmem:[#allocation5 + $0x3f0] sm:$0xf0] }
  0x3b   :  { %v2475_v54 = vld [vmem:[#allocation5 + $0x360] sm:$0xf]  ;;  %v3032_v55 = vld [vmem:[#allocation5 + $0x36c] sm:$0xf0]  ;;  %v2348_v58 = vor.u32 %v3000_v53, %v2347_v52  ;;  %988 = vmatpush.bf16.msra.mxu0 %v2092_v56  ;;  %v174_v39 = vld [vmem:[#allocation2] sm:$0xf]  ;;  %v2416_v52 = vor.u32 %v3014_v32, %v2413_v33  ;;  %v2544_v56 = vor.u32 %v3046_v37, %v2541_v38 }
  0x3c   :  { %v2075_v59 = vld [vmem:[#allocation5 + $0x40] sm:$0xf]  ;;  %v2932_v60 = vld [vmem:[#allocation5 + $0x4c] sm:$0xf0]  ;;  %v2476_v62 = vor.u32 %v3032_v55, %v2475_v54  ;;  %1001 = vmatpush.bf16.msra.mxu1 %v2220_v57  ;;  %v2946_v41 = vld [vmem:[#allocation5 + $0xc4] sm:$0xf] }
  0x3d   :  { %v2203_v61 = vld [vmem:[#allocation5 + $0x140] sm:$0xf]  ;;  %v2964_v63 = vld [vmem:[#allocation5 + $0x14c] sm:$0xf0]  ;;  %v2076_v4 = vor.u32 %v2932_v60, %v2075_v59  ;;  %1014 = vmatpush.bf16.msra.mxu2 %v2348_v58  ;;  %v171_v42 = vld [vmem:[%s3605_s0] sm:$0xff]  ;;  %v176_v44 = vperm.slane %v174_v39, 0 }
  0x3e   :  { %v2331_v0 = vld [vmem:[#allocation5 + $0x240] sm:$0xf]  ;;  %v2996_v1 = vld [vmem:[#allocation5 + $0x24c] sm:$0xf0]  ;;  %v2204_v6 = vor.u32 %v2964_v63, %v2203_v61  ;;  %1027 = vmatpush.bf16.msra.mxu3 %v2476_v62  ;;  %v177_v45 = vperm.slane %v174_v39, 1  ;;  %v178_v46 = vperm.slane %v174_v39, 2 }
  0x3f   :  { %v2459_v2 = vld [vmem:[#allocation5 + $0x340] sm:$0xf]  ;;  %v3028_v3 = vld [vmem:[#allocation5 + $0x34c] sm:$0xf0]  ;;  %v2332_v7 = vor.u32 %v2996_v1, %v2331_v0  ;;  %989 = vmatpush.bf16.msra.mxu0 %v2076_v4  ;;  %v2141_v49 = vld [vmem:[#allocation5 + $0xd0] sm:$0xf0] }
  0x40   :  { %v2059_v5 = vld [vmem:[#allocation5 + $0x20] sm:$0xf]  ;;  %v2928_v8 = vld [vmem:[#allocation5 + $0x2c] sm:$0xf0]  ;;  %v2460_v11 = vor.u32 %v3028_v3, %v2459_v2  ;;  %1002 = vmatpush.bf16.msra.mxu1 %v2204_v6  ;;  %v2978_v50 = vld [vmem:[#allocation5 + $0x1c4] sm:$0xf]  ;;  %v2144_v0 = vor.u32 %v2946_v41, %v2141_v49 }
  0x41   :  { %v2187_v9 = vld [vmem:[#allocation5 + $0x120] sm:$0xf]  ;;  %v2960_v10 = vld [vmem:[#allocation5 + $0x12c] sm:$0xf0]  ;;  %v2060_v18 = vor.u32 %v2928_v8, %v2059_v5  ;;  %1015 = vmatpush.bf16.msra.mxu2 %v2332_v7  ;;  %v179_v51 = vperm.slane %v174_v39, 3  ;;  %v180_v54 = vrot.slane %v177_v45, 6 }
  0x42   :  { %v2315_v12 = vld [vmem:[#allocation5 + $0x220] sm:$0xf]  ;;  %v2992_v13 = vld [vmem:[#allocation5 + $0x22c] sm:$0xf0]  ;;  %v2188_v22 = vor.u32 %v2960_v10, %v2187_v9  ;;  %1028 = vmatpush.bf16.msra.mxu3 %v2460_v11  ;;  %v2269_v53 = vld [vmem:[#allocation5 + $0x1d0] sm:$0xf0] }
  0x43   :  { %v2443_v14 = vld [vmem:[#allocation5 + $0x320] sm:$0xf]  ;;  %v3024_v15 = vld [vmem:[#allocation5 + $0x32c] sm:$0xf0]  ;;  %v2316_v23 = vor.u32 %v2992_v13, %v2315_v12  ;;  %990 = vmatpush.bf16.msra.mxu0 %v2060_v18  ;;  %v181_v55 = vrot.slane %v178_v46, 4  ;;  %v182_v60 = vrot.slane %v179_v51, 2  ;;  %v184_v63 = vsel %vm183_vm0, %v176_v44, %v180_v54 }
  0x44   :  { %v2043_v16 = vld [vmem:[#allocation5] sm:$0xf]  ;;  %v2924_v17 = vld [vmem:[#allocation5 + $0xc] sm:$0xf0]  ;;  %v2444_v27 = vor.u32 %v3024_v15, %v2443_v14  ;;  %1003 = vmatpush.bf16.msra.mxu1 %v2188_v22  ;;  %v3010_v57 = vld [vmem:[#allocation5 + $0x2c4] sm:$0xf]  ;;  %v2272_v2 = vor.u32 %v2978_v50, %v2269_v53 }
  0x45   :  { %v2171_v19 = vld [vmem:[#allocation5 + $0x100] sm:$0xf]  ;;  %v2956_v20 = vld [vmem:[#allocation5 + $0x10c] sm:$0xf0]  ;;  %v2044_v34 = vor.u32 %v2924_v17, %v2043_v16  ;;  %1016 = vmatpush.bf16.msra.mxu2 %v2316_v23  ;;  %v2397_v58 = vld [vmem:[#allocation5 + $0x2d0] sm:$0xf0]  ;;  %v186_v1 = vsel %vm185_vm1, %v181_v55, %v182_v60 }
  0x46   :  { %v2299_v21 = vld [vmem:[#allocation5 + $0x200] sm:$0xf]  ;;  %v2988_v24 = vld [vmem:[#allocation5 + $0x20c] sm:$0xf0]  ;;  %v2172_v35 = vor.u32 %v2956_v20, %v2171_v19  ;;  %1029 = vmatpush.bf16.msra.mxu3 %v2444_v27  ;;  %v3042_v61 = vld [vmem:[#allocation5 + $0x3c4] sm:$0xf]  ;;  %v2400_v3 = vor.u32 %v3010_v57, %v2397_v58  ;;  %v188_v4 = vsel %vm187_vm2, %v184_v63, %v186_v1 }
  0x47   :  { %v2427_v25 = vld [vmem:[#allocation5 + $0x300] sm:$0xf]  ;;  %v3020_v26 = vld [vmem:[#allocation5 + $0x30c] sm:$0xf0]  ;;  %v2300_v36 = vor.u32 %v2988_v24, %v2299_v21  ;;  %991 = vmatpush.bf16.msra.mxu0 %v2044_v34  ;;  %v2525_v62 = vld [vmem:[#allocation5 + $0x3d0] sm:$0xf0] }
  0x48   :  { %v2428_v40 = vor.u32 %v3020_v26, %v2427_v25  ;;  %v172_v43 = vld [vmem:[%s3605_s0 + $0x8] sm:$0xff]  ;;  %1004 = vmatpush.bf16.msra.mxu1 %v2172_v35  ;;  %v2942_v5 = vld [vmem:[#allocation5 + $0xa4] sm:$0xf]  ;;  %v2125_v6 = vld [vmem:[#allocation5 + $0xb0] sm:$0xf0]  ;;  %v2528_v8 = vor.u32 %v3042_v61, %v2525_v62 }
  0x49   :  { %v173_v59 = vadd.f32 %v172_v43, %v171_v42  ;;  %1017 = vmatpush.bf16.msra.mxu2 %v2300_v36  ;;  %v2974_v7 = vld [vmem:[#allocation5 + $0x1a4] sm:$0xf]  ;;  %v2253_v10 = vld [vmem:[#allocation5 + $0x1b0] sm:$0xf0]  ;;  %v2128_v16 = vor.u32 %v2942_v5, %v2125_v6 }
  0x4a   :  { %1030 = vmatpush.bf16.msra.mxu3 %v2428_v40  ;;  %v3006_v11 = vld [vmem:[#allocation5 + $0x2a4] sm:$0xf]  ;;  %v2381_v12 = vld [vmem:[#allocation5 + $0x2b0] sm:$0xf0]  ;;  %v2256_v18 = vor.u32 %v2974_v7, %v2253_v10 }
  0x4b   :  { %1036 = vmatpush.bf16.msrb.mxu0 %v2160_v47  ;;  %v190_v9 = vadd.f32 %v188_v4, %v173_v59  ;;  %v3038_v13 = vld [vmem:[#allocation5 + $0x3a4] sm:$0xf]  ;;  %v2509_v14 = vld [vmem:[#allocation5 + $0x3b0] sm:$0xf0]  ;;  %v2384_v19 = vor.u32 %v3006_v11, %v2381_v12 }
  0x4c   :  { %1049 = vmatpush.bf16.msrb.mxu1 %v2288_v48  ;;  %v2938_v17 = vld [vmem:[#allocation5 + $0x84] sm:$0xf]  ;;  %v2109_v20 = vld [vmem:[#allocation5 + $0x90] sm:$0xf0]  ;;  %v2512_v23 = vor.u32 %v3038_v13, %v2509_v14 }
  0x4d   :  { %1062 = vmatpush.bf16.msrb.mxu2 %v2416_v52  ;;  %v191_v15 = vmax.f32 %v190_v9, 0.0  ;;  %v2970_v21 = vld [vmem:[#allocation5 + $0x184] sm:$0xf]  ;;  %v2237_v22 = vld [vmem:[#allocation5 + $0x190] sm:$0xf0]  ;;  %v2112_v28 = vor.u32 %v2938_v17, %v2109_v20 }
  0x4e   :  { %1075 = vmatpush.bf16.msrb.mxu3 %v2544_v56  ;;  %v3002_v24 = vld [vmem:[#allocation5 + $0x284] sm:$0xf]  ;;  %v2365_v25 = vld [vmem:[#allocation5 + $0x290] sm:$0xf0]  ;;  %v2240_v29 = vor.u32 %v2970_v21, %v2237_v22  ;;  %v2163_v20 = vld [vmem:[#allocation5 + $0xe8] sm:$0xf] }
  0x4f   :  { %1037 = vmatpush.bf16.msrb.mxu0 %v2144_v0  ;;  %193 = vst [vmem:[#allocation1] ss:$4 sm:$0xff] %v191_v15  ;;  %v3034_v26 = vld [vmem:[#allocation5 + $0x384] sm:$0xf]  ;;  %v2493_v27 = vld [vmem:[#allocation5 + $0x390] sm:$0xf0]  ;;  %v2368_v30 = vor.u32 %v3002_v24, %v2365_v25 }
  0x50   :  { %1050 = vmatpush.bf16.msrb.mxu1 %v2272_v2  ;;  %v2496_v31 = vor.u32 %v3034_v26, %v2493_v27  ;;  %v2934_v32 = vld [vmem:[#allocation5 + $0x64] sm:$0xf]  ;;  %v2093_v33 = vld [vmem:[#allocation5 + $0x70] sm:$0xf0]  ;;  %v2953_v21 = vld [vmem:[#allocation5 + $0xf4] sm:$0xf0] }
  0x51   :  { %1063 = vmatpush.bf16.msrb.mxu2 %v2400_v3  ;;  %v2966_v34 = vld [vmem:[#allocation5 + $0x164] sm:$0xf]  ;;  %v2221_v35 = vld [vmem:[#allocation5 + $0x170] sm:$0xf0]  ;;  %v2096_v48 = vor.u32 %v2934_v32, %v2093_v33  ;;  %v2291_v22 = vld [vmem:[#allocation5 + $0x1e8] sm:$0xf]  ;;  %v2164_v32 = vor.u32 %v2953_v21, %v2163_v20 }
  0x52   :  { %1076 = vmatpush.bf16.msrb.mxu3 %v2528_v8  ;;  %v2998_v36 = vld [vmem:[#allocation5 + $0x264] sm:$0xf]  ;;  %v2349_v37 = vld [vmem:[#allocation5 + $0x270] sm:$0xf0]  ;;  %v2224_v49 = vor.u32 %v2966_v34, %v2221_v35  ;;  %v2419_v24 = vld [vmem:[#allocation5 + $0x2e8] sm:$0xf] }
  0x53   :  { %1038 = vmatpush.bf16.msrb.mxu0 %v2128_v16  ;;  %v3030_v38 = vld [vmem:[#allocation5 + $0x364] sm:$0xf]  ;;  %v2477_v39 = vld [vmem:[#allocation5 + $0x370] sm:$0xf0]  ;;  %v2352_v52 = vor.u32 %v2998_v36, %v2349_v37  ;;  %v3017_v27 = vld [vmem:[#allocation5 + $0x2f4] sm:$0xf0] }
  0x54   :  { %1051 = vmatpush.bf16.msrb.mxu1 %v2256_v18  ;;  %v2930_v42 = vld [vmem:[#allocation5 + $0x44] sm:$0xf]  ;;  %v2077_v43 = vld [vmem:[#allocation5 + $0x50] sm:$0xf0]  ;;  %v2480_v53 = vor.u32 %v3030_v38, %v2477_v39  ;;  %v2147_v34 = vld [vmem:[#allocation5 + $0xc8] sm:$0xf]  ;;  %v2420_v36 = vor.u32 %v3017_v27, %v2419_v24 }
  0x55   :  { %1064 = vmatpush.bf16.msrb.mxu2 %v2384_v19  ;;  %v2962_v54 = vld [vmem:[#allocation5 + $0x144] sm:$0xf]  ;;  %v2205_v55 = vld [vmem:[#allocation5 + $0x150] sm:$0xf0]  ;;  %v2080_v60 = vor.u32 %v2930_v42, %v2077_v43  ;;  %v2949_v35 = vld [vmem:[#allocation5 + $0xd4] sm:$0xf0] }
  0x56   :  { %1077 = vmatpush.bf16.msrb.mxu3 %v2512_v23  ;;  %v196_v40 = vld.sshfl [vmem:[#allocation1 + $0x10] sm:$0xff pattern:$0x73625140]  ;;  %v194_v41 = vld.sshfl [vmem:[#allocation1] sm:$0xff pattern:$0x73625140]  ;;  %v2208_v61 = vor.u32 %v2962_v54, %v2205_v55 }
  0x57   :  { %1039 = vmatpush.bf16.msrb.mxu0 %v2112_v28  ;;  %v3533_v44 = vpack.c.bf16 %v196_v40, %v196_v40  ;;  %v3535_v45 = vpack.c.bf16 %v194_v41, %v194_v41  ;;  %v197_v46 = vld.sshfl [vmem:[#allocation1 + $0x18] sm:$0xff pattern:$0x73625140]  ;;  %v195_v47 = vld.sshfl [vmem:[#allocation1 + $0x8] sm:$0xff pattern:$0x73625140] }
  0x58   :  { %1052 = vmatpush.bf16.msrb.mxu1 %v2240_v29  ;;  %v3537_v50 = vpack.c.bf16 %v197_v46, %v197_v46  ;;  %v3539_v51 = vpack.c.bf16 %v195_v47, %v195_v47  ;;  %v2994_v56 = vld [vmem:[#allocation5 + $0x244] sm:$0xf]  ;;  %v2333_v57 = vld [vmem:[#allocation5 + $0x250] sm:$0xf0]  ;;  %v2985_v23 = vld [vmem:[#allocation5 + $0x1f4] sm:$0xf0]  ;;  %v2148_v46 = vor.u32 %v2949_v35, %v2147_v34 }
  0x59   :  { %1065 = vmatpush.bf16.msrb.mxu2 %v2368_v30  ;;  %992 = vmatmul.bf16.vlgmr.msra.gmra.mxu0 %v3535_v45  ;;  %v3026_v58 = vld [vmem:[#allocation5 + $0x344] sm:$0xf]  ;;  %v2461_v59 = vld [vmem:[#allocation5 + $0x350] sm:$0xf0]  ;;  %v2336_v0 = vor.u32 %v2994_v56, %v2333_v57  ;;  %v2547_v28 = vld [vmem:[#allocation5 + $0x3e8] sm:$0xf]  ;;  %v2292_v33 = vor.u32 %v2985_v23, %v2291_v22 }
  0x5a   :  { %1078 = vmatpush.bf16.msrb.mxu3 %v2496_v31  ;;  %1018 = vmatmul.bf16.vlgmr.msra.gmra.mxu2 %v3533_v44  ;;  %v2926_v62 = vld [vmem:[#allocation5 + $0x24] sm:$0xf]  ;;  %v2061_v63 = vld [vmem:[#allocation5 + $0x30] sm:$0xf0]  ;;  %v2464_v1 = vor.u32 %v3026_v58, %v2461_v59  ;;  %v3049_v29 = vld [vmem:[#allocation5 + $0x3f4] sm:$0xf0] }
  0x5b   :  { %1031 = vmatmul.bf16.vlgmr.msra.gmra.mxu3 %v3537_v50  ;;  %1005 = vmatmul.bf16.vlgmr.msra.gmra.mxu1 %v3539_v51  ;;  %v2958_v2 = vld [vmem:[#allocation5 + $0x124] sm:$0xf]  ;;  %v2189_v3 = vld [vmem:[#allocation5 + $0x130] sm:$0xf0]  ;;  %v2064_v9 = vor.u32 %v2926_v62, %v2061_v63  ;;  %v2548_v37 = vor.u32 %v3049_v29, %v2547_v28  ;;  %v2275_v38 = vld [vmem:[#allocation5 + $0x1c8] sm:$0xf] }
  0x5c   :  { %1040 = vmatpush.bf16.msrb.mxu0 %v2096_v48  ;;  %1053 = vmatpush.bf16.msrb.mxu1 %v2224_v49  ;;  %v2990_v4 = vld [vmem:[#allocation5 + $0x224] sm:$0xf]  ;;  %v2317_v5 = vld [vmem:[#allocation5 + $0x230] sm:$0xf0]  ;;  %v2192_v10 = vor.u32 %v2958_v2, %v2189_v3  ;;  %v2981_v39 = vld [vmem:[#allocation5 + $0x1d4] sm:$0xf0] }
  0x5d   :  { %1066 = vmatpush.bf16.msrb.mxu2 %v2352_v52  ;;  %v3022_v6 = vld [vmem:[#allocation5 + $0x324] sm:$0xf]  ;;  %v2445_v7 = vld [vmem:[#allocation5 + $0x330] sm:$0xf0]  ;;  %v2320_v14 = vor.u32 %v2990_v4, %v2317_v5  ;;  %v2403_v40 = vld [vmem:[#allocation5 + $0x2c8] sm:$0xf]  ;;  %v2276_v47 = vor.u32 %v2981_v39, %v2275_v38 }
  0x5e   :  { %1079 = vmatpush.bf16.msrb.mxu3 %v2480_v53  ;;  %v2922_v8 = vld [vmem:[#allocation5 + $0x4] sm:$0xf]  ;;  %v2045_v11 = vld [vmem:[#allocation5 + $0x10] sm:$0xf0]  ;;  %v2448_v15 = vor.u32 %v3022_v6, %v2445_v7  ;;  %v3013_v41 = vld [vmem:[#allocation5 + $0x2d4] sm:$0xf0] }
  0x5f   :  { %v2954_v12 = vld [vmem:[#allocation5 + $0x104] sm:$0xf]  ;;  %v2173_v13 = vld [vmem:[#allocation5 + $0x110] sm:$0xf0]  ;;  %v2048_v25 = vor.u32 %v2922_v8, %v2045_v11  ;;  %v2531_v42 = vld [vmem:[#allocation5 + $0x3c8] sm:$0xf]  ;;  %v2404_v52 = vor.u32 %v3013_v41, %v2403_v40 }
  0x60   :  { %1041 = vmatpush.bf16.msrb.mxu0 %v2080_v60  ;;  %1054 = vmatpush.bf16.msrb.mxu1 %v2208_v61  ;;  %v2986_v16 = vld [vmem:[#allocation5 + $0x204] sm:$0xf]  ;;  %v2301_v17 = vld [vmem:[#allocation5 + $0x210] sm:$0xf0]  ;;  %v2176_v26 = vor.u32 %v2954_v12, %v2173_v13  ;;  %v3045_v43 = vld [vmem:[#allocation5 + $0x3d4] sm:$0xf0] }
  0x61   :  { %1067 = vmatpush.bf16.msrb.mxu2 %v2336_v0  ;;  %v3018_v18 = vld [vmem:[#allocation5 + $0x304] sm:$0xf]  ;;  %v2429_v19 = vld [vmem:[#allocation5 + $0x310] sm:$0xf0]  ;;  %v2304_v30 = vor.u32 %v2986_v16, %v2301_v17  ;;  %v2131_v48 = vld [vmem:[#allocation5 + $0xa8] sm:$0xf]  ;;  %v2532_v53 = vor.u32 %v3045_v43, %v2531_v42 }
  0x62   :  { %1080 = vmatpush.bf16.msrb.mxu3 %v2464_v1  ;;  %v2432_v31 = vor.u32 %v3018_v18, %v2429_v19  ;;  %v2945_v49 = vld [vmem:[#allocation5 + $0xb4] sm:$0xf0]  ;;  %v2259_v54 = vld [vmem:[#allocation5 + $0x1a8] sm:$0xf] }
  0x63   :  { %v2977_v55 = vld [vmem:[#allocation5 + $0x1b4] sm:$0xf0]  ;;  %v2387_v56 = vld [vmem:[#allocation5 + $0x2a8] sm:$0xf]  ;;  %v2132_v60 = vor.u32 %v2945_v49, %v2131_v48 }
  0x64   :  { %1042 = vmatpush.bf16.msrb.mxu0 %v2064_v9  ;;  %1055 = vmatpush.bf16.msrb.mxu1 %v2192_v10  ;;  %v3009_v57 = vld [vmem:[#allocation5 + $0x2b4] sm:$0xf0]  ;;  %v2515_v58 = vld [vmem:[#allocation5 + $0x3a8] sm:$0xf]  ;;  %v2260_v61 = vor.u32 %v2977_v55, %v2259_v54 }
  0x65   :  { %1068 = vmatpush.bf16.msrb.mxu2 %v2320_v14  ;;  %v3041_v59 = vld [vmem:[#allocation5 + $0x3b4] sm:$0xf0]  ;;  %v2115_v62 = vld [vmem:[#allocation5 + $0x88] sm:$0xf]  ;;  %v2388_v0 = vor.u32 %v3009_v57, %v2387_v56 }
  0x66   :  { %1081 = vmatpush.bf16.msrb.mxu3 %v2448_v15  ;;  %v2941_v63 = vld [vmem:[#allocation5 + $0x94] sm:$0xf0]  ;;  %v2516_v1 = vor.u32 %v3041_v59, %v2515_v58  ;;  %v2243_v2 = vld [vmem:[#allocation5 + $0x188] sm:$0xf] }
  0x67   :  { %v2973_v3 = vld [vmem:[#allocation5 + $0x194] sm:$0xf0]  ;;  %v2371_v4 = vld [vmem:[#allocation5 + $0x288] sm:$0xf]  ;;  %v2116_v8 = vor.u32 %v2941_v63, %v2115_v62  ;;  %v2983_v62 = vld [vmem:[#allocation5 + $0x1ec] sm:$0xf] }
  0x68   :  { %1043 = vmatpush.bf16.msrb.mxu0 %v2048_v25  ;;  %1056 = vmatpush.bf16.msrb.mxu1 %v2176_v26  ;;  %v3005_v5 = vld [vmem:[#allocation5 + $0x294] sm:$0xf0]  ;;  %v2499_v6 = vld [vmem:[#allocation5 + $0x388] sm:$0xf]  ;;  %v2244_v9 = vor.u32 %v2973_v3, %v2243_v2  ;;  %v2293_v63 = vld [vmem:[#allocation5 + $0x1f8] sm:$0xf0] }
  0x69   :  { %1069 = vmatpush.bf16.msrb.mxu2 %v2304_v30  ;;  %v3037_v7 = vld [vmem:[#allocation5 + $0x394] sm:$0xf0]  ;;  %v2099_v10 = vld [vmem:[#allocation5 + $0x68] sm:$0xf]  ;;  %v2372_v12 = vor.u32 %v3005_v5, %v2371_v4  ;;  %v3047_v4 = vld [vmem:[#allocation5 + $0x3ec] sm:$0xf] }
  0x6a   :  { %1082 = vmatpush.bf16.msrb.mxu3 %v2432_v31  ;;  %v2937_v11 = vld [vmem:[#allocation5 + $0x74] sm:$0xf0]  ;;  %v2500_v13 = vor.u32 %v3037_v7, %v2499_v6  ;;  %v2227_v14 = vld [vmem:[#allocation5 + $0x168] sm:$0xf]  ;;  %v2549_v5 = vld [vmem:[#allocation5 + $0x3f8] sm:$0xf0] }
  0x6b   :  { %1044 = vmatmul.bf16.vlgmr.msrb.gmra.mxu0 %v3535_v45  ;;  %1057 = vmatmul.bf16.vlgmr.msrb.gmra.mxu1 %v3539_v51  ;;  %v2969_v15 = vld [vmem:[#allocation5 + $0x174] sm:$0xf0]  ;;  %v2355_v16 = vld [vmem:[#allocation5 + $0x268] sm:$0xf]  ;;  %v2100_v20 = vor.u32 %v2937_v11, %v2099_v10  ;;  %v2947_v10 = vld [vmem:[#allocation5 + $0xcc] sm:$0xf] }
  0x6c   :  { %1088 = vmatpush.bf16.msra.mxu0 %v2164_v32  ;;  %1101 = vmatpush.bf16.msra.mxu1 %v2292_v33  ;;  %v3001_v17 = vld [vmem:[#allocation5 + $0x274] sm:$0xf0]  ;;  %v2483_v18 = vld [vmem:[#allocation5 + $0x368] sm:$0xf]  ;;  %v2228_v21 = vor.u32 %v2969_v15, %v2227_v14  ;;  %v2149_v11 = vld [vmem:[#allocation5 + $0xd8] sm:$0xf0] }
  0x6d   :  { %1114 = vmatpush.bf16.msra.mxu2 %v2420_v36  ;;  %1083 = vmatmul.bf16.vlgmr.msrb.gmra.mxu3 %v3537_v50  ;;  %v3033_v19 = vld [vmem:[#allocation5 + $0x374] sm:$0xf0]  ;;  %v2083_v22 = vld [vmem:[#allocation5 + $0x48] sm:$0xf]  ;;  %v2356_v24 = vor.u32 %v3001_v17, %v2355_v16  ;;  %v2979_v14 = vld [vmem:[#allocation5 + $0x1cc] sm:$0xf] }
  0x6e   :  { %1127 = vmatpush.bf16.msra.mxu3 %v2548_v37  ;;  %1070 = vmatmul.bf16.vlgmr.msrb.gmra.mxu2 %v3533_v44  ;;  %v2933_v23 = vld [vmem:[#allocation5 + $0x54] sm:$0xf0]  ;;  %v2484_v25 = vor.u32 %v3033_v19, %v2483_v18  ;;  %v2211_v26 = vld [vmem:[#allocation5 + $0x148] sm:$0xf]  ;;  %v2277_v15 = vld [vmem:[#allocation5 + $0x1d8] sm:$0xf0] }
  0x6f   :  { %v2965_v27 = vld [vmem:[#allocation5 + $0x154] sm:$0xf0]  ;;  %v2339_v28 = vld [vmem:[#allocation5 + $0x248] sm:$0xf]  ;;  %v2084_v32 = vor.u32 %v2933_v23, %v2083_v22  ;;  %v3011_v16 = vld [vmem:[#allocation5 + $0x2cc] sm:$0xf] }
  0x70   :  { %1089 = vmatpush.bf16.msra.mxu0 %v2148_v46  ;;  %1102 = vmatpush.bf16.msra.mxu1 %v2276_v47  ;;  %v2997_v29 = vld [vmem:[#allocation5 + $0x254] sm:$0xf0]  ;;  %v2467_v30 = vld [vmem:[#allocation5 + $0x348] sm:$0xf]  ;;  %v2212_v33 = vor.u32 %v2965_v27, %v2211_v26  ;;  %v2405_v17 = vld [vmem:[#allocation5 + $0x2d8] sm:$0xf0] }
  0x71   :  { %1115 = vmatpush.bf16.msra.mxu2 %v2404_v52  ;;  %v3029_v31 = vld [vmem:[#allocation5 + $0x354] sm:$0xf0]  ;;  %v2067_v34 = vld [vmem:[#allocation5 + $0x28] sm:$0xf]  ;;  %v2340_v36 = vor.u32 %v2997_v29, %v2339_v28  ;;  %v3043_v18 = vld [vmem:[#allocation5 + $0x3cc] sm:$0xf] }
  0x72   :  { %1128 = vmatpush.bf16.msra.mxu3 %v2532_v53  ;;  %v2929_v35 = vld [vmem:[#allocation5 + $0x34] sm:$0xf0]  ;;  %v2468_v37 = vor.u32 %v3029_v31, %v2467_v30  ;;  %v2195_v38 = vld [vmem:[#allocation5 + $0x128] sm:$0xf]  ;;  %v2533_v19 = vld [vmem:[#allocation5 + $0x3d8] sm:$0xf0] }
  0x73   :  { %v2961_v39 = vld [vmem:[#allocation5 + $0x134] sm:$0xf0]  ;;  %v2323_v40 = vld [vmem:[#allocation5 + $0x228] sm:$0xf]  ;;  %v2068_v52 = vor.u32 %v2929_v35, %v2067_v34  ;;  %v2943_v22 = vld [vmem:[#allocation5 + $0xac] sm:$0xf] }
  0x74   :  { %1090 = vmatpush.bf16.msra.mxu0 %v2132_v60  ;;  %1103 = vmatpush.bf16.msra.mxu1 %v2260_v61  ;;  %v2993_v41 = vld [vmem:[#allocation5 + $0x234] sm:$0xf0]  ;;  %v2451_v42 = vld [vmem:[#allocation5 + $0x328] sm:$0xf]  ;;  %v2196_v53 = vor.u32 %v2961_v39, %v2195_v38  ;;  %v2951_v60 = vld [vmem:[#allocation5 + $0xec] sm:$0xf] }
  0x75   :  { %1116 = vmatpush.bf16.msra.mxu2 %v2388_v0  ;;  %v3025_v43 = vld [vmem:[#allocation5 + $0x334] sm:$0xf0]  ;;  %v2051_v46 = vld [vmem:[#allocation5 + $0x8] sm:$0xf]  ;;  %v2324_v57 = vor.u32 %v2993_v41, %v2323_v40  ;;  %v2165_v61 = vld [vmem:[#allocation5 + $0xf8] sm:$0xf0] }
  0x76   :  { %1129 = vmatpush.bf16.msra.mxu3 %v2516_v1  ;;  %v2925_v47 = vld [vmem:[#allocation5 + $0x14] sm:$0xf0]  ;;  %v2179_v48 = vld [vmem:[#allocation5 + $0x108] sm:$0xf]  ;;  %v2452_v58 = vor.u32 %v3025_v43, %v2451_v42  ;;  %v3015_v0 = vld [vmem:[#allocation5 + $0x2ec] sm:$0xf] }
  0x77   :  { %v2957_v49 = vld [vmem:[#allocation5 + $0x114] sm:$0xf0]  ;;  %v2307_v54 = vld [vmem:[#allocation5 + $0x208] sm:$0xf]  ;;  %v2421_v1 = vld [vmem:[#allocation5 + $0x2f8] sm:$0xf0]  ;;  %v2052_v2 = vor.u32 %v2925_v47, %v2051_v46 }
  0x78   :  { %1091 = vmatpush.bf16.msra.mxu0 %v2116_v8  ;;  %1104 = vmatpush.bf16.msra.mxu1 %v2244_v9  ;;  %v2989_v55 = vld [vmem:[#allocation5 + $0x214] sm:$0xf0]  ;;  %v2435_v56 = vld [vmem:[#allocation5 + $0x308] sm:$0xf]  ;;  %v2180_v3 = vor.u32 %v2957_v49, %v2179_v48  ;;  %v2168_v8 = vor.u32 %v2951_v60, %v2165_v61  ;;  %v2296_v9 = vor.u32 %v2983_v62, %v2293_v63  ;;  %v2133_v23 = vld [vmem:[#allocation5 + $0xb8] sm:$0xf0] }
  0x79   :  { %1117 = vmatpush.bf16.msra.mxu2 %v2372_v12  ;;  %v3021_v59 = vld [vmem:[#allocation5 + $0x314] sm:$0xf0]  ;;  %v2308_v6 = vor.u32 %v2989_v55, %v2307_v54  ;;  %v2424_v12 = vor.u32 %v3015_v0, %v2421_v1  ;;  %v2975_v26 = vld [vmem:[#allocation5 + $0x1ac] sm:$0xf]  ;;  %v2261_v27 = vld [vmem:[#allocation5 + $0x1b8] sm:$0xf0] }
  0x7a   :  { %1130 = vmatpush.bf16.msra.mxu3 %v2500_v13  ;;  %v2436_v7 = vor.u32 %v3021_v59, %v2435_v56  ;;  %v2552_v13 = vor.u32 %v3047_v4, %v2549_v5  ;;  %v3007_v28 = vld [vmem:[#allocation5 + $0x2ac] sm:$0xf]  ;;  %v2389_v29 = vld [vmem:[#allocation5 + $0x2b8] sm:$0xf0] }
  0x7b   :  { %v3039_v30 = vld [vmem:[#allocation5 + $0x3ac] sm:$0xf]  ;;  %v2517_v31 = vld [vmem:[#allocation5 + $0x3b8] sm:$0xf0] }
  0x7c   :  { %1092 = vmatpush.bf16.msra.mxu0 %v2100_v20  ;;  %1105 = vmatpush.bf16.msra.mxu1 %v2228_v21  ;;  %v2152_v20 = vor.u32 %v2947_v10, %v2149_v11  ;;  %v2280_v21 = vor.u32 %v2979_v14, %v2277_v15  ;;  %v2939_v34 = vld [vmem:[#allocation5 + $0x8c] sm:$0xf]  ;;  %v2117_v35 = vld [vmem:[#allocation5 + $0x98] sm:$0xf0] }
  0x7d   :  { %1118 = vmatpush.bf16.msra.mxu2 %v2356_v24  ;;  %v2408_v24 = vor.u32 %v3011_v16, %v2405_v17  ;;  %v2971_v38 = vld [vmem:[#allocation5 + $0x18c] sm:$0xf]  ;;  %v2245_v39 = vld [vmem:[#allocation5 + $0x198] sm:$0xf0]  ;;  %v2120_v46 = vor.u32 %v2939_v34, %v2117_v35  ;;  %v2675_v34 = vld [vmem:[#allocation8 + $0xf0] sm:$0xf] }
  0x7e   :  { %1131 = vmatpush.bf16.msra.mxu3 %v2484_v25  ;;  %v2536_v25 = vor.u32 %v3043_v18, %v2533_v19  ;;  %v3003_v40 = vld [vmem:[#allocation5 + $0x28c] sm:$0xf]  ;;  %v2373_v41 = vld [vmem:[#allocation5 + $0x298] sm:$0xf0]  ;;  %v2248_v47 = vor.u32 %v2971_v38, %v2245_v39 }
  0x7f   :  { %v3035_v42 = vld [vmem:[#allocation5 + $0x38c] sm:$0xf]  ;;  %v2501_v43 = vld [vmem:[#allocation5 + $0x398] sm:$0xf0] }
  0x80   :  { %1093 = vmatpush.bf16.msra.mxu0 %v2084_v32  ;;  %1106 = vmatpush.bf16.msra.mxu1 %v2212_v33  ;;  %v2136_v32 = vor.u32 %v2943_v22, %v2133_v23  ;;  %v2264_v33 = vor.u32 %v2975_v26, %v2261_v27  ;;  %v2935_v48 = vld [vmem:[#allocation5 + $0x6c] sm:$0xf]  ;;  %v2101_v49 = vld [vmem:[#allocation5 + $0x78] sm:$0xf0] }
  0x81   :  { %1119 = vmatpush.bf16.msra.mxu2 %v2340_v36  ;;  %v2392_v36 = vor.u32 %v3007_v28, %v2389_v29  ;;  %v2967_v54 = vld [vmem:[#allocation5 + $0x16c] sm:$0xf]  ;;  %v2229_v55 = vld [vmem:[#allocation5 + $0x178] sm:$0xf0]  ;;  %v2104_v60 = vor.u32 %v2935_v48, %v2101_v49 }
  0x82   :  { %1132 = vmatpush.bf16.msra.mxu3 %v2468_v37  ;;  %v2520_v37 = vor.u32 %v3039_v30, %v2517_v31  ;;  %v2999_v56 = vld [vmem:[#allocation5 + $0x26c] sm:$0xf]  ;;  %v2485_v59 = vld [vmem:[#allocation5 + $0x378] sm:$0xf0]  ;;  %v2232_v61 = vor.u32 %v2967_v54, %v2229_v55  ;;  %v2587_v55 = vld [vmem:[#allocation8 + $0x40] sm:$0xf] }
  0x83   :  { %v2931_v62 = vld [vmem:[#allocation5 + $0x4c] sm:$0xf]  ;;  %v2085_v63 = vld [vmem:[#allocation5 + $0x58] sm:$0xf0] }
  0x84   :  { %1094 = vmatpush.bf16.msra.mxu0 %v2068_v52  ;;  %1107 = vmatpush.bf16.msra.mxu1 %v2196_v53  ;;  %v2376_v52 = vor.u32 %v3003_v40, %v2373_v41  ;;  %v2504_v53 = vor.u32 %v3035_v42, %v2501_v43  ;;  %v2995_v4 = vld [vmem:[#allocation5 + $0x24c] sm:$0xf]  ;;  %v2341_v5 = vld [vmem:[#allocation5 + $0x258] sm:$0xf0]  ;;  %v2603_v41 = vld [vmem:[#allocation8 + $0x60] sm:$0xf] }
  0x85   :  { %1120 = vmatpush.bf16.msra.mxu2 %v2324_v57  ;;  %v2357_v57 = vld [vmem:[#allocation5 + $0x278] sm:$0xf0]  ;;  %v2927_v10 = vld [vmem:[#allocation5 + $0x2c] sm:$0xf] }
  0x86   :  { %1133 = vmatpush.bf16.msra.mxu3 %v2452_v58  ;;  %v3031_v58 = vld [vmem:[#allocation5 + $0x36c] sm:$0xf]  ;;  %v2360_v0 = vor.u32 %v2999_v56, %v2357_v57  ;;  %v2069_v11 = vld [vmem:[#allocation5 + $0x38] sm:$0xf0] }
  0x87   :  { %v2488_v1 = vor.u32 %v3031_v58, %v2485_v59  ;;  %v2959_v14 = vld [vmem:[#allocation5 + $0x12c] sm:$0xf]  ;;  %v2197_v15 = vld [vmem:[#allocation5 + $0x138] sm:$0xf0]  ;;  %v2579_v58 = vld [vmem:[#allocation8 + $0x30] sm:$0xf] }
  0x88   :  { %1095 = vmatpush.bf16.msra.mxu0 %v2052_v2  ;;  %1108 = vmatpush.bf16.msra.mxu1 %v2180_v3  ;;  %v2963_v2 = vld [vmem:[#allocation5 + $0x14c] sm:$0xf]  ;;  %v2213_v3 = vld [vmem:[#allocation5 + $0x158] sm:$0xf0] }
  0x89   :  { %1121 = vmatpush.bf16.msra.mxu2 %v2308_v6  ;;  %v3027_v6 = vld [vmem:[#allocation5 + $0x34c] sm:$0xf]  ;;  %v2325_v17 = vld [vmem:[#allocation5 + $0x238] sm:$0xf0] }
  0x8a   :  { %1134 = vmatpush.bf16.msra.mxu3 %v2436_v7  ;;  %v2469_v7 = vld [vmem:[#allocation5 + $0x358] sm:$0xf0]  ;;  %v2991_v16 = vld [vmem:[#allocation5 + $0x22c] sm:$0xf] }
  0x8b   :  { %1096 = vmatmul.bf16.vlgmr.msra.gmra.mxu0 %v3535_v45  ;;  %1109 = vmatmul.bf16.vlgmr.msra.gmra.mxu1 %v3539_v51  ;;  %v3023_v18 = vld [vmem:[#allocation5 + $0x32c] sm:$0xf]  ;;  %v2453_v19 = vld [vmem:[#allocation5 + $0x338] sm:$0xf0] }
  0x8c   :  { %1140 = vmatpush.bf16.msrb.mxu0 %v2168_v8  ;;  %1153 = vmatpush.bf16.msrb.mxu1 %v2296_v9  ;;  %v2088_v8 = vor.u32 %v2931_v62, %v2085_v63  ;;  %v2216_v9 = vor.u32 %v2963_v2, %v2213_v3  ;;  %v2923_v22 = vld [vmem:[#allocation5 + $0xc] sm:$0xf]  ;;  %v2053_v23 = vld [vmem:[#allocation5 + $0x18] sm:$0xf0]  ;;  %v2456_v26 = vor.u32 %v3023_v18, %v2453_v19  ;;  %v2563_v62 = vld [vmem:[#allocation8 + $0x10] sm:$0xf] }
  0x8d   :  { %1166 = vmatpush.bf16.msrb.mxu2 %v2424_v12  ;;  %1135 = vmatmul.bf16.vlgmr.msra.gmra.mxu3 %v3537_v50  ;;  %v2344_v12 = vor.u32 %v2995_v4, %v2341_v5  ;;  %v2181_v27 = vld [vmem:[#allocation5 + $0x118] sm:$0xf0]  ;;  %v2987_v28 = vld [vmem:[#allocation5 + $0x20c] sm:$0xf]  ;;  %v2555_v2 = vld [vmem:[#allocation8] sm:$0xf] }
  0x8e   :  { %1179 = vmatpush.bf16.msrb.mxu3 %v2552_v13  ;;  %1122 = vmatmul.bf16.vlgmr.msra.gmra.mxu2 %v3533_v44  ;;  %v2472_v13 = vor.u32 %v3027_v6, %v2469_v7  ;;  %v2309_v29 = vld [vmem:[#allocation5 + $0x218] sm:$0xf0]  ;;  %v3019_v30 = vld [vmem:[#allocation5 + $0x30c] sm:$0xf]  ;;  %v3064_v4 = vld [vmem:[#allocation8 + $0x74] sm:$0xf] }
  0x8f   :  { %v2437_v31 = vld [vmem:[#allocation5 + $0x318] sm:$0xf0]  ;;  %v2312_v38 = vor.u32 %v2987_v28, %v2309_v29  ;;  %v3063_v43 = vld [vmem:[#allocation8 + $0x64] sm:$0xf0]  ;;  %v2613_v5 = vld [vmem:[#allocation8 + $0x78] sm:$0xf0] }
  0x90   :  { %1141 = vmatpush.bf16.msrb.mxu0 %v2152_v20  ;;  %1154 = vmatpush.bf16.msrb.mxu1 %v2280_v21  ;;  %v2072_v20 = vor.u32 %v2927_v10, %v2069_v11  ;;  %v2200_v21 = vor.u32 %v2959_v14, %v2197_v15  ;;  %v3081_v35 = vld [vmem:[#allocation8 + $0xf4] sm:$0xf0]  ;;  %v2440_v39 = vor.u32 %v3019_v30, %v2437_v31  ;;  %v3059_v56 = vld [vmem:[#allocation8 + $0x44] sm:$0xf0]  ;;  %v2651_v6 = vld [vmem:[#allocation8 + $0xc0] sm:$0xf] }
  0x91   :  { %1167 = vmatpush.bf16.msrb.mxu2 %v2408_v24  ;;  %v2955_v24 = vld [vmem:[#allocation5 + $0x10c] sm:$0xf]  ;;  %v2676_v42 = vor.u32 %v3081_v35, %v2675_v34  ;;  %v2604_v48 = vor.u32 %v3063_v43, %v2603_v41  ;;  %v2588_v57 = vor.u32 %v3059_v56, %v2587_v55  ;;  %v3057_v59 = vld [vmem:[#allocation8 + $0x34] sm:$0xf0]  ;;  %v2616_v10 = vor.u32 %v3064_v4, %v2613_v5  ;;  %v3062_v11 = vld [vmem:[#allocation8 + $0x64] sm:$0xf] }
  0x92   :  { %1180 = vmatpush.bf16.msrb.mxu3 %v2536_v25  ;;  %v2328_v25 = vor.u32 %v2991_v16, %v2325_v17  ;;  %v3053_v63 = vld [vmem:[#allocation8 + $0x14] sm:$0xf0]  ;;  %v3051_v3 = vld [vmem:[#allocation8 + $0x4] sm:$0xf0]  ;;  %v3060_v17 = vld [vmem:[#allocation8 + $0x54] sm:$0xf] }
  0x93   :  { %v3075_v7 = vld [vmem:[#allocation8 + $0xc4] sm:$0xf0]  ;;  %v3073_v14 = vld [vmem:[#allocation8 + $0xb4] sm:$0xf0]  ;;  %v2597_v18 = vld [vmem:[#allocation8 + $0x58] sm:$0xf0] }
  0x94   :  { %1142 = vmatpush.bf16.msrb.mxu0 %v2136_v32  ;;  %1155 = vmatpush.bf16.msrb.mxu1 %v2264_v33  ;;  %v2611_v32 = vld [vmem:[#allocation8 + $0x70] sm:$0xf]  ;;  %v3065_v33 = vld [vmem:[#allocation8 + $0x74] sm:$0xf0]  ;;  %v2635_v19 = vld [vmem:[#allocation8 + $0xa0] sm:$0xf] }
  0x95   :  { %1168 = vmatpush.bf16.msrb.mxu2 %v2392_v36  ;;  %v2056_v36 = vor.u32 %v2923_v22, %v2053_v23  ;;  %v2612_v40 = vor.u32 %v3065_v33, %v2611_v32  ;;  %v2627_v22 = vld [vmem:[#allocation8 + $0x90] sm:$0xf]  ;;  %v2600_v23 = vor.u32 %v3060_v17, %v2597_v18  ;;  %v2619_v29 = vld [vmem:[#allocation8 + $0x80] sm:$0xf]  ;;  %v3067_v30 = vld [vmem:[#allocation8 + $0x84] sm:$0xf0] }
  0x96   :  { %1181 = vmatpush.bf16.msrb.mxu3 %v2520_v37  ;;  %v2184_v37 = vor.u32 %v2955_v24, %v2181_v27  ;;  %v3069_v24 = vld [vmem:[#allocation8 + $0x94] sm:$0xf0]  ;;  %v2739_v28 = vld [vmem:[#allocation8 + $0x170] sm:$0xf]  ;;  %v3080_v33 = vld [vmem:[#allocation8 + $0xf4] sm:$0xf] }
  0x97   :  { %v2628_v27 = vor.u32 %v3069_v24, %v2627_v22  ;;  %v3097_v31 = vld [vmem:[#allocation8 + $0x174] sm:$0xf0]  ;;  %v2677_v34 = vld [vmem:[#allocation8 + $0xf8] sm:$0xf0]  ;;  %v3078_v43 = vld [vmem:[#allocation8 + $0xe4] sm:$0xf] }
  0x98   :  { %1143 = vmatpush.bf16.msrb.mxu0 %v2120_v46  ;;  %1156 = vmatpush.bf16.msrb.mxu1 %v2248_v47  ;;  %v2667_v46 = vld [vmem:[#allocation8 + $0xe0] sm:$0xf]  ;;  %v3079_v47 = vld [vmem:[#allocation8 + $0xe4] sm:$0xf0]  ;;  %v2740_v32 = vor.u32 %v3097_v31, %v2739_v28  ;;  %v2680_v41 = vor.u32 %v3080_v33, %v2677_v34  ;;  %v3052_v56 = vld [vmem:[#allocation8 + $0x14] sm:$0xf] }
  0x99   :  { %1169 = vmatpush.bf16.msrb.mxu2 %v2376_v52  ;;  %v2668_v49 = vor.u32 %v3079_v47, %v2667_v46  ;;  %v2595_v52 = vld [vmem:[#allocation8 + $0x50] sm:$0xf]  ;;  %v2669_v46 = vld [vmem:[#allocation8 + $0xe8] sm:$0xf0]  ;;  %v3074_v4 = vld [vmem:[#allocation8 + $0xc4] sm:$0xf] }
  0x9a   :  { %1182 = vmatpush.bf16.msrb.mxu3 %v2504_v53  ;;  %v3061_v53 = vld [vmem:[#allocation8 + $0x54] sm:$0xf0]  ;;  %v2653_v5 = vld [vmem:[#allocation8 + $0xc8] sm:$0xf0]  ;;  %v3070_v24 = vld [vmem:[#allocation8 + $0xa4] sm:$0xf] }
  0x9b   :  { %v2596_v54 = vor.u32 %v3061_v53, %v2595_v52  ;;  %v3557_v52 = vld [vmem:[#allocation7] sm:$0xf]  ;;  %v2672_v53 = vor.u32 %v3078_v43, %v2669_v46  ;;  %v3113_v22 = vld [vmem:[#allocation8 + $0x1f4] sm:$0xf0]  ;;  %v3068_v34 = vld [vmem:[#allocation8 + $0x94] sm:$0xf] }
  0x9c   :  { %1144 = vmatpush.bf16.msrb.mxu0 %v2104_v60  ;;  %1157 = vmatpush.bf16.msrb.mxu1 %v2232_v61  ;;  %v2580_v60 = vor.u32 %v3057_v59, %v2579_v58  ;;  %v3055_v61 = vld [vmem:[#allocation8 + $0x24] sm:$0xf0]  ;;  %v336_v55 = vperm.slane %v3557_v52, 0  ;;  %v3050_v58 = vld [vmem:[#allocation8 + $0x4] sm:$0xf] }
  0x9d   :  { %1170 = vmatpush.bf16.msrb.mxu2 %v2360_v0  ;;  %v3077_v0 = vld [vmem:[#allocation8 + $0xd4] sm:$0xf0]  ;;  %v2723_v59 = vld [vmem:[#allocation8 + $0x150] sm:$0xf]  ;;  %v3083_v43 = vld [vmem:[#allocation8 + $0x104] sm:$0xf0] }
  0x9e   :  { %1183 = vmatpush.bf16.msrb.mxu3 %v2488_v1  ;;  %v3085_v33 = vld [vmem:[#allocation8 + $0x114] sm:$0xf0]  ;;  %v3066_v46 = vld [vmem:[#allocation8 + $0x84] sm:$0xf] }
  0xa0   :  { %1145 = vmatpush.bf16.msrb.mxu0 %v2088_v8  ;;  %1158 = vmatpush.bf16.msrb.mxu1 %v2216_v9  ;;  %v2556_v8 = vor.u32 %v3051_v3, %v2555_v2  ;;  %v2652_v9 = vor.u32 %v3075_v7, %v2651_v6  ;;  %v2557_v2 = vld [vmem:[#allocation8 + $0x8] sm:$0xf0] }
  0xa1   :  { %1171 = vmatpush.bf16.msrb.mxu2 %v2344_v12  ;;  %v2605_v12 = vld [vmem:[#allocation8 + $0x68] sm:$0xf0] }
  0xa2   :  { %1184 = vmatpush.bf16.msrb.mxu3 %v2472_v13  ;;  %v2643_v13 = vld [vmem:[#allocation8 + $0xb0] sm:$0xf]  ;;  %v2608_v16 = vor.u32 %v3062_v11, %v2605_v12  ;;  %v2560_v11 = vor.u32 %v3050_v58, %v2557_v2  ;;  %v3072_v12 = vld [vmem:[#allocation8 + $0xb4] sm:$0xf] }
  0xa3   :  { %v2644_v15 = vor.u32 %v3073_v14, %v2643_v13  ;;  %v2645_v13 = vld [vmem:[#allocation8 + $0xb8] sm:$0xf0] }
  0xa4   :  { %1146 = vmatpush.bf16.msrb.mxu0 %v2072_v20  ;;  %1159 = vmatpush.bf16.msrb.mxu1 %v2200_v21  ;;  %v3071_v20 = vld [vmem:[#allocation8 + $0xa4] sm:$0xf0] }
  0xa5   :  { %1172 = vmatpush.bf16.msrb.mxu2 %v2328_v25  ;;  %v2636_v21 = vor.u32 %v3071_v20, %v2635_v19  ;;  %v3058_v25 = vld [vmem:[#allocation8 + $0x44] sm:$0xf]  ;;  %v2648_v19 = vor.u32 %v3072_v12, %v2645_v13  ;;  %v3087_v20 = vld [vmem:[#allocation8 + $0x124] sm:$0xf0] }
  0xa6   :  { %1185 = vmatpush.bf16.msrb.mxu3 %v2456_v26  ;;  %v2589_v26 = vld [vmem:[#allocation8 + $0x48] sm:$0xf0]  ;;  %v3107_v12 = vld [vmem:[#allocation8 + $0x1c4] sm:$0xf0]  ;;  %v3090_v13 = vld [vmem:[#allocation8 + $0x144] sm:$0xf] }
  0xa7   :  { %v2592_v35 = vor.u32 %v3058_v25, %v2589_v26  ;;  %v2637_v25 = vld [vmem:[#allocation8 + $0xa8] sm:$0xf0] }
  0xa8   :  { %1147 = vmatpush.bf16.msrb.mxu0 %v2056_v36  ;;  %1160 = vmatpush.bf16.msrb.mxu1 %v2184_v37  ;;  %v3056_v36 = vld [vmem:[#allocation8 + $0x34] sm:$0xf]  ;;  %v2581_v37 = vld [vmem:[#allocation8 + $0x38] sm:$0xf0]  ;;  %v2640_v31 = vor.u32 %v3070_v24, %v2637_v25 }
  0xa9   :  { %1173 = vmatpush.bf16.msrb.mxu2 %v2312_v38  ;;  %v2620_v38 = vor.u32 %v3067_v30, %v2619_v29  ;;  %v2584_v47 = vor.u32 %v3056_v36, %v2581_v37 }
  0xaa   :  { %1186 = vmatpush.bf16.msrb.mxu3 %v2440_v39  ;;  %v2731_v39 = vld [vmem:[#allocation8 + $0x160] sm:$0xf] }
  0xab   :  { %1148 = vmatmul.bf16.vlgmr.msrb.gmra.mxu0 %v3535_v45  ;;  %1161 = vmatmul.bf16.vlgmr.msrb.gmra.mxu1 %v3539_v51  ;;  %v2571_v45 = vld [vmem:[#allocation8 + $0x20] sm:$0xf] }
  0xac   :  { %1590 = vmatpush.bf16.msra.mxu0 %v2612_v40  ;;  %1603 = vmatpush.bf16.msra.mxu1 %v2676_v42  ;;  %v2572_v51 = vor.u32 %v3055_v61, %v2571_v45  ;;  %v3095_v40 = vld [vmem:[#allocation8 + $0x164] sm:$0xf0]  ;;  %v3076_v45 = vld [vmem:[#allocation8 + $0xd4] sm:$0xf] }
  0xad   :  { %1174 = vmatmul.bf16.vlgmr.msrb.gmra.mxu2 %v3533_v44  ;;  %1187 = vmatmul.bf16.vlgmr.msrb.gmra.mxu3 %v3537_v50  ;;  %v2659_v44 = vld [vmem:[#allocation8 + $0xd0] sm:$0xf]  ;;  %v2564_v50 = vor.u32 %v3053_v63, %v2563_v62  ;;  %v2732_v42 = vor.u32 %v3095_v40, %v2731_v39  ;;  %v2661_v63 = vld [vmem:[#allocation8 + $0xd8] sm:$0xf0] }
  0xae   :  { %v2660_v1 = vor.u32 %v3077_v0, %v2659_v44  ;;  %1616 = vmatpush.bf16.msra.mxu2 %v2740_v32  ;;  %v2715_v44 = vld [vmem:[#allocation8 + $0x140] sm:$0xf]  ;;  %v3091_v0 = vld [vmem:[#allocation8 + $0x144] sm:$0xf0]  ;;  %v2664_v3 = vor.u32 %v3076_v45, %v2661_v63  ;;  %v2691_v32 = vld [vmem:[#allocation8 + $0x110] sm:$0xf] }
  0xaf   :  { %v2716_v6 = vor.u32 %v3091_v0, %v2715_v44  ;;  %v2692_v39 = vor.u32 %v3085_v33, %v2691_v32  ;;  %v2755_v32 = vld [vmem:[#allocation8 + $0x190] sm:$0xf]  ;;  %v3101_v33 = vld [vmem:[#allocation8 + $0x194] sm:$0xf0] }
  0xb0   :  { %1591 = vmatpush.bf16.msra.mxu0 %v2604_v48  ;;  %1604 = vmatpush.bf16.msra.mxu1 %v2668_v49  ;;  %v3054_v48 = vld [vmem:[#allocation8 + $0x24] sm:$0xf]  ;;  %v2573_v49 = vld [vmem:[#allocation8 + $0x28] sm:$0xf0] }
  0xb2   :  { %1617 = vmatpush.bf16.msra.mxu2 %v2732_v42  ;;  %v2683_v42 = vld [vmem:[#allocation8 + $0x100] sm:$0xf] }
  0xb4   :  { %1592 = vmatpush.bf16.msra.mxu0 %v2596_v54  ;;  %1605 = vmatpush.bf16.msra.mxu1 %v2660_v1  ;;  %v2576_v54 = vor.u32 %v3054_v48, %v2573_v49  ;;  %v3096_v48 = vld [vmem:[#allocation8 + $0x174] sm:$0xf]  ;;  %v2741_v49 = vld [vmem:[#allocation8 + $0x178] sm:$0xf0] }
  0xb5   :  { %v2744_v58 = vor.u32 %v3096_v48, %v2741_v49  ;;  %v3112_v48 = vld [vmem:[#allocation8 + $0x1f4] sm:$0xf]  ;;  %v2805_v49 = vld [vmem:[#allocation8 + $0x1f8] sm:$0xf0] }
  0xb8   :  { %1593 = vmatpush.bf16.msra.mxu0 %v2588_v57  ;;  %1606 = vmatpush.bf16.msra.mxu1 %v2652_v9  ;;  %v2565_v57 = vld [vmem:[#allocation8 + $0x18] sm:$0xf0]  ;;  %v2707_v9 = vld [vmem:[#allocation8 + $0x130] sm:$0xf] }
  0xbc   :  { %1594 = vmatpush.bf16.msra.mxu0 %v2580_v60  ;;  %1607 = vmatpush.bf16.msra.mxu1 %v2644_v15  ;;  %v3093_v60 = vld [vmem:[#allocation8 + $0x154] sm:$0xf0] }
  0xbd   :  { %v2724_v62 = vor.u32 %v3093_v60, %v2723_v59  ;;  %v2795_v59 = vld [vmem:[#allocation8 + $0x1e0] sm:$0xf]  ;;  %v3111_v60 = vld [vmem:[#allocation8 + $0x1e4] sm:$0xf0] }
  0xbe   :  { %v2796_v45 = vor.u32 %v3111_v60, %v2795_v59 }
  0xbf   :  { %1618 = vmatpush.bf16.msra.mxu2 %v2724_v62 }
  0xc0   :  { %1595 = vmatpush.bf16.msra.mxu0 %v2572_v51  ;;  %1608 = vmatpush.bf16.msra.mxu1 %v2636_v21  ;;  %v2568_v51 = vor.u32 %v3052_v56, %v2565_v57  ;;  %v2803_v21 = vld [vmem:[#allocation8 + $0x1f0] sm:$0xf] }
  0xc1   :  { %v2804_v26 = vor.u32 %v3113_v22, %v2803_v21  ;;  %v3088_v22 = vld [vmem:[#allocation8 + $0x134] sm:$0xf] }
  0xc3   :  { %1619 = vmatpush.bf16.msra.mxu2 %v2716_v6  ;;  %1629 = vmatpush.bf16.msra.mxu3 %v2804_v26  ;;  %v3092_v6 = vld [vmem:[#allocation8 + $0x154] sm:$0xf]  ;;  %v2763_v26 = vld [vmem:[#allocation8 + $0x1a0] sm:$0xf] }
  0xc4   :  { %1596 = vmatpush.bf16.msra.mxu0 %v2564_v50  ;;  %1609 = vmatpush.bf16.msra.mxu1 %v2628_v27 }
  0xc7   :  { %1630 = vmatpush.bf16.msra.mxu3 %v2796_v45 }
  0xc8   :  { %1597 = vmatpush.bf16.msra.mxu0 %v2556_v8  ;;  %1610 = vmatpush.bf16.msra.mxu1 %v2620_v38  ;;  %v2656_v8 = vor.u32 %v3074_v4, %v2653_v5  ;;  %v337_v38 = vperm.slane %v3557_v52, 1  ;;  %v2787_v4 = vld [vmem:[#allocation8 + $0x1d0] sm:$0xf]  ;;  %v3109_v5 = vld [vmem:[#allocation8 + $0x1d4] sm:$0xf0] }
  0xcc   :  { %1642 = vmatpush.bf16.msrb.mxu0 %v2616_v10  ;;  %1655 = vmatpush.bf16.msrb.mxu1 %v2680_v41  ;;  %v3089_v10 = vld [vmem:[#allocation8 + $0x134] sm:$0xf0] }
  0xcd   :  { %v2708_v15 = vor.u32 %v3089_v10, %v2707_v9  ;;  %v2725_v9 = vld [vmem:[#allocation8 + $0x158] sm:$0xf0]  ;;  %v2779_v10 = vld [vmem:[#allocation8 + $0x1c0] sm:$0xf] }
  0xcf   :  { %1620 = vmatpush.bf16.msra.mxu2 %v2708_v15 }
  0xd0   :  { %1643 = vmatpush.bf16.msrb.mxu0 %v2608_v16  ;;  %1656 = vmatpush.bf16.msrb.mxu1 %v2672_v53  ;;  %v2699_v16 = vld [vmem:[#allocation8 + $0x120] sm:$0xf] }
  0xd1   :  { %v2700_v29 = vor.u32 %v3087_v20, %v2699_v16  ;;  %v2780_v16 = vor.u32 %v3107_v12, %v2779_v10  ;;  %v3105_v20 = vld [vmem:[#allocation8 + $0x1b4] sm:$0xf0]  ;;  %v2765_v12 = vld [vmem:[#allocation8 + $0x1a8] sm:$0xf0] }
  0xd3   :  { %1621 = vmatpush.bf16.msra.mxu2 %v2700_v29  ;;  %v2701_v29 = vld [vmem:[#allocation8 + $0x128] sm:$0xf0] }
  0xd4   :  { %1644 = vmatpush.bf16.msrb.mxu0 %v2600_v23  ;;  %1657 = vmatpush.bf16.msrb.mxu1 %v2664_v3 }
  0xd6   :  { %v993_v61 = vpop.f32.mrf.mxu0 }
  0xd7   :  { %v994_v50 = vadd.f32 %v993_v61, %v336_v55  ;;  %1622 = vmatpush.bf16.msra.mxu2 %v2692_v39  ;;  %v3094_v61 = vld [vmem:[#allocation8 + $0x164] sm:$0xf]  ;;  %v3099_v39 = vld [vmem:[#allocation8 + $0x184] sm:$0xf0] }
  0xd8   :  { %1645 = vmatpush.bf16.msrb.mxu0 %v2592_v35  ;;  %v1006_v1 = vpop.f32.mrf.mxu1  ;;  %1658 = vmatpush.bf16.msrb.mxu1 %v2656_v8  ;;  %v2629_v35 = vld [vmem:[#allocation8 + $0x98] sm:$0xf0]  ;;  %v2788_v8 = vor.u32 %v3109_v5, %v2787_v4 }
  0xd9   :  { %v1007_v7 = vadd.f32 %v1006_v1, %v994_v50  ;;  %v2632_v41 = vor.u32 %v3068_v34, %v2629_v35  ;;  %v3084_v34 = vld [vmem:[#allocation8 + $0x114] sm:$0xf]  ;;  %v2693_v35 = vld [vmem:[#allocation8 + $0x118] sm:$0xf0] }
  0xda   :  { %1631 = vmatpush.bf16.msra.mxu3 %v2788_v8 }
  0xdc   :  { %1646 = vmatpush.bf16.msrb.mxu0 %v2584_v47  ;;  %1659 = vmatpush.bf16.msrb.mxu1 %v2648_v19  ;;  %v2621_v47 = vld [vmem:[#allocation8 + $0x88] sm:$0xf0]  ;;  %v2771_v19 = vld [vmem:[#allocation8 + $0x1b0] sm:$0xf] }
  0xdd   :  { %v1019_v14 = vpop.f32.mrf.mxu2  ;;  %v2624_v57 = vor.u32 %v3066_v46, %v2621_v47  ;;  %v2772_v24 = vor.u32 %v3105_v20, %v2771_v19  ;;  %v339_v19 = vperm.slane %v3557_v52, 3 }
  0xde   :  { %v1020_v17 = vadd.f32 %v1019_v14, %v1007_v7  ;;  %v1032_v18 = vpop.f32.mrf.mxu3  ;;  %v995_v23 = vpop.f32.mrf.mxu0  ;;  %v2717_v14 = vld [vmem:[#allocation8 + $0x148] sm:$0xf0]  ;;  %1632 = vmatpush.bf16.msra.mxu3 %v2780_v16 }
  0xdf   :  { %v2709_v23 = vld [vmem:[#allocation8 + $0x138] sm:$0xf0] }
  0xe0   :  { %1647 = vmatpush.bf16.msrb.mxu0 %v2576_v54  ;;  %v1033_v27 = vadd.f32 %v1032_v18, %v1020_v17  ;;  %v1008_v28 = vpop.f32.mrf.mxu1  ;;  %1660 = vmatpush.bf16.msrb.mxu1 %v2640_v31  ;;  %v2684_v54 = vor.u32 %v3083_v43, %v2683_v42  ;;  %v2720_v18 = vor.u32 %v3090_v13, %v2717_v14  ;;  %v2685_v42 = vld [vmem:[#allocation8 + $0x108] sm:$0xf0]  ;;  %v3100_v14 = vld [vmem:[#allocation8 + $0x194] sm:$0xf] }
  0xe1   :  { %v2712_v25 = vor.u32 %v3088_v22, %v2709_v23  ;;  %v3086_v28 = vld [vmem:[#allocation8 + $0x124] sm:$0xf] }
  0xe2   :  { %v1192_v30 = vmax.f32 %v1033_v27, 0.0  ;;  %1623 = vmatpush.bf16.msra.mxu2 %v2684_v54  ;;  %v3103_v27 = vld [vmem:[#allocation8 + $0x1a4] sm:$0xf0]  ;;  %1633 = vmatpush.bf16.msra.mxu3 %v2772_v24  ;;  %v2704_v31 = vor.u32 %v3086_v28, %v2701_v29 }
  0xe4   :  { %1648 = vmatpush.bf16.msrb.mxu0 %v2568_v51  ;;  %v1196_v36 = vpack.c.bf16 %v1192_v30, %v1192_v30  ;;  %1661 = vmatpush.bf16.msrb.mxu1 %v2632_v41  ;;  %v2733_v51 = vld [vmem:[#allocation8 + $0x168] sm:$0xf0]  ;;  %v2764_v30 = vor.u32 %v3103_v27, %v2763_v26  ;;  %v3082_v41 = vld [vmem:[#allocation8 + $0x104] sm:$0xf] }
  0xe5   :  { %v1021_v37 = vpop.f32.mrf.mxu2  ;;  %v2736_v63 = vor.u32 %v3094_v61, %v2733_v51  ;;  %v2688_v47 = vor.u32 %v3082_v41, %v2685_v42  ;;  %v3120_v41 = vld [vmem:[#allocation11 + $0x30] sm:$0xff]  ;;  %v3119_v42 = vld [vmem:[#allocation11 + $0x28] sm:$0xff] }
  0xe6   :  { %1598 = vmatmul.bf16.vlgmr.msra.gmra.mxu0 %v1196_v36  ;;  %v1034_v40 = vpop.f32.mrf.mxu3  ;;  %1668 = vmatpush.bf16.msrb.mxu2 %v2744_v58  ;;  %v2696_v37 = vor.u32 %v3084_v34, %v2693_v35 }
  0xe7   :  { %1634 = vmatpush.bf16.msra.mxu3 %v2764_v30  ;;  %v338_v40 = vperm.slane %v3557_v52, 2 }
  0xe8   :  { %1649 = vmatpush.bf16.msrb.mxu0 %v2560_v11  ;;  %v1045_v53 = vpop.f32.mrf.mxu0  ;;  %v1058_v56 = vpop.f32.mrf.mxu1  ;;  %1662 = vmatpush.bf16.msrb.mxu1 %v2624_v57  ;;  %v2728_v11 = vor.u32 %v3092_v6, %v2725_v9  ;;  %v2797_v57 = vld [vmem:[#allocation8 + $0x1e8] sm:$0xf0]  ;;  %v3104_v6 = vld [vmem:[#allocation8 + $0x1b4] sm:$0xf] }
  0xe9   :  { %v1046_v55 = vadd.f32 %v1045_v53, %v337_v38  ;;  %v2747_v38 = vld [vmem:[#allocation8 + $0x180] sm:$0xf] }
  0xea   :  { %1669 = vmatpush.bf16.msrb.mxu2 %v2736_v63  ;;  %v2748_v43 = vor.u32 %v3099_v39, %v2747_v38  ;;  %v3121_v38 = vld [vmem:[#allocation11 + $0x38] sm:$0xff] }
  0xeb   :  { %v1059_v62 = vadd.f32 %v1058_v56, %v1046_v55  ;;  %v2808_v55 = vor.u32 %v3112_v48, %v2805_v49  ;;  %v3110_v56 = vld [vmem:[#allocation8 + $0x1e4] sm:$0xf]  ;;  %v3117_v48 = vld [vmem:[#allocation11 + $0x18] sm:$0xff] }
  0xec   :  { %v2800_v59 = vor.u32 %v3110_v56, %v2797_v57  ;;  %1830 = vmatpush.bf16.msra.mxu0 %v3121_v38  ;;  %v3115_v56 = vld [vmem:[#allocation11 + $0x8] sm:$0xff]  ;;  %v3159_v38 = vld [vmem:[#allocation14] ss:$0 sm:$0xff] }
  0xed   :  { %v3127_v57 = vld [vmem:[#allocation11 + $0x68] sm:$0xff] }
  0xee   :  { %1670 = vmatpush.bf16.msrb.mxu2 %v2728_v11  ;;  %v3102_v11 = vld [vmem:[#allocation8 + $0x1a4] sm:$0xf] }
  0xef   :  { %v2768_v13 = vor.u32 %v3102_v11, %v2765_v12 }
  0xf0   :  { %v1084_v50 = vpop.f32.mrf.mxu3  ;;  %v1047_v1 = vpop.f32.mrf.mxu0  ;;  %1831 = vmatpush.bf16.msra.mxu0 %v3120_v41 }
  0xf1   :  { %v1071_v44 = vpop.f32.mrf.mxu2  ;;  %v1060_v3 = vpop.f32.mrf.mxu1 }
  0xf2   :  { %v1072_v0 = vadd.f32 %v1071_v44, %v1059_v62  ;;  %1671 = vmatpush.bf16.msrb.mxu2 %v2720_v18  ;;  %v3108_v44 = vld [vmem:[#allocation8 + $0x1d4] sm:$0xf]  ;;  %v2781_v3 = vld [vmem:[#allocation8 + $0x1c8] sm:$0xf0] }
  0xf3   :  { %v2749_v18 = vld [vmem:[#allocation8 + $0x188] sm:$0xf0] }
  0xf4   :  { %v1085_v2 = vadd.f32 %v1084_v50, %v1072_v0  ;;  %v2789_v0 = vld [vmem:[#allocation8 + $0x1d8] sm:$0xf0]  ;;  %1832 = vmatpush.bf16.msra.mxu0 %v3119_v42 }
  0xf5   :  { %v2792_v50 = vor.u32 %v3108_v44, %v2789_v0  ;;  %v3122_v0 = vld [vmem:[#allocation11 + $0x40] sm:$0xff] }
  0xf6   :  { %v1193_v7 = vmax.f32 %v1085_v2, 0.0  ;;  %1650 = vmatmul.bf16.vlgmr.msrb.gmra.mxu0 %v1196_v36  ;;  %1672 = vmatpush.bf16.msrb.mxu2 %v2712_v25  ;;  %v2756_v36 = vor.u32 %v3101_v33, %v2755_v32  ;;  %v3106_v2 = vld [vmem:[#allocation8 + $0x1c4] sm:$0xf] }
  0xf7   :  { %v2784_v4 = vor.u32 %v3106_v2, %v2781_v3  ;;  %v3136_v3 = vld [vmem:[%s3613_s8 + $0x30] sm:$0xff] }
  0xf8   :  { %v1197_v15 = vpack.c.bf16 %v1193_v7, %v1193_v7  ;;  %v1086_v21 = vpop.f32.mrf.mxu3  ;;  %1635 = vmatpush.bf16.msra.mxu3 %v2756_v36  ;;  %v2773_v7 = vld [vmem:[#allocation8 + $0x1b8] sm:$0xf0] }
  0xf9   :  { %v1073_v17 = vpop.f32.mrf.mxu2  ;;  %v2776_v10 = vor.u32 %v3104_v6, %v2773_v7 }
  0xfa   :  { %1611 = vmatmul.bf16.vlgmr.msra.gmra.mxu1 %v1197_v15  ;;  %1673 = vmatpush.bf16.msrb.mxu2 %v2704_v31  ;;  %v3098_v17 = vld [vmem:[#allocation8 + $0x184] sm:$0xf] }
  0xfb   :  { %v2752_v20 = vor.u32 %v3098_v17, %v2749_v18 }
  0xfc   :  { %1636 = vmatpush.bf16.msra.mxu3 %v2748_v43 }
  0xfe   :  { %1674 = vmatpush.bf16.msrb.mxu2 %v2696_v37 }
 0x100   :  { %1681 = vmatpush.bf16.msrb.mxu3 %v2808_v55 }
 0x102   :  { %1675 = vmatpush.bf16.msrb.mxu2 %v2688_v47  ;;  %v3129_v47 = vld [vmem:[#allocation11 + $0x78] sm:$0xff] }
 0x103   :  { %1843 = vmatpush.bf16.msra.mxu1 %v3129_v47 }
 0x104   :  { %1682 = vmatpush.bf16.msrb.mxu3 %v2800_v59  ;;  %v3126_v59 = vld [vmem:[#allocation11 + $0x60] sm:$0xff] }
 0x108   :  { %v1097_v46 = vpop.f32.mrf.mxu0  ;;  %v1110_v54 = vpop.f32.mrf.mxu1  ;;  %1683 = vmatpush.bf16.msrb.mxu3 %v2792_v50  ;;  %v3137_v50 = vld [vmem:[%s3613_s8 + $0x38] sm:$0xff] }
 0x109   :  { %v1098_v53 = vadd.f32 %v1097_v46, %v338_v40  ;;  %v3118_v46 = vld [vmem:[#allocation11 + $0x20] sm:$0xff] }
 0x10a   :  { %1663 = vmatmul.bf16.vlgmr.msrb.gmra.mxu1 %v1197_v15  ;;  %v2757_v15 = vld [vmem:[#allocation8 + $0x198] sm:$0xf0]  ;;  %1833 = vmatpush.bf16.msra.mxu0 %v3118_v46  ;;  %v3160_v46 = vld [vmem:[#allocation16] ss:$0 sm:$0xff] }
 0x10b   :  { %v1111_v58 = vadd.f32 %v1110_v54, %v1098_v53  ;;  %v2760_v16 = vor.u32 %v3100_v14, %v2757_v15  ;;  %v3116_v53 = vld [vmem:[#allocation11 + $0x10] sm:$0xff] }
 0x10c   :  { %1684 = vmatpush.bf16.msrb.mxu3 %v2784_v4  ;;  %v3128_v54 = vld [vmem:[#allocation11 + $0x70] sm:$0xff] }
 0x10d   :  { %1844 = vmatpush.bf16.msra.mxu1 %v3128_v54 }
 0x10e   :  { %1834 = vmatpush.bf16.msra.mxu0 %v3117_v48 }
 0x110   :  { %v1136_v61 = vpop.f32.mrf.mxu3  ;;  %v1099_v51 = vpop.f32.mrf.mxu0  ;;  %1685 = vmatpush.bf16.msrb.mxu3 %v2776_v10 }
 0x111   :  { %v1123_v60 = vpop.f32.mrf.mxu2  ;;  %v1112_v63 = vpop.f32.mrf.mxu1  ;;  %1845 = vmatpush.bf16.msra.mxu1 %v3127_v57  ;;  %v1264_v51 = vld [vmem:[#allocation10] sm:$0x3] }
 0x112   :  { %v1124_v45 = vadd.f32 %v1123_v60, %v1111_v58  ;;  %1835 = vmatpush.bf16.msra.mxu0 %v3116_v53  ;;  %v3114_v58 = vld [vmem:[#allocation11] sm:$0xff]  ;;  %v3123_v63 = vld [vmem:[#allocation11 + $0x48] sm:$0xff]  ;;  %v1266_v44 = vperm.slane %v1264_v51, 0  ;;  %v1267_v10 = vperm.slane %v1264_v51, 1 }
 0x114   :  { %v1137_v62 = vadd.f32 %v1136_v61, %v1124_v45  ;;  %1686 = vmatpush.bf16.msrb.mxu3 %v2768_v13  ;;  %v3125_v45 = vld [vmem:[#allocation11 + $0x58] sm:$0xff]  ;;  %v3124_v61 = vld [vmem:[#allocation11 + $0x50] sm:$0xff] }
 0x115   :  { %1846 = vmatpush.bf16.msra.mxu1 %v3126_v59 }
 0x116   :  { %v1194_v1 = vmax.f32 %v1137_v62, 0.0  ;;  %1836 = vmatpush.bf16.msra.mxu0 %v3115_v56 }
 0x118   :  { %v1198_v5 = vpack.c.bf16 %v1194_v1, %v1194_v1  ;;  %v1138_v9 = vpop.f32.mrf.mxu3  ;;  %1687 = vmatpush.bf16.msrb.mxu3 %v2760_v16 }
 0x119   :  { %v1125_v8 = vpop.f32.mrf.mxu2  ;;  %1847 = vmatpush.bf16.msra.mxu1 %v3125_v45 }
 0x11a   :  { %1624 = vmatmul.bf16.vlgmr.msra.gmra.mxu2 %v1198_v5  ;;  %1837 = vmatpush.bf16.msra.mxu0 %v3114_v58 }
 0x11b   :  { %1926 = vmatpush.bf16.msra.mxu2 %v3137_v50 }
 0x11c   :  { %1688 = vmatpush.bf16.msrb.mxu3 %v2752_v20  ;;  %v3135_v20 = vld [vmem:[%s3613_s8 + $0x28] sm:$0xff] }
 0x11d   :  { %1848 = vmatpush.bf16.msra.mxu1 %v3124_v61 }
 0x11f   :  { %1927 = vmatpush.bf16.msra.mxu2 %v3136_v3 }
 0x121   :  { %1849 = vmatpush.bf16.msra.mxu1 %v3123_v63 }
 0x123   :  { %1928 = vmatpush.bf16.msra.mxu2 %v3135_v20 }
 0x125   :  { %1850 = vmatpush.bf16.msra.mxu1 %v3122_v0 }
 0x128   :  { %v1149_v21 = vpop.f32.mrf.mxu0  ;;  %v1162_v22 = vpop.f32.mrf.mxu1 }
 0x129   :  { %v1150_v23 = vadd.f32 %v1149_v21, %v339_v19  ;;  %v3134_v21 = vld [vmem:[%s3613_s8 + $0x20] sm:$0xff] }
 0x12a   :  { %1676 = vmatmul.bf16.vlgmr.msrb.gmra.mxu2 %v1198_v5 }
 0x12b   :  { %v1163_v24 = vadd.f32 %v1162_v22, %v1150_v23  ;;  %1929 = vmatpush.bf16.msra.mxu2 %v3134_v21  ;;  %v3133_v22 = vld [vmem:[%s3613_s8 + $0x18] sm:$0xff]  ;;  %v3132_v23 = vld [vmem:[%s3613_s8 + $0x10] sm:$0xff] }
 0x12f   :  { %1930 = vmatpush.bf16.msra.mxu2 %v3133_v22 }
 0x130   :  { %v1175_v25 = vpop.f32.mrf.mxu2  ;;  %v1188_v26 = vpop.f32.mrf.mxu3 }
 0x131   :  { %v1176_v27 = vadd.f32 %v1175_v25, %v1163_v24  ;;  %v1151_v28 = vpop.f32.mrf.mxu0  ;;  %v1164_v29 = vpop.f32.mrf.mxu1  ;;  %v3131_v24 = vld [vmem:[%s3613_s8 + $0x8] sm:$0xff]  ;;  %v3130_v25 = vld [vmem:[%s3613_s8] sm:$0xff] }
 0x132   :  { %v3139_v28 = vld [vmem:[%s3615_s10 + $0x8] sm:$0xff] }
 0x133   :  { %v1189_v30 = vadd.f32 %v1188_v26, %v1176_v27  ;;  %1931 = vmatpush.bf16.msra.mxu2 %v3132_v23  ;;  %v3141_v26 = vld [vmem:[%s3615_s10 + $0x18] sm:$0xff]  ;;  %v3140_v27 = vld [vmem:[%s3615_s10 + $0x10] sm:$0xff] }
 0x135   :  { %v1195_v31 = vmax.f32 %v1189_v30, 0.0 }
 0x137   :  { %v1199_v32 = vpack.c.bf16 %v1195_v31, %v1195_v31  ;;  %1932 = vmatpush.bf16.msra.mxu2 %v3131_v24  ;;  %v3158_v31 = vld [vmem:[#allocation13] ss:$0 sm:$0xff] }
 0x138   :  { %v1177_v33 = vpop.f32.mrf.mxu2  ;;  %v1190_v34 = vpop.f32.mrf.mxu3 }
 0x139   :  { %1637 = vmatmul.bf16.vlgmr.msra.gmra.mxu3 %v1199_v32 }
 0x13a   :  { %1985 = vmatpush.bf16.msra.mxu3 %v3141_v26 }
 0x13b   :  { %1933 = vmatpush.bf16.msra.mxu2 %v3130_v25 }
 0x13e   :  { %1986 = vmatpush.bf16.msra.mxu3 %v3140_v27 }
 0x142   :  { %1987 = vmatpush.bf16.msra.mxu3 %v3139_v28 }
 0x149   :  { %1689 = vmatmul.bf16.vlgmr.msrb.gmra.mxu3 %v1199_v32 }
 0x163   :  { %v1599_v52 = vpop.f32.mrf.mxu0 }
 0x164   :  { %v1600_v1 = vadd.f32 %v1599_v52, %v1266_v44 }
 0x16b   :  { %v1601_v35 = vpop.f32.mrf.mxu0 }
 0x173   :  { %v1651_v36 = vpop.f32.mrf.mxu0 }
 0x174   :  { %v1652_v12 = vadd.f32 %v1651_v36, %v1267_v10 }
 0x177   :  { %v1612_v37 = vpop.f32.mrf.mxu1 }
 0x178   :  { %v1613_v4 = vadd.f32 %v1612_v37, %v1600_v1  ;;  %v3138_v37 = vld [vmem:[%s3615_s10] sm:$0xff]  ;;  %s3432_s10 = smov [#allocation17]  }
 0x179   :  { %1988 = vmatpush.bf16.msra.mxu3 %v3138_v37  ;;  %s2025_s26 = sshll.u32 %s3432_s10, 4  ;;  %s2026_s26 = int_to_ptr.vmem [resolvable:$true] %s2025_s26 }
 0x17b   :  { %v1653_v39 = vpop.f32.mrf.mxu0 }
 0x17f   :  { %v1614_v40 = vpop.f32.mrf.mxu1 }
 0x187   :  { %v1664_v43 = vpop.f32.mrf.mxu1 }
 0x188   :  { %v1665_v13 = vadd.f32 %v1664_v43, %v1652_v12 }
 0x18f   :  { %v1666_v49 = vpop.f32.mrf.mxu1 }
 0x19d   :  { %v1625_v55 = vpop.f32.mrf.mxu2 }
 0x19e   :  { %v1626_v5 = vadd.f32 %v1625_v55, %v1613_v4 }
 0x1a5   :  { %v1627_v60 = vpop.f32.mrf.mxu2 }
 0x1ad   :  { %v1677_v62 = vpop.f32.mrf.mxu2 }
 0x1ae   :  { %v1678_v14 = vadd.f32 %v1677_v62, %v1665_v13 }
 0x1b5   :  { %v1679_v2 = vpop.f32.mrf.mxu2 }
 0x1bc   :  { %v1638_v6 = vpop.f32.mrf.mxu3 }
 0x1bd   :  { %v1639_v7 = vadd.f32 %v1638_v6, %v1626_v5 }
 0x1bf   :  { %v1694_v8 = vmax.f32 %v1639_v7, 0.0 }
 0x1c1   :  { %v1696_v9 = vpack.c.bf16 %v1694_v8, %v1694_v8 }
 0x1c3   :  { %1838 = vmatmul.bf16.vlgmr.msra.gmra.mxu0 %v1696_v9 }
 0x1c4   :  { %v1640_v11 = vpop.f32.mrf.mxu3 }
 0x1cc   :  { %v1690_v15 = vpop.f32.mrf.mxu3 }
 0x1cd   :  { %v1691_v16 = vadd.f32 %v1690_v15, %v1678_v14 }
 0x1cf   :  { %v1695_v17 = vmax.f32 %v1691_v16, 0.0 }
 0x1d1   :  { %v1697_v18 = vpack.c.bf16 %v1695_v17, %v1695_v17 }
 0x1d3   :  { %1851 = vmatmul.bf16.vlgmr.msra.gmra.mxu1 %v1697_v18 }
 0x1d4   :  { %v1692_v19 = vpop.f32.mrf.mxu3 }
 0x240   :  { %v1839_v29 = vpop.f32.mrf.mxu0 }
 0x241   :  { %v1840_v32 = vadd.f32 %v3158_v31, %v1839_v29 }
 0x248   :  { %v1841_v30 = vpop.f32.mrf.mxu0 }
 0x250   :  { %v1852_v33 = vpop.f32.mrf.mxu1 }
 0x251   :  { %v1853_v34 = vadd.f32 %v1852_v33, %v1840_v32 }
 0x253   :  { %v1856_v52 = vmax.f32 %v1853_v34, 0.0 }
 0x255   :  { %v1857_v35 = vpack.c.bf16 %v1856_v52, %v1856_v52 }
 0x257   :  { %1934 = vmatmul.bf16.vlgmr.msra.gmra.mxu2 %v1857_v35 }
 0x258   :  { %v1854_v36 = vpop.f32.mrf.mxu1 }
 0x2da   :  { %v1935_v39 = vpop.f32.mrf.mxu2 }
 0x2db   :  { %v1936_v40 = vadd.f32 %v3159_v38, %v1935_v39 }
 0x2dd   :  { %v1939_v41 = vmax.f32 %v1936_v40, 0.0 }
 0x2df   :  { %v1940_v42 = vpack.c.bf16 %v1939_v41, %v1939_v41 }
 0x2e1   :  { %2921 = vmatmul.msk.bf16.vlgmr.msra.gmra.mxu3 %vm1977_vm3, %v1940_v42 }
 0x2e2   :  { %v1937_v43 = vpop.f32.mrf.mxu2 }
 0x364   :  { %v1990_v47 = vpop.f32.mrf.mxu3 }
 0x365   :  { %v1991_v48 = vadd.f32 %v3160_v46, %v1990_v47 }
 0x367   :  { %v1995_v49 = vsel %vm1994_vm4, %v1991_v48, -inf }
 0x368   :  { %1996 = vmax.xlane.f32.xlu0 %v1995_v49 }
 0x36c   :  { %v1992_v53 = vpop.f32.mrf.mxu3 }
 0x3db   :  { %v1997_v54 = vpop.xlane.xlu0 %1996 }
 0x3dc   :  { %v1998_v55 = vsub.f32 %v1991_v48, %v1997_v54 }
 0x3de   :  { %v1999_v56 = vmul.f32 1.442695, %v1998_v55 }
 0x3e0   :  { %3161 = vpow2.f32 %v1999_v56 }
 0x3e6   :  { %v3162_v57 = vpop.eup %3161 }
 0x3e7   :  { %v2001_v58 = vsel %vm1994_vm4, %v3162_v57, 0.0 }
 0x3e8   :  { %2002 = vadd.xlane.f32.xlu0 %v2001_v58 }
 0x45b   :  { %v2003_v59 = vpop.xlane.xlu0 %2002 }
 0x45c   :  { %3163 = vrcp.f32 %v2003_v59  ;;  %v2015_v51 = vand.u32 2147483648, %v2003_v59  ;;  %v2013_v63 = vand.u32 2147483647, %v2003_v59  ;;  %vm2009_vm6 = vweird.f32 %v2003_v59 }
 0x45e   :  { %v2016_v0 = vor.u32 1.1754944e-38, %v2015_v51  ;;  %vm2014_vm8 = vcmp.eq.f32.partialorder %v2013_v63, 8.507059e+37 }
 0x462   :  { %v3164_v60 = vpop.eup %3163 }
 0x463   :  { %v2005_v45 = vmul.f32 %v3164_v60, %v2003_v59  ;;  %vm2010_vm5 = vweird.f32 %v3164_v60 }
 0x464   :  { %vm2011_vm7 = vmor %vm2009_vm6, %vm2010_vm5 }
 0x465   :  { %v2006_v61 = vsub.f32 1.0, %v2005_v45 }
 0x467   :  { %v2007_v62 = vmul.f32 %v3164_v60, %v2006_v61 }
 0x469   :  { %v2008_v44 = vadd.f32 %v3164_v60, %v2007_v62 }
 0x46b   :  { %v2012_v50 = vsel %vm2011_vm7, %v3164_v60, %v2008_v44 }
 0x46c   :  { %v2017_v1 = vsel %vm2014_vm8, %v2016_v0, %v2012_v50 }
 0x46d   :  { %v2018_v2 = vmul.f32 %v3162_v57, %v2017_v1 }
 0x46f   :  { %2019 = vst.msk [vmem:[#allocation17] sm:$0x3] %vm1994_vm4, %v2018_v2 }
 0x470   :  { %2030 = dma.vmem_to_hbm [thread:$0]  %s2026_s26, 32, %s2028_s27, [#allocation4]  }
 0x471   :  { %3415 = dma.done.wait [#allocation4], 32  }
 0x472   :  { %3416 = vsyncadd [#allocation4], 4294967264 }
 0x473   :  { %2035 = vsyncpa [#allocation3], 1 }
 0x474   :  { %2036 = vsyncpa [#allocation6], 1 }
 0x475   :  { %2037 = vsyncpa [#allocation9], 1 }
 0x476   :  { %2038 = vsyncpa [#allocation12], 1 }
 0x477   :  { %2039 = vsyncpa [#allocation15], 1 }
 0x478   :  { %2040 = vsyncpa [#allocation4], 1 }

// kernel: neural_net_forward.2
= control target key start
LH: loop header
LB: loop body
LE: loop exit
PB: predicated region body
PF: predicated region fallthrough
CT: control target
= control target key end

     0   :  { %7 = vsyncpa [#allocation3], 0  ;;  %s19797_s0 = inlined_call_operand.vmem [shape: bf16[2,30720], index: 0, kind: input, shape index: {}]   ;;  %s19798_s1 = inlined_call_operand.hbm [shape: bf16[30720,512], index: 1, kind: input, shape index: {}]   ;;  %s19799_s2 = inlined_call_operand.vmem [shape: f32[2,2,512], index: 2, kind: output, shape index: {}]  }
   0x1   :  { %9 = vsyncpa [#allocation3 + $0x1], 0  ;;  %s16819_s9 = smov 0   ;;  %s16821_s10 = smov 0  }
   0x2   :  { %s16823_s11 = smov 0   ;;  %s16825_s12 = smov 0  }
   0x3   :  { %s16827_s13 = smov 0   ;;  %s16829_s14 = smov 0  }
   0x4   :  { %s16831_s15 = smov 0   ;;  %s16833_s16 = smov 0  }
   0x5 LB: > { %s10187_s17 = sadd.s32 4294967295, %s16799_s16   ;;  %s24_s18 = sadd.s32 1, %s16791_s14  ;;  %s16799_s16 = sphi %s16833_s16, %s15_s16   ;;  %s16795_s15 = sphi %s16831_s15, %s19807_s15   ;;  %s16791_s14 = sphi %s16829_s14, %s19806_s14   ;;  %s16787_s13 = sphi %s16827_s13, %s19805_s13   ;;  %s16783_s12 = sphi %s16825_s12, %s19804_s12   ;;  %s16779_s11 = sphi %s16823_s11, %s19803_s11   ;;  %s16775_s10 = sphi %s16821_s10, %s19802_s10   ;;  %s16771_s9 = sphi %s16819_s9, %s19801_s9  }
   0x6   : > { %p25_p0 = scmp.ge.s32.totalorder %s24_s18, 3  ;;  %s27_s19 = sadd.s32 1, %s16795_s15 }
   0x7   : > { %s61_s20 = smul.u32 3, %s16795_s15  ;;  %s68_s21 = sadd.s32 1, %s16779_s11 }
   0x8   : > { %s19809_s18 = smov (%p25_p0, %s24_s18), 0  ;;  %s19811_s19 = smov (!%p25_p0, %s27_s19), %s16795_s15 }
   0x9   : > { %s62_s22 = sadd.s32 %s16791_s14, %s61_s20  ;;  %p75_p1 = scmp.ne.s32.totalorder %s16779_s11, %s16775_s10 }
   0xa   : > { %p29_p2 = scmp.ge.s32.totalorder %s19811_s19, 2  ;;  %p76_p3 = scmp.eq.s32.totalorder %s16799_s16, 0 }
   0xb   : > { %p81_p4 = scmp.ne.s32.totalorder %s16775_s10, %s16771_s9  ;;  %p82_p5 = scmp.eq.s32.totalorder %s10187_s17, 0 }
   0xc   : > { %s19813_s19 = smov (%p29_p2, %s19811_s19), 0  ;;  %p77_p6 = por %p76_p3, %p75_p1 }
   0xd   : > { %p16872_p7 = por %p82_p5, %p81_p4  ;;  %s63_s24 = smul.u32 3, %s19813_s19 }
   0xe   : > { %p16611_p8 = scmp.lt.s32.totalorder %s16799_s16, 6  ;;  %s143_s25 = sand.u32 1, %s16779_s11  }
   0xf   : > { %s64_s26 = sadd.s32 %s63_s24, %s19809_s18  ;;  %s16603_s28 = smul.u32 10240, %s143_s25 }
  0x10   : > { %s65_s27 = ssub.s32 %s62_s22, %s64_s26  ;;  %s16602_s29 = smul.u32 10240, %s62_s22 }
  0x11   : > { %p66_p9 = scmp.eq.s32.totalorder %s65_s27, 0  ;;  %p16608_p10 = pnand %p16611_p8, %p77_p6 }
  0x12   : > { %s155_s5 = scalar_lea.hbm %s19798_s1, %s16602_s29  ;;  %s147_s6 = scalar_lea.vmem [#allocation2], %s16603_s28 }
  0x13   : > { %s16881_s30 = scalar_select %p66_p9, %s16779_s11, %s68_s21  }
  0x14   : > { %s158_s7 = sshll.u32 %s147_s6, 4  ;;  %s156_s8 = sshll.u32 %s155_s5, 4  ;;  %s159_s7 = int_to_ptr.vmem [resolvable:$true] %s158_s7  ;;  %s157_s8 = int_to_ptr.hbm [resolvable:$true] %s156_s8 }
  0x15   : > { %s144_s9 = scalar_lea.sflag [#allocation3], %s143_s25  ;;  %s16801_s17 = smov 256  }
  0x16   : > { %s16802_s20 = smov 16   ;;  %p10193_p11 = scmp.ge.s32.totalorder %s16799_s16, 1 }
  0x17   : > { %16610 = dma.hbm_to_vmem [thread:$0]  (!%p16608_p10), %s157_s8, 163840, %s159_s7, %s144_s9, %s16801_s17, %s16801_s17, %s16802_s20  }
  0x18   : > { %p166_p12 = scmp.lt.s32.totalorder %s16799_s16, 7 }
  0x1a   : > { %p167_p13 = pnand %p10193_p11, %p166_p12 }
  0x1b   : > { %s172_s21 = sand.u32 (!%p167_p13), 1, %s16775_s10  }
  0x1c   : > { %170 = sbr.rel (%p167_p13) target bundleno = 1482 (0x5ca), region = 28  ;;  %s173_s24 = scalar_lea.sflag (!%p167_p13), [#allocation3], %s172_s21 }
  0x1d   : > { %s16604_s22 = smul.u32 (!%p167_p13), 10240, %s172_s21 }
  0x1f   : > { %s16889_s26 = scalar_lea.vmem (!%p167_p13), [#allocation2], %s16604_s22 }
  0x21   : > { %16766 = dma.done.wait (%p16872_p7), %s173_s24, 163840  }
  0x22   : > { %16768 = vsyncadd (%p16872_p7), %s173_s24, 4294803456  ;;  %s204_s25 = smul.u32 3, %s16787_s13  ;;  %p216_p0 = scmp.lt.s32.totalorder %s16787_s13, 1 }
  0x23   : > { %p10196_p2 = scmp.ne.s32.totalorder %s16783_s12, 0 }
  0x24   : > { %s205_s27 = sadd.s32 %s16783_s12, %s204_s25  ;;  %s19815_s13 = smov (!%p216_p0, %s16787_s13), 1 }
  0x25   : > { %s206_s28 = smul.u32 40, %s205_s27  ;;  %s15321_s29 = sshll.u32 %s19815_s13, 3 }
  0x26   : > { %s16902_s5 = scalar_lea.vmem %s19799_s2, %s15321_s29  ;;  %224 = sbr.rel (%p10196_p2) target bundleno = 45 (0x2d), region = 36 }
  0x27   : > { %p207_p1 = scmp.lt.s32.totalorder %s206_s28, 239 }
  0x29   : > { %s19817_s28 = smov (!%p207_p1, %s206_s28), 239 }
  0x2a   : > { %s16907_s7 = scalar_lea.vmem %s19797_s0, %s19817_s28 }
  0x2b   : > { %v16803_v0 = vmov 0.0  }
  0x2c   : > { %225 = vst [vmem:[%s16902_s5] sm:$0xff] %v16803_v0 }
  0x2d PF: > { %v10311_v1 = vld [vmem:[%s16889_s26 + $0xe0] sm:$0xf]  ;;  %v15352_v2 = vld [vmem:[%s16889_s26 + $0xec] sm:$0xf0]  ;;  %vm10089_vm0 = vcmask 1041408   ;;  %vm10091_vm1 = vcmask 1045508  }
  0x2e   : > { %v10439_v3 = vld [vmem:[%s16889_s26 + $0x1e0] sm:$0xf]  ;;  %v10312_v4 = vor.u32 %v15352_v2, %v10311_v1  ;;  %v15384_v5 = vld [vmem:[%s16889_s26 + $0x1ec] sm:$0xf0]  ;;  %vm10093_vm2 = vcmask 1043456  }
  0x2f   : > { %v10567_v6 = vld [vmem:[%s16889_s26 + $0x2e0] sm:$0xf]  ;;  %v15416_v7 = vld [vmem:[%s16889_s26 + $0x2ec] sm:$0xf0]  ;;  %v10440_v8 = vor.u32 %v15384_v5, %v10439_v3 }
  0x30   : > { %v10568_v9 = vor.u32 %v15416_v7, %v10567_v6  ;;  %v10695_v10 = vld [vmem:[%s16889_s26 + $0x3e0] sm:$0xf]  ;;  %v15448_v11 = vld [vmem:[%s16889_s26 + $0x3ec] sm:$0xf0]  ;;  %8002 = vmatpush.bf16.msra.mxu0 %v10312_v4 }
  0x31   : > { %v10295_v12 = vld [vmem:[%s16889_s26 + $0xc0] sm:$0xf]  ;;  %v10696_v13 = vor.u32 %v15448_v11, %v10695_v10  ;;  %v15348_v14 = vld [vmem:[%s16889_s26 + $0xcc] sm:$0xf0]  ;;  %8015 = vmatpush.bf16.msra.mxu1 %v10440_v8 }
  0x32   : > { %v10423_v15 = vld [vmem:[%s16889_s26 + $0x1c0] sm:$0xf]  ;;  %v15380_v16 = vld [vmem:[%s16889_s26 + $0x1cc] sm:$0xf0]  ;;  %8028 = vmatpush.bf16.msra.mxu2 %v10568_v9  ;;  %v10296_v17 = vor.u32 %v15348_v14, %v10295_v12 }
  0x33   : > { %v10424_v18 = vor.u32 %v15380_v16, %v10423_v15  ;;  %v10551_v19 = vld [vmem:[%s16889_s26 + $0x2c0] sm:$0xf]  ;;  %v15412_v20 = vld [vmem:[%s16889_s26 + $0x2cc] sm:$0xf0]  ;;  %8041 = vmatpush.bf16.msra.mxu3 %v10696_v13 }
  0x34   : > { %v10679_v21 = vld [vmem:[%s16889_s26 + $0x3c0] sm:$0xf]  ;;  %v10552_v22 = vor.u32 %v15412_v20, %v10551_v19  ;;  %v15444_v23 = vld [vmem:[%s16889_s26 + $0x3cc] sm:$0xf0]  ;;  %8003 = vmatpush.bf16.msra.mxu0 %v10296_v17 }
  0x35   : > { %v10279_v24 = vld [vmem:[%s16889_s26 + $0xa0] sm:$0xf]  ;;  %v15344_v25 = vld [vmem:[%s16889_s26 + $0xac] sm:$0xf0]  ;;  %v10680_v26 = vor.u32 %v15444_v23, %v10679_v21  ;;  %8016 = vmatpush.bf16.msra.mxu1 %v10424_v18 }
  0x36   : > { %v10407_v27 = vld [vmem:[%s16889_s26 + $0x1a0] sm:$0xf]  ;;  %v15376_v28 = vld [vmem:[%s16889_s26 + $0x1ac] sm:$0xf0]  ;;  %v10280_v30 = vor.u32 %v15344_v25, %v10279_v24  ;;  %8029 = vmatpush.bf16.msra.mxu2 %v10552_v22 }
  0x37   : > { %v10535_v29 = vld [vmem:[%s16889_s26 + $0x2a0] sm:$0xf]  ;;  %v15408_v31 = vld [vmem:[%s16889_s26 + $0x2ac] sm:$0xf0]  ;;  %v10408_v34 = vor.u32 %v15376_v28, %v10407_v27  ;;  %8042 = vmatpush.bf16.msra.mxu3 %v10680_v26 }
  0x38   : > { %v10663_v32 = vld [vmem:[%s16889_s26 + $0x3a0] sm:$0xf]  ;;  %v15440_v33 = vld [vmem:[%s16889_s26 + $0x3ac] sm:$0xf0]  ;;  %v10536_v35 = vor.u32 %v15408_v31, %v10535_v29  ;;  %8004 = vmatpush.bf16.msra.mxu0 %v10280_v30 }
  0x39   : > { %v10263_v36 = vld [vmem:[%s16889_s26 + $0x80] sm:$0xf]  ;;  %v15340_v37 = vld [vmem:[%s16889_s26 + $0x8c] sm:$0xf0]  ;;  %v10664_v39 = vor.u32 %v15440_v33, %v10663_v32  ;;  %8017 = vmatpush.bf16.msra.mxu1 %v10408_v34 }
  0x3a   : > { %v10391_v38 = vld [vmem:[%s16889_s26 + $0x180] sm:$0xf]  ;;  %v15372_v40 = vld [vmem:[%s16889_s26 + $0x18c] sm:$0xf0]  ;;  %v10264_v45 = vor.u32 %v15340_v37, %v10263_v36  ;;  %8030 = vmatpush.bf16.msra.mxu2 %v10536_v35 }
  0x3b   : > { %v10519_v41 = vld [vmem:[%s16889_s26 + $0x280] sm:$0xf]  ;;  %v15404_v42 = vld [vmem:[%s16889_s26 + $0x28c] sm:$0xf0]  ;;  %v10392_v46 = vor.u32 %v15372_v40, %v10391_v38  ;;  %8043 = vmatpush.bf16.msra.mxu3 %v10664_v39 }
  0x3c   : > { %v10647_v43 = vld [vmem:[%s16889_s26 + $0x380] sm:$0xf]  ;;  %v15436_v44 = vld [vmem:[%s16889_s26 + $0x38c] sm:$0xf0]  ;;  %v10520_v47 = vor.u32 %v15404_v42, %v10519_v41  ;;  %8005 = vmatpush.bf16.msra.mxu0 %v10264_v45 }
  0x3d   : > { %v10247_v48 = vld [vmem:[%s16889_s26 + $0x60] sm:$0xf]  ;;  %v15336_v49 = vld [vmem:[%s16889_s26 + $0x6c] sm:$0xf0]  ;;  %v10648_v51 = vor.u32 %v15436_v44, %v10647_v43  ;;  %8018 = vmatpush.bf16.msra.mxu1 %v10392_v46 }
  0x3e   : > { %v10375_v50 = vld [vmem:[%s16889_s26 + $0x160] sm:$0xf]  ;;  %v15368_v52 = vld [vmem:[%s16889_s26 + $0x16c] sm:$0xf0]  ;;  %v10248_v57 = vor.u32 %v15336_v49, %v10247_v48  ;;  %8031 = vmatpush.bf16.msra.mxu2 %v10520_v47 }
  0x3f   : > { %v10503_v53 = vld [vmem:[%s16889_s26 + $0x260] sm:$0xf]  ;;  %v15400_v54 = vld [vmem:[%s16889_s26 + $0x26c] sm:$0xf0]  ;;  %v10376_v58 = vor.u32 %v15368_v52, %v10375_v50  ;;  %8044 = vmatpush.bf16.msra.mxu3 %v10648_v51 }
  0x40   : > { %v10631_v55 = vld [vmem:[%s16889_s26 + $0x360] sm:$0xf]  ;;  %v15432_v56 = vld [vmem:[%s16889_s26 + $0x36c] sm:$0xf0]  ;;  %v10504_v59 = vor.u32 %v15400_v54, %v10503_v53  ;;  %8006 = vmatpush.bf16.msra.mxu0 %v10248_v57 }
  0x41   : > { %v10231_v60 = vld [vmem:[%s16889_s26 + $0x40] sm:$0xf]  ;;  %v15332_v61 = vld [vmem:[%s16889_s26 + $0x4c] sm:$0xf0]  ;;  %v10632_v63 = vor.u32 %v15432_v56, %v10631_v55  ;;  %8019 = vmatpush.bf16.msra.mxu1 %v10376_v58 }
  0x42   : > { %v10359_v62 = vld [vmem:[%s16889_s26 + $0x140] sm:$0xf]  ;;  %v15364_v0 = vld [vmem:[%s16889_s26 + $0x14c] sm:$0xf0]  ;;  %v10232_v5 = vor.u32 %v15332_v61, %v10231_v60  ;;  %8032 = vmatpush.bf16.msra.mxu2 %v10504_v59  ;;  %v227_v60 = vld [vmem:[%s16907_s7] sm:$0xff] }
  0x43   : > { %v10487_v1 = vld [vmem:[%s16889_s26 + $0x240] sm:$0xf]  ;;  %v15396_v2 = vld [vmem:[%s16889_s26 + $0x24c] sm:$0xf0]  ;;  %v10360_v6 = vor.u32 %v15364_v0, %v10359_v62  ;;  %8045 = vmatpush.bf16.msra.mxu3 %v10632_v63  ;;  %1513 = vst [vmem:[#allocation1] ss:$9 sm:$0xff] %v227_v60 }
  0x44   : > { %v10615_v3 = vld [vmem:[%s16889_s26 + $0x340] sm:$0xf]  ;;  %v15428_v4 = vld [vmem:[%s16889_s26 + $0x34c] sm:$0xf0]  ;;  %v10488_v7 = vor.u32 %v15396_v2, %v10487_v1  ;;  %8007 = vmatpush.bf16.msra.mxu0 %v10232_v5 }
  0x45   : > { %v10215_v8 = vld [vmem:[%s16889_s26 + $0x20] sm:$0xf]  ;;  %v15328_v9 = vld [vmem:[%s16889_s26 + $0x2c] sm:$0xf0]  ;;  %v10616_v11 = vor.u32 %v15428_v4, %v10615_v3  ;;  %8020 = vmatpush.bf16.msra.mxu1 %v10360_v6 }
  0x46   : > { %v10343_v10 = vld [vmem:[%s16889_s26 + $0x120] sm:$0xf]  ;;  %v15360_v12 = vld [vmem:[%s16889_s26 + $0x12c] sm:$0xf0]  ;;  %v10216_v17 = vor.u32 %v15328_v9, %v10215_v8  ;;  %8033 = vmatpush.bf16.msra.mxu2 %v10488_v7 }
  0x47   : > { %v10471_v13 = vld [vmem:[%s16889_s26 + $0x220] sm:$0xf]  ;;  %v15392_v14 = vld [vmem:[%s16889_s26 + $0x22c] sm:$0xf0]  ;;  %v10344_v20 = vor.u32 %v15360_v12, %v10343_v10  ;;  %8046 = vmatpush.bf16.msra.mxu3 %v10616_v11 }
  0x48   : > { %v10599_v15 = vld [vmem:[%s16889_s26 + $0x320] sm:$0xf]  ;;  %v15424_v16 = vld [vmem:[%s16889_s26 + $0x32c] sm:$0xf0]  ;;  %v10472_v21 = vor.u32 %v15392_v14, %v10471_v13  ;;  %8008 = vmatpush.bf16.msra.mxu0 %v10216_v17 }
  0x49   : > { %v10199_v18 = vld [vmem:[%s16889_s26] sm:$0xf]  ;;  %v15324_v19 = vld [vmem:[%s16889_s26 + $0xc] sm:$0xf0]  ;;  %v10600_v25 = vor.u32 %v15424_v16, %v10599_v15  ;;  %8021 = vmatpush.bf16.msra.mxu1 %v10344_v20 }
  0x4a   : > { %v10327_v22 = vld [vmem:[%s16889_s26 + $0x100] sm:$0xf]  ;;  %v15356_v23 = vld [vmem:[%s16889_s26 + $0x10c] sm:$0xf0]  ;;  %v10200_v32 = vor.u32 %v15324_v19, %v10199_v18  ;;  %8034 = vmatpush.bf16.msra.mxu2 %v10472_v21 }
  0x4b   : > { %v10455_v24 = vld [vmem:[%s16889_s26 + $0x200] sm:$0xf]  ;;  %v15388_v26 = vld [vmem:[%s16889_s26 + $0x20c] sm:$0xf0]  ;;  %v10328_v36 = vor.u32 %v15356_v23, %v10327_v22  ;;  %8047 = vmatpush.bf16.msra.mxu3 %v10600_v25  ;;  %v17014_v22 = vld [vmem:[#allocation1] sm:$0xff] }
  0x4c   : > { %v10583_v27 = vld [vmem:[%s16889_s26 + $0x300] sm:$0xf]  ;;  %v15420_v28 = vld [vmem:[%s16889_s26 + $0x30c] sm:$0xf0]  ;;  %v10456_v37 = vor.u32 %v15388_v26, %v10455_v24  ;;  %8009 = vmatpush.bf16.msra.mxu0 %v10200_v32 }
  0x4d   : > { %v10823_v29 = vld [vmem:[%s16889_s26 + $0x4e0] sm:$0xf]  ;;  %v15480_v30 = vld [vmem:[%s16889_s26 + $0x4ec] sm:$0xf0]  ;;  %v10584_v40 = vor.u32 %v15420_v28, %v10583_v27  ;;  %8022 = vmatpush.bf16.msra.mxu1 %v10328_v36 }
  0x4e   : > { %v10951_v31 = vld [vmem:[%s16889_s26 + $0x5e0] sm:$0xf]  ;;  %v15512_v33 = vld [vmem:[%s16889_s26 + $0x5ec] sm:$0xf0]  ;;  %v10824_v41 = vor.u32 %v15480_v30, %v10823_v29  ;;  %8035 = vmatpush.bf16.msra.mxu2 %v10456_v37 }
  0x4f   : > { %v11079_v34 = vld [vmem:[%s16889_s26 + $0x6e0] sm:$0xf]  ;;  %v15544_v35 = vld [vmem:[%s16889_s26 + $0x6ec] sm:$0xf0]  ;;  %v10952_v42 = vor.u32 %v15512_v33, %v10951_v31  ;;  %8048 = vmatpush.bf16.msra.mxu3 %v10584_v40  ;;  %8010 = vmatmul.bf16.vlgmr.msra.gmra.mxu0 %v17014_v22 }
  0x50   : > { %v11207_v38 = vld [vmem:[%s16889_s26 + $0x7e0] sm:$0xf]  ;;  %v15576_v39 = vld [vmem:[%s16889_s26 + $0x7ec] sm:$0xf0]  ;;  %v11080_v43 = vor.u32 %v15544_v35, %v11079_v34  ;;  %8054 = vmatpush.bf16.msrb.mxu0 %v10824_v41 }
  0x51   : > { %v10807_v44 = vld [vmem:[%s16889_s26 + $0x4c0] sm:$0xf]  ;;  %v15476_v45 = vld [vmem:[%s16889_s26 + $0x4cc] sm:$0xf0]  ;;  %v11208_v47 = vor.u32 %v15576_v39, %v11207_v38  ;;  %8067 = vmatpush.bf16.msrb.mxu1 %v10952_v42 }
  0x52   : > { %v10935_v46 = vld [vmem:[%s16889_s26 + $0x5c0] sm:$0xf]  ;;  %v15508_v48 = vld [vmem:[%s16889_s26 + $0x5cc] sm:$0xf0]  ;;  %v10808_v53 = vor.u32 %v15476_v45, %v10807_v44  ;;  %8080 = vmatpush.bf16.msrb.mxu2 %v11080_v43 }
  0x53   : > { %v11063_v49 = vld [vmem:[%s16889_s26 + $0x6c0] sm:$0xf]  ;;  %v15540_v50 = vld [vmem:[%s16889_s26 + $0x6cc] sm:$0xf0]  ;;  %v10936_v56 = vor.u32 %v15508_v48, %v10935_v46  ;;  %8093 = vmatpush.bf16.msrb.mxu3 %v11208_v47 }
  0x54   : > { %v11191_v51 = vld [vmem:[%s16889_s26 + $0x7c0] sm:$0xf]  ;;  %v15572_v52 = vld [vmem:[%s16889_s26 + $0x7cc] sm:$0xf0]  ;;  %v11064_v57 = vor.u32 %v15540_v50, %v11063_v49  ;;  %8055 = vmatpush.bf16.msrb.mxu0 %v10808_v53 }
  0x55   : > { %v10791_v54 = vld [vmem:[%s16889_s26 + $0x4a0] sm:$0xf]  ;;  %v15472_v55 = vld [vmem:[%s16889_s26 + $0x4ac] sm:$0xf0]  ;;  %v11192_v61 = vor.u32 %v15572_v52, %v11191_v51  ;;  %8068 = vmatpush.bf16.msrb.mxu1 %v10936_v56 }
  0x56   : > { %v10919_v58 = vld [vmem:[%s16889_s26 + $0x5a0] sm:$0xf]  ;;  %v15504_v59 = vld [vmem:[%s16889_s26 + $0x5ac] sm:$0xf0]  ;;  %v10792_v2 = vor.u32 %v15472_v55, %v10791_v54  ;;  %8081 = vmatpush.bf16.msrb.mxu2 %v11064_v57 }
  0x57   : > { %v11047_v62 = vld [vmem:[%s16889_s26 + $0x6a0] sm:$0xf]  ;;  %v15536_v63 = vld [vmem:[%s16889_s26 + $0x6ac] sm:$0xf0]  ;;  %v10920_v3 = vor.u32 %v15504_v59, %v10919_v58  ;;  %8094 = vmatpush.bf16.msrb.mxu3 %v11192_v61 }
  0x58   : > { %v11175_v0 = vld [vmem:[%s16889_s26 + $0x7a0] sm:$0xf]  ;;  %v15568_v1 = vld [vmem:[%s16889_s26 + $0x7ac] sm:$0xf0]  ;;  %v11048_v4 = vor.u32 %v15536_v63, %v11047_v62  ;;  %8056 = vmatpush.bf16.msrb.mxu0 %v10792_v2  ;;  %v17055_v2 = vld [vmem:[#allocation1 + $0x3f] sm:$0xff] }
  0x59   : > { %v10775_v5 = vld [vmem:[%s16889_s26 + $0x480] sm:$0xf]  ;;  %v15468_v6 = vld [vmem:[%s16889_s26 + $0x48c] sm:$0xf0]  ;;  %v11176_v8 = vor.u32 %v15568_v1, %v11175_v0  ;;  %8069 = vmatpush.bf16.msrb.mxu1 %v10920_v3  ;;  %v17057_v3 = vld [vmem:[#allocation1 + $0x2d] sm:$0xff] }
  0x5a   : > { %v10903_v7 = vld [vmem:[%s16889_s26 + $0x580] sm:$0xf]  ;;  %v15500_v9 = vld [vmem:[%s16889_s26 + $0x58c] sm:$0xf0]  ;;  %v10776_v15 = vor.u32 %v15468_v6, %v10775_v5  ;;  %8082 = vmatpush.bf16.msrb.mxu2 %v11048_v4 }
  0x5b   : > { %v11031_v10 = vld [vmem:[%s16889_s26 + $0x680] sm:$0xf]  ;;  %v15532_v11 = vld [vmem:[%s16889_s26 + $0x68c] sm:$0xf0]  ;;  %v10904_v19 = vor.u32 %v15500_v9, %v10903_v7  ;;  %8095 = vmatpush.bf16.msrb.mxu3 %v11176_v8 }
  0x5c   : > { %v11159_v12 = vld [vmem:[%s16889_s26 + $0x780] sm:$0xf]  ;;  %v15564_v13 = vld [vmem:[%s16889_s26 + $0x78c] sm:$0xf0]  ;;  %v11032_v20 = vor.u32 %v15532_v11, %v11031_v10  ;;  %8057 = vmatpush.bf16.msrb.mxu0 %v10776_v15 }
  0x5d   : > { %v10759_v14 = vld [vmem:[%s16889_s26 + $0x460] sm:$0xf]  ;;  %v15464_v16 = vld [vmem:[%s16889_s26 + $0x46c] sm:$0xf0]  ;;  %v11160_v24 = vor.u32 %v15564_v13, %v11159_v12  ;;  %8070 = vmatpush.bf16.msrb.mxu1 %v10904_v19 }
  0x5e   : > { %v10887_v17 = vld [vmem:[%s16889_s26 + $0x560] sm:$0xf]  ;;  %v15496_v18 = vld [vmem:[%s16889_s26 + $0x56c] sm:$0xf0]  ;;  %v10760_v30 = vor.u32 %v15464_v16, %v10759_v14  ;;  %8083 = vmatpush.bf16.msrb.mxu2 %v11032_v20 }
  0x5f   : > { %v17012_v21 = vld [vmem:[#allocation1 + $0x12] sm:$0xff]  ;;  %v17016_v23 = vld [vmem:[#allocation1 + $0x1b] sm:$0xff]  ;;  %v11015_v25 = vld [vmem:[%s16889_s26 + $0x660] sm:$0xf]  ;;  %v10888_v31 = vor.u32 %v15496_v18, %v10887_v17  ;;  %8096 = vmatpush.bf16.msrb.mxu3 %v11160_v24 }
  0x60   : > { %v15528_v26 = vld [vmem:[%s16889_s26 + $0x66c] sm:$0xf0]  ;;  %8036 = vmatmul.bf16.vlgmr.msra.gmra.mxu2 %v17012_v21  ;;  %v17021_v27 = vld [vmem:[#allocation1 + $0x9] sm:$0xff]  ;;  %8049 = vmatmul.bf16.vlgmr.msra.gmra.mxu3 %v17016_v23 }
  0x61   : > { %v11143_v28 = vld [vmem:[%s16889_s26 + $0x760] sm:$0xf]  ;;  %v15560_v29 = vld [vmem:[%s16889_s26 + $0x76c] sm:$0xf0]  ;;  %8023 = vmatmul.bf16.vlgmr.msra.gmra.mxu1 %v17021_v27  ;;  %v11016_v32 = vor.u32 %v15528_v26, %v11015_v25  ;;  %8058 = vmatpush.bf16.msrb.mxu0 %v10760_v30 }
  0x62   : > { %v10743_v33 = vld [vmem:[%s16889_s26 + $0x440] sm:$0xf]  ;;  %v15460_v34 = vld [vmem:[%s16889_s26 + $0x44c] sm:$0xf0]  ;;  %v11144_v36 = vor.u32 %v15560_v29, %v11143_v28  ;;  %8071 = vmatpush.bf16.msrb.mxu1 %v10888_v31 }
  0x63   : > { %v10871_v35 = vld [vmem:[%s16889_s26 + $0x540] sm:$0xf]  ;;  %v15492_v37 = vld [vmem:[%s16889_s26 + $0x54c] sm:$0xf0]  ;;  %v10744_v42 = vor.u32 %v15460_v34, %v10743_v33  ;;  %8084 = vmatpush.bf16.msrb.mxu2 %v11016_v32 }
  0x64   : > { %v10999_v38 = vld [vmem:[%s16889_s26 + $0x640] sm:$0xf]  ;;  %v15524_v39 = vld [vmem:[%s16889_s26 + $0x64c] sm:$0xf0]  ;;  %v10872_v44 = vor.u32 %v15492_v37, %v10871_v35  ;;  %8097 = vmatpush.bf16.msrb.mxu3 %v11144_v36 }
  0x65   : > { %v11127_v40 = vld [vmem:[%s16889_s26 + $0x740] sm:$0xf]  ;;  %v15556_v41 = vld [vmem:[%s16889_s26 + $0x74c] sm:$0xf0]  ;;  %v11000_v45 = vor.u32 %v15524_v39, %v10999_v38  ;;  %8059 = vmatpush.bf16.msrb.mxu0 %v10744_v42 }
  0x66   : > { %v10727_v43 = vld [vmem:[%s16889_s26 + $0x420] sm:$0xf]  ;;  %v15456_v46 = vld [vmem:[%s16889_s26 + $0x42c] sm:$0xf0]  ;;  %v11128_v49 = vor.u32 %v15556_v41, %v11127_v40  ;;  %8072 = vmatpush.bf16.msrb.mxu1 %v10872_v44 }
  0x67   : > { %v10855_v47 = vld [vmem:[%s16889_s26 + $0x520] sm:$0xf]  ;;  %v15488_v48 = vld [vmem:[%s16889_s26 + $0x52c] sm:$0xf0]  ;;  %v10728_v56 = vor.u32 %v15456_v46, %v10727_v43  ;;  %8085 = vmatpush.bf16.msrb.mxu2 %v11000_v45 }
  0x68   : > { %v10983_v50 = vld [vmem:[%s16889_s26 + $0x620] sm:$0xf]  ;;  %v15520_v51 = vld [vmem:[%s16889_s26 + $0x62c] sm:$0xf0]  ;;  %v10856_v63 = vor.u32 %v15488_v48, %v10855_v47  ;;  %8098 = vmatpush.bf16.msrb.mxu3 %v11128_v49 }
  0x69   : > { %v11111_v52 = vld [vmem:[%s16889_s26 + $0x720] sm:$0xf]  ;;  %v15552_v53 = vld [vmem:[%s16889_s26 + $0x72c] sm:$0xf0]  ;;  %v10984_v0 = vor.u32 %v15520_v51, %v10983_v50  ;;  %8060 = vmatpush.bf16.msrb.mxu0 %v10728_v56 }
  0x6a   : > { %v10711_v54 = vld [vmem:[%s16889_s26 + $0x400] sm:$0xf]  ;;  %v15452_v55 = vld [vmem:[%s16889_s26 + $0x40c] sm:$0xf0]  ;;  %v11112_v4 = vor.u32 %v15552_v53, %v11111_v52  ;;  %8073 = vmatpush.bf16.msrb.mxu1 %v10856_v63 }
  0x6b   : > { %v10839_v57 = vld [vmem:[%s16889_s26 + $0x500] sm:$0xf]  ;;  %v15484_v58 = vld [vmem:[%s16889_s26 + $0x50c] sm:$0xf0]  ;;  %v10712_v10 = vor.u32 %v15452_v55, %v10711_v54  ;;  %8086 = vmatpush.bf16.msrb.mxu2 %v10984_v0 }
  0x6c   : > { %v10967_v59 = vld [vmem:[%s16889_s26 + $0x600] sm:$0xf]  ;;  %v15516_v60 = vld [vmem:[%s16889_s26 + $0x60c] sm:$0xf0]  ;;  %v10840_v14 = vor.u32 %v15484_v58, %v10839_v57  ;;  %8099 = vmatpush.bf16.msrb.mxu3 %v11112_v4 }
  0x6d   : > { %v17050_v61 = vld [vmem:[#allocation1 + $0x36] sm:$0xff]  ;;  %v228_v62 = vld [vmem:[%s16907_s7 + $0x8] sm:$0xff]  ;;  %v10968_v15 = vor.u32 %v15516_v60, %v10967_v59  ;;  %8061 = vmatpush.bf16.msrb.mxu0 %v10712_v10 }
  0x6e   : > { %v17053_v1 = vld [vmem:[#allocation1 + $0x24] sm:$0xff]  ;;  %v15548_v6 = vld [vmem:[%s16889_s26 + $0x70c] sm:$0xf0]  ;;  %8074 = vmatpush.bf16.msrb.mxu1 %v10840_v14 }
  0x6f   : > { %v11095_v5 = vld [vmem:[%s16889_s26 + $0x700] sm:$0xf]  ;;  %1523 = vst [vmem:[#allocation1] ss:$9 sm:$0xff] %v228_v62  ;;  %v15608_v8 = vld [vmem:[%s16889_s26 + $0x8ec] sm:$0xf0]  ;;  %8087 = vmatpush.bf16.msrb.mxu2 %v10968_v15 }
  0x70   : > { %v11335_v7 = vld [vmem:[%s16889_s26 + $0x8e0] sm:$0xf]  ;;  %v15640_v11 = vld [vmem:[%s16889_s26 + $0x9ec] sm:$0xf0]  ;;  %v11096_v18 = vor.u32 %v15548_v6, %v11095_v5  ;;  %8062 = vmatmul.bf16.vlgmr.msrb.gmra.mxu0 %v17053_v1 }
  0x71   : > { %v11463_v9 = vld [vmem:[%s16889_s26 + $0x9e0] sm:$0xf]  ;;  %v15672_v13 = vld [vmem:[%s16889_s26 + $0xaec] sm:$0xf0]  ;;  %v11336_v19 = vor.u32 %v15608_v8, %v11335_v7  ;;  %8075 = vmatmul.bf16.vlgmr.msrb.gmra.mxu1 %v17057_v3 }
  0x72   : > { %v11591_v12 = vld [vmem:[%s16889_s26 + $0xae0] sm:$0xf]  ;;  %v15704_v17 = vld [vmem:[%s16889_s26 + $0xbec] sm:$0xf0]  ;;  %v11464_v20 = vor.u32 %v15640_v11, %v11463_v9  ;;  %8100 = vmatpush.bf16.msrb.mxu3 %v11096_v18  ;;  %8088 = vmatmul.bf16.vlgmr.msrb.gmra.mxu2 %v17050_v61 }
  0x73   : > { %v11719_v16 = vld [vmem:[%s16889_s26 + $0xbe0] sm:$0xf]  ;;  %v11592_v24 = vor.u32 %v15672_v13, %v11591_v12  ;;  %v15604_v26 = vld [vmem:[%s16889_s26 + $0x8cc] sm:$0xf0]  ;;  %8106 = vmatpush.bf16.msra.mxu0 %v11336_v19 }
  0x74   : > { %v11319_v25 = vld [vmem:[%s16889_s26 + $0x8c0] sm:$0xf]  ;;  %v11720_v29 = vor.u32 %v15704_v17, %v11719_v16  ;;  %v15636_v30 = vld [vmem:[%s16889_s26 + $0x9cc] sm:$0xf0]  ;;  %8119 = vmatpush.bf16.msra.mxu1 %v11464_v20 }
  0x75   : > { %v11447_v28 = vld [vmem:[%s16889_s26 + $0x9c0] sm:$0xf]  ;;  %v15668_v32 = vld [vmem:[%s16889_s26 + $0xacc] sm:$0xf0]  ;;  %v11320_v35 = vor.u32 %v15604_v26, %v11319_v25  ;;  %8132 = vmatpush.bf16.msra.mxu2 %v11592_v24  ;;  %8101 = vmatmul.bf16.vlgmr.msrb.gmra.mxu3 %v17055_v2 }
  0x76   : > { %v11575_v31 = vld [vmem:[%s16889_s26 + $0xac0] sm:$0xf]  ;;  %v15700_v34 = vld [vmem:[%s16889_s26 + $0xbcc] sm:$0xf0]  ;;  %v11448_v36 = vor.u32 %v15636_v30, %v11447_v28  ;;  %8145 = vmatpush.bf16.msra.mxu3 %v11720_v29 }
  0x77   : > { %v11703_v33 = vld [vmem:[%s16889_s26 + $0xbc0] sm:$0xf]  ;;  %v11576_v37 = vor.u32 %v15668_v32, %v11575_v31  ;;  %v15600_v39 = vld [vmem:[%s16889_s26 + $0x8ac] sm:$0xf0]  ;;  %8107 = vmatpush.bf16.msra.mxu0 %v11320_v35 }
  0x78   : > { %v11303_v38 = vld [vmem:[%s16889_s26 + $0x8a0] sm:$0xf]  ;;  %v11704_v41 = vor.u32 %v15700_v34, %v11703_v33  ;;  %v15632_v42 = vld [vmem:[%s16889_s26 + $0x9ac] sm:$0xf0]  ;;  %8120 = vmatpush.bf16.msra.mxu1 %v11448_v36 }
  0x79   : > { %v11431_v40 = vld [vmem:[%s16889_s26 + $0x9a0] sm:$0xf]  ;;  %v15664_v44 = vld [vmem:[%s16889_s26 + $0xaac] sm:$0xf0]  ;;  %v11304_v47 = vor.u32 %v15600_v39, %v11303_v38  ;;  %8133 = vmatpush.bf16.msra.mxu2 %v11576_v37 }
  0x7a   : > { %v11559_v43 = vld [vmem:[%s16889_s26 + $0xaa0] sm:$0xf]  ;;  %v15696_v46 = vld [vmem:[%s16889_s26 + $0xbac] sm:$0xf0]  ;;  %v11432_v48 = vor.u32 %v15632_v42, %v11431_v40  ;;  %8146 = vmatpush.bf16.msra.mxu3 %v11704_v41 }
  0x7b   : > { %v11687_v45 = vld [vmem:[%s16889_s26 + $0xba0] sm:$0xf]  ;;  %v11560_v49 = vor.u32 %v15664_v44, %v11559_v43  ;;  %v15596_v51 = vld [vmem:[%s16889_s26 + $0x88c] sm:$0xf0]  ;;  %8108 = vmatpush.bf16.msra.mxu0 %v11304_v47 }
  0x7c   : > { %v11287_v50 = vld [vmem:[%s16889_s26 + $0x880] sm:$0xf]  ;;  %v11688_v53 = vor.u32 %v15696_v46, %v11687_v45  ;;  %v15628_v54 = vld [vmem:[%s16889_s26 + $0x98c] sm:$0xf0]  ;;  %8121 = vmatpush.bf16.msra.mxu1 %v11432_v48 }
  0x7d   : > { %v11415_v52 = vld [vmem:[%s16889_s26 + $0x980] sm:$0xf]  ;;  %v15660_v56 = vld [vmem:[%s16889_s26 + $0xa8c] sm:$0xf0]  ;;  %v11288_v59 = vor.u32 %v15596_v51, %v11287_v50  ;;  %8134 = vmatpush.bf16.msra.mxu2 %v11560_v49 }
  0x7e   : > { %v11543_v55 = vld [vmem:[%s16889_s26 + $0xa80] sm:$0xf]  ;;  %v15692_v58 = vld [vmem:[%s16889_s26 + $0xb8c] sm:$0xf0]  ;;  %v11416_v60 = vor.u32 %v15628_v54, %v11415_v52  ;;  %8147 = vmatpush.bf16.msra.mxu3 %v11688_v53 }
  0x7f   : > { %v11671_v57 = vld [vmem:[%s16889_s26 + $0xb80] sm:$0xf]  ;;  %v11544_v62 = vor.u32 %v15660_v56, %v11543_v55  ;;  %v15592_v0 = vld [vmem:[%s16889_s26 + $0x86c] sm:$0xf0]  ;;  %8109 = vmatpush.bf16.msra.mxu0 %v11288_v59 }
  0x80   : > { %v11271_v63 = vld [vmem:[%s16889_s26 + $0x860] sm:$0xf]  ;;  %v11672_v5 = vor.u32 %v15692_v58, %v11671_v57  ;;  %v15624_v6 = vld [vmem:[%s16889_s26 + $0x96c] sm:$0xf0]  ;;  %8122 = vmatpush.bf16.msra.mxu1 %v11416_v60 }
  0x81   : > { %v11399_v4 = vld [vmem:[%s16889_s26 + $0x960] sm:$0xf]  ;;  %v15656_v8 = vld [vmem:[%s16889_s26 + $0xa6c] sm:$0xf0]  ;;  %v11272_v11 = vor.u32 %v15592_v0, %v11271_v63  ;;  %8135 = vmatpush.bf16.msra.mxu2 %v11544_v62 }
  0x82   : > { %v11527_v7 = vld [vmem:[%s16889_s26 + $0xa60] sm:$0xf]  ;;  %v15688_v10 = vld [vmem:[%s16889_s26 + $0xb6c] sm:$0xf0]  ;;  %v11400_v12 = vor.u32 %v15624_v6, %v11399_v4  ;;  %8148 = vmatpush.bf16.msra.mxu3 %v11672_v5 }
  0x83   : > { %v11655_v9 = vld [vmem:[%s16889_s26 + $0xb60] sm:$0xf]  ;;  %v11528_v13 = vor.u32 %v15656_v8, %v11527_v7  ;;  %v15588_v15 = vld [vmem:[%s16889_s26 + $0x84c] sm:$0xf0]  ;;  %8110 = vmatpush.bf16.msra.mxu0 %v11272_v11 }
  0x84   : > { %v11255_v14 = vld [vmem:[%s16889_s26 + $0x840] sm:$0xf]  ;;  %v11656_v17 = vor.u32 %v15688_v10, %v11655_v9  ;;  %v15620_v18 = vld [vmem:[%s16889_s26 + $0x94c] sm:$0xf0]  ;;  %8123 = vmatpush.bf16.msra.mxu1 %v11400_v12 }
  0x85   : > { %v11383_v16 = vld [vmem:[%s16889_s26 + $0x940] sm:$0xf]  ;;  %v15652_v20 = vld [vmem:[%s16889_s26 + $0xa4c] sm:$0xf0]  ;;  %v11256_v26 = vor.u32 %v15588_v15, %v11255_v14  ;;  %8136 = vmatpush.bf16.msra.mxu2 %v11528_v13  ;;  %v17143_v13 = vld [vmem:[#allocation1] sm:$0xff] }
  0x86   : > { %v11511_v19 = vld [vmem:[%s16889_s26 + $0xa40] sm:$0xf]  ;;  %v15684_v25 = vld [vmem:[%s16889_s26 + $0xb4c] sm:$0xf0]  ;;  %v11384_v28 = vor.u32 %v15620_v18, %v11383_v16  ;;  %8149 = vmatpush.bf16.msra.mxu3 %v11656_v17 }
  0x87   : > { %v11639_v24 = vld [vmem:[%s16889_s26 + $0xb40] sm:$0xf]  ;;  %v11512_v29 = vor.u32 %v15652_v20, %v11511_v19  ;;  %v15584_v31 = vld [vmem:[%s16889_s26 + $0x82c] sm:$0xf0]  ;;  %8111 = vmatpush.bf16.msra.mxu0 %v11256_v26 }
  0x88   : > { %v11239_v30 = vld [vmem:[%s16889_s26 + $0x820] sm:$0xf]  ;;  %v11640_v33 = vor.u32 %v15684_v25, %v11639_v24  ;;  %v15616_v34 = vld [vmem:[%s16889_s26 + $0x92c] sm:$0xf0]  ;;  %8124 = vmatpush.bf16.msra.mxu1 %v11384_v28 }
  0x89   : > { %v11367_v32 = vld [vmem:[%s16889_s26 + $0x920] sm:$0xf]  ;;  %v15648_v36 = vld [vmem:[%s16889_s26 + $0xa2c] sm:$0xf0]  ;;  %v11240_v39 = vor.u32 %v15584_v31, %v11239_v30  ;;  %8137 = vmatpush.bf16.msra.mxu2 %v11512_v29 }
  0x8a   : > { %v11495_v35 = vld [vmem:[%s16889_s26 + $0xa20] sm:$0xf]  ;;  %v15680_v38 = vld [vmem:[%s16889_s26 + $0xb2c] sm:$0xf0]  ;;  %v11368_v42 = vor.u32 %v15616_v34, %v11367_v32  ;;  %8150 = vmatpush.bf16.msra.mxu3 %v11640_v33 }
  0x8b   : > { %v11623_v37 = vld [vmem:[%s16889_s26 + $0xb20] sm:$0xf]  ;;  %v15580_v41 = vld [vmem:[%s16889_s26 + $0x80c] sm:$0xf0]  ;;  %v11496_v43 = vor.u32 %v15648_v36, %v11495_v35  ;;  %8112 = vmatpush.bf16.msra.mxu0 %v11240_v39 }
  0x8c   : > { %v11223_v40 = vld [vmem:[%s16889_s26 + $0x800] sm:$0xf]  ;;  %v15612_v45 = vld [vmem:[%s16889_s26 + $0x90c] sm:$0xf0]  ;;  %v11624_v47 = vor.u32 %v15680_v38, %v11623_v37  ;;  %8125 = vmatpush.bf16.msra.mxu1 %v11368_v42 }
  0x8d   : > { %v11351_v44 = vld [vmem:[%s16889_s26 + $0x900] sm:$0xf]  ;;  %v15644_v48 = vld [vmem:[%s16889_s26 + $0xa0c] sm:$0xf0]  ;;  %v11224_v54 = vor.u32 %v15580_v41, %v11223_v40  ;;  %8138 = vmatpush.bf16.msra.mxu2 %v11496_v43 }
  0x8e   : > { %v11479_v46 = vld [vmem:[%s16889_s26 + $0xa00] sm:$0xf]  ;;  %v15676_v50 = vld [vmem:[%s16889_s26 + $0xb0c] sm:$0xf0]  ;;  %v11352_v58 = vor.u32 %v15612_v45, %v11351_v44  ;;  %8151 = vmatpush.bf16.msra.mxu3 %v11624_v47 }
  0x8f   : > { %v11607_v49 = vld [vmem:[%s16889_s26 + $0xb00] sm:$0xf]  ;;  %v15736_v52 = vld [vmem:[%s16889_s26 + $0xcec] sm:$0xf0]  ;;  %v11480_v59 = vor.u32 %v15644_v48, %v11479_v46  ;;  %8113 = vmatpush.bf16.msra.mxu0 %v11224_v54 }
  0x90   : > { %v11847_v51 = vld [vmem:[%s16889_s26 + $0xce0] sm:$0xf]  ;;  %v15768_v55 = vld [vmem:[%s16889_s26 + $0xdec] sm:$0xf0]  ;;  %v11608_v63 = vor.u32 %v15676_v50, %v11607_v49  ;;  %8126 = vmatpush.bf16.msra.mxu1 %v11352_v58 }
  0x91   : > { %v11975_v53 = vld [vmem:[%s16889_s26 + $0xde0] sm:$0xf]  ;;  %v15800_v57 = vld [vmem:[%s16889_s26 + $0xeec] sm:$0xf0]  ;;  %v11848_v0 = vor.u32 %v15736_v52, %v11847_v51  ;;  %8139 = vmatpush.bf16.msra.mxu2 %v11480_v59 }
  0x92   : > { %v12103_v56 = vld [vmem:[%s16889_s26 + $0xee0] sm:$0xf]  ;;  %v15832_v62 = vld [vmem:[%s16889_s26 + $0xfec] sm:$0xf0]  ;;  %v11976_v4 = vor.u32 %v15768_v55, %v11975_v53  ;;  %8152 = vmatpush.bf16.msra.mxu3 %v11608_v63  ;;  %8114 = vmatmul.bf16.vlgmr.msra.gmra.mxu0 %v17143_v13 }
  0x93   : > { %v12231_v60 = vld [vmem:[%s16889_s26 + $0xfe0] sm:$0xf]  ;;  %v12104_v5 = vor.u32 %v15800_v57, %v12103_v56  ;;  %v15732_v7 = vld [vmem:[%s16889_s26 + $0xccc] sm:$0xf0]  ;;  %8158 = vmatpush.bf16.msrb.mxu0 %v11848_v0 }
  0x94   : > { %v11831_v6 = vld [vmem:[%s16889_s26 + $0xcc0] sm:$0xf]  ;;  %v12232_v9 = vor.u32 %v15832_v62, %v12231_v60  ;;  %v15764_v10 = vld [vmem:[%s16889_s26 + $0xdcc] sm:$0xf0]  ;;  %8171 = vmatpush.bf16.msrb.mxu1 %v11976_v4 }
  0x95   : > { %v11959_v8 = vld [vmem:[%s16889_s26 + $0xdc0] sm:$0xf]  ;;  %v15796_v12 = vld [vmem:[%s16889_s26 + $0xecc] sm:$0xf0]  ;;  %v11832_v19 = vor.u32 %v15732_v7, %v11831_v6  ;;  %8184 = vmatpush.bf16.msrb.mxu2 %v12104_v5 }
  0x96   : > { %v12087_v11 = vld [vmem:[%s16889_s26 + $0xec0] sm:$0xf]  ;;  %v15828_v15 = vld [vmem:[%s16889_s26 + $0xfcc] sm:$0xf0]  ;;  %v11960_v20 = vor.u32 %v15764_v10, %v11959_v8  ;;  %8197 = vmatpush.bf16.msrb.mxu3 %v12232_v9 }
  0x97   : > { %v12215_v14 = vld [vmem:[%s16889_s26 + $0xfc0] sm:$0xf]  ;;  %v17147_v16 = vld [vmem:[#allocation1 + $0x12] sm:$0xff]  ;;  %v17151_v18 = vld [vmem:[#allocation1 + $0x1b] sm:$0xff]  ;;  %v12088_v24 = vor.u32 %v15796_v12, %v12087_v11  ;;  %8159 = vmatpush.bf16.msrb.mxu0 %v11832_v19 }
  0x98   : > { %v17149_v17 = vld [vmem:[#allocation1 + $0x9] sm:$0xff]  ;;  %v15728_v26 = vld [vmem:[%s16889_s26 + $0xcac] sm:$0xf0]  ;;  %v12216_v29 = vor.u32 %v15828_v15, %v12215_v14  ;;  %8140 = vmatmul.bf16.vlgmr.msra.gmra.mxu2 %v17147_v16  ;;  %8153 = vmatmul.bf16.vlgmr.msra.gmra.mxu3 %v17151_v18 }
  0x99   : > { %v11815_v25 = vld [vmem:[%s16889_s26 + $0xca0] sm:$0xf]  ;;  %v15760_v30 = vld [vmem:[%s16889_s26 + $0xdac] sm:$0xf0]  ;;  %8127 = vmatmul.bf16.vlgmr.msra.gmra.mxu1 %v17149_v17  ;;  %8185 = vmatpush.bf16.msrb.mxu2 %v12088_v24 }
  0x9a   : > { %v11943_v28 = vld [vmem:[%s16889_s26 + $0xda0] sm:$0xf]  ;;  %v15792_v32 = vld [vmem:[%s16889_s26 + $0xeac] sm:$0xf0]  ;;  %v11816_v35 = vor.u32 %v15728_v26, %v11815_v25  ;;  %8172 = vmatpush.bf16.msrb.mxu1 %v11960_v20  ;;  %8198 = vmatpush.bf16.msrb.mxu3 %v12216_v29 }
  0x9b   : > { %v12071_v31 = vld [vmem:[%s16889_s26 + $0xea0] sm:$0xf]  ;;  %v15824_v34 = vld [vmem:[%s16889_s26 + $0xfac] sm:$0xf0]  ;;  %v11944_v36 = vor.u32 %v15760_v30, %v11943_v28 }
  0x9c   : > { %v12199_v33 = vld [vmem:[%s16889_s26 + $0xfa0] sm:$0xf]  ;;  %v12072_v37 = vor.u32 %v15792_v32, %v12071_v31  ;;  %v15724_v39 = vld [vmem:[%s16889_s26 + $0xc8c] sm:$0xf0]  ;;  %8160 = vmatpush.bf16.msrb.mxu0 %v11816_v35 }
  0x9d   : > { %v11799_v38 = vld [vmem:[%s16889_s26 + $0xc80] sm:$0xf]  ;;  %v12200_v41 = vor.u32 %v15824_v34, %v12199_v33  ;;  %v15756_v42 = vld [vmem:[%s16889_s26 + $0xd8c] sm:$0xf0] }
  0x9e   : > { %v11927_v40 = vld [vmem:[%s16889_s26 + $0xd80] sm:$0xf]  ;;  %v15788_v44 = vld [vmem:[%s16889_s26 + $0xe8c] sm:$0xf0]  ;;  %v11800_v47 = vor.u32 %v15724_v39, %v11799_v38  ;;  %8173 = vmatpush.bf16.msrb.mxu1 %v11944_v36  ;;  %8186 = vmatpush.bf16.msrb.mxu2 %v12072_v37 }
  0x9f   : > { %v12055_v43 = vld [vmem:[%s16889_s26 + $0xe80] sm:$0xf]  ;;  %v15820_v46 = vld [vmem:[%s16889_s26 + $0xf8c] sm:$0xf0]  ;;  %v11928_v48 = vor.u32 %v15756_v42, %v11927_v40  ;;  %8199 = vmatpush.bf16.msrb.mxu3 %v12200_v41 }
  0xa0   : > { %v12183_v45 = vld [vmem:[%s16889_s26 + $0xf80] sm:$0xf]  ;;  %v12056_v49 = vor.u32 %v15788_v44, %v12055_v43  ;;  %v15720_v51 = vld [vmem:[%s16889_s26 + $0xc6c] sm:$0xf0]  ;;  %8161 = vmatpush.bf16.msrb.mxu0 %v11800_v47 }
  0xa1   : > { %v11783_v50 = vld [vmem:[%s16889_s26 + $0xc60] sm:$0xf]  ;;  %v12184_v53 = vor.u32 %v15820_v46, %v12183_v45  ;;  %v15752_v54 = vld [vmem:[%s16889_s26 + $0xd6c] sm:$0xf0] }
  0xa2   : > { %v11911_v52 = vld [vmem:[%s16889_s26 + $0xd60] sm:$0xf]  ;;  %v15784_v56 = vld [vmem:[%s16889_s26 + $0xe6c] sm:$0xf0]  ;;  %v11784_v59 = vor.u32 %v15720_v51, %v11783_v50  ;;  %8174 = vmatpush.bf16.msrb.mxu1 %v11928_v48  ;;  %8187 = vmatpush.bf16.msrb.mxu2 %v12056_v49  ;;  %v17213_v49 = vld [vmem:[#allocation1 + $0x2d] sm:$0xff] }
  0xa3   : > { %v12039_v55 = vld [vmem:[%s16889_s26 + $0xe60] sm:$0xf]  ;;  %v15816_v58 = vld [vmem:[%s16889_s26 + $0xf6c] sm:$0xf0]  ;;  %v11912_v60 = vor.u32 %v15752_v54, %v11911_v52  ;;  %8200 = vmatpush.bf16.msrb.mxu3 %v12184_v53  ;;  %v17215_v50 = vld [vmem:[#allocation1 + $0x3f] sm:$0xff] }
  0xa4   : > { %v12167_v57 = vld [vmem:[%s16889_s26 + $0xf60] sm:$0xf]  ;;  %v12040_v62 = vor.u32 %v15784_v56, %v12039_v55  ;;  %v15716_v0 = vld [vmem:[%s16889_s26 + $0xc4c] sm:$0xf0]  ;;  %8162 = vmatpush.bf16.msrb.mxu0 %v11784_v59  ;;  %v229_v51 = vld [vmem:[%s16907_s7 + $0x10] sm:$0xff] }
  0xa5   : > { %v11767_v63 = vld [vmem:[%s16889_s26 + $0xc40] sm:$0xf]  ;;  %v12168_v5 = vor.u32 %v15816_v58, %v12167_v57  ;;  %v15748_v6 = vld [vmem:[%s16889_s26 + $0xd4c] sm:$0xf0] }
  0xa6   : > { %v11895_v4 = vld [vmem:[%s16889_s26 + $0xd40] sm:$0xf]  ;;  %v15780_v8 = vld [vmem:[%s16889_s26 + $0xe4c] sm:$0xf0]  ;;  %v11768_v11 = vor.u32 %v15716_v0, %v11767_v63  ;;  %8175 = vmatpush.bf16.msrb.mxu1 %v11912_v60  ;;  %8188 = vmatpush.bf16.msrb.mxu2 %v12040_v62 }
  0xa7   : > { %v12023_v7 = vld [vmem:[%s16889_s26 + $0xe40] sm:$0xf]  ;;  %v15812_v10 = vld [vmem:[%s16889_s26 + $0xf4c] sm:$0xf0]  ;;  %v11896_v14 = vor.u32 %v15748_v6, %v11895_v4  ;;  %8201 = vmatpush.bf16.msrb.mxu3 %v12168_v5 }
  0xa8   : > { %v12151_v9 = vld [vmem:[%s16889_s26 + $0xf40] sm:$0xf]  ;;  %v12024_v15 = vor.u32 %v15780_v8, %v12023_v7  ;;  %v15712_v19 = vld [vmem:[%s16889_s26 + $0xc2c] sm:$0xf0]  ;;  %8163 = vmatpush.bf16.msrb.mxu0 %v11768_v11 }
  0xa9   : > { %v11751_v12 = vld [vmem:[%s16889_s26 + $0xc20] sm:$0xf]  ;;  %v15744_v24 = vld [vmem:[%s16889_s26 + $0xd2c] sm:$0xf0]  ;;  %v12152_v25 = vor.u32 %v15812_v10, %v12151_v9 }
  0xaa   : > { %v11879_v20 = vld [vmem:[%s16889_s26 + $0xd20] sm:$0xf]  ;;  %v15776_v28 = vld [vmem:[%s16889_s26 + $0xe2c] sm:$0xf0]  ;;  %v11752_v33 = vor.u32 %v15712_v19, %v11751_v12  ;;  %8176 = vmatpush.bf16.msrb.mxu1 %v11896_v14  ;;  %8189 = vmatpush.bf16.msrb.mxu2 %v12024_v15 }
  0xab   : > { %v12007_v26 = vld [vmem:[%s16889_s26 + $0xe20] sm:$0xf]  ;;  %v15808_v30 = vld [vmem:[%s16889_s26 + $0xf2c] sm:$0xf0]  ;;  %v11880_v38 = vor.u32 %v15744_v24, %v11879_v20  ;;  %8202 = vmatpush.bf16.msrb.mxu3 %v12152_v25 }
  0xac   : > { %v12135_v29 = vld [vmem:[%s16889_s26 + $0xf20] sm:$0xf]  ;;  %v15708_v32 = vld [vmem:[%s16889_s26 + $0xc0c] sm:$0xf0]  ;;  %v12008_v39 = vor.u32 %v15776_v28, %v12007_v26  ;;  %8164 = vmatpush.bf16.msrb.mxu0 %v11752_v33 }
  0xad   : > { %v11735_v31 = vld [vmem:[%s16889_s26 + $0xc00] sm:$0xf]  ;;  %v15740_v35 = vld [vmem:[%s16889_s26 + $0xd0c] sm:$0xf0]  ;;  %v12136_v44 = vor.u32 %v15808_v30, %v12135_v29 }
  0xae   : > { %v11863_v34 = vld [vmem:[%s16889_s26 + $0xd00] sm:$0xf]  ;;  %v15772_v37 = vld [vmem:[%s16889_s26 + $0xe0c] sm:$0xf0]  ;;  %v11736_v52 = vor.u32 %v15708_v32, %v11735_v31  ;;  %8177 = vmatpush.bf16.msrb.mxu1 %v11880_v38  ;;  %8190 = vmatpush.bf16.msrb.mxu2 %v12008_v39 }
  0xaf   : > { %v11991_v36 = vld [vmem:[%s16889_s26 + $0xe00] sm:$0xf]  ;;  %v15804_v41 = vld [vmem:[%s16889_s26 + $0xf0c] sm:$0xf0]  ;;  %v11864_v55 = vor.u32 %v15740_v35, %v11863_v34  ;;  %8203 = vmatpush.bf16.msrb.mxu3 %v12136_v44 }
  0xb0   : > { %v12119_v40 = vld [vmem:[%s16889_s26 + $0xf00] sm:$0xf]  ;;  %v15864_v43 = vld [vmem:[%s16889_s26 + $0x10ec] sm:$0xf0]  ;;  %v11992_v56 = vor.u32 %v15772_v37, %v11991_v36  ;;  %8165 = vmatpush.bf16.msrb.mxu0 %v11736_v52 }
  0xb1   : > { %v12359_v42 = vld [vmem:[%s16889_s26 + $0x10e0] sm:$0xf]  ;;  %v15896_v46 = vld [vmem:[%s16889_s26 + $0x11ec] sm:$0xf0]  ;;  %v12120_v59 = vor.u32 %v15804_v41, %v12119_v40 }
  0xb2   : > { %v12487_v45 = vld [vmem:[%s16889_s26 + $0x11e0] sm:$0xf]  ;;  %v17211_v48 = vld [vmem:[#allocation1 + $0x36] sm:$0xff]  ;;  %v12360_v60 = vor.u32 %v15864_v43, %v12359_v42  ;;  %8178 = vmatpush.bf16.msrb.mxu1 %v11864_v55  ;;  %8191 = vmatpush.bf16.msrb.mxu2 %v11992_v56 }
  0xb3   : > { %v17209_v47 = vld [vmem:[#allocation1 + $0x24] sm:$0xff]  ;;  %v15928_v54 = vld [vmem:[%s16889_s26 + $0x12ec] sm:$0xf0]  ;;  %v12488_v62 = vor.u32 %v15896_v46, %v12487_v45  ;;  %8204 = vmatpush.bf16.msrb.mxu3 %v12120_v59 }
  0xb4   : > { %v12615_v53 = vld [vmem:[%s16889_s26 + $0x12e0] sm:$0xf]  ;;  %1533 = vst [vmem:[#allocation1] ss:$9 sm:$0xff] %v229_v51  ;;  %v15960_v58 = vld [vmem:[%s16889_s26 + $0x13ec] sm:$0xf0]  ;;  %8210 = vmatpush.bf16.msra.mxu0 %v12360_v60 }
  0xb5   : > { %v12743_v57 = vld [vmem:[%s16889_s26 + $0x13e0] sm:$0xf]  ;;  %v12616_v63 = vor.u32 %v15928_v54, %v12615_v53  ;;  %v15860_v4 = vld [vmem:[%s16889_s26 + $0x10cc] sm:$0xf0]  ;;  %8166 = vmatmul.bf16.vlgmr.msrb.gmra.mxu0 %v17209_v47  ;;  %8192 = vmatmul.bf16.vlgmr.msrb.gmra.mxu2 %v17211_v48 }
  0xb6   : > { %v12343_v0 = vld [vmem:[%s16889_s26 + $0x10c0] sm:$0xf]  ;;  %v12744_v6 = vor.u32 %v15960_v58, %v12743_v57  ;;  %v15892_v7 = vld [vmem:[%s16889_s26 + $0x11cc] sm:$0xf0]  ;;  %8223 = vmatpush.bf16.msra.mxu1 %v12488_v62  ;;  %8205 = vmatmul.bf16.vlgmr.msrb.gmra.mxu3 %v17215_v50 }
  0xb7   : > { %v12471_v5 = vld [vmem:[%s16889_s26 + $0x11c0] sm:$0xf]  ;;  %v15924_v9 = vld [vmem:[%s16889_s26 + $0x12cc] sm:$0xf0]  ;;  %v12344_v12 = vor.u32 %v15860_v4, %v12343_v0  ;;  %8236 = vmatpush.bf16.msra.mxu2 %v12616_v63  ;;  %8179 = vmatmul.bf16.vlgmr.msrb.gmra.mxu1 %v17213_v49 }
  0xb8   : > { %v12599_v8 = vld [vmem:[%s16889_s26 + $0x12c0] sm:$0xf]  ;;  %v15956_v11 = vld [vmem:[%s16889_s26 + $0x13cc] sm:$0xf0]  ;;  %v12472_v14 = vor.u32 %v15892_v7, %v12471_v5  ;;  %8249 = vmatpush.bf16.msra.mxu3 %v12744_v6 }
  0xb9   : > { %v12727_v10 = vld [vmem:[%s16889_s26 + $0x13c0] sm:$0xf]  ;;  %v12600_v15 = vor.u32 %v15924_v9, %v12599_v8  ;;  %v15856_v20 = vld [vmem:[%s16889_s26 + $0x10ac] sm:$0xf0]  ;;  %8211 = vmatpush.bf16.msra.mxu0 %v12344_v12 }
  0xba   : > { %v12327_v19 = vld [vmem:[%s16889_s26 + $0x10a0] sm:$0xf]  ;;  %v12728_v25 = vor.u32 %v15956_v11, %v12727_v10  ;;  %v15888_v26 = vld [vmem:[%s16889_s26 + $0x11ac] sm:$0xf0]  ;;  %8224 = vmatpush.bf16.msra.mxu1 %v12472_v14 }
  0xbb   : > { %v12455_v24 = vld [vmem:[%s16889_s26 + $0x11a0] sm:$0xf]  ;;  %v15920_v29 = vld [vmem:[%s16889_s26 + $0x12ac] sm:$0xf0]  ;;  %v12328_v32 = vor.u32 %v15856_v20, %v12327_v19  ;;  %8237 = vmatpush.bf16.msra.mxu2 %v12600_v15 }
  0xbc   : > { %v12583_v28 = vld [vmem:[%s16889_s26 + $0x12a0] sm:$0xf]  ;;  %v15952_v31 = vld [vmem:[%s16889_s26 + $0x13ac] sm:$0xf0]  ;;  %v12456_v33 = vor.u32 %v15888_v26, %v12455_v24  ;;  %8250 = vmatpush.bf16.msra.mxu3 %v12728_v25 }
  0xbd   : > { %v12711_v30 = vld [vmem:[%s16889_s26 + $0x13a0] sm:$0xf]  ;;  %v12584_v34 = vor.u32 %v15920_v29, %v12583_v28  ;;  %v15852_v36 = vld [vmem:[%s16889_s26 + $0x108c] sm:$0xf0]  ;;  %8212 = vmatpush.bf16.msra.mxu0 %v12328_v32 }
  0xbe   : > { %v12311_v35 = vld [vmem:[%s16889_s26 + $0x1080] sm:$0xf]  ;;  %v12712_v38 = vor.u32 %v15952_v31, %v12711_v30  ;;  %v15884_v39 = vld [vmem:[%s16889_s26 + $0x118c] sm:$0xf0]  ;;  %8225 = vmatpush.bf16.msra.mxu1 %v12456_v33 }
  0xbf   : > { %v12439_v37 = vld [vmem:[%s16889_s26 + $0x1180] sm:$0xf]  ;;  %v15916_v41 = vld [vmem:[%s16889_s26 + $0x128c] sm:$0xf0]  ;;  %v12312_v44 = vor.u32 %v15852_v36, %v12311_v35  ;;  %8238 = vmatpush.bf16.msra.mxu2 %v12584_v34 }
  0xc0   : > { %v12567_v40 = vld [vmem:[%s16889_s26 + $0x1280] sm:$0xf]  ;;  %v15948_v43 = vld [vmem:[%s16889_s26 + $0x138c] sm:$0xf0]  ;;  %v12440_v45 = vor.u32 %v15884_v39, %v12439_v37  ;;  %8251 = vmatpush.bf16.msra.mxu3 %v12712_v38 }
  0xc1   : > { %v12695_v42 = vld [vmem:[%s16889_s26 + $0x1380] sm:$0xf]  ;;  %v12568_v46 = vor.u32 %v15916_v41, %v12567_v40  ;;  %v15848_v52 = vld [vmem:[%s16889_s26 + $0x106c] sm:$0xf0]  ;;  %8213 = vmatpush.bf16.msra.mxu0 %v12312_v44 }
  0xc2   : > { %v12295_v51 = vld [vmem:[%s16889_s26 + $0x1060] sm:$0xf]  ;;  %v12696_v54 = vor.u32 %v15948_v43, %v12695_v42  ;;  %v15880_v55 = vld [vmem:[%s16889_s26 + $0x116c] sm:$0xf0]  ;;  %8226 = vmatpush.bf16.msra.mxu1 %v12440_v45 }
  0xc3   : > { %v12423_v53 = vld [vmem:[%s16889_s26 + $0x1160] sm:$0xf]  ;;  %v15912_v57 = vld [vmem:[%s16889_s26 + $0x126c] sm:$0xf0]  ;;  %v12296_v60 = vor.u32 %v15848_v52, %v12295_v51  ;;  %8239 = vmatpush.bf16.msra.mxu2 %v12568_v46 }
  0xc4   : > { %v12551_v56 = vld [vmem:[%s16889_s26 + $0x1260] sm:$0xf]  ;;  %v15944_v59 = vld [vmem:[%s16889_s26 + $0x136c] sm:$0xf0]  ;;  %v12424_v62 = vor.u32 %v15880_v55, %v12423_v53  ;;  %8252 = vmatpush.bf16.msra.mxu3 %v12696_v54 }
  0xc5   : > { %v12679_v58 = vld [vmem:[%s16889_s26 + $0x1360] sm:$0xf]  ;;  %v12552_v63 = vor.u32 %v15912_v57, %v12551_v56  ;;  %v15844_v4 = vld [vmem:[%s16889_s26 + $0x104c] sm:$0xf0]  ;;  %8214 = vmatpush.bf16.msra.mxu0 %v12296_v60 }
  0xc6   : > { %v12279_v0 = vld [vmem:[%s16889_s26 + $0x1040] sm:$0xf]  ;;  %v12680_v6 = vor.u32 %v15944_v59, %v12679_v58  ;;  %v15876_v7 = vld [vmem:[%s16889_s26 + $0x114c] sm:$0xf0]  ;;  %8227 = vmatpush.bf16.msra.mxu1 %v12424_v62 }
  0xc7   : > { %v12407_v5 = vld [vmem:[%s16889_s26 + $0x1140] sm:$0xf]  ;;  %v15908_v9 = vld [vmem:[%s16889_s26 + $0x124c] sm:$0xf0]  ;;  %v12280_v12 = vor.u32 %v15844_v4, %v12279_v0  ;;  %8240 = vmatpush.bf16.msra.mxu2 %v12552_v63 }
  0xc8   : > { %v12535_v8 = vld [vmem:[%s16889_s26 + $0x1240] sm:$0xf]  ;;  %v15940_v11 = vld [vmem:[%s16889_s26 + $0x134c] sm:$0xf0]  ;;  %v12408_v14 = vor.u32 %v15876_v7, %v12407_v5  ;;  %8253 = vmatpush.bf16.msra.mxu3 %v12680_v6 }
  0xc9   : > { %v12663_v10 = vld [vmem:[%s16889_s26 + $0x1340] sm:$0xf]  ;;  %v12536_v15 = vor.u32 %v15908_v9, %v12535_v8  ;;  %v15840_v20 = vld [vmem:[%s16889_s26 + $0x102c] sm:$0xf0]  ;;  %8215 = vmatpush.bf16.msra.mxu0 %v12280_v12 }
  0xca   : > { %v12263_v19 = vld [vmem:[%s16889_s26 + $0x1020] sm:$0xf]  ;;  %v12664_v25 = vor.u32 %v15940_v11, %v12663_v10  ;;  %v15872_v26 = vld [vmem:[%s16889_s26 + $0x112c] sm:$0xf0]  ;;  %8228 = vmatpush.bf16.msra.mxu1 %v12408_v14  ;;  %v17296_v10 = vld [vmem:[#allocation1] sm:$0xff] }
  0xcb   : > { %v12391_v24 = vld [vmem:[%s16889_s26 + $0x1120] sm:$0xf]  ;;  %v15904_v29 = vld [vmem:[%s16889_s26 + $0x122c] sm:$0xf0]  ;;  %v12264_v32 = vor.u32 %v15840_v20, %v12263_v19  ;;  %8241 = vmatpush.bf16.msra.mxu2 %v12536_v15 }
  0xcc   : > { %v12519_v28 = vld [vmem:[%s16889_s26 + $0x1220] sm:$0xf]  ;;  %v15936_v31 = vld [vmem:[%s16889_s26 + $0x132c] sm:$0xf0]  ;;  %v12392_v35 = vor.u32 %v15872_v26, %v12391_v24  ;;  %8254 = vmatpush.bf16.msra.mxu3 %v12664_v25 }
  0xcd   : > { %v12647_v30 = vld [vmem:[%s16889_s26 + $0x1320] sm:$0xf]  ;;  %v15836_v34 = vld [vmem:[%s16889_s26 + $0x100c] sm:$0xf0]  ;;  %v12520_v36 = vor.u32 %v15904_v29, %v12519_v28  ;;  %8216 = vmatpush.bf16.msra.mxu0 %v12264_v32 }
  0xce   : > { %v12247_v33 = vld [vmem:[%s16889_s26 + $0x1000] sm:$0xf]  ;;  %v15868_v38 = vld [vmem:[%s16889_s26 + $0x110c] sm:$0xf0]  ;;  %v12648_v40 = vor.u32 %v15936_v31, %v12647_v30  ;;  %8229 = vmatpush.bf16.msra.mxu1 %v12392_v35 }
  0xcf   : > { %v12375_v37 = vld [vmem:[%s16889_s26 + $0x1100] sm:$0xf]  ;;  %v15900_v41 = vld [vmem:[%s16889_s26 + $0x120c] sm:$0xf0]  ;;  %v12248_v51 = vor.u32 %v15836_v34, %v12247_v33  ;;  %8242 = vmatpush.bf16.msra.mxu2 %v12520_v36 }
  0xd0   : > { %v12503_v39 = vld [vmem:[%s16889_s26 + $0x1200] sm:$0xf]  ;;  %v15932_v43 = vld [vmem:[%s16889_s26 + $0x130c] sm:$0xf0]  ;;  %v12376_v55 = vor.u32 %v15868_v38, %v12375_v37  ;;  %8255 = vmatpush.bf16.msra.mxu3 %v12648_v40 }
  0xd1   : > { %v12631_v42 = vld [vmem:[%s16889_s26 + $0x1300] sm:$0xf]  ;;  %v15992_v45 = vld [vmem:[%s16889_s26 + $0x14ec] sm:$0xf0]  ;;  %v12504_v56 = vor.u32 %v15900_v41, %v12503_v39  ;;  %8217 = vmatpush.bf16.msra.mxu0 %v12248_v51 }
  0xd2   : > { %v12871_v44 = vld [vmem:[%s16889_s26 + $0x14e0] sm:$0xf]  ;;  %v16024_v52 = vld [vmem:[%s16889_s26 + $0x15ec] sm:$0xf0]  ;;  %v12632_v59 = vor.u32 %v15932_v43, %v12631_v42  ;;  %8230 = vmatpush.bf16.msra.mxu1 %v12376_v55 }
  0xd3   : > { %v12999_v46 = vld [vmem:[%s16889_s26 + $0x15e0] sm:$0xf]  ;;  %v16056_v54 = vld [vmem:[%s16889_s26 + $0x16ec] sm:$0xf0]  ;;  %v12872_v60 = vor.u32 %v15992_v45, %v12871_v44  ;;  %8243 = vmatpush.bf16.msra.mxu2 %v12504_v56 }
  0xd4   : > { %v13127_v53 = vld [vmem:[%s16889_s26 + $0x16e0] sm:$0xf]  ;;  %v16088_v58 = vld [vmem:[%s16889_s26 + $0x17ec] sm:$0xf0]  ;;  %v13000_v62 = vor.u32 %v16024_v52, %v12999_v46  ;;  %8256 = vmatpush.bf16.msra.mxu3 %v12632_v59  ;;  %8218 = vmatmul.bf16.vlgmr.msra.gmra.mxu0 %v17296_v10 }
  0xd5   : > { %v13255_v57 = vld [vmem:[%s16889_s26 + $0x17e0] sm:$0xf]  ;;  %v13128_v63 = vor.u32 %v16056_v54, %v13127_v53  ;;  %v15988_v4 = vld [vmem:[%s16889_s26 + $0x14cc] sm:$0xf0]  ;;  %8262 = vmatpush.bf16.msrb.mxu0 %v12872_v60 }
  0xd6   : > { %v12855_v0 = vld [vmem:[%s16889_s26 + $0x14c0] sm:$0xf]  ;;  %v13256_v6 = vor.u32 %v16088_v58, %v13255_v57  ;;  %v16020_v7 = vld [vmem:[%s16889_s26 + $0x15cc] sm:$0xf0]  ;;  %8275 = vmatpush.bf16.msrb.mxu1 %v13000_v62 }
  0xd7   : > { %v12983_v5 = vld [vmem:[%s16889_s26 + $0x15c0] sm:$0xf]  ;;  %v16052_v9 = vld [vmem:[%s16889_s26 + $0x16cc] sm:$0xf0]  ;;  %v12856_v20 = vor.u32 %v15988_v4, %v12855_v0  ;;  %8288 = vmatpush.bf16.msrb.mxu2 %v13128_v63 }
  0xd8   : > { %v13111_v8 = vld [vmem:[%s16889_s26 + $0x16c0] sm:$0xf]  ;;  %v16084_v12 = vld [vmem:[%s16889_s26 + $0x17cc] sm:$0xf0]  ;;  %v12984_v24 = vor.u32 %v16020_v7, %v12983_v5  ;;  %8301 = vmatpush.bf16.msrb.mxu3 %v13256_v6 }
  0xd9   : > { %v13239_v11 = vld [vmem:[%s16889_s26 + $0x17c0] sm:$0xf]  ;;  %v17300_v14 = vld [vmem:[#allocation1 + $0x12] sm:$0xff]  ;;  %v17304_v19 = vld [vmem:[#allocation1 + $0x1b] sm:$0xff]  ;;  %v13112_v25 = vor.u32 %v16052_v9, %v13111_v8  ;;  %8263 = vmatpush.bf16.msrb.mxu0 %v12856_v20 }
  0xda   : > { %v17302_v15 = vld [vmem:[#allocation1 + $0x9] sm:$0xff]  ;;  %v15984_v28 = vld [vmem:[%s16889_s26 + $0x14ac] sm:$0xf0]  ;;  %v13240_v30 = vor.u32 %v16084_v12, %v13239_v11  ;;  %8244 = vmatmul.bf16.vlgmr.msra.gmra.mxu2 %v17300_v14  ;;  %8257 = vmatmul.bf16.vlgmr.msra.gmra.mxu3 %v17304_v19 }
  0xdb   : > { %v12839_v26 = vld [vmem:[%s16889_s26 + $0x14a0] sm:$0xf]  ;;  %v16016_v31 = vld [vmem:[%s16889_s26 + $0x15ac] sm:$0xf0]  ;;  %8231 = vmatmul.bf16.vlgmr.msra.gmra.mxu1 %v17302_v15  ;;  %8289 = vmatpush.bf16.msrb.mxu2 %v13112_v25 }
  0xdc   : > { %v12967_v29 = vld [vmem:[%s16889_s26 + $0x15a0] sm:$0xf]  ;;  %v16048_v33 = vld [vmem:[%s16889_s26 + $0x16ac] sm:$0xf0]  ;;  %v12840_v36 = vor.u32 %v15984_v28, %v12839_v26  ;;  %8276 = vmatpush.bf16.msrb.mxu1 %v12984_v24  ;;  %8302 = vmatpush.bf16.msrb.mxu3 %v13240_v30  ;;  %v8011_v30 = vpop.f32.mrf.mxu0 }
  0xdd   : > { %v13095_v32 = vld [vmem:[%s16889_s26 + $0x16a0] sm:$0xf]  ;;  %v16080_v35 = vld [vmem:[%s16889_s26 + $0x17ac] sm:$0xf0]  ;;  %v12968_v37 = vor.u32 %v16016_v31, %v12967_v29 }
  0xde   : > { %v13223_v34 = vld [vmem:[%s16889_s26 + $0x17a0] sm:$0xf]  ;;  %v13096_v38 = vor.u32 %v16048_v33, %v13095_v32  ;;  %v15980_v40 = vld [vmem:[%s16889_s26 + $0x148c] sm:$0xf0]  ;;  %8264 = vmatpush.bf16.msrb.mxu0 %v12840_v36  ;;  %v8024_v36 = vpop.f32.mrf.mxu1 }
  0xdf   : > { %v12823_v39 = vld [vmem:[%s16889_s26 + $0x1480] sm:$0xf]  ;;  %v13224_v42 = vor.u32 %v16080_v35, %v13223_v34  ;;  %v16012_v43 = vld [vmem:[%s16889_s26 + $0x158c] sm:$0xf0] }
  0xe0   : > { %v12951_v41 = vld [vmem:[%s16889_s26 + $0x1580] sm:$0xf]  ;;  %v16044_v45 = vld [vmem:[%s16889_s26 + $0x168c] sm:$0xf0]  ;;  %v12824_v52 = vor.u32 %v15980_v40, %v12823_v39  ;;  %8277 = vmatpush.bf16.msrb.mxu1 %v12968_v37  ;;  %8290 = vmatpush.bf16.msrb.mxu2 %v13096_v38 }
  0xe1   : > { %v13079_v44 = vld [vmem:[%s16889_s26 + $0x1680] sm:$0xf]  ;;  %v16076_v51 = vld [vmem:[%s16889_s26 + $0x178c] sm:$0xf0]  ;;  %v12952_v53 = vor.u32 %v16012_v43, %v12951_v41  ;;  %8303 = vmatpush.bf16.msrb.mxu3 %v13224_v42  ;;  %v8025_v41 = vadd.f32 %v8024_v36, %v8011_v30 }
  0xe2   : > { %v13207_v46 = vld [vmem:[%s16889_s26 + $0x1780] sm:$0xf]  ;;  %v13080_v54 = vor.u32 %v16044_v45, %v13079_v44  ;;  %v15976_v56 = vld [vmem:[%s16889_s26 + $0x146c] sm:$0xf0]  ;;  %8265 = vmatpush.bf16.msrb.mxu0 %v12824_v52 }
  0xe3   : > { %v12807_v55 = vld [vmem:[%s16889_s26 + $0x1460] sm:$0xf]  ;;  %v13208_v58 = vor.u32 %v16076_v51, %v13207_v46  ;;  %v16008_v59 = vld [vmem:[%s16889_s26 + $0x156c] sm:$0xf0] }
  0xe4   : > { %v12935_v57 = vld [vmem:[%s16889_s26 + $0x1560] sm:$0xf]  ;;  %v16040_v62 = vld [vmem:[%s16889_s26 + $0x166c] sm:$0xf0]  ;;  %v12808_v4 = vor.u32 %v15976_v56, %v12807_v55  ;;  %8278 = vmatpush.bf16.msrb.mxu1 %v12952_v53  ;;  %8291 = vmatpush.bf16.msrb.mxu2 %v13080_v54 }
  0xe5   : > { %v13063_v60 = vld [vmem:[%s16889_s26 + $0x1660] sm:$0xf]  ;;  %v16072_v0 = vld [vmem:[%s16889_s26 + $0x176c] sm:$0xf0]  ;;  %v12936_v5 = vor.u32 %v16008_v59, %v12935_v57  ;;  %8304 = vmatpush.bf16.msrb.mxu3 %v13208_v58 }
  0xe6   : > { %v13191_v63 = vld [vmem:[%s16889_s26 + $0x1760] sm:$0xf]  ;;  %v13064_v6 = vor.u32 %v16040_v62, %v13063_v60  ;;  %v15972_v8 = vld [vmem:[%s16889_s26 + $0x144c] sm:$0xf0]  ;;  %8266 = vmatpush.bf16.msrb.mxu0 %v12808_v4  ;;  %v8037_v60 = vpop.f32.mrf.mxu2 }
  0xe7   : > { %v12791_v7 = vld [vmem:[%s16889_s26 + $0x1440] sm:$0xf]  ;;  %v13192_v11 = vor.u32 %v16072_v0, %v13191_v63  ;;  %v16004_v12 = vld [vmem:[%s16889_s26 + $0x154c] sm:$0xf0] }
  0xe8   : > { %v12919_v9 = vld [vmem:[%s16889_s26 + $0x1540] sm:$0xf]  ;;  %v16036_v24 = vld [vmem:[%s16889_s26 + $0x164c] sm:$0xf0]  ;;  %v12792_v28 = vor.u32 %v15972_v8, %v12791_v7  ;;  %8279 = vmatpush.bf16.msrb.mxu1 %v12936_v5  ;;  %8292 = vmatpush.bf16.msrb.mxu2 %v13064_v6  ;;  %v8038_v6 = vadd.f32 %v8037_v60, %v8025_v41  ;;  %v8050_v7 = vpop.f32.mrf.mxu3  ;;  %v17366_v8 = vld [vmem:[#allocation1 + $0x2d] sm:$0xff] }
  0xe9   : > { %v13047_v20 = vld [vmem:[%s16889_s26 + $0x1640] sm:$0xf]  ;;  %v16068_v26 = vld [vmem:[%s16889_s26 + $0x174c] sm:$0xf0]  ;;  %v12920_v31 = vor.u32 %v16004_v12, %v12919_v9  ;;  %8305 = vmatpush.bf16.msrb.mxu3 %v13192_v11  ;;  %v17368_v9 = vld [vmem:[#allocation1 + $0x3f] sm:$0xff] }
  0xea   : > { %v13175_v25 = vld [vmem:[%s16889_s26 + $0x1740] sm:$0xf]  ;;  %v13048_v32 = vor.u32 %v16036_v24, %v13047_v20  ;;  %v15968_v33 = vld [vmem:[%s16889_s26 + $0x142c] sm:$0xf0]  ;;  %8267 = vmatpush.bf16.msrb.mxu0 %v12792_v28 }
  0xeb   : > { %v12775_v29 = vld [vmem:[%s16889_s26 + $0x1420] sm:$0xf]  ;;  %v16000_v35 = vld [vmem:[%s16889_s26 + $0x152c] sm:$0xf0]  ;;  %v13176_v37 = vor.u32 %v16068_v26, %v13175_v25  ;;  %v17373_v25 = vadd.f32 %v8050_v7, %v8038_v6  ;;  %v8013_v26 = vpop.f32.mrf.mxu0 }
  0xec   : > { %v12903_v34 = vld [vmem:[%s16889_s26 + $0x1520] sm:$0xf]  ;;  %v16032_v39 = vld [vmem:[%s16889_s26 + $0x162c] sm:$0xf0]  ;;  %v12776_v45 = vor.u32 %v15968_v33, %v12775_v29  ;;  %8280 = vmatpush.bf16.msrb.mxu1 %v12920_v31  ;;  %8293 = vmatpush.bf16.msrb.mxu2 %v13048_v32  ;;  %v8026_v32 = vpop.f32.mrf.mxu1 }
  0xed   : > { %v13031_v38 = vld [vmem:[%s16889_s26 + $0x1620] sm:$0xf]  ;;  %v16064_v42 = vld [vmem:[%s16889_s26 + $0x172c] sm:$0xf0]  ;;  %v12904_v54 = vor.u32 %v16000_v35, %v12903_v34  ;;  %8306 = vmatpush.bf16.msrb.mxu3 %v13176_v37 }
  0xee   : > { %v13159_v40 = vld [vmem:[%s16889_s26 + $0x1720] sm:$0xf]  ;;  %v15964_v44 = vld [vmem:[%s16889_s26 + $0x140c] sm:$0xf0]  ;;  %v13032_v55 = vor.u32 %v16032_v39, %v13031_v38  ;;  %8268 = vmatpush.bf16.msrb.mxu0 %v12776_v45 }
  0xef   : > { %v12759_v43 = vld [vmem:[%s16889_s26 + $0x1400] sm:$0xf]  ;;  %v15996_v51 = vld [vmem:[%s16889_s26 + $0x150c] sm:$0xf0]  ;;  %v13160_v62 = vor.u32 %v16064_v42, %v13159_v40 }
  0xf0   : > { %v12887_v46 = vld [vmem:[%s16889_s26 + $0x1500] sm:$0xf]  ;;  %v16028_v53 = vld [vmem:[%s16889_s26 + $0x160c] sm:$0xf0]  ;;  %v12760_v12 = vor.u32 %v15964_v44, %v12759_v43  ;;  %8281 = vmatpush.bf16.msrb.mxu1 %v12904_v54  ;;  %8294 = vmatpush.bf16.msrb.mxu2 %v13032_v55 }
  0xf1   : > { %v13015_v52 = vld [vmem:[%s16889_s26 + $0x1600] sm:$0xf]  ;;  %v16060_v57 = vld [vmem:[%s16889_s26 + $0x170c] sm:$0xf0]  ;;  %v12888_v28 = vor.u32 %v15996_v51, %v12887_v46  ;;  %8307 = vmatpush.bf16.msrb.mxu3 %v13160_v62  ;;  %v8039_v46 = vpop.f32.mrf.mxu2 }
  0xf2   : > { %v13143_v56 = vld [vmem:[%s16889_s26 + $0x1700] sm:$0xf]  ;;  %v16120_v59 = vld [vmem:[%s16889_s26 + $0x18ec] sm:$0xf0]  ;;  %v13016_v29 = vor.u32 %v16028_v53, %v13015_v52  ;;  %8269 = vmatpush.bf16.msrb.mxu0 %v12760_v12  ;;  %v8052_v52 = vpop.f32.mrf.mxu3 }
  0xf3   : > { %v13383_v58 = vld [vmem:[%s16889_s26 + $0x18e0] sm:$0xf]  ;;  %v16152_v0 = vld [vmem:[%s16889_s26 + $0x19ec] sm:$0xf0]  ;;  %v13144_v33 = vor.u32 %v16060_v57, %v13143_v56 }
  0xf4   : > { %v13511_v63 = vld [vmem:[%s16889_s26 + $0x19e0] sm:$0xf]  ;;  %v17364_v5 = vld [vmem:[#allocation1 + $0x36] sm:$0xff]  ;;  %v13384_v34 = vor.u32 %v16120_v59, %v13383_v58  ;;  %8282 = vmatpush.bf16.msrb.mxu1 %v12888_v28  ;;  %8295 = vmatpush.bf16.msrb.mxu2 %v13016_v29 }
  0xf5   : > { %v17362_v4 = vld [vmem:[#allocation1 + $0x24] sm:$0xff]  ;;  %v230_v11 = vld [vmem:[%s16907_s7 + $0x18] sm:$0xff]  ;;  %v13512_v35 = vor.u32 %v16152_v0, %v13511_v63  ;;  %8308 = vmatpush.bf16.msrb.mxu3 %v13144_v33 }
  0xf6   : > { %v13639_v20 = vld [vmem:[%s16889_s26 + $0x1ae0] sm:$0xf]  ;;  %v16184_v24 = vld [vmem:[%s16889_s26 + $0x1aec] sm:$0xf0]  ;;  %1543 = vst [vmem:[#allocation1] ss:$9 sm:$0xff] %v230_v11  ;;  %8314 = vmatpush.bf16.msra.mxu0 %v13384_v34  ;;  %v8063_v34 = vpop.f32.mrf.mxu0 }
  0xf7   : > { %v13767_v30 = vld [vmem:[%s16889_s26 + $0x1be0] sm:$0xf]  ;;  %v16216_v31 = vld [vmem:[%s16889_s26 + $0x1bec] sm:$0xf0]  ;;  %v13640_v36 = vor.u32 %v16184_v24, %v13639_v20  ;;  %8270 = vmatmul.bf16.vlgmr.msrb.gmra.mxu0 %v17362_v4  ;;  %8296 = vmatmul.bf16.vlgmr.msrb.gmra.mxu2 %v17364_v5 }
  0xf8   : > { %v13367_v37 = vld [vmem:[%s16889_s26 + $0x18c0] sm:$0xf]  ;;  %v16116_v38 = vld [vmem:[%s16889_s26 + $0x18cc] sm:$0xf0]  ;;  %v13768_v40 = vor.u32 %v16216_v31, %v13767_v30  ;;  %8327 = vmatpush.bf16.msra.mxu1 %v13512_v35  ;;  %8309 = vmatmul.bf16.vlgmr.msrb.gmra.mxu3 %v17368_v9 }
  0xf9   : > { %v13495_v39 = vld [vmem:[%s16889_s26 + $0x19c0] sm:$0xf]  ;;  %v16148_v41 = vld [vmem:[%s16889_s26 + $0x19cc] sm:$0xf0]  ;;  %v13368_v51 = vor.u32 %v16116_v38, %v13367_v37  ;;  %8340 = vmatpush.bf16.msra.mxu2 %v13640_v36  ;;  %8283 = vmatmul.bf16.vlgmr.msrb.gmra.mxu1 %v17366_v8 }
  0xfa   : > { %v13623_v42 = vld [vmem:[%s16889_s26 + $0x1ac0] sm:$0xf]  ;;  %v16180_v43 = vld [vmem:[%s16889_s26 + $0x1acc] sm:$0xf0]  ;;  %v13496_v53 = vor.u32 %v16148_v41, %v13495_v39  ;;  %8353 = vmatpush.bf16.msra.mxu3 %v13768_v40  ;;  %v8064_v40 = vadd.f32 %v8063_v34, %v17373_v25  ;;  %v8076_v41 = vpop.f32.mrf.mxu1 }
  0xfb   : > { %v13751_v44 = vld [vmem:[%s16889_s26 + $0x1bc0] sm:$0xf]  ;;  %v16212_v45 = vld [vmem:[%s16889_s26 + $0x1bcc] sm:$0xf0]  ;;  %v13624_v54 = vor.u32 %v16180_v43, %v13623_v42  ;;  %8315 = vmatpush.bf16.msra.mxu0 %v13368_v51 }
  0xfc   : > { %v13351_v55 = vld [vmem:[%s16889_s26 + $0x18a0] sm:$0xf]  ;;  %v16112_v56 = vld [vmem:[%s16889_s26 + $0x18ac] sm:$0xf0]  ;;  %v13752_v58 = vor.u32 %v16212_v45, %v13751_v44  ;;  %8328 = vmatpush.bf16.msra.mxu1 %v13496_v53  ;;  %v8077_v52 = vadd.f32 %v8076_v41, %v8064_v40 }
  0xfd   : > { %v13479_v57 = vld [vmem:[%s16889_s26 + $0x19a0] sm:$0xf]  ;;  %v16144_v59 = vld [vmem:[%s16889_s26 + $0x19ac] sm:$0xf0]  ;;  %v13352_v6 = vor.u32 %v16112_v56, %v13351_v55  ;;  %8341 = vmatpush.bf16.msra.mxu2 %v13624_v54 }
  0xfe   : > { %v13607_v60 = vld [vmem:[%s16889_s26 + $0x1aa0] sm:$0xf]  ;;  %v16176_v62 = vld [vmem:[%s16889_s26 + $0x1aac] sm:$0xf0]  ;;  %v13480_v7 = vor.u32 %v16144_v59, %v13479_v57  ;;  %8354 = vmatpush.bf16.msra.mxu3 %v13752_v58  ;;  %v8089_v58 = vpop.f32.mrf.mxu2 }
  0xff   : > { %v13735_v63 = vld [vmem:[%s16889_s26 + $0x1ba0] sm:$0xf]  ;;  %v16208_v0 = vld [vmem:[%s16889_s26 + $0x1bac] sm:$0xf0]  ;;  %v13608_v11 = vor.u32 %v16176_v62, %v13607_v60  ;;  %8316 = vmatpush.bf16.msra.mxu0 %v13352_v6  ;;  %v8102_v6 = vpop.f32.mrf.mxu3 }
 0x100   : > { %v13335_v12 = vld [vmem:[%s16889_s26 + $0x1880] sm:$0xf]  ;;  %v16108_v20 = vld [vmem:[%s16889_s26 + $0x188c] sm:$0xf0]  ;;  %v13736_v26 = vor.u32 %v16208_v0, %v13735_v63  ;;  %8329 = vmatpush.bf16.msra.mxu1 %v13480_v7  ;;  %v8090_v0 = vadd.f32 %v8089_v58, %v8077_v52 }
 0x101   : > { %v13463_v24 = vld [vmem:[%s16889_s26 + $0x1980] sm:$0xf]  ;;  %v16140_v28 = vld [vmem:[%s16889_s26 + $0x198c] sm:$0xf0]  ;;  %v13336_v33 = vor.u32 %v16108_v20, %v13335_v12  ;;  %8342 = vmatpush.bf16.msra.mxu2 %v13608_v11 }
 0x102   : > { %v13591_v29 = vld [vmem:[%s16889_s26 + $0x1a80] sm:$0xf]  ;;  %v16172_v30 = vld [vmem:[%s16889_s26 + $0x1a8c] sm:$0xf0]  ;;  %v13464_v35 = vor.u32 %v16140_v28, %v13463_v24  ;;  %8355 = vmatpush.bf16.msra.mxu3 %v13736_v26  ;;  %v17422_v20 = vadd.f32 %v8102_v6, %v8090_v0  ;;  %v8065_v24 = vpop.f32.mrf.mxu0 }
 0x103   : > { %v13719_v31 = vld [vmem:[%s16889_s26 + $0x1b80] sm:$0xf]  ;;  %v16204_v32 = vld [vmem:[%s16889_s26 + $0x1b8c] sm:$0xf0]  ;;  %v13592_v36 = vor.u32 %v16172_v30, %v13591_v29  ;;  %8317 = vmatpush.bf16.msra.mxu0 %v13336_v33 }
 0x104   : > { %v13319_v37 = vld [vmem:[%s16889_s26 + $0x1860] sm:$0xf]  ;;  %v16104_v38 = vld [vmem:[%s16889_s26 + $0x186c] sm:$0xf0]  ;;  %v13720_v42 = vor.u32 %v16204_v32, %v13719_v31  ;;  %8330 = vmatpush.bf16.msra.mxu1 %v13464_v35  ;;  %v8078_v32 = vpop.f32.mrf.mxu1 }
 0x105   : > { %v13447_v39 = vld [vmem:[%s16889_s26 + $0x1960] sm:$0xf]  ;;  %v16136_v43 = vld [vmem:[%s16889_s26 + $0x196c] sm:$0xf0]  ;;  %v13320_v53 = vor.u32 %v16104_v38, %v13319_v37  ;;  %8343 = vmatpush.bf16.msra.mxu2 %v13592_v36 }
 0x106   : > { %v13575_v44 = vld [vmem:[%s16889_s26 + $0x1a60] sm:$0xf]  ;;  %v16168_v45 = vld [vmem:[%s16889_s26 + $0x1a6c] sm:$0xf0]  ;;  %v13448_v25 = vor.u32 %v16136_v43, %v13447_v39  ;;  %8356 = vmatpush.bf16.msra.mxu3 %v13720_v42 }
 0x107   : > { %v13703_v46 = vld [vmem:[%s16889_s26 + $0x1b60] sm:$0xf]  ;;  %v16200_v51 = vld [vmem:[%s16889_s26 + $0x1b6c] sm:$0xf0]  ;;  %v13576_v54 = vor.u32 %v16168_v45, %v13575_v44  ;;  %8318 = vmatpush.bf16.msra.mxu0 %v13320_v53 }
 0x108   : > { %v13303_v55 = vld [vmem:[%s16889_s26 + $0x1840] sm:$0xf]  ;;  %v16100_v56 = vld [vmem:[%s16889_s26 + $0x184c] sm:$0xf0]  ;;  %v13704_v59 = vor.u32 %v16200_v51, %v13703_v46  ;;  %8331 = vmatpush.bf16.msra.mxu1 %v13448_v25  ;;  %v8091_v51 = vpop.f32.mrf.mxu2 }
 0x109   : > { %v13431_v57 = vld [vmem:[%s16889_s26 + $0x1940] sm:$0xf]  ;;  %v16132_v60 = vld [vmem:[%s16889_s26 + $0x194c] sm:$0xf0]  ;;  %v13304_v12 = vor.u32 %v16100_v56, %v13303_v55  ;;  %8344 = vmatpush.bf16.msra.mxu2 %v13576_v54  ;;  %v8104_v55 = vpop.f32.mrf.mxu3 }
 0x10a   : > { %v13559_v62 = vld [vmem:[%s16889_s26 + $0x1a40] sm:$0xf]  ;;  %v16164_v63 = vld [vmem:[%s16889_s26 + $0x1a4c] sm:$0xf0]  ;;  %v13432_v26 = vor.u32 %v16132_v60, %v13431_v57  ;;  %8357 = vmatpush.bf16.msra.mxu3 %v13704_v59 }
 0x10b   : > { %v13687_v7 = vld [vmem:[%s16889_s26 + $0x1b40] sm:$0xf]  ;;  %v16196_v11 = vld [vmem:[%s16889_s26 + $0x1b4c] sm:$0xf0]  ;;  %v13560_v28 = vor.u32 %v16164_v63, %v13559_v62  ;;  %8319 = vmatpush.bf16.msra.mxu0 %v13304_v12 }
 0x10c   : > { %v13287_v29 = vld [vmem:[%s16889_s26 + $0x1820] sm:$0xf]  ;;  %v16096_v30 = vld [vmem:[%s16889_s26 + $0x182c] sm:$0xf0]  ;;  %v13688_v33 = vor.u32 %v16196_v11, %v13687_v7  ;;  %8332 = vmatpush.bf16.msra.mxu1 %v13432_v26 }
 0x10d   : > { %v13415_v31 = vld [vmem:[%s16889_s26 + $0x1920] sm:$0xf]  ;;  %v16128_v34 = vld [vmem:[%s16889_s26 + $0x192c] sm:$0xf0]  ;;  %v13288_v39 = vor.u32 %v16096_v30, %v13287_v29  ;;  %8345 = vmatpush.bf16.msra.mxu2 %v13560_v28 }
 0x10e   : > { %v13543_v35 = vld [vmem:[%s16889_s26 + $0x1a20] sm:$0xf]  ;;  %v16160_v36 = vld [vmem:[%s16889_s26 + $0x1a2c] sm:$0xf0]  ;;  %v13416_v42 = vor.u32 %v16128_v34, %v13415_v31  ;;  %8358 = vmatpush.bf16.msra.mxu3 %v13688_v33 }
 0x10f   : > { %v13671_v37 = vld [vmem:[%s16889_s26 + $0x1b20] sm:$0xf]  ;;  %v16192_v38 = vld [vmem:[%s16889_s26 + $0x1b2c] sm:$0xf0]  ;;  %v13544_v43 = vor.u32 %v16160_v36, %v13543_v35  ;;  %8320 = vmatpush.bf16.msra.mxu0 %v13288_v39  ;;  %v17454_v36 = vld [vmem:[#allocation1] sm:$0xff] }
 0x110   : > { %v13271_v40 = vld [vmem:[%s16889_s26 + $0x1800] sm:$0xf]  ;;  %v16092_v41 = vld [vmem:[%s16889_s26 + $0x180c] sm:$0xf0]  ;;  %v13672_v52 = vor.u32 %v16192_v38, %v13671_v37  ;;  %8333 = vmatpush.bf16.msra.mxu1 %v13416_v42 }
 0x111   : > { %v13399_v44 = vld [vmem:[%s16889_s26 + $0x1900] sm:$0xf]  ;;  %v16124_v45 = vld [vmem:[%s16889_s26 + $0x190c] sm:$0xf0]  ;;  %v13272_v59 = vor.u32 %v16092_v41, %v13271_v40  ;;  %8346 = vmatpush.bf16.msra.mxu2 %v13544_v43 }
 0x112   : > { %v13527_v46 = vld [vmem:[%s16889_s26 + $0x1a00] sm:$0xf]  ;;  %v16156_v53 = vld [vmem:[%s16889_s26 + $0x1a0c] sm:$0xf0]  ;;  %v13400_v0 = vor.u32 %v16124_v45, %v13399_v44  ;;  %8359 = vmatpush.bf16.msra.mxu3 %v13672_v52 }
 0x113   : > { %v13655_v25 = vld [vmem:[%s16889_s26 + $0x1b00] sm:$0xf]  ;;  %v16188_v54 = vld [vmem:[%s16889_s26 + $0x1b0c] sm:$0xf0]  ;;  %v13528_v6 = vor.u32 %v16156_v53, %v13527_v46  ;;  %8321 = vmatpush.bf16.msra.mxu0 %v13272_v59 }
 0x114   : > { %v13895_v56 = vld [vmem:[%s16889_s26 + $0x1ce0] sm:$0xf]  ;;  %v16248_v57 = vld [vmem:[%s16889_s26 + $0x1cec] sm:$0xf0]  ;;  %v13656_v12 = vor.u32 %v16188_v54, %v13655_v25  ;;  %8334 = vmatpush.bf16.msra.mxu1 %v13400_v0 }
 0x115   : > { %v14023_v58 = vld [vmem:[%s16889_s26 + $0x1de0] sm:$0xf]  ;;  %v16280_v60 = vld [vmem:[%s16889_s26 + $0x1dec] sm:$0xf0]  ;;  %v13896_v24 = vor.u32 %v16248_v57, %v13895_v56  ;;  %8347 = vmatpush.bf16.msra.mxu2 %v13528_v6 }
 0x116   : > { %v14151_v62 = vld [vmem:[%s16889_s26 + $0x1ee0] sm:$0xf]  ;;  %v16312_v63 = vld [vmem:[%s16889_s26 + $0x1eec] sm:$0xf0]  ;;  %v14024_v26 = vor.u32 %v16280_v60, %v14023_v58  ;;  %8360 = vmatpush.bf16.msra.mxu3 %v13656_v12  ;;  %8322 = vmatmul.bf16.vlgmr.msra.gmra.mxu0 %v17454_v36  ;;  %v8115_v12 = vpop.f32.mrf.mxu0 }
 0x117   : > { %v14279_v7 = vld [vmem:[%s16889_s26 + $0x1fe0] sm:$0xf]  ;;  %v16344_v11 = vld [vmem:[%s16889_s26 + $0x1fec] sm:$0xf0]  ;;  %v14152_v28 = vor.u32 %v16312_v63, %v14151_v62  ;;  %8366 = vmatpush.bf16.msrb.mxu0 %v13896_v24 }
 0x118   : > { %v13879_v29 = vld [vmem:[%s16889_s26 + $0x1cc0] sm:$0xf]  ;;  %v16244_v30 = vld [vmem:[%s16889_s26 + $0x1ccc] sm:$0xf0]  ;;  %v14280_v32 = vor.u32 %v16344_v11, %v14279_v7  ;;  %8379 = vmatpush.bf16.msrb.mxu1 %v14024_v26 }
 0x119   : > { %v14007_v31 = vld [vmem:[%s16889_s26 + $0x1dc0] sm:$0xf]  ;;  %v16276_v33 = vld [vmem:[%s16889_s26 + $0x1dcc] sm:$0xf0]  ;;  %v13880_v42 = vor.u32 %v16244_v30, %v13879_v29  ;;  %8392 = vmatpush.bf16.msrb.mxu2 %v14152_v28  ;;  %v8116_v28 = vadd.f32 %v8115_v12, %v17422_v20  ;;  %v8128_v30 = vpop.f32.mrf.mxu1 }
 0x11a   : > { %v14135_v34 = vld [vmem:[%s16889_s26 + $0x1ec0] sm:$0xf]  ;;  %v16308_v35 = vld [vmem:[%s16889_s26 + $0x1ecc] sm:$0xf0]  ;;  %v14008_v43 = vor.u32 %v16276_v33, %v14007_v31  ;;  %8405 = vmatpush.bf16.msrb.mxu3 %v14280_v32 }
 0x11b   : > { %v14263_v37 = vld [vmem:[%s16889_s26 + $0x1fc0] sm:$0xf]  ;;  %v16340_v38 = vld [vmem:[%s16889_s26 + $0x1fcc] sm:$0xf0]  ;;  %v14136_v44 = vor.u32 %v16308_v35, %v14135_v34  ;;  %8367 = vmatpush.bf16.msrb.mxu0 %v13880_v42 }
 0x11c   : > { %v17458_v39 = vld [vmem:[#allocation1 + $0x12] sm:$0xff]  ;;  %v17460_v40 = vld [vmem:[#allocation1 + $0x9] sm:$0xff]  ;;  %v17462_v41 = vld [vmem:[#allocation1 + $0x1b] sm:$0xff]  ;;  %v14264_v52 = vor.u32 %v16340_v38, %v14263_v37  ;;  %8380 = vmatpush.bf16.msrb.mxu1 %v14008_v43  ;;  %v8129_v38 = vadd.f32 %v8128_v30, %v8116_v28 }
 0x11d   : > { %v13863_v45 = vld [vmem:[%s16889_s26 + $0x1ca0] sm:$0xf]  ;;  %v16240_v46 = vld [vmem:[%s16889_s26 + $0x1cac] sm:$0xf0]  ;;  %8348 = vmatmul.bf16.vlgmr.msra.gmra.mxu2 %v17458_v39  ;;  %8335 = vmatmul.bf16.vlgmr.msra.gmra.mxu1 %v17460_v40 }
 0x11e   : > { %v13991_v51 = vld [vmem:[%s16889_s26 + $0x1da0] sm:$0xf]  ;;  %v16272_v53 = vld [vmem:[%s16889_s26 + $0x1dac] sm:$0xf0]  ;;  %8361 = vmatmul.bf16.vlgmr.msra.gmra.mxu3 %v17462_v41  ;;  %v13864_v57 = vor.u32 %v16240_v46, %v13863_v45  ;;  %8393 = vmatpush.bf16.msrb.mxu2 %v14136_v44 }
 0x11f   : > { %v14119_v25 = vld [vmem:[%s16889_s26 + $0x1ea0] sm:$0xf]  ;;  %v16304_v54 = vld [vmem:[%s16889_s26 + $0x1eac] sm:$0xf0]  ;;  %v13992_v58 = vor.u32 %v16272_v53, %v13991_v51  ;;  %8406 = vmatpush.bf16.msrb.mxu3 %v14264_v52 }
 0x120   : > { %v14247_v55 = vld [vmem:[%s16889_s26 + $0x1fa0] sm:$0xf]  ;;  %v16336_v56 = vld [vmem:[%s16889_s26 + $0x1fac] sm:$0xf0]  ;;  %v14120_v59 = vor.u32 %v16304_v54, %v14119_v25  ;;  %8368 = vmatpush.bf16.msrb.mxu0 %v13864_v57 }
 0x121   : > { %v13847_v60 = vld [vmem:[%s16889_s26 + $0x1c80] sm:$0xf]  ;;  %v16236_v62 = vld [vmem:[%s16889_s26 + $0x1c8c] sm:$0xf0]  ;;  %v14248_v0 = vor.u32 %v16336_v56, %v14247_v55  ;;  %8381 = vmatpush.bf16.msrb.mxu1 %v13992_v58  ;;  %v8141_v56 = vpop.f32.mrf.mxu2  ;;  %v8130_v12 = vpop.f32.mrf.mxu1 }
 0x122   : > { %v13975_v63 = vld [vmem:[%s16889_s26 + $0x1d80] sm:$0xf]  ;;  %v16268_v6 = vld [vmem:[%s16889_s26 + $0x1d8c] sm:$0xf0]  ;;  %v13848_v29 = vor.u32 %v16236_v62, %v13847_v60  ;;  %8394 = vmatpush.bf16.msrb.mxu2 %v14120_v59  ;;  %v8142_v60 = vadd.f32 %v8141_v56, %v8129_v38  ;;  %v8154_v62 = vpop.f32.mrf.mxu3 }
 0x123   : > { %v14103_v7 = vld [vmem:[%s16889_s26 + $0x1e80] sm:$0xf]  ;;  %v16300_v11 = vld [vmem:[%s16889_s26 + $0x1e8c] sm:$0xf0]  ;;  %v13976_v31 = vor.u32 %v16268_v6, %v13975_v63  ;;  %8407 = vmatpush.bf16.msrb.mxu3 %v14248_v0  ;;  %v8117_v6 = vpop.f32.mrf.mxu0 }
 0x124   : > { %v14231_v24 = vld [vmem:[%s16889_s26 + $0x1f80] sm:$0xf]  ;;  %v16332_v26 = vld [vmem:[%s16889_s26 + $0x1f8c] sm:$0xf0]  ;;  %v14104_v32 = vor.u32 %v16300_v11, %v14103_v7  ;;  %8369 = vmatpush.bf16.msrb.mxu0 %v13848_v29 }
 0x125   : > { %v13831_v33 = vld [vmem:[%s16889_s26 + $0x1c60] sm:$0xf]  ;;  %v16232_v34 = vld [vmem:[%s16889_s26 + $0x1c6c] sm:$0xf0]  ;;  %v14232_v37 = vor.u32 %v16332_v26, %v14231_v24  ;;  %8382 = vmatpush.bf16.msrb.mxu1 %v13976_v31  ;;  %v17502_v24 = vadd.f32 %v8154_v62, %v8142_v60 }
 0x126   : > { %v13959_v35 = vld [vmem:[%s16889_s26 + $0x1d60] sm:$0xf]  ;;  %v16264_v42 = vld [vmem:[%s16889_s26 + $0x1d6c] sm:$0xf0]  ;;  %v13832_v46 = vor.u32 %v16232_v34, %v13831_v33  ;;  %8395 = vmatpush.bf16.msrb.mxu2 %v14104_v32 }
 0x127   : > { %v14087_v43 = vld [vmem:[%s16889_s26 + $0x1e60] sm:$0xf]  ;;  %v16296_v20 = vld [vmem:[%s16889_s26 + $0x1e6c] sm:$0xf0]  ;;  %v13960_v51 = vor.u32 %v16264_v42, %v13959_v35  ;;  %8408 = vmatpush.bf16.msrb.mxu3 %v14232_v37 }
 0x128   : > { %v14215_v44 = vld [vmem:[%s16889_s26 + $0x1f60] sm:$0xf]  ;;  %v16328_v45 = vld [vmem:[%s16889_s26 + $0x1f6c] sm:$0xf0]  ;;  %v14088_v52 = vor.u32 %v16296_v20, %v14087_v43  ;;  %8370 = vmatpush.bf16.msrb.mxu0 %v13832_v46 }
 0x129   : > { %v13815_v53 = vld [vmem:[%s16889_s26 + $0x1c40] sm:$0xf]  ;;  %v16228_v25 = vld [vmem:[%s16889_s26 + $0x1c4c] sm:$0xf0]  ;;  %v14216_v55 = vor.u32 %v16328_v45, %v14215_v44  ;;  %8383 = vmatpush.bf16.msrb.mxu1 %v13960_v51  ;;  %v8143_v62 = vpop.f32.mrf.mxu2 }
 0x12a   : > { %v13943_v54 = vld [vmem:[%s16889_s26 + $0x1d40] sm:$0xf]  ;;  %v16260_v57 = vld [vmem:[%s16889_s26 + $0x1d4c] sm:$0xf0]  ;;  %v13816_v7 = vor.u32 %v16228_v25, %v13815_v53  ;;  %8396 = vmatpush.bf16.msrb.mxu2 %v14088_v52  ;;  %v8156_v6 = vpop.f32.mrf.mxu3 }
 0x12b   : > { %v14071_v58 = vld [vmem:[%s16889_s26 + $0x1e40] sm:$0xf]  ;;  %v16292_v59 = vld [vmem:[%s16889_s26 + $0x1e4c] sm:$0xf0]  ;;  %v13944_v26 = vor.u32 %v16260_v57, %v13943_v54  ;;  %8409 = vmatpush.bf16.msrb.mxu3 %v14216_v55 }
 0x12c   : > { %v14199_v63 = vld [vmem:[%s16889_s26 + $0x1f40] sm:$0xf]  ;;  %v16324_v0 = vld [vmem:[%s16889_s26 + $0x1f4c] sm:$0xf0]  ;;  %v14072_v28 = vor.u32 %v16292_v59, %v14071_v58  ;;  %8371 = vmatpush.bf16.msrb.mxu0 %v13816_v7  ;;  %v231_v7 = vld [vmem:[%s16907_s7 + $0x20] sm:$0xff] }
 0x12d   : > { %v13799_v11 = vld [vmem:[%s16889_s26 + $0x1c20] sm:$0xf]  ;;  %v16224_v29 = vld [vmem:[%s16889_s26 + $0x1c2c] sm:$0xf0]  ;;  %v14200_v32 = vor.u32 %v16324_v0, %v14199_v63  ;;  %8384 = vmatpush.bf16.msrb.mxu1 %v13944_v26  ;;  %v17527_v63 = vld [vmem:[#allocation1 + $0x2d] sm:$0xff] }
 0x12e   : > { %v13927_v30 = vld [vmem:[%s16889_s26 + $0x1d20] sm:$0xf]  ;;  %v16256_v31 = vld [vmem:[%s16889_s26 + $0x1d2c] sm:$0xf0]  ;;  %v13800_v43 = vor.u32 %v16224_v29, %v13799_v11  ;;  %8397 = vmatpush.bf16.msrb.mxu2 %v14072_v28  ;;  %v17529_v0 = vld [vmem:[#allocation1 + $0x3f] sm:$0xff] }
 0x12f   : > { %v14055_v33 = vld [vmem:[%s16889_s26 + $0x1e20] sm:$0xf]  ;;  %v16288_v34 = vld [vmem:[%s16889_s26 + $0x1e2c] sm:$0xf0]  ;;  %v13928_v51 = vor.u32 %v16256_v31, %v13927_v30  ;;  %8410 = vmatpush.bf16.msrb.mxu3 %v14200_v32 }
 0x130   : > { %v14183_v35 = vld [vmem:[%s16889_s26 + $0x1f20] sm:$0xf]  ;;  %v16320_v37 = vld [vmem:[%s16889_s26 + $0x1f2c] sm:$0xf0]  ;;  %v14056_v52 = vor.u32 %v16288_v34, %v14055_v33  ;;  %8372 = vmatpush.bf16.msrb.mxu0 %v13800_v43 }
 0x131   : > { %v13783_v38 = vld [vmem:[%s16889_s26 + $0x1c00] sm:$0xf]  ;;  %v16220_v42 = vld [vmem:[%s16889_s26 + $0x1c0c] sm:$0xf0]  ;;  %v14184_v56 = vor.u32 %v16320_v37, %v14183_v35  ;;  %8385 = vmatpush.bf16.msrb.mxu1 %v13928_v51 }
 0x132   : > { %v13911_v20 = vld [vmem:[%s16889_s26 + $0x1d00] sm:$0xf]  ;;  %v16252_v44 = vld [vmem:[%s16889_s26 + $0x1d0c] sm:$0xf0]  ;;  %v13784_v11 = vor.u32 %v16220_v42, %v13783_v38  ;;  %8398 = vmatpush.bf16.msrb.mxu2 %v14056_v52 }
 0x133   : > { %v14039_v45 = vld [vmem:[%s16889_s26 + $0x1e00] sm:$0xf]  ;;  %v16284_v46 = vld [vmem:[%s16889_s26 + $0x1e0c] sm:$0xf0]  ;;  %v13912_v28 = vor.u32 %v16252_v44, %v13911_v20  ;;  %8411 = vmatpush.bf16.msrb.mxu3 %v14184_v56 }
 0x134   : > { %v14167_v53 = vld [vmem:[%s16889_s26 + $0x1f00] sm:$0xf]  ;;  %v16316_v25 = vld [vmem:[%s16889_s26 + $0x1f0c] sm:$0xf0]  ;;  %v14040_v29 = vor.u32 %v16284_v46, %v14039_v45  ;;  %8373 = vmatpush.bf16.msrb.mxu0 %v13784_v11 }
 0x135   : > { %v14407_v54 = vld [vmem:[%s16889_s26 + $0x20e0] sm:$0xf]  ;;  %v16376_v55 = vld [vmem:[%s16889_s26 + $0x20ec] sm:$0xf0]  ;;  %v14168_v32 = vor.u32 %v16316_v25, %v14167_v53  ;;  %8386 = vmatpush.bf16.msrb.mxu1 %v13912_v28 }
 0x136   : > { %v14535_v57 = vld [vmem:[%s16889_s26 + $0x21e0] sm:$0xf]  ;;  %v16408_v58 = vld [vmem:[%s16889_s26 + $0x21ec] sm:$0xf0]  ;;  %v14408_v33 = vor.u32 %v16376_v55, %v14407_v54  ;;  %8399 = vmatpush.bf16.msrb.mxu2 %v14040_v29 }
 0x137   : > { %v17523_v59 = vld [vmem:[#allocation1 + $0x24] sm:$0xff]  ;;  %v17525_v60 = vld [vmem:[#allocation1 + $0x36] sm:$0xff]  ;;  %v14536_v34 = vor.u32 %v16408_v58, %v14535_v57  ;;  %8412 = vmatpush.bf16.msrb.mxu3 %v14168_v32 }
 0x138   : > { %v14663_v12 = vld [vmem:[%s16889_s26 + $0x22e0] sm:$0xf]  ;;  %v16440_v26 = vld [vmem:[%s16889_s26 + $0x22ec] sm:$0xf0]  ;;  %1553 = vst [vmem:[#allocation1] ss:$9 sm:$0xff] %v231_v7  ;;  %8418 = vmatpush.bf16.msra.mxu0 %v14408_v33  ;;  %8387 = vmatmul.bf16.vlgmr.msrb.gmra.mxu1 %v17527_v63 }
 0x139   : > { %v14791_v30 = vld [vmem:[%s16889_s26 + $0x23e0] sm:$0xf]  ;;  %v16472_v31 = vld [vmem:[%s16889_s26 + $0x23ec] sm:$0xf0]  ;;  %v14664_v35 = vor.u32 %v16440_v26, %v14663_v12  ;;  %8431 = vmatpush.bf16.msra.mxu1 %v14536_v34  ;;  %8374 = vmatmul.bf16.vlgmr.msrb.gmra.mxu0 %v17523_v59 }
 0x13a   : > { %v14391_v37 = vld [vmem:[%s16889_s26 + $0x20c0] sm:$0xf]  ;;  %v16372_v38 = vld [vmem:[%s16889_s26 + $0x20cc] sm:$0xf0]  ;;  %v14792_v43 = vor.u32 %v16472_v31, %v14791_v30  ;;  %8400 = vmatmul.bf16.vlgmr.msrb.gmra.mxu2 %v17525_v60  ;;  %8413 = vmatmul.bf16.vlgmr.msrb.gmra.mxu3 %v17529_v0 }
 0x13b   : > { %v14519_v42 = vld [vmem:[%s16889_s26 + $0x21c0] sm:$0xf]  ;;  %v16404_v51 = vld [vmem:[%s16889_s26 + $0x21cc] sm:$0xf0]  ;;  %v14392_v52 = vor.u32 %v16372_v38, %v14391_v37  ;;  %8444 = vmatpush.bf16.msra.mxu2 %v14664_v35  ;;  %v8167_v37 = vpop.f32.mrf.mxu0 }
 0x13c   : > { %v14647_v20 = vld [vmem:[%s16889_s26 + $0x22c0] sm:$0xf]  ;;  %v16436_v44 = vld [vmem:[%s16889_s26 + $0x22cc] sm:$0xf0]  ;;  %v14520_v53 = vor.u32 %v16404_v51, %v14519_v42  ;;  %8457 = vmatpush.bf16.msra.mxu3 %v14792_v43  ;;  %v8168_v43 = vadd.f32 %v8167_v37, %v17502_v24 }
 0x13d   : > { %v14775_v45 = vld [vmem:[%s16889_s26 + $0x23c0] sm:$0xf]  ;;  %v16468_v46 = vld [vmem:[%s16889_s26 + $0x23cc] sm:$0xf0]  ;;  %v14648_v25 = vor.u32 %v16436_v44, %v14647_v20  ;;  %8419 = vmatpush.bf16.msra.mxu0 %v14392_v52  ;;  %v8180_v20 = vpop.f32.mrf.mxu1 }
 0x13e   : > { %v14375_v54 = vld [vmem:[%s16889_s26 + $0x20a0] sm:$0xf]  ;;  %v16368_v55 = vld [vmem:[%s16889_s26 + $0x20ac] sm:$0xf0]  ;;  %v14776_v57 = vor.u32 %v16468_v46, %v14775_v45  ;;  %8432 = vmatpush.bf16.msra.mxu1 %v14520_v53 }
 0x13f   : > { %v14503_v56 = vld [vmem:[%s16889_s26 + $0x21a0] sm:$0xf]  ;;  %v16400_v58 = vld [vmem:[%s16889_s26 + $0x21ac] sm:$0xf0]  ;;  %v14376_v12 = vor.u32 %v16368_v55, %v14375_v54  ;;  %8445 = vmatpush.bf16.msra.mxu2 %v14648_v25  ;;  %v8181_v54 = vadd.f32 %v8180_v20, %v8168_v43 }
 0x140   : > { %v14631_v62 = vld [vmem:[%s16889_s26 + $0x22a0] sm:$0xf]  ;;  %v16432_v6 = vld [vmem:[%s16889_s26 + $0x22ac] sm:$0xf0]  ;;  %v14504_v26 = vor.u32 %v16400_v58, %v14503_v56  ;;  %8458 = vmatpush.bf16.msra.mxu3 %v14776_v57 }
 0x141   : > { %v14759_v7 = vld [vmem:[%s16889_s26 + $0x23a0] sm:$0xf]  ;;  %v16464_v11 = vld [vmem:[%s16889_s26 + $0x23ac] sm:$0xf0]  ;;  %v14632_v28 = vor.u32 %v16432_v6, %v14631_v62  ;;  %8420 = vmatpush.bf16.msra.mxu0 %v14376_v12 }
 0x142   : > { %v14359_v29 = vld [vmem:[%s16889_s26 + $0x2080] sm:$0xf]  ;;  %v16364_v30 = vld [vmem:[%s16889_s26 + $0x208c] sm:$0xf0]  ;;  %v14760_v32 = vor.u32 %v16464_v11, %v14759_v7  ;;  %8433 = vmatpush.bf16.msra.mxu1 %v14504_v26 }
 0x143   : > { %v14487_v31 = vld [vmem:[%s16889_s26 + $0x2180] sm:$0xf]  ;;  %v16396_v33 = vld [vmem:[%s16889_s26 + $0x218c] sm:$0xf0]  ;;  %v14360_v51 = vor.u32 %v16364_v30, %v14359_v29  ;;  %8446 = vmatpush.bf16.msra.mxu2 %v14632_v28  ;;  %v8193_v29 = vpop.f32.mrf.mxu2 }
 0x144   : > { %v14615_v34 = vld [vmem:[%s16889_s26 + $0x2280] sm:$0xf]  ;;  %v16428_v35 = vld [vmem:[%s16889_s26 + $0x228c] sm:$0xf0]  ;;  %v14488_v44 = vor.u32 %v16396_v33, %v14487_v31  ;;  %8459 = vmatpush.bf16.msra.mxu3 %v14760_v32  ;;  %v8194_v33 = vadd.f32 %v8193_v29, %v8181_v54 }
 0x145   : > { %v14743_v38 = vld [vmem:[%s16889_s26 + $0x2380] sm:$0xf]  ;;  %v16460_v42 = vld [vmem:[%s16889_s26 + $0x238c] sm:$0xf0]  ;;  %v14616_v45 = vor.u32 %v16428_v35, %v14615_v34  ;;  %8421 = vmatpush.bf16.msra.mxu0 %v14360_v51  ;;  %v8206_v34 = vpop.f32.mrf.mxu3  ;;  %v8182_v43 = vpop.f32.mrf.mxu1 }
 0x146   : > { %v14343_v46 = vld [vmem:[%s16889_s26 + $0x2060] sm:$0xf]  ;;  %v16360_v52 = vld [vmem:[%s16889_s26 + $0x206c] sm:$0xf0]  ;;  %v14744_v25 = vor.u32 %v16460_v42, %v14743_v38  ;;  %8434 = vmatpush.bf16.msra.mxu1 %v14488_v44  ;;  %v8169_v38 = vpop.f32.mrf.mxu0  ;;  %v17581_v51 = vadd.f32 %v8206_v34, %v8194_v33 }
 0x147   : > { %v14471_v53 = vld [vmem:[%s16889_s26 + $0x2160] sm:$0xf]  ;;  %v16392_v55 = vld [vmem:[%s16889_s26 + $0x216c] sm:$0xf0]  ;;  %v14344_v62 = vor.u32 %v16360_v52, %v14343_v46  ;;  %8447 = vmatpush.bf16.msra.mxu2 %v14616_v45 }
 0x148   : > { %v14599_v56 = vld [vmem:[%s16889_s26 + $0x2260] sm:$0xf]  ;;  %v16424_v24 = vld [vmem:[%s16889_s26 + $0x226c] sm:$0xf0]  ;;  %v14472_v6 = vor.u32 %v16392_v55, %v14471_v53  ;;  %8460 = vmatpush.bf16.msra.mxu3 %v14744_v25 }
 0x149   : > { %v14727_v57 = vld [vmem:[%s16889_s26 + $0x2360] sm:$0xf]  ;;  %v16456_v58 = vld [vmem:[%s16889_s26 + $0x236c] sm:$0xf0]  ;;  %v14600_v7 = vor.u32 %v16424_v24, %v14599_v56  ;;  %8422 = vmatpush.bf16.msra.mxu0 %v14344_v62 }
 0x14a   : > { %v14327_v11 = vld [vmem:[%s16889_s26 + $0x2040] sm:$0xf]  ;;  %v16356_v12 = vld [vmem:[%s16889_s26 + $0x204c] sm:$0xf0]  ;;  %v14728_v28 = vor.u32 %v16456_v58, %v14727_v57  ;;  %8435 = vmatpush.bf16.msra.mxu1 %v14472_v6 }
 0x14b   : > { %v14455_v26 = vld [vmem:[%s16889_s26 + $0x2140] sm:$0xf]  ;;  %v16388_v30 = vld [vmem:[%s16889_s26 + $0x214c] sm:$0xf0]  ;;  %v14328_v42 = vor.u32 %v16356_v12, %v14327_v11  ;;  %8448 = vmatpush.bf16.msra.mxu2 %v14600_v7 }
 0x14c   : > { %v14583_v31 = vld [vmem:[%s16889_s26 + $0x2240] sm:$0xf]  ;;  %v16420_v32 = vld [vmem:[%s16889_s26 + $0x224c] sm:$0xf0]  ;;  %v14456_v20 = vor.u32 %v16388_v30, %v14455_v26  ;;  %8461 = vmatpush.bf16.msra.mxu3 %v14728_v28 }
 0x14d   : > { %v14711_v35 = vld [vmem:[%s16889_s26 + $0x2340] sm:$0xf]  ;;  %v16452_v37 = vld [vmem:[%s16889_s26 + $0x234c] sm:$0xf0]  ;;  %v14584_v44 = vor.u32 %v16420_v32, %v14583_v31  ;;  %8423 = vmatpush.bf16.msra.mxu0 %v14328_v42  ;;  %v8195_v32 = vpop.f32.mrf.mxu2 }
 0x14e   : > { %v14311_v45 = vld [vmem:[%s16889_s26 + $0x2020] sm:$0xf]  ;;  %v16352_v46 = vld [vmem:[%s16889_s26 + $0x202c] sm:$0xf0]  ;;  %v14712_v53 = vor.u32 %v16452_v37, %v14711_v35  ;;  %8436 = vmatpush.bf16.msra.mxu1 %v14456_v20  ;;  %v8208_v37 = vpop.f32.mrf.mxu3 }
 0x14f   : > { %v14439_v52 = vld [vmem:[%s16889_s26 + $0x2120] sm:$0xf]  ;;  %v16384_v25 = vld [vmem:[%s16889_s26 + $0x212c] sm:$0xf0]  ;;  %v14312_v57 = vor.u32 %v16352_v46, %v14311_v45  ;;  %8449 = vmatpush.bf16.msra.mxu2 %v14584_v44 }
 0x150   : > { %v14567_v54 = vld [vmem:[%s16889_s26 + $0x2220] sm:$0xf]  ;;  %v16416_v55 = vld [vmem:[%s16889_s26 + $0x222c] sm:$0xf0]  ;;  %v14440_v6 = vor.u32 %v16384_v25, %v14439_v52  ;;  %8462 = vmatpush.bf16.msra.mxu3 %v14712_v53 }
 0x151   : > { %v14695_v56 = vld [vmem:[%s16889_s26 + $0x2320] sm:$0xf]  ;;  %v16448_v24 = vld [vmem:[%s16889_s26 + $0x232c] sm:$0xf0]  ;;  %v14568_v7 = vor.u32 %v16416_v55, %v14567_v54  ;;  %8424 = vmatpush.bf16.msra.mxu0 %v14312_v57 }
 0x152   : > { %v14295_v58 = vld [vmem:[%s16889_s26 + $0x2000] sm:$0xf]  ;;  %v16348_v62 = vld [vmem:[%s16889_s26 + $0x200c] sm:$0xf0]  ;;  %v14696_v28 = vor.u32 %v16448_v24, %v14695_v56  ;;  %8437 = vmatpush.bf16.msra.mxu1 %v14440_v6 }
 0x153   : > { %v14423_v11 = vld [vmem:[%s16889_s26 + $0x2100] sm:$0xf]  ;;  %v16380_v12 = vld [vmem:[%s16889_s26 + $0x210c] sm:$0xf0]  ;;  %v14296_v38 = vor.u32 %v16348_v62, %v14295_v58  ;;  %8450 = vmatpush.bf16.msra.mxu2 %v14568_v7 }
 0x154   : > { %v14551_v26 = vld [vmem:[%s16889_s26 + $0x2200] sm:$0xf]  ;;  %v16412_v29 = vld [vmem:[%s16889_s26 + $0x220c] sm:$0xf0]  ;;  %v14424_v44 = vor.u32 %v16380_v12, %v14423_v11  ;;  %8463 = vmatpush.bf16.msra.mxu3 %v14696_v28  ;;  %v1554_v11 = vld [vmem:[#allocation1] sm:$0xff] }
 0x155   : > { %v14679_v30 = vld [vmem:[%s16889_s26 + $0x2300] sm:$0xf]  ;;  %v16444_v31 = vld [vmem:[%s16889_s26 + $0x230c] sm:$0xf0]  ;;  %v14552_v45 = vor.u32 %v16412_v29, %v14551_v26  ;;  %8425 = vmatpush.bf16.msra.mxu0 %v14296_v38 }
 0x156   : > { %v14919_v33 = vld [vmem:[%s16889_s26 + $0x24e0] sm:$0xf]  ;;  %v16504_v34 = vld [vmem:[%s16889_s26 + $0x24ec] sm:$0xf0]  ;;  %v14680_v53 = vor.u32 %v16444_v31, %v14679_v30  ;;  %8438 = vmatpush.bf16.msra.mxu1 %v14424_v44 }
 0x157   : > { %v15047_v35 = vld [vmem:[%s16889_s26 + $0x25e0] sm:$0xf]  ;;  %v16536_v42 = vld [vmem:[%s16889_s26 + $0x25ec] sm:$0xf0]  ;;  %v14920_v25 = vor.u32 %v16504_v34, %v14919_v33  ;;  %8451 = vmatpush.bf16.msra.mxu2 %v14552_v45 }
 0x158   : > { %v15175_v43 = vld [vmem:[%s16889_s26 + $0x26e0] sm:$0xf]  ;;  %v16568_v20 = vld [vmem:[%s16889_s26 + $0x26ec] sm:$0xf0]  ;;  %v15048_v54 = vor.u32 %v16536_v42, %v15047_v35  ;;  %8464 = vmatpush.bf16.msra.mxu3 %v14680_v53  ;;  %8426 = vmatmul.bf16.vlgmr.msra.gmra.mxu0 %v1554_v11 }
 0x159   : > { %v15303_v46 = vld [vmem:[%s16889_s26 + $0x27e0] sm:$0xf]  ;;  %v16600_v52 = vld [vmem:[%s16889_s26 + $0x27ec] sm:$0xf0]  ;;  %v15176_v55 = vor.u32 %v16568_v20, %v15175_v43  ;;  %8470 = vmatpush.bf16.msrb.mxu0 %v14920_v25 }
 0x15a   : > { %v14903_v56 = vld [vmem:[%s16889_s26 + $0x24c0] sm:$0xf]  ;;  %v16500_v24 = vld [vmem:[%s16889_s26 + $0x24cc] sm:$0xf0]  ;;  %v15304_v58 = vor.u32 %v16600_v52, %v15303_v46  ;;  %8483 = vmatpush.bf16.msrb.mxu1 %v15048_v54 }
 0x15b   : > { %v15031_v57 = vld [vmem:[%s16889_s26 + $0x25c0] sm:$0xf]  ;;  %v16532_v62 = vld [vmem:[%s16889_s26 + $0x25cc] sm:$0xf0]  ;;  %v14904_v31 = vor.u32 %v16500_v24, %v14903_v56  ;;  %8496 = vmatpush.bf16.msrb.mxu2 %v15176_v55 }
 0x15c   : > { %v15159_v6 = vld [vmem:[%s16889_s26 + $0x26c0] sm:$0xf]  ;;  %v16564_v7 = vld [vmem:[%s16889_s26 + $0x26cc] sm:$0xf0]  ;;  %v15032_v32 = vor.u32 %v16532_v62, %v15031_v57  ;;  %8509 = vmatpush.bf16.msrb.mxu3 %v15304_v58  ;;  %v8219_v62 = vpop.f32.mrf.mxu0 }
 0x15d   : > { %v15287_v12 = vld [vmem:[%s16889_s26 + $0x27c0] sm:$0xf]  ;;  %v16596_v26 = vld [vmem:[%s16889_s26 + $0x27cc] sm:$0xf0]  ;;  %v15160_v33 = vor.u32 %v16564_v7, %v15159_v6  ;;  %8471 = vmatpush.bf16.msrb.mxu0 %v14904_v31  ;;  %v8220_v11 = vadd.f32 %v8219_v62, %v17581_v51 }
 0x15e   : > { %v1556_v28 = vld [vmem:[#allocation1 + $0x12] sm:$0xff]  ;;  %v1555_v29 = vld [vmem:[#allocation1 + $0x9] sm:$0xff]  ;;  %v1557_v30 = vld [vmem:[#allocation1 + $0x1b] sm:$0xff]  ;;  %v15288_v38 = vor.u32 %v16596_v26, %v15287_v12  ;;  %8484 = vmatpush.bf16.msrb.mxu1 %v15032_v32  ;;  %v8232_v26 = vpop.f32.mrf.mxu1 }
 0x15f   : > { %v14887_v34 = vld [vmem:[%s16889_s26 + $0x24a0] sm:$0xf]  ;;  %v16496_v35 = vld [vmem:[%s16889_s26 + $0x24ac] sm:$0xf0]  ;;  %8452 = vmatmul.bf16.vlgmr.msra.gmra.mxu2 %v1556_v28  ;;  %8439 = vmatmul.bf16.vlgmr.msra.gmra.mxu1 %v1555_v29 }
 0x160   : > { %v15015_v37 = vld [vmem:[%s16889_s26 + $0x25a0] sm:$0xf]  ;;  %v16528_v42 = vld [vmem:[%s16889_s26 + $0x25ac] sm:$0xf0]  ;;  %8465 = vmatmul.bf16.vlgmr.msra.gmra.mxu3 %v1557_v30  ;;  %v14888_v46 = vor.u32 %v16496_v35, %v14887_v34  ;;  %8497 = vmatpush.bf16.msrb.mxu2 %v15160_v33  ;;  %v8233_v34 = vadd.f32 %v8232_v26, %v8220_v11 }
 0x161   : > { %v15143_v43 = vld [vmem:[%s16889_s26 + $0x26a0] sm:$0xf]  ;;  %v16560_v20 = vld [vmem:[%s16889_s26 + $0x26ac] sm:$0xf0]  ;;  %v15016_v52 = vor.u32 %v16528_v42, %v15015_v37  ;;  %8510 = vmatpush.bf16.msrb.mxu3 %v15288_v38 }
 0x162   : > { %v15271_v44 = vld [vmem:[%s16889_s26 + $0x27a0] sm:$0xf]  ;;  %v16592_v45 = vld [vmem:[%s16889_s26 + $0x27ac] sm:$0xf0]  ;;  %v15144_v53 = vor.u32 %v16560_v20, %v15143_v43  ;;  %8472 = vmatpush.bf16.msrb.mxu0 %v14888_v46 }
 0x163   : > { %v14871_v25 = vld [vmem:[%s16889_s26 + $0x2480] sm:$0xf]  ;;  %v16492_v54 = vld [vmem:[%s16889_s26 + $0x248c] sm:$0xf0]  ;;  %v15272_v56 = vor.u32 %v16592_v45, %v15271_v44  ;;  %8485 = vmatpush.bf16.msrb.mxu1 %v15016_v52 }
 0x164   : > { %v14999_v55 = vld [vmem:[%s16889_s26 + $0x2580] sm:$0xf]  ;;  %v16524_v24 = vld [vmem:[%s16889_s26 + $0x258c] sm:$0xf0]  ;;  %v14872_v12 = vor.u32 %v16492_v54, %v14871_v25  ;;  %8498 = vmatpush.bf16.msrb.mxu2 %v15144_v53  ;;  %v8245_v25 = vpop.f32.mrf.mxu2 }
 0x165   : > { %v15127_v57 = vld [vmem:[%s16889_s26 + $0x2680] sm:$0xf]  ;;  %v16556_v58 = vld [vmem:[%s16889_s26 + $0x268c] sm:$0xf0]  ;;  %v15000_v28 = vor.u32 %v16524_v24, %v14999_v55  ;;  %8511 = vmatpush.bf16.msrb.mxu3 %v15272_v56  ;;  %v8246_v24 = vadd.f32 %v8245_v25, %v8233_v34 }
 0x166   : > { %v15255_v6 = vld [vmem:[%s16889_s26 + $0x2780] sm:$0xf]  ;;  %v16588_v7 = vld [vmem:[%s16889_s26 + $0x278c] sm:$0xf0]  ;;  %v15128_v29 = vor.u32 %v16556_v58, %v15127_v57  ;;  %8473 = vmatpush.bf16.msrb.mxu0 %v14872_v12  ;;  %v8258_v57 = vpop.f32.mrf.mxu3  ;;  %v8234_v11 = vpop.f32.mrf.mxu1 }
 0x167   : > { %v14855_v30 = vld [vmem:[%s16889_s26 + $0x2460] sm:$0xf]  ;;  %v16488_v31 = vld [vmem:[%s16889_s26 + $0x246c] sm:$0xf0]  ;;  %v15256_v33 = vor.u32 %v16588_v7, %v15255_v6  ;;  %8486 = vmatpush.bf16.msrb.mxu1 %v15000_v28  ;;  %v8221_v6 = vpop.f32.mrf.mxu0  ;;  %v17648_v12 = vadd.f32 %v8258_v57, %v8246_v24  ;;  %v15350_v24 = vld [vmem:[%s16889_s26 + $0xe4] sm:$0xf] }
 0x168   : > { %v14983_v32 = vld [vmem:[%s16889_s26 + $0x2560] sm:$0xf]  ;;  %v16520_v35 = vld [vmem:[%s16889_s26 + $0x256c] sm:$0xf0]  ;;  %v14856_v43 = vor.u32 %v16488_v31, %v14855_v30  ;;  %8499 = vmatpush.bf16.msrb.mxu2 %v15128_v29  ;;  %v10313_v57 = vld [vmem:[%s16889_s26 + $0xf0] sm:$0xf0] }
 0x169   : > { %v15111_v37 = vld [vmem:[%s16889_s26 + $0x2660] sm:$0xf]  ;;  %v16552_v51 = vld [vmem:[%s16889_s26 + $0x266c] sm:$0xf0]  ;;  %v14984_v20 = vor.u32 %v16520_v35, %v14983_v32  ;;  %8512 = vmatpush.bf16.msrb.mxu3 %v15256_v33  ;;  %v15414_v11 = vld [vmem:[%s16889_s26 + $0x2e4] sm:$0xf] }
 0x16a   : > { %v15239_v38 = vld [vmem:[%s16889_s26 + $0x2760] sm:$0xf]  ;;  %v16584_v42 = vld [vmem:[%s16889_s26 + $0x276c] sm:$0xf0]  ;;  %v15112_v44 = vor.u32 %v16552_v51, %v15111_v37  ;;  %8474 = vmatpush.bf16.msrb.mxu0 %v14856_v43 }
 0x16b   : > { %v14839_v45 = vld [vmem:[%s16889_s26 + $0x2440] sm:$0xf]  ;;  %v16484_v46 = vld [vmem:[%s16889_s26 + $0x244c] sm:$0xf0]  ;;  %v15240_v53 = vor.u32 %v16584_v42, %v15239_v38  ;;  %8487 = vmatpush.bf16.msrb.mxu1 %v14984_v20 }
 0x16c   : > { %v14967_v52 = vld [vmem:[%s16889_s26 + $0x2540] sm:$0xf]  ;;  %v16516_v54 = vld [vmem:[%s16889_s26 + $0x254c] sm:$0xf0]  ;;  %v14840_v7 = vor.u32 %v16484_v46, %v14839_v45  ;;  %8500 = vmatpush.bf16.msrb.mxu2 %v15112_v44 }
 0x16d   : > { %v15095_v55 = vld [vmem:[%s16889_s26 + $0x2640] sm:$0xf]  ;;  %v16548_v56 = vld [vmem:[%s16889_s26 + $0x264c] sm:$0xf0]  ;;  %v14968_v26 = vor.u32 %v16516_v54, %v14967_v52  ;;  %8513 = vmatpush.bf16.msrb.mxu3 %v15240_v53 }
 0x16e   : > { %v15223_v58 = vld [vmem:[%s16889_s26 + $0x2740] sm:$0xf]  ;;  %v16580_v62 = vld [vmem:[%s16889_s26 + $0x274c] sm:$0xf0]  ;;  %v15096_v28 = vor.u32 %v16548_v56, %v15095_v55  ;;  %8475 = vmatpush.bf16.msrb.mxu0 %v14840_v7  ;;  %v8247_v56 = vpop.f32.mrf.mxu2  ;;  %v10441_v7 = vld [vmem:[%s16889_s26 + $0x1f0] sm:$0xf0] }
 0x16f   : > { %v14823_v29 = vld [vmem:[%s16889_s26 + $0x2420] sm:$0xf]  ;;  %v16480_v30 = vld [vmem:[%s16889_s26 + $0x242c] sm:$0xf0]  ;;  %v15224_v32 = vor.u32 %v16580_v62, %v15223_v58  ;;  %8488 = vmatpush.bf16.msrb.mxu1 %v14968_v26  ;;  %v15382_v58 = vld [vmem:[%s16889_s26 + $0x1e4] sm:$0xf]  ;;  %v8260_v62 = vpop.f32.mrf.mxu3 }
 0x170   : > { %v14951_v31 = vld [vmem:[%s16889_s26 + $0x2520] sm:$0xf]  ;;  %v16512_v33 = vld [vmem:[%s16889_s26 + $0x252c] sm:$0xf0]  ;;  %v14824_v38 = vor.u32 %v16480_v30, %v14823_v29  ;;  %8501 = vmatpush.bf16.msrb.mxu2 %v15096_v28  ;;  %v10569_v26 = vld [vmem:[%s16889_s26 + $0x2f0] sm:$0xf0] }
 0x171   : > { %v15079_v34 = vld [vmem:[%s16889_s26 + $0x2620] sm:$0xf]  ;;  %v16544_v35 = vld [vmem:[%s16889_s26 + $0x262c] sm:$0xf0]  ;;  %v14952_v20 = vor.u32 %v16512_v33, %v14951_v31  ;;  %8514 = vmatpush.bf16.msrb.mxu3 %v15224_v32  ;;  %v15446_v30 = vld [vmem:[%s16889_s26 + $0x3e4] sm:$0xf]  ;;  %v10316_v33 = vor.u32 %v15350_v24, %v10313_v57 }
 0x172   : > { %v15207_v37 = vld [vmem:[%s16889_s26 + $0x2720] sm:$0xf]  ;;  %v16576_v51 = vld [vmem:[%s16889_s26 + $0x272c] sm:$0xf0]  ;;  %v15080_v44 = vor.u32 %v16544_v35, %v15079_v34  ;;  %8476 = vmatpush.bf16.msrb.mxu0 %v14824_v38  ;;  %v10697_v31 = vld [vmem:[%s16889_s26 + $0x3f0] sm:$0xf0]  ;;  %v10444_v34 = vor.u32 %v15382_v58, %v10441_v7  ;;  %v10572_v35 = vor.u32 %v15414_v11, %v10569_v26 }
 0x173   : > { %v14807_v42 = vld [vmem:[%s16889_s26 + $0x2400] sm:$0xf]  ;;  %v16476_v43 = vld [vmem:[%s16889_s26 + $0x240c] sm:$0xf0]  ;;  %v15208_v53 = vor.u32 %v16576_v51, %v15207_v37  ;;  %8489 = vmatpush.bf16.msrb.mxu1 %v14952_v20  ;;  %v15346_v37 = vld [vmem:[%s16889_s26 + $0xc4] sm:$0xf] }
 0x174   : > { %v14935_v45 = vld [vmem:[%s16889_s26 + $0x2500] sm:$0xf]  ;;  %v16508_v46 = vld [vmem:[%s16889_s26 + $0x250c] sm:$0xf0]  ;;  %v14808_v6 = vor.u32 %v16476_v43, %v14807_v42  ;;  %8502 = vmatpush.bf16.msrb.mxu2 %v15080_v44  ;;  %v10297_v51 = vld [vmem:[%s16889_s26 + $0xd0] sm:$0xf0]  ;;  %v10700_v42 = vor.u32 %v15446_v30, %v10697_v31 }
 0x175   : > { %v15063_v52 = vld [vmem:[%s16889_s26 + $0x2600] sm:$0xf]  ;;  %v16540_v25 = vld [vmem:[%s16889_s26 + $0x260c] sm:$0xf0]  ;;  %v14936_v28 = vor.u32 %v16508_v46, %v14935_v45  ;;  %8515 = vmatpush.bf16.msrb.mxu3 %v15208_v53  ;;  %v15378_v38 = vld [vmem:[%s16889_s26 + $0x1c4] sm:$0xf] }
 0x176   : > { %v15191_v54 = vld [vmem:[%s16889_s26 + $0x2700] sm:$0xf]  ;;  %v16572_v55 = vld [vmem:[%s16889_s26 + $0x270c] sm:$0xf0]  ;;  %v15064_v29 = vor.u32 %v16540_v25, %v15063_v52  ;;  %8477 = vmatpush.bf16.msrb.mxu0 %v14808_v6  ;;  %v10425_v43 = vld [vmem:[%s16889_s26 + $0x1d0] sm:$0xf0] }
 0x177   : > { %v15192_v32 = vor.u32 %v16572_v55, %v15191_v54  ;;  %v15410_v20 = vld [vmem:[%s16889_s26 + $0x2c4] sm:$0xf]  ;;  %v10553_v44 = vld [vmem:[%s16889_s26 + $0x2d0] sm:$0xf0]  ;;  %8490 = vmatpush.bf16.msrb.mxu1 %v14936_v28  ;;  %v1558_v45 = vld [vmem:[#allocation1 + $0x24] sm:$0xff]  ;;  %v10300_v55 = vor.u32 %v15346_v37, %v10297_v51  ;;  %v10428_v56 = vor.u32 %v15378_v38, %v10425_v43  ;;  %v8271_v43 = vpop.f32.mrf.mxu0 }
 0x178   : > { %8503 = vmatpush.bf16.msrb.mxu2 %v15064_v29  ;;  %v15442_v46 = vld [vmem:[%s16889_s26 + $0x3c4] sm:$0xf]  ;;  %v10681_v52 = vld [vmem:[%s16889_s26 + $0x3d0] sm:$0xf0]  ;;  %v10556_v24 = vor.u32 %v15410_v20, %v10553_v44 }
 0x179   : > { %8516 = vmatpush.bf16.msrb.mxu3 %v15192_v32  ;;  %v1560_v53 = vld [vmem:[#allocation1 + $0x36] sm:$0xff]  ;;  %v1559_v25 = vld [vmem:[#allocation1 + $0x2d] sm:$0xff]  ;;  %v1561_v54 = vld [vmem:[#allocation1 + $0x3f] sm:$0xff]  ;;  %8478 = vmatmul.bf16.vlgmr.msrb.gmra.mxu0 %v1558_v45  ;;  %v10684_v6 = vor.u32 %v15442_v46, %v10681_v52  ;;  %v8272_v45 = vadd.f32 %v8271_v43, %v17648_v12  ;;  %v8284_v52 = vpop.f32.mrf.mxu1 }
 0x17a   : > { %8522 = vmatpush.bf16.msra.mxu0 %v10316_v33  ;;  %v15342_v57 = vld [vmem:[%s16889_s26 + $0xa4] sm:$0xf]  ;;  %v10281_v58 = vld [vmem:[%s16889_s26 + $0xb0] sm:$0xf0]  ;;  %8491 = vmatmul.bf16.vlgmr.msrb.gmra.mxu1 %v1559_v25 }
 0x17b   : > { %8535 = vmatpush.bf16.msra.mxu1 %v10444_v34  ;;  %v15374_v62 = vld [vmem:[%s16889_s26 + $0x1a4] sm:$0xf]  ;;  %v10409_v7 = vld [vmem:[%s16889_s26 + $0x1b0] sm:$0xf0]  ;;  %8504 = vmatmul.bf16.vlgmr.msrb.gmra.mxu2 %v1560_v53  ;;  %v10284_v30 = vor.u32 %v15342_v57, %v10281_v58  ;;  %v8285_v57 = vadd.f32 %v8284_v52, %v8272_v45 }
 0x17c   : > { %8548 = vmatpush.bf16.msra.mxu2 %v10572_v35  ;;  %v15406_v11 = vld [vmem:[%s16889_s26 + $0x2a4] sm:$0xf]  ;;  %v10537_v26 = vld [vmem:[%s16889_s26 + $0x2b0] sm:$0xf0]  ;;  %8517 = vmatmul.bf16.vlgmr.msrb.gmra.mxu3 %v1561_v54  ;;  %v10412_v31 = vor.u32 %v15374_v62, %v10409_v7 }
 0x17d   : > { %8561 = vmatpush.bf16.msra.mxu3 %v10700_v42  ;;  %v15438_v28 = vld [vmem:[%s16889_s26 + $0x3a4] sm:$0xf]  ;;  %v10665_v29 = vld [vmem:[%s16889_s26 + $0x3b0] sm:$0xf0]  ;;  %v10540_v32 = vor.u32 %v15406_v11, %v10537_v26 }
 0x17e   : > { %8523 = vmatpush.bf16.msra.mxu0 %v10300_v55  ;;  %v15338_v33 = vld [vmem:[%s16889_s26 + $0x84] sm:$0xf]  ;;  %v10265_v34 = vld [vmem:[%s16889_s26 + $0x90] sm:$0xf0]  ;;  %v10668_v37 = vor.u32 %v15438_v28, %v10665_v29 }
 0x17f   : > { %8536 = vmatpush.bf16.msra.mxu1 %v10428_v56  ;;  %v15370_v35 = vld [vmem:[%s16889_s26 + $0x184] sm:$0xf]  ;;  %v10393_v51 = vld [vmem:[%s16889_s26 + $0x190] sm:$0xf0]  ;;  %v10268_v46 = vor.u32 %v15338_v33, %v10265_v34  ;;  %v8297_v33 = vpop.f32.mrf.mxu2 }
 0x180   : > { %8549 = vmatpush.bf16.msra.mxu2 %v10556_v24  ;;  %v15402_v38 = vld [vmem:[%s16889_s26 + $0x284] sm:$0xf]  ;;  %v10521_v42 = vld [vmem:[%s16889_s26 + $0x290] sm:$0xf0]  ;;  %v10396_v53 = vor.u32 %v15370_v35, %v10393_v51  ;;  %v8298_v51 = vadd.f32 %v8297_v33, %v8285_v57 }
 0x181   : > { %8562 = vmatpush.bf16.msra.mxu3 %v10684_v6  ;;  %v15434_v20 = vld [vmem:[%s16889_s26 + $0x384] sm:$0xf]  ;;  %v10649_v44 = vld [vmem:[%s16889_s26 + $0x390] sm:$0xf0]  ;;  %v10524_v25 = vor.u32 %v15402_v38, %v10521_v42  ;;  %v8310_v38 = vpop.f32.mrf.mxu3  ;;  %v8286_v45 = vpop.f32.mrf.mxu1 }
 0x182   : > { %8524 = vmatpush.bf16.msra.mxu0 %v10284_v30  ;;  %v15334_v54 = vld [vmem:[%s16889_s26 + $0x64] sm:$0xf]  ;;  %v10249_v55 = vld [vmem:[%s16889_s26 + $0x70] sm:$0xf0]  ;;  %v10652_v24 = vor.u32 %v15434_v20, %v10649_v44  ;;  %v8273_v20 = vpop.f32.mrf.mxu0 }
 0x183   : > { %8537 = vmatpush.bf16.msra.mxu1 %v10412_v31  ;;  %v15366_v56 = vld [vmem:[%s16889_s26 + $0x164] sm:$0xf]  ;;  %v10377_v58 = vld [vmem:[%s16889_s26 + $0x170] sm:$0xf0]  ;;  %v10252_v11 = vor.u32 %v15334_v54, %v10249_v55 }
 0x184   : > { %8550 = vmatpush.bf16.msra.mxu2 %v10540_v32  ;;  %v15398_v62 = vld [vmem:[%s16889_s26 + $0x264] sm:$0xf]  ;;  %v10505_v12 = vld [vmem:[%s16889_s26 + $0x270] sm:$0xf0]  ;;  %v10380_v26 = vor.u32 %v15366_v56, %v10377_v58 }
 0x185   : > { %8563 = vmatpush.bf16.msra.mxu3 %v10668_v37  ;;  %v15430_v6 = vld [vmem:[%s16889_s26 + $0x364] sm:$0xf]  ;;  %v10633_v7 = vld [vmem:[%s16889_s26 + $0x370] sm:$0xf0]  ;;  %v10508_v28 = vor.u32 %v15398_v62, %v10505_v12 }
 0x186   : > { %8525 = vmatpush.bf16.msra.mxu0 %v10268_v46  ;;  %v15330_v29 = vld [vmem:[%s16889_s26 + $0x44] sm:$0xf]  ;;  %v10233_v30 = vld [vmem:[%s16889_s26 + $0x50] sm:$0xf0]  ;;  %v10636_v32 = vor.u32 %v15430_v6, %v10633_v7  ;;  %v17715_v46 = vadd.f32 %v8310_v38, %v8298_v51 }
 0x187   : > { %8538 = vmatpush.bf16.msra.mxu1 %v10396_v53  ;;  %v15362_v31 = vld [vmem:[%s16889_s26 + $0x144] sm:$0xf]  ;;  %v10361_v34 = vld [vmem:[%s16889_s26 + $0x150] sm:$0xf0]  ;;  %v10236_v44 = vor.u32 %v15330_v29, %v10233_v30 }
 0x188   : > { %8551 = vmatpush.bf16.msra.mxu2 %v10524_v25  ;;  %v15394_v35 = vld [vmem:[%s16889_s26 + $0x244] sm:$0xf]  ;;  %v10489_v37 = vld [vmem:[%s16889_s26 + $0x250] sm:$0xf0]  ;;  %v10364_v52 = vor.u32 %v15362_v31, %v10361_v34 }
 0x189   : > { %8564 = vmatpush.bf16.msra.mxu3 %v10652_v24  ;;  %v15426_v42 = vld [vmem:[%s16889_s26 + $0x344] sm:$0xf]  ;;  %v10617_v43 = vld [vmem:[%s16889_s26 + $0x350] sm:$0xf0]  ;;  %v10492_v53 = vor.u32 %v15394_v35, %v10489_v37  ;;  %v8299_v37 = vpop.f32.mrf.mxu2 }
 0x18a   : > { %8526 = vmatpush.bf16.msra.mxu0 %v10252_v11  ;;  %v15326_v25 = vld [vmem:[%s16889_s26 + $0x24] sm:$0xf]  ;;  %v10217_v54 = vld [vmem:[%s16889_s26 + $0x30] sm:$0xf0]  ;;  %v10620_v56 = vor.u32 %v15426_v42, %v10617_v43  ;;  %v8312_v43 = vpop.f32.mrf.mxu3 }
 0x18b   : > { %8539 = vmatpush.bf16.msra.mxu1 %v10380_v26  ;;  %v15358_v55 = vld [vmem:[%s16889_s26 + $0x124] sm:$0xf]  ;;  %v10345_v24 = vld [vmem:[%s16889_s26 + $0x130] sm:$0xf0]  ;;  %v10220_v6 = vor.u32 %v15326_v25, %v10217_v54 }
 0x18c   : > { %8552 = vmatpush.bf16.msra.mxu2 %v10508_v28  ;;  %v15390_v57 = vld [vmem:[%s16889_s26 + $0x224] sm:$0xf]  ;;  %v10473_v58 = vld [vmem:[%s16889_s26 + $0x230] sm:$0xf0]  ;;  %v10348_v26 = vor.u32 %v15358_v55, %v10345_v24 }
 0x18d   : > { %8565 = vmatpush.bf16.msra.mxu3 %v10636_v32  ;;  %v15422_v62 = vld [vmem:[%s16889_s26 + $0x324] sm:$0xf]  ;;  %v10601_v12 = vld [vmem:[%s16889_s26 + $0x330] sm:$0xf0]  ;;  %v10476_v28 = vor.u32 %v15390_v57, %v10473_v58 }
 0x18e   : > { %8527 = vmatpush.bf16.msra.mxu0 %v10236_v44  ;;  %v15322_v7 = vld [vmem:[%s16889_s26 + $0x4] sm:$0xf]  ;;  %v10201_v11 = vld [vmem:[%s16889_s26 + $0x10] sm:$0xf0]  ;;  %v10604_v32 = vor.u32 %v15422_v62, %v10601_v12 }
 0x18f   : > { %8540 = vmatpush.bf16.msra.mxu1 %v10364_v52  ;;  %v15354_v29 = vld [vmem:[%s16889_s26 + $0x104] sm:$0xf]  ;;  %v10329_v30 = vld [vmem:[%s16889_s26 + $0x110] sm:$0xf0]  ;;  %v10204_v20 = vor.u32 %v15322_v7, %v10201_v11 }
 0x190   : > { %8553 = vmatpush.bf16.msra.mxu2 %v10492_v53  ;;  %v15386_v31 = vld [vmem:[%s16889_s26 + $0x204] sm:$0xf]  ;;  %v10457_v33 = vld [vmem:[%s16889_s26 + $0x210] sm:$0xf0]  ;;  %v10332_v53 = vor.u32 %v15354_v29, %v10329_v30 }
 0x191   : > { %8566 = vmatpush.bf16.msra.mxu3 %v10620_v56  ;;  %v15418_v34 = vld [vmem:[%s16889_s26 + $0x304] sm:$0xf]  ;;  %v10585_v35 = vld [vmem:[%s16889_s26 + $0x310] sm:$0xf0]  ;;  %v10460_v25 = vor.u32 %v15386_v31, %v10457_v33 }
 0x192   : > { %v15478_v51 = vld [vmem:[%s16889_s26 + $0x4e4] sm:$0xf]  ;;  %v10825_v38 = vld [vmem:[%s16889_s26 + $0x4f0] sm:$0xf0]  ;;  %8528 = vmatpush.bf16.msra.mxu0 %v10220_v6  ;;  %v10588_v56 = vor.u32 %v15418_v34, %v10585_v35 }
 0x193   : > { %v15510_v42 = vld [vmem:[%s16889_s26 + $0x5e4] sm:$0xf]  ;;  %v10953_v44 = vld [vmem:[%s16889_s26 + $0x5f0] sm:$0xf0]  ;;  %8541 = vmatpush.bf16.msra.mxu1 %v10348_v26  ;;  %v10828_v24 = vor.u32 %v15478_v51, %v10825_v38 }
 0x194   : > { %v15542_v45 = vld [vmem:[%s16889_s26 + $0x6e4] sm:$0xf]  ;;  %v11081_v52 = vld [vmem:[%s16889_s26 + $0x6f0] sm:$0xf0]  ;;  %8554 = vmatpush.bf16.msra.mxu2 %v10476_v28  ;;  %v10956_v57 = vor.u32 %v15510_v42, %v10953_v44 }
 0x195   : > { %v15574_v54 = vld [vmem:[%s16889_s26 + $0x7e4] sm:$0xf]  ;;  %v11209_v55 = vld [vmem:[%s16889_s26 + $0x7f0] sm:$0xf0]  ;;  %8567 = vmatpush.bf16.msra.mxu3 %v10604_v32  ;;  %v11084_v58 = vor.u32 %v15542_v45, %v11081_v52 }
 0x196   : > { %v15474_v62 = vld [vmem:[%s16889_s26 + $0x4c4] sm:$0xf]  ;;  %v10809_v12 = vld [vmem:[%s16889_s26 + $0x4d0] sm:$0xf0]  ;;  %8529 = vmatpush.bf16.msra.mxu0 %v10204_v20  ;;  %v11212_v7 = vor.u32 %v15574_v54, %v11209_v55 }
 0x197   : > { %v15506_v6 = vld [vmem:[%s16889_s26 + $0x5c4] sm:$0xf]  ;;  %v10937_v11 = vld [vmem:[%s16889_s26 + $0x5d0] sm:$0xf0]  ;;  %8542 = vmatpush.bf16.msra.mxu1 %v10332_v53  ;;  %v10812_v31 = vor.u32 %v15474_v62, %v10809_v12  ;;  %v8323_v62 = vpop.f32.mrf.mxu0 }
 0x198   : > { %v15538_v26 = vld [vmem:[%s16889_s26 + $0x6c4] sm:$0xf]  ;;  %v11065_v28 = vld [vmem:[%s16889_s26 + $0x6d0] sm:$0xf0]  ;;  %8555 = vmatpush.bf16.msra.mxu2 %v10460_v25  ;;  %v10940_v32 = vor.u32 %v15506_v6, %v10937_v11 }
 0x199   : > { %v15570_v29 = vld [vmem:[%s16889_s26 + $0x7c4] sm:$0xf]  ;;  %v11193_v30 = vld [vmem:[%s16889_s26 + $0x7d0] sm:$0xf0]  ;;  %8568 = vmatpush.bf16.msra.mxu3 %v10588_v56  ;;  %v11068_v33 = vor.u32 %v15538_v26, %v11065_v28  ;;  %8530 = vmatmul.bf16.vlgmr.msra.gmra.mxu0 %v17014_v22 }
 0x19a   : > { %8574 = vmatpush.bf16.msrb.mxu0 %v10828_v24  ;;  %v15470_v34 = vld [vmem:[%s16889_s26 + $0x4a4] sm:$0xf]  ;;  %v10793_v35 = vld [vmem:[%s16889_s26 + $0x4b0] sm:$0xf0]  ;;  %v11196_v51 = vor.u32 %v15570_v29, %v11193_v30  ;;  %8543 = vmatmul.bf16.vlgmr.msra.gmra.mxu1 %v17021_v27  ;;  %v8336_v26 = vpop.f32.mrf.mxu1 }
 0x19b   : > { %8587 = vmatpush.bf16.msrb.mxu1 %v10956_v57  ;;  %v15502_v37 = vld [vmem:[%s16889_s26 + $0x5a4] sm:$0xf]  ;;  %v10921_v38 = vld [vmem:[%s16889_s26 + $0x5b0] sm:$0xf0]  ;;  %8556 = vmatmul.bf16.vlgmr.msra.gmra.mxu2 %v17012_v21  ;;  %v10796_v45 = vor.u32 %v15470_v34, %v10793_v35 }
 0x19c   : > { %8600 = vmatpush.bf16.msrb.mxu2 %v11084_v58  ;;  %v15534_v42 = vld [vmem:[%s16889_s26 + $0x6a4] sm:$0xf]  ;;  %v11049_v43 = vld [vmem:[%s16889_s26 + $0x6b0] sm:$0xf0]  ;;  %8569 = vmatmul.bf16.vlgmr.msra.gmra.mxu3 %v17016_v23  ;;  %v10924_v52 = vor.u32 %v15502_v37, %v10921_v38 }
 0x19d   : > { %8613 = vmatpush.bf16.msrb.mxu3 %v11212_v7  ;;  %v15566_v20 = vld [vmem:[%s16889_s26 + $0x7a4] sm:$0xf]  ;;  %v11177_v44 = vld [vmem:[%s16889_s26 + $0x7b0] sm:$0xf0]  ;;  %v11052_v53 = vor.u32 %v15534_v42, %v11049_v43  ;;  %v8324_v7 = vadd.f32 %v8323_v62, %v17715_v46 }
 0x19e   : > { %8575 = vmatpush.bf16.msrb.mxu0 %v10812_v31  ;;  %v15466_v25 = vld [vmem:[%s16889_s26 + $0x484] sm:$0xf]  ;;  %v10777_v54 = vld [vmem:[%s16889_s26 + $0x490] sm:$0xf0]  ;;  %v11180_v56 = vor.u32 %v15566_v20, %v11177_v44 }
 0x19f   : > { %8588 = vmatpush.bf16.msrb.mxu1 %v10940_v32  ;;  %v15498_v55 = vld [vmem:[%s16889_s26 + $0x584] sm:$0xf]  ;;  %v10905_v24 = vld [vmem:[%s16889_s26 + $0x590] sm:$0xf0]  ;;  %v10780_v11 = vor.u32 %v15466_v25, %v10777_v54  ;;  %v8337_v34 = vadd.f32 %v8336_v26, %v8324_v7 }
 0x1a0   : > { %8601 = vmatpush.bf16.msrb.mxu2 %v11068_v33  ;;  %v15530_v57 = vld [vmem:[%s16889_s26 + $0x684] sm:$0xf]  ;;  %v11033_v58 = vld [vmem:[%s16889_s26 + $0x690] sm:$0xf0]  ;;  %v10908_v28 = vor.u32 %v15498_v55, %v10905_v24  ;;  %v8349_v25 = vpop.f32.mrf.mxu2 }
 0x1a1   : > { %8614 = vmatpush.bf16.msrb.mxu3 %v11196_v51  ;;  %v15562_v12 = vld [vmem:[%s16889_s26 + $0x784] sm:$0xf]  ;;  %v11161_v6 = vld [vmem:[%s16889_s26 + $0x790] sm:$0xf0]  ;;  %v11036_v29 = vor.u32 %v15530_v57, %v11033_v58  ;;  %v8350_v24 = vadd.f32 %v8349_v25, %v8337_v34  ;;  %v8362_v57 = vpop.f32.mrf.mxu3 }
 0x1a2   : > { %8576 = vmatpush.bf16.msrb.mxu0 %v10796_v45  ;;  %v15462_v30 = vld [vmem:[%s16889_s26 + $0x464] sm:$0xf]  ;;  %v10761_v31 = vld [vmem:[%s16889_s26 + $0x470] sm:$0xf0]  ;;  %v11164_v33 = vor.u32 %v15562_v12, %v11161_v6  ;;  %v8325_v12 = vpop.f32.mrf.mxu0  ;;  %v8338_v7 = vpop.f32.mrf.mxu1 }
 0x1a3   : > { %8589 = vmatpush.bf16.msrb.mxu1 %v10924_v52  ;;  %v15494_v32 = vld [vmem:[%s16889_s26 + $0x564] sm:$0xf]  ;;  %v10889_v35 = vld [vmem:[%s16889_s26 + $0x570] sm:$0xf0]  ;;  %v10764_v42 = vor.u32 %v15462_v30, %v10761_v31 }
 0x1a4   : > { %8602 = vmatpush.bf16.msrb.mxu2 %v11052_v53  ;;  %v15526_v37 = vld [vmem:[%s16889_s26 + $0x664] sm:$0xf]  ;;  %v11017_v46 = vld [vmem:[%s16889_s26 + $0x670] sm:$0xf0]  ;;  %v10892_v43 = vor.u32 %v15494_v32, %v10889_v35 }
 0x1a5   : > { %8615 = vmatpush.bf16.msrb.mxu3 %v11180_v56  ;;  %v15558_v51 = vld [vmem:[%s16889_s26 + $0x764] sm:$0xf]  ;;  %v11145_v38 = vld [vmem:[%s16889_s26 + $0x770] sm:$0xf0]  ;;  %v11020_v20 = vor.u32 %v15526_v37, %v11017_v46 }
 0x1a6   : > { %8577 = vmatpush.bf16.msrb.mxu0 %v10780_v11  ;;  %v15458_v44 = vld [vmem:[%s16889_s26 + $0x444] sm:$0xf]  ;;  %v10745_v45 = vld [vmem:[%s16889_s26 + $0x450] sm:$0xf0]  ;;  %v11148_v53 = vor.u32 %v15558_v51, %v11145_v38  ;;  %v17786_v11 = vadd.f32 %v8362_v57, %v8350_v24 }
 0x1a7   : > { %8590 = vmatpush.bf16.msrb.mxu1 %v10908_v28  ;;  %v15490_v52 = vld [vmem:[%s16889_s26 + $0x544] sm:$0xf]  ;;  %v10873_v54 = vld [vmem:[%s16889_s26 + $0x550] sm:$0xf0]  ;;  %v10748_v6 = vor.u32 %v15458_v44, %v10745_v45 }
 0x1a8   : > { %8603 = vmatpush.bf16.msrb.mxu2 %v11036_v29  ;;  %v15522_v55 = vld [vmem:[%s16889_s26 + $0x644] sm:$0xf]  ;;  %v11001_v56 = vld [vmem:[%s16889_s26 + $0x650] sm:$0xf0]  ;;  %v10876_v26 = vor.u32 %v15490_v52, %v10873_v54 }
 0x1a9   : > { %8616 = vmatpush.bf16.msrb.mxu3 %v11164_v33  ;;  %v15554_v58 = vld [vmem:[%s16889_s26 + $0x744] sm:$0xf]  ;;  %v11129_v62 = vld [vmem:[%s16889_s26 + $0x750] sm:$0xf0]  ;;  %v11004_v28 = vor.u32 %v15522_v55, %v11001_v56  ;;  %v8351_v56 = vpop.f32.mrf.mxu2 }
 0x1aa   : > { %8578 = vmatpush.bf16.msrb.mxu0 %v10764_v42  ;;  %v15454_v29 = vld [vmem:[%s16889_s26 + $0x424] sm:$0xf]  ;;  %v10729_v30 = vld [vmem:[%s16889_s26 + $0x430] sm:$0xf0]  ;;  %v11132_v32 = vor.u32 %v15554_v58, %v11129_v62  ;;  %v8364_v62 = vpop.f32.mrf.mxu3 }
 0x1ab   : > { %8591 = vmatpush.bf16.msrb.mxu1 %v10892_v43  ;;  %v15486_v31 = vld [vmem:[%s16889_s26 + $0x524] sm:$0xf]  ;;  %v10857_v33 = vld [vmem:[%s16889_s26 + $0x530] sm:$0xf0]  ;;  %v10732_v51 = vor.u32 %v15454_v29, %v10729_v30 }
 0x1ac   : > { %8604 = vmatpush.bf16.msrb.mxu2 %v11020_v20  ;;  %v15518_v34 = vld [vmem:[%s16889_s26 + $0x624] sm:$0xf]  ;;  %v10985_v35 = vld [vmem:[%s16889_s26 + $0x630] sm:$0xf0]  ;;  %v10860_v43 = vor.u32 %v15486_v31, %v10857_v33 }
 0x1ad   : > { %8617 = vmatpush.bf16.msrb.mxu3 %v11148_v53  ;;  %v15550_v37 = vld [vmem:[%s16889_s26 + $0x724] sm:$0xf]  ;;  %v11113_v46 = vld [vmem:[%s16889_s26 + $0x730] sm:$0xf0]  ;;  %v10988_v20 = vor.u32 %v15518_v34, %v10985_v35 }
 0x1ae   : > { %8579 = vmatpush.bf16.msrb.mxu0 %v10748_v6  ;;  %v15450_v38 = vld [vmem:[%s16889_s26 + $0x404] sm:$0xf]  ;;  %v10713_v42 = vld [vmem:[%s16889_s26 + $0x410] sm:$0xf0]  ;;  %v11116_v53 = vor.u32 %v15550_v37, %v11113_v46 }
 0x1af   : > { %8592 = vmatpush.bf16.msrb.mxu1 %v10876_v26  ;;  %v15482_v44 = vld [vmem:[%s16889_s26 + $0x504] sm:$0xf]  ;;  %v10841_v45 = vld [vmem:[%s16889_s26 + $0x510] sm:$0xf0]  ;;  %v10716_v12 = vor.u32 %v15450_v38, %v10713_v42 }
 0x1b0   : > { %8605 = vmatpush.bf16.msrb.mxu2 %v11004_v28  ;;  %v15514_v52 = vld [vmem:[%s16889_s26 + $0x604] sm:$0xf]  ;;  %v10969_v25 = vld [vmem:[%s16889_s26 + $0x610] sm:$0xf0]  ;;  %v10844_v28 = vor.u32 %v15482_v44, %v10841_v45 }
 0x1b1   : > { %8618 = vmatpush.bf16.msrb.mxu3 %v11132_v32  ;;  %v15546_v54 = vld [vmem:[%s16889_s26 + $0x704] sm:$0xf]  ;;  %v11097_v55 = vld [vmem:[%s16889_s26 + $0x710] sm:$0xf0]  ;;  %v10972_v29 = vor.u32 %v15514_v52, %v10969_v25 }
 0x1b2   : > { %v15606_v24 = vld [vmem:[%s16889_s26 + $0x8e4] sm:$0xf]  ;;  %v11337_v57 = vld [vmem:[%s16889_s26 + $0x8f0] sm:$0xf0]  ;;  %8580 = vmatpush.bf16.msrb.mxu0 %v10732_v51  ;;  %v11100_v32 = vor.u32 %v15546_v54, %v11097_v55 }
 0x1b3   : > { %v15638_v58 = vld [vmem:[%s16889_s26 + $0x9e4] sm:$0xf]  ;;  %v11465_v6 = vld [vmem:[%s16889_s26 + $0x9f0] sm:$0xf0]  ;;  %8593 = vmatpush.bf16.msrb.mxu1 %v10860_v43  ;;  %v11340_v33 = vor.u32 %v15606_v24, %v11337_v57 }
 0x1b4   : > { %v15670_v7 = vld [vmem:[%s16889_s26 + $0xae4] sm:$0xf]  ;;  %v11593_v26 = vld [vmem:[%s16889_s26 + $0xaf0] sm:$0xf0]  ;;  %8606 = vmatpush.bf16.msrb.mxu2 %v10988_v20  ;;  %v11468_v34 = vor.u32 %v15638_v58, %v11465_v6 }
 0x1b5   : > { %v15702_v30 = vld [vmem:[%s16889_s26 + $0xbe4] sm:$0xf]  ;;  %v11721_v31 = vld [vmem:[%s16889_s26 + $0xbf0] sm:$0xf0]  ;;  %8619 = vmatpush.bf16.msrb.mxu3 %v11116_v53  ;;  %v11596_v35 = vor.u32 %v15670_v7, %v11593_v26 }
 0x1b6   : > { %v15602_v37 = vld [vmem:[%s16889_s26 + $0x8c4] sm:$0xf]  ;;  %v11321_v46 = vld [vmem:[%s16889_s26 + $0x8d0] sm:$0xf0]  ;;  %8581 = vmatpush.bf16.msrb.mxu0 %v10716_v12  ;;  %v11724_v38 = vor.u32 %v15702_v30, %v11721_v31 }
 0x1b7   : > { %v15634_v51 = vld [vmem:[%s16889_s26 + $0x9c4] sm:$0xf]  ;;  %v11449_v42 = vld [vmem:[%s16889_s26 + $0x9d0] sm:$0xf0]  ;;  %8594 = vmatpush.bf16.msrb.mxu1 %v10844_v28  ;;  %v11324_v52 = vor.u32 %v15602_v37, %v11321_v46  ;;  %v8375_v37 = vpop.f32.mrf.mxu0 }
 0x1b8   : > { %v15666_v43 = vld [vmem:[%s16889_s26 + $0xac4] sm:$0xf]  ;;  %v11577_v20 = vld [vmem:[%s16889_s26 + $0xad0] sm:$0xf0]  ;;  %8607 = vmatpush.bf16.msrb.mxu2 %v10972_v29  ;;  %v11452_v53 = vor.u32 %v15634_v51, %v11449_v42 }
 0x1b9   : > { %v15698_v44 = vld [vmem:[%s16889_s26 + $0xbc4] sm:$0xf]  ;;  %v11705_v45 = vld [vmem:[%s16889_s26 + $0xbd0] sm:$0xf0]  ;;  %8620 = vmatpush.bf16.msrb.mxu3 %v11100_v32  ;;  %v11580_v25 = vor.u32 %v15666_v43, %v11577_v20  ;;  %8582 = vmatmul.bf16.vlgmr.msrb.gmra.mxu0 %v17053_v1  ;;  %v8388_v43 = vpop.f32.mrf.mxu1 }
 0x1ba   : > { %8626 = vmatpush.bf16.msra.mxu0 %v11340_v33  ;;  %v15598_v54 = vld [vmem:[%s16889_s26 + $0x8a4] sm:$0xf]  ;;  %v11305_v55 = vld [vmem:[%s16889_s26 + $0x8b0] sm:$0xf0]  ;;  %v11708_v24 = vor.u32 %v15698_v44, %v11705_v45  ;;  %8595 = vmatmul.bf16.vlgmr.msrb.gmra.mxu1 %v17057_v3 }
 0x1bb   : > { %8639 = vmatpush.bf16.msra.mxu1 %v11468_v34  ;;  %v15630_v56 = vld [vmem:[%s16889_s26 + $0x9a4] sm:$0xf]  ;;  %8608 = vmatmul.bf16.vlgmr.msrb.gmra.mxu2 %v17050_v61  ;;  %v11433_v57 = vld [vmem:[%s16889_s26 + $0x9b0] sm:$0xf0]  ;;  %v11308_v7 = vor.u32 %v15598_v54, %v11305_v55 }
 0x1bc   : > { %8652 = vmatpush.bf16.msra.mxu2 %v11596_v35  ;;  %v15662_v58 = vld [vmem:[%s16889_s26 + $0xaa4] sm:$0xf]  ;;  %v11561_v62 = vld [vmem:[%s16889_s26 + $0xab0] sm:$0xf0]  ;;  %8621 = vmatmul.bf16.vlgmr.msrb.gmra.mxu3 %v17055_v2  ;;  %v11436_v26 = vor.u32 %v15630_v56, %v11433_v57 }
 0x1bd   : > { %8665 = vmatpush.bf16.msra.mxu3 %v11724_v38  ;;  %v15694_v12 = vld [vmem:[%s16889_s26 + $0xba4] sm:$0xf]  ;;  %v11689_v6 = vld [vmem:[%s16889_s26 + $0xbb0] sm:$0xf0]  ;;  %v11564_v28 = vor.u32 %v15662_v58, %v11561_v62  ;;  %v8376_v38 = vadd.f32 %v8375_v37, %v17786_v11 }
 0x1be   : > { %8627 = vmatpush.bf16.msra.mxu0 %v11324_v52  ;;  %v15594_v29 = vld [vmem:[%s16889_s26 + $0x884] sm:$0xf]  ;;  %v11289_v30 = vld [vmem:[%s16889_s26 + $0x890] sm:$0xf0]  ;;  %v11692_v32 = vor.u32 %v15694_v12, %v11689_v6 }
 0x1bf   : > { %8640 = vmatpush.bf16.msra.mxu1 %v11452_v53  ;;  %v15626_v31 = vld [vmem:[%s16889_s26 + $0x984] sm:$0xf]  ;;  %v11417_v33 = vld [vmem:[%s16889_s26 + $0x990] sm:$0xf0]  ;;  %v11292_v42 = vor.u32 %v15594_v29, %v11289_v30  ;;  %v8389_v54 = vadd.f32 %v8388_v43, %v8376_v38  ;;  %v8401_v29 = vpop.f32.mrf.mxu2 }
 0x1c0   : > { %8653 = vmatpush.bf16.msra.mxu2 %v11580_v25  ;;  %v15658_v34 = vld [vmem:[%s16889_s26 + $0xa84] sm:$0xf]  ;;  %v11545_v35 = vld [vmem:[%s16889_s26 + $0xa90] sm:$0xf0]  ;;  %v11420_v20 = vor.u32 %v15626_v31, %v11417_v33 }
 0x1c1   : > { %8666 = vmatpush.bf16.msra.mxu3 %v11708_v24  ;;  %v15690_v46 = vld [vmem:[%s16889_s26 + $0xb84] sm:$0xf]  ;;  %v11673_v51 = vld [vmem:[%s16889_s26 + $0xb90] sm:$0xf0]  ;;  %v11548_v44 = vor.u32 %v15658_v34, %v11545_v35  ;;  %v8402_v33 = vadd.f32 %v8401_v29, %v8389_v54  ;;  %v8414_v34 = vpop.f32.mrf.mxu3  ;;  %v8390_v38 = vpop.f32.mrf.mxu1 }
 0x1c2   : > { %8628 = vmatpush.bf16.msra.mxu0 %v11308_v7  ;;  %v15590_v45 = vld [vmem:[%s16889_s26 + $0x864] sm:$0xf]  ;;  %v11273_v52 = vld [vmem:[%s16889_s26 + $0x870] sm:$0xf0]  ;;  %v11676_v25 = vor.u32 %v15690_v46, %v11673_v51  ;;  %v8377_v46 = vpop.f32.mrf.mxu0 }
 0x1c3   : > { %8641 = vmatpush.bf16.msra.mxu1 %v11436_v26  ;;  %v15622_v53 = vld [vmem:[%s16889_s26 + $0x964] sm:$0xf]  ;;  %v11401_v55 = vld [vmem:[%s16889_s26 + $0x970] sm:$0xf0]  ;;  %v11276_v58 = vor.u32 %v15590_v45, %v11273_v52 }
 0x1c4   : > { %8654 = vmatpush.bf16.msra.mxu2 %v11564_v28  ;;  %v15654_v56 = vld [vmem:[%s16889_s26 + $0xa64] sm:$0xf]  ;;  %v11529_v11 = vld [vmem:[%s16889_s26 + $0xa70] sm:$0xf0]  ;;  %v11404_v62 = vor.u32 %v15622_v53, %v11401_v55 }
 0x1c5   : > { %8667 = vmatpush.bf16.msra.mxu3 %v11692_v32  ;;  %v15686_v24 = vld [vmem:[%s16889_s26 + $0xb64] sm:$0xf]  ;;  %v11657_v57 = vld [vmem:[%s16889_s26 + $0xb70] sm:$0xf0]  ;;  %v11532_v12 = vor.u32 %v15654_v56, %v11529_v11 }
 0x1c6   : > { %8629 = vmatpush.bf16.msra.mxu0 %v11292_v42  ;;  %v15586_v6 = vld [vmem:[%s16889_s26 + $0x844] sm:$0xf]  ;;  %v11257_v7 = vld [vmem:[%s16889_s26 + $0x850] sm:$0xf0]  ;;  %v11660_v28 = vor.u32 %v15686_v24, %v11657_v57  ;;  %v17857_v42 = vadd.f32 %v8414_v34, %v8402_v33 }
 0x1c7   : > { %8642 = vmatpush.bf16.msra.mxu1 %v11420_v20  ;;  %v15618_v26 = vld [vmem:[%s16889_s26 + $0x944] sm:$0xf]  ;;  %v11385_v30 = vld [vmem:[%s16889_s26 + $0x950] sm:$0xf0]  ;;  %v11260_v51 = vor.u32 %v15586_v6, %v11257_v7 }
 0x1c8   : > { %8655 = vmatpush.bf16.msra.mxu2 %v11548_v44  ;;  %v15650_v31 = vld [vmem:[%s16889_s26 + $0xa44] sm:$0xf]  ;;  %v11513_v32 = vld [vmem:[%s16889_s26 + $0xa50] sm:$0xf0]  ;;  %v11388_v43 = vor.u32 %v15618_v26, %v11385_v30 }
 0x1c9   : > { %8668 = vmatpush.bf16.msra.mxu3 %v11676_v25  ;;  %v15682_v35 = vld [vmem:[%s16889_s26 + $0xb44] sm:$0xf]  ;;  %v11641_v37 = vld [vmem:[%s16889_s26 + $0xb50] sm:$0xf0]  ;;  %v11516_v20 = vor.u32 %v15650_v31, %v11513_v32  ;;  %v8403_v32 = vpop.f32.mrf.mxu2 }
 0x1ca   : > { %8630 = vmatpush.bf16.msra.mxu0 %v11276_v58  ;;  %v15582_v44 = vld [vmem:[%s16889_s26 + $0x824] sm:$0xf]  ;;  %v11241_v45 = vld [vmem:[%s16889_s26 + $0x830] sm:$0xf0]  ;;  %v11644_v53 = vor.u32 %v15682_v35, %v11641_v37  ;;  %v8416_v37 = vpop.f32.mrf.mxu3 }
 0x1cb   : > { %8643 = vmatpush.bf16.msra.mxu1 %v11404_v62  ;;  %v15614_v52 = vld [vmem:[%s16889_s26 + $0x924] sm:$0xf]  ;;  %v11369_v25 = vld [vmem:[%s16889_s26 + $0x930] sm:$0xf0]  ;;  %v11244_v24 = vor.u32 %v15582_v44, %v11241_v45 }
 0x1cc   : > { %8656 = vmatpush.bf16.msra.mxu2 %v11532_v12  ;;  %v15646_v54 = vld [vmem:[%s16889_s26 + $0xa24] sm:$0xf]  ;;  %v11497_v55 = vld [vmem:[%s16889_s26 + $0xa30] sm:$0xf0]  ;;  %v11372_v62 = vor.u32 %v15614_v52, %v11369_v25 }
 0x1cd   : > { %8669 = vmatpush.bf16.msra.mxu3 %v11660_v28  ;;  %v15678_v56 = vld [vmem:[%s16889_s26 + $0xb24] sm:$0xf]  ;;  %v11625_v11 = vld [vmem:[%s16889_s26 + $0xb30] sm:$0xf0]  ;;  %v11500_v12 = vor.u32 %v15646_v54, %v11497_v55 }
 0x1ce   : > { %8631 = vmatpush.bf16.msra.mxu0 %v11260_v51  ;;  %v15578_v57 = vld [vmem:[%s16889_s26 + $0x804] sm:$0xf]  ;;  %v11225_v58 = vld [vmem:[%s16889_s26 + $0x810] sm:$0xf0]  ;;  %v11628_v28 = vor.u32 %v15678_v56, %v11625_v11 }
 0x1cf   : > { %8644 = vmatpush.bf16.msra.mxu1 %v11388_v43  ;;  %v15610_v6 = vld [vmem:[%s16889_s26 + $0x904] sm:$0xf]  ;;  %v11353_v7 = vld [vmem:[%s16889_s26 + $0x910] sm:$0xf0]  ;;  %v11228_v46 = vor.u32 %v15578_v57, %v11225_v58 }
 0x1d0   : > { %8657 = vmatpush.bf16.msra.mxu2 %v11516_v20  ;;  %v15642_v26 = vld [vmem:[%s16889_s26 + $0xa04] sm:$0xf]  ;;  %v11481_v29 = vld [vmem:[%s16889_s26 + $0xa10] sm:$0xf0]  ;;  %v11356_v20 = vor.u32 %v15610_v6, %v11353_v7 }
 0x1d1   : > { %8670 = vmatpush.bf16.msra.mxu3 %v11644_v53  ;;  %v15674_v30 = vld [vmem:[%s16889_s26 + $0xb04] sm:$0xf]  ;;  %v11609_v31 = vld [vmem:[%s16889_s26 + $0xb10] sm:$0xf0]  ;;  %v11484_v44 = vor.u32 %v15642_v26, %v11481_v29 }
 0x1d2   : > { %v15734_v33 = vld [vmem:[%s16889_s26 + $0xce4] sm:$0xf]  ;;  %v11849_v34 = vld [vmem:[%s16889_s26 + $0xcf0] sm:$0xf0]  ;;  %8632 = vmatpush.bf16.msra.mxu0 %v11244_v24  ;;  %v11612_v53 = vor.u32 %v15674_v30, %v11609_v31 }
 0x1d3   : > { %v15766_v35 = vld [vmem:[%s16889_s26 + $0xde4] sm:$0xf]  ;;  %v11977_v51 = vld [vmem:[%s16889_s26 + $0xdf0] sm:$0xf0]  ;;  %8645 = vmatpush.bf16.msra.mxu1 %v11372_v62  ;;  %v11852_v25 = vor.u32 %v15734_v33, %v11849_v34 }
 0x1d4   : > { %v15798_v38 = vld [vmem:[%s16889_s26 + $0xee4] sm:$0xf]  ;;  %v12105_v43 = vld [vmem:[%s16889_s26 + $0xef0] sm:$0xf0]  ;;  %8658 = vmatpush.bf16.msra.mxu2 %v11500_v12  ;;  %v11980_v54 = vor.u32 %v15766_v35, %v11977_v51 }
 0x1d5   : > { %v15830_v45 = vld [vmem:[%s16889_s26 + $0xfe4] sm:$0xf]  ;;  %v12233_v52 = vld [vmem:[%s16889_s26 + $0xff0] sm:$0xf0]  ;;  %8671 = vmatpush.bf16.msra.mxu3 %v11628_v28  ;;  %v12108_v55 = vor.u32 %v15798_v38, %v12105_v43 }
 0x1d6   : > { %v15730_v56 = vld [vmem:[%s16889_s26 + $0xcc4] sm:$0xf]  ;;  %v11833_v11 = vld [vmem:[%s16889_s26 + $0xcd0] sm:$0xf0]  ;;  %8633 = vmatpush.bf16.msra.mxu0 %v11228_v46  ;;  %v12236_v57 = vor.u32 %v15830_v45, %v12233_v52 }
 0x1d7   : > { %v15762_v24 = vld [vmem:[%s16889_s26 + $0xdc4] sm:$0xf]  ;;  %v11961_v58 = vld [vmem:[%s16889_s26 + $0xdd0] sm:$0xf0]  ;;  %8646 = vmatpush.bf16.msra.mxu1 %v11356_v20  ;;  %v11836_v26 = vor.u32 %v15730_v56, %v11833_v11  ;;  %v8427_v56 = vpop.f32.mrf.mxu0 }
 0x1d8   : > { %v15794_v62 = vld [vmem:[%s16889_s26 + $0xec4] sm:$0xf]  ;;  %v12089_v12 = vld [vmem:[%s16889_s26 + $0xed0] sm:$0xf0]  ;;  %8659 = vmatpush.bf16.msra.mxu2 %v11484_v44  ;;  %v11964_v28 = vor.u32 %v15762_v24, %v11961_v58 }
 0x1d9   : > { %v15826_v6 = vld [vmem:[%s16889_s26 + $0xfc4] sm:$0xf]  ;;  %v12217_v7 = vld [vmem:[%s16889_s26 + $0xfd0] sm:$0xf0]  ;;  %8672 = vmatpush.bf16.msra.mxu3 %v11612_v53  ;;  %v12092_v29 = vor.u32 %v15794_v62, %v12089_v12  ;;  %8634 = vmatmul.bf16.vlgmr.msra.gmra.mxu0 %v17143_v13 }
 0x1da   : > { %8678 = vmatpush.bf16.msrb.mxu0 %v11852_v25  ;;  %v15726_v30 = vld [vmem:[%s16889_s26 + $0xca4] sm:$0xf]  ;;  %v11817_v31 = vld [vmem:[%s16889_s26 + $0xcb0] sm:$0xf0]  ;;  %v12220_v33 = vor.u32 %v15826_v6, %v12217_v7  ;;  %8647 = vmatmul.bf16.vlgmr.msra.gmra.mxu1 %v17149_v17 }
 0x1db   : > { %8691 = vmatpush.bf16.msrb.mxu1 %v11980_v54  ;;  %v15758_v32 = vld [vmem:[%s16889_s26 + $0xda4] sm:$0xf]  ;;  %v11945_v34 = vld [vmem:[%s16889_s26 + $0xdb0] sm:$0xf0]  ;;  %8660 = vmatmul.bf16.vlgmr.msra.gmra.mxu2 %v17147_v16  ;;  %v11820_v38 = vor.u32 %v15726_v30, %v11817_v31 }
 0x1dc   : > { %8704 = vmatpush.bf16.msrb.mxu2 %v12108_v55  ;;  %v15790_v35 = vld [vmem:[%s16889_s26 + $0xea4] sm:$0xf]  ;;  %v12073_v37 = vld [vmem:[%s16889_s26 + $0xeb0] sm:$0xf0]  ;;  %8673 = vmatmul.bf16.vlgmr.msra.gmra.mxu3 %v17151_v18  ;;  %v11948_v43 = vor.u32 %v15758_v32, %v11945_v34  ;;  %v8440_v62 = vpop.f32.mrf.mxu1 }
 0x1dd   : > { %8717 = vmatpush.bf16.msrb.mxu3 %v12236_v57  ;;  %v15822_v46 = vld [vmem:[%s16889_s26 + $0xfa4] sm:$0xf]  ;;  %v12201_v51 = vld [vmem:[%s16889_s26 + $0xfb0] sm:$0xf0]  ;;  %v12076_v20 = vor.u32 %v15790_v35, %v12073_v37  ;;  %v8428_v57 = vadd.f32 %v8427_v56, %v17857_v42 }
 0x1de   : > { %8679 = vmatpush.bf16.msrb.mxu0 %v11836_v26  ;;  %v15722_v44 = vld [vmem:[%s16889_s26 + $0xc84] sm:$0xf]  ;;  %v11801_v45 = vld [vmem:[%s16889_s26 + $0xc90] sm:$0xf0]  ;;  %v12204_v53 = vor.u32 %v15822_v46, %v12201_v51 }
 0x1df   : > { %8692 = vmatpush.bf16.msrb.mxu1 %v11964_v28  ;;  %v15754_v52 = vld [vmem:[%s16889_s26 + $0xd84] sm:$0xf]  ;;  %v11929_v25 = vld [vmem:[%s16889_s26 + $0xd90] sm:$0xf0]  ;;  %v11804_v58 = vor.u32 %v15722_v44, %v11801_v45  ;;  %v8441_v30 = vadd.f32 %v8440_v62, %v8428_v57 }
 0x1e0   : > { %8705 = vmatpush.bf16.msrb.mxu2 %v12092_v29  ;;  %v15786_v54 = vld [vmem:[%s16889_s26 + $0xe84] sm:$0xf]  ;;  %v12057_v55 = vld [vmem:[%s16889_s26 + $0xe90] sm:$0xf0]  ;;  %v11932_v12 = vor.u32 %v15754_v52, %v11929_v25 }
 0x1e1   : > { %8718 = vmatpush.bf16.msrb.mxu3 %v12220_v33  ;;  %v15818_v11 = vld [vmem:[%s16889_s26 + $0xf84] sm:$0xf]  ;;  %v12185_v24 = vld [vmem:[%s16889_s26 + $0xf90] sm:$0xf0]  ;;  %v12060_v6 = vor.u32 %v15786_v54, %v12057_v55 }
 0x1e2   : > { %8680 = vmatpush.bf16.msrb.mxu0 %v11820_v38  ;;  %v15718_v7 = vld [vmem:[%s16889_s26 + $0xc64] sm:$0xf]  ;;  %v11785_v26 = vld [vmem:[%s16889_s26 + $0xc70] sm:$0xf0]  ;;  %v12188_v29 = vor.u32 %v15818_v11, %v12185_v24  ;;  %v8453_v44 = vpop.f32.mrf.mxu2  ;;  %v8429_v11 = vpop.f32.mrf.mxu0 }
 0x1e3   : > { %8693 = vmatpush.bf16.msrb.mxu1 %v11948_v43  ;;  %v15750_v28 = vld [vmem:[%s16889_s26 + $0xd64] sm:$0xf]  ;;  %v11913_v31 = vld [vmem:[%s16889_s26 + $0xd70] sm:$0xf0]  ;;  %v11788_v35 = vor.u32 %v15718_v7, %v11785_v26  ;;  %v8454_v25 = vadd.f32 %v8453_v44, %v8441_v30  ;;  %v8466_v54 = vpop.f32.mrf.mxu3 }
 0x1e4   : > { %8706 = vmatpush.bf16.msrb.mxu2 %v12076_v20  ;;  %v15782_v32 = vld [vmem:[%s16889_s26 + $0xe64] sm:$0xf]  ;;  %v12041_v42 = vld [vmem:[%s16889_s26 + $0xe70] sm:$0xf0]  ;;  %v11916_v37 = vor.u32 %v15750_v28, %v11913_v31  ;;  %v8442_v57 = vpop.f32.mrf.mxu1 }
 0x1e5   : > { %8719 = vmatpush.bf16.msrb.mxu3 %v12204_v53  ;;  %v15814_v33 = vld [vmem:[%s16889_s26 + $0xf64] sm:$0xf]  ;;  %v12169_v34 = vld [vmem:[%s16889_s26 + $0xf70] sm:$0xf0]  ;;  %v12044_v46 = vor.u32 %v15782_v32, %v12041_v42 }
 0x1e6   : > { %8681 = vmatpush.bf16.msrb.mxu0 %v11804_v58  ;;  %v15714_v51 = vld [vmem:[%s16889_s26 + $0xc44] sm:$0xf]  ;;  %v11769_v38 = vld [vmem:[%s16889_s26 + $0xc50] sm:$0xf0]  ;;  %v12172_v20 = vor.u32 %v15814_v33, %v12169_v34  ;;  %v17928_v58 = vadd.f32 %v8466_v54, %v8454_v25 }
 0x1e7   : > { %8694 = vmatpush.bf16.msrb.mxu1 %v11932_v12  ;;  %v15746_v43 = vld [vmem:[%s16889_s26 + $0xd44] sm:$0xf]  ;;  %v11897_v45 = vld [vmem:[%s16889_s26 + $0xd50] sm:$0xf0]  ;;  %v11772_v24 = vor.u32 %v15714_v51, %v11769_v38 }
 0x1e8   : > { %8707 = vmatpush.bf16.msrb.mxu2 %v12060_v6  ;;  %v15778_v52 = vld [vmem:[%s16889_s26 + $0xe44] sm:$0xf]  ;;  %v12025_v53 = vld [vmem:[%s16889_s26 + $0xe50] sm:$0xf0]  ;;  %v11900_v62 = vor.u32 %v15746_v43, %v11897_v45 }
 0x1e9   : > { %8720 = vmatpush.bf16.msrb.mxu3 %v12188_v29  ;;  %v15810_v55 = vld [vmem:[%s16889_s26 + $0xf44] sm:$0xf]  ;;  %v12153_v56 = vld [vmem:[%s16889_s26 + $0xf50] sm:$0xf0]  ;;  %v12028_v12 = vor.u32 %v15778_v52, %v12025_v53 }
 0x1ea   : > { %8682 = vmatpush.bf16.msrb.mxu0 %v11788_v35  ;;  %v15710_v6 = vld [vmem:[%s16889_s26 + $0xc24] sm:$0xf]  ;;  %v11753_v7 = vld [vmem:[%s16889_s26 + $0xc30] sm:$0xf0]  ;;  %v12156_v28 = vor.u32 %v15810_v55, %v12153_v56  ;;  %v8455_v53 = vpop.f32.mrf.mxu2 }
 0x1eb   : > { %8695 = vmatpush.bf16.msrb.mxu1 %v11916_v37  ;;  %v15742_v26 = vld [vmem:[%s16889_s26 + $0xd24] sm:$0xf]  ;;  %v11881_v29 = vld [vmem:[%s16889_s26 + $0xd30] sm:$0xf0]  ;;  %v11756_v33 = vor.u32 %v15710_v6, %v11753_v7  ;;  %v8468_v56 = vpop.f32.mrf.mxu3 }
 0x1ec   : > { %8708 = vmatpush.bf16.msrb.mxu2 %v12044_v46  ;;  %v15774_v30 = vld [vmem:[%s16889_s26 + $0xe24] sm:$0xf]  ;;  %v12009_v31 = vld [vmem:[%s16889_s26 + $0xe30] sm:$0xf0]  ;;  %v11884_v37 = vor.u32 %v15742_v26, %v11881_v29 }
 0x1ed   : > { %8721 = vmatpush.bf16.msrb.mxu3 %v12172_v20  ;;  %v15806_v32 = vld [vmem:[%s16889_s26 + $0xf24] sm:$0xf]  ;;  %v12137_v42 = vld [vmem:[%s16889_s26 + $0xf30] sm:$0xf0]  ;;  %v12012_v46 = vor.u32 %v15774_v30, %v12009_v31 }
 0x1ee   : > { %8683 = vmatpush.bf16.msrb.mxu0 %v11772_v24  ;;  %v15706_v34 = vld [vmem:[%s16889_s26 + $0xc04] sm:$0xf]  ;;  %v11737_v35 = vld [vmem:[%s16889_s26 + $0xc10] sm:$0xf0]  ;;  %v12140_v20 = vor.u32 %v15806_v32, %v12137_v42 }
 0x1ef   : > { %8696 = vmatpush.bf16.msrb.mxu1 %v11900_v62  ;;  %v15738_v51 = vld [vmem:[%s16889_s26 + $0xd04] sm:$0xf]  ;;  %v11865_v38 = vld [vmem:[%s16889_s26 + $0xd10] sm:$0xf0]  ;;  %v11740_v11 = vor.u32 %v15706_v34, %v11737_v35 }
 0x1f0   : > { %8709 = vmatpush.bf16.msrb.mxu2 %v12028_v12  ;;  %v15770_v43 = vld [vmem:[%s16889_s26 + $0xe04] sm:$0xf]  ;;  %v11993_v44 = vld [vmem:[%s16889_s26 + $0xe10] sm:$0xf0]  ;;  %v11868_v12 = vor.u32 %v15738_v51, %v11865_v38 }
 0x1f1   : > { %8722 = vmatpush.bf16.msrb.mxu3 %v12156_v28  ;;  %v15802_v45 = vld [vmem:[%s16889_s26 + $0xf04] sm:$0xf]  ;;  %v12121_v52 = vld [vmem:[%s16889_s26 + $0xf10] sm:$0xf0]  ;;  %v11996_v6 = vor.u32 %v15770_v43, %v11993_v44 }
 0x1f2   : > { %v15862_v25 = vld [vmem:[%s16889_s26 + $0x10e4] sm:$0xf]  ;;  %v12361_v54 = vld [vmem:[%s16889_s26 + $0x10f0] sm:$0xf0]  ;;  %8684 = vmatpush.bf16.msrb.mxu0 %v11756_v33  ;;  %v12124_v28 = vor.u32 %v15802_v45, %v12121_v52 }
 0x1f3   : > { %v15894_v55 = vld [vmem:[%s16889_s26 + $0x11e4] sm:$0xf]  ;;  %v12489_v24 = vld [vmem:[%s16889_s26 + $0x11f0] sm:$0xf0]  ;;  %8697 = vmatpush.bf16.msrb.mxu1 %v11884_v37  ;;  %v12364_v29 = vor.u32 %v15862_v25, %v12361_v54 }
 0x1f4   : > { %v15926_v57 = vld [vmem:[%s16889_s26 + $0x12e4] sm:$0xf]  ;;  %v12617_v62 = vld [vmem:[%s16889_s26 + $0x12f0] sm:$0xf0]  ;;  %8710 = vmatpush.bf16.msrb.mxu2 %v12012_v46  ;;  %v12492_v30 = vor.u32 %v15894_v55, %v12489_v24 }
 0x1f5   : > { %v15958_v7 = vld [vmem:[%s16889_s26 + $0x13e4] sm:$0xf]  ;;  %v12745_v26 = vld [vmem:[%s16889_s26 + $0x13f0] sm:$0xf0]  ;;  %8723 = vmatpush.bf16.msrb.mxu3 %v12140_v20  ;;  %v12620_v31 = vor.u32 %v15926_v57, %v12617_v62 }
 0x1f6   : > { %v15858_v32 = vld [vmem:[%s16889_s26 + $0x10c4] sm:$0xf]  ;;  %v12345_v42 = vld [vmem:[%s16889_s26 + $0x10d0] sm:$0xf0]  ;;  %8685 = vmatpush.bf16.msrb.mxu0 %v11740_v11  ;;  %v12748_v34 = vor.u32 %v15958_v7, %v12745_v26 }
 0x1f7   : > { %v15890_v33 = vld [vmem:[%s16889_s26 + $0x11c4] sm:$0xf]  ;;  %v12473_v35 = vld [vmem:[%s16889_s26 + $0x11d0] sm:$0xf0]  ;;  %8698 = vmatpush.bf16.msrb.mxu1 %v11868_v12  ;;  %v12348_v43 = vor.u32 %v15858_v32, %v12345_v42  ;;  %v8479_v32 = vpop.f32.mrf.mxu0 }
 0x1f8   : > { %v15922_v37 = vld [vmem:[%s16889_s26 + $0x12c4] sm:$0xf]  ;;  %v12601_v46 = vld [vmem:[%s16889_s26 + $0x12d0] sm:$0xf0]  ;;  %8711 = vmatpush.bf16.msrb.mxu2 %v11996_v6  ;;  %v12476_v20 = vor.u32 %v15890_v33, %v12473_v35 }
 0x1f9   : > { %v15954_v51 = vld [vmem:[%s16889_s26 + $0x13c4] sm:$0xf]  ;;  %v12729_v38 = vld [vmem:[%s16889_s26 + $0x13d0] sm:$0xf0]  ;;  %8724 = vmatpush.bf16.msrb.mxu3 %v12124_v28  ;;  %v12604_v44 = vor.u32 %v15922_v37, %v12601_v46  ;;  %8686 = vmatmul.bf16.vlgmr.msrb.gmra.mxu0 %v17209_v47  ;;  %v8492_v37 = vpop.f32.mrf.mxu1 }
 0x1fa   : > { %8730 = vmatpush.bf16.msra.mxu0 %v12364_v29  ;;  %v15854_v45 = vld [vmem:[%s16889_s26 + $0x10a4] sm:$0xf]  ;;  %v12329_v52 = vld [vmem:[%s16889_s26 + $0x10b0] sm:$0xf0]  ;;  %v12732_v25 = vor.u32 %v15954_v51, %v12729_v38  ;;  %8699 = vmatmul.bf16.vlgmr.msrb.gmra.mxu1 %v17213_v49 }
 0x1fb   : > { %8743 = vmatpush.bf16.msra.mxu1 %v12492_v30  ;;  %v15886_v53 = vld [vmem:[%s16889_s26 + $0x11a4] sm:$0xf]  ;;  %v12457_v54 = vld [vmem:[%s16889_s26 + $0x11b0] sm:$0xf0]  ;;  %8712 = vmatmul.bf16.vlgmr.msrb.gmra.mxu2 %v17211_v48  ;;  %v12332_v57 = vor.u32 %v15854_v45, %v12329_v52 }
 0x1fc   : > { %8756 = vmatpush.bf16.msra.mxu2 %v12620_v31  ;;  %v15918_v55 = vld [vmem:[%s16889_s26 + $0x12a4] sm:$0xf]  ;;  %v12585_v56 = vld [vmem:[%s16889_s26 + $0x12b0] sm:$0xf0]  ;;  %8725 = vmatmul.bf16.vlgmr.msrb.gmra.mxu3 %v17215_v50  ;;  %v12460_v62 = vor.u32 %v15886_v53, %v12457_v54 }
 0x1fd   : > { %8769 = vmatpush.bf16.msra.mxu3 %v12748_v34  ;;  %v15950_v11 = vld [vmem:[%s16889_s26 + $0x13a4] sm:$0xf]  ;;  %v12713_v24 = vld [vmem:[%s16889_s26 + $0x13b0] sm:$0xf0]  ;;  %v12588_v12 = vor.u32 %v15918_v55, %v12585_v56  ;;  %v8480_v34 = vadd.f32 %v8479_v32, %v17928_v58 }
 0x1fe   : > { %8731 = vmatpush.bf16.msra.mxu0 %v12348_v43  ;;  %v15850_v6 = vld [vmem:[%s16889_s26 + $0x1084] sm:$0xf]  ;;  %v12313_v7 = vld [vmem:[%s16889_s26 + $0x1090] sm:$0xf0]  ;;  %v12716_v28 = vor.u32 %v15950_v11, %v12713_v24 }
 0x1ff   : > { %8744 = vmatpush.bf16.msra.mxu1 %v12476_v20  ;;  %v15882_v26 = vld [vmem:[%s16889_s26 + $0x1184] sm:$0xf]  ;;  %v12441_v29 = vld [vmem:[%s16889_s26 + $0x1190] sm:$0xf0]  ;;  %v12316_v35 = vor.u32 %v15850_v6, %v12313_v7  ;;  %v8493_v45 = vadd.f32 %v8492_v37, %v8480_v34  ;;  %v8505_v6 = vpop.f32.mrf.mxu2 }
 0x200   : > { %8757 = vmatpush.bf16.msra.mxu2 %v12604_v44  ;;  %v15914_v30 = vld [vmem:[%s16889_s26 + $0x1284] sm:$0xf]  ;;  %v12569_v31 = vld [vmem:[%s16889_s26 + $0x1290] sm:$0xf0]  ;;  %v12444_v46 = vor.u32 %v15882_v26, %v12441_v29 }
 0x201   : > { %8770 = vmatpush.bf16.msra.mxu3 %v12732_v25  ;;  %v15946_v42 = vld [vmem:[%s16889_s26 + $0x1384] sm:$0xf]  ;;  %v12697_v33 = vld [vmem:[%s16889_s26 + $0x1390] sm:$0xf0]  ;;  %v12572_v51 = vor.u32 %v15914_v30, %v12569_v31  ;;  %v8506_v29 = vadd.f32 %v8505_v6, %v8493_v45  ;;  %v8518_v30 = vpop.f32.mrf.mxu3  ;;  %v8494_v34 = vpop.f32.mrf.mxu1 }
 0x202   : > { %8732 = vmatpush.bf16.msra.mxu0 %v12332_v57  ;;  %v15846_v38 = vld [vmem:[%s16889_s26 + $0x1064] sm:$0xf]  ;;  %v12297_v43 = vld [vmem:[%s16889_s26 + $0x1070] sm:$0xf0]  ;;  %v12700_v44 = vor.u32 %v15946_v42, %v12697_v33  ;;  %v8481_v42 = vpop.f32.mrf.mxu0 }
 0x203   : > { %8745 = vmatpush.bf16.msra.mxu1 %v12460_v62  ;;  %v15878_v20 = vld [vmem:[%s16889_s26 + $0x1164] sm:$0xf]  ;;  %v12425_v52 = vld [vmem:[%s16889_s26 + $0x1170] sm:$0xf0]  ;;  %v12300_v55 = vor.u32 %v15846_v38, %v12297_v43 }
 0x204   : > { %8758 = vmatpush.bf16.msra.mxu2 %v12588_v12  ;;  %v15910_v53 = vld [vmem:[%s16889_s26 + $0x1264] sm:$0xf]  ;;  %v12553_v58 = vld [vmem:[%s16889_s26 + $0x1270] sm:$0xf0]  ;;  %v12428_v56 = vor.u32 %v15878_v20, %v12425_v52 }
 0x205   : > { %8771 = vmatpush.bf16.msra.mxu3 %v12716_v28  ;;  %v15942_v25 = vld [vmem:[%s16889_s26 + $0x1364] sm:$0xf]  ;;  %v12681_v54 = vld [vmem:[%s16889_s26 + $0x1370] sm:$0xf0]  ;;  %v12556_v11 = vor.u32 %v15910_v53, %v12553_v58 }
 0x206   : > { %8733 = vmatpush.bf16.msra.mxu0 %v12316_v35  ;;  %v15842_v24 = vld [vmem:[%s16889_s26 + $0x1044] sm:$0xf]  ;;  %v12281_v57 = vld [vmem:[%s16889_s26 + $0x1050] sm:$0xf0]  ;;  %v12684_v12 = vor.u32 %v15942_v25, %v12681_v54  ;;  %v17999_v35 = vadd.f32 %v8518_v30, %v8506_v29 }
 0x207   : > { %8746 = vmatpush.bf16.msra.mxu1 %v12444_v46  ;;  %v15874_v62 = vld [vmem:[%s16889_s26 + $0x1144] sm:$0xf]  ;;  %v12409_v7 = vld [vmem:[%s16889_s26 + $0x1150] sm:$0xf0]  ;;  %v12284_v33 = vor.u32 %v15842_v24, %v12281_v57 }
 0x208   : > { %8759 = vmatpush.bf16.msra.mxu2 %v12572_v51  ;;  %v15906_v26 = vld [vmem:[%s16889_s26 + $0x1244] sm:$0xf]  ;;  %v12537_v28 = vld [vmem:[%s16889_s26 + $0x1250] sm:$0xf0]  ;;  %v12412_v37 = vor.u32 %v15874_v62, %v12409_v7 }
 0x209   : > { %8772 = vmatpush.bf16.msra.mxu3 %v12700_v44  ;;  %v15938_v31 = vld [vmem:[%s16889_s26 + $0x1344] sm:$0xf]  ;;  %v12665_v32 = vld [vmem:[%s16889_s26 + $0x1350] sm:$0xf0]  ;;  %v12540_v46 = vor.u32 %v15906_v26, %v12537_v28  ;;  %v8507_v28 = vpop.f32.mrf.mxu2 }
 0x20a   : > { %8734 = vmatpush.bf16.msra.mxu0 %v12300_v55  ;;  %v15838_v51 = vld [vmem:[%s16889_s26 + $0x1024] sm:$0xf]  ;;  %v12265_v38 = vld [vmem:[%s16889_s26 + $0x1030] sm:$0xf0]  ;;  %v12668_v20 = vor.u32 %v15938_v31, %v12665_v32  ;;  %v8520_v32 = vpop.f32.mrf.mxu3 }
 0x20b   : > { %8747 = vmatpush.bf16.msra.mxu1 %v12428_v56  ;;  %v15870_v43 = vld [vmem:[%s16889_s26 + $0x1124] sm:$0xf]  ;;  %v12393_v44 = vld [vmem:[%s16889_s26 + $0x1130] sm:$0xf0]  ;;  %v12268_v25 = vor.u32 %v15838_v51, %v12265_v38 }
 0x20c   : > { %8760 = vmatpush.bf16.msra.mxu2 %v12556_v11  ;;  %v15902_v45 = vld [vmem:[%s16889_s26 + $0x1224] sm:$0xf]  ;;  %v12521_v52 = vld [vmem:[%s16889_s26 + $0x1230] sm:$0xf0]  ;;  %v12396_v56 = vor.u32 %v15870_v43, %v12393_v44 }
 0x20d   : > { %8773 = vmatpush.bf16.msra.mxu3 %v12684_v12  ;;  %v15934_v53 = vld [vmem:[%s16889_s26 + $0x1324] sm:$0xf]  ;;  %v12649_v58 = vld [vmem:[%s16889_s26 + $0x1330] sm:$0xf0]  ;;  %v12524_v11 = vor.u32 %v15902_v45, %v12521_v52 }
 0x20e   : > { %8735 = vmatpush.bf16.msra.mxu0 %v12284_v33  ;;  %v15834_v54 = vld [vmem:[%s16889_s26 + $0x1004] sm:$0xf]  ;;  %v12249_v55 = vld [vmem:[%s16889_s26 + $0x1010] sm:$0xf0]  ;;  %v12652_v12 = vor.u32 %v15934_v53, %v12649_v58 }
 0x20f   : > { %8748 = vmatpush.bf16.msra.mxu1 %v12412_v37  ;;  %v15866_v24 = vld [vmem:[%s16889_s26 + $0x1104] sm:$0xf]  ;;  %v12377_v57 = vld [vmem:[%s16889_s26 + $0x1110] sm:$0xf0]  ;;  %v12252_v42 = vor.u32 %v15834_v54, %v12249_v55 }
 0x210   : > { %8761 = vmatpush.bf16.msra.mxu2 %v12540_v46  ;;  %v15898_v62 = vld [vmem:[%s16889_s26 + $0x1204] sm:$0xf]  ;;  %v12505_v6 = vld [vmem:[%s16889_s26 + $0x1210] sm:$0xf0]  ;;  %v12380_v46 = vor.u32 %v15866_v24, %v12377_v57 }
 0x211   : > { %8774 = vmatpush.bf16.msra.mxu3 %v12668_v20  ;;  %v15930_v7 = vld [vmem:[%s16889_s26 + $0x1304] sm:$0xf]  ;;  %v12633_v26 = vld [vmem:[%s16889_s26 + $0x1310] sm:$0xf0]  ;;  %v12508_v51 = vor.u32 %v15898_v62, %v12505_v6 }
 0x212   : > { %v15990_v29 = vld [vmem:[%s16889_s26 + $0x14e4] sm:$0xf]  ;;  %v12873_v30 = vld [vmem:[%s16889_s26 + $0x14f0] sm:$0xf0]  ;;  %8736 = vmatpush.bf16.msra.mxu0 %v12268_v25  ;;  %v12636_v20 = vor.u32 %v15930_v7, %v12633_v26 }
 0x213   : > { %v16022_v31 = vld [vmem:[%s16889_s26 + $0x15e4] sm:$0xf]  ;;  %v13001_v33 = vld [vmem:[%s16889_s26 + $0x15f0] sm:$0xf0]  ;;  %8749 = vmatpush.bf16.msra.mxu1 %v12396_v56  ;;  %v12876_v44 = vor.u32 %v15990_v29, %v12873_v30 }
 0x214   : > { %v16054_v34 = vld [vmem:[%s16889_s26 + $0x16e4] sm:$0xf]  ;;  %v13129_v37 = vld [vmem:[%s16889_s26 + $0x16f0] sm:$0xf0]  ;;  %8762 = vmatpush.bf16.msra.mxu2 %v12524_v11  ;;  %v13004_v45 = vor.u32 %v16022_v31, %v13001_v33 }
 0x215   : > { %v16086_v38 = vld [vmem:[%s16889_s26 + $0x17e4] sm:$0xf]  ;;  %v13257_v43 = vld [vmem:[%s16889_s26 + $0x17f0] sm:$0xf0]  ;;  %8775 = vmatpush.bf16.msra.mxu3 %v12652_v12  ;;  %v13132_v52 = vor.u32 %v16054_v34, %v13129_v37 }
 0x216   : > { %v15986_v53 = vld [vmem:[%s16889_s26 + $0x14c4] sm:$0xf]  ;;  %v12857_v58 = vld [vmem:[%s16889_s26 + $0x14d0] sm:$0xf0]  ;;  %8737 = vmatpush.bf16.msra.mxu0 %v12252_v42  ;;  %v13260_v54 = vor.u32 %v16086_v38, %v13257_v43 }
 0x217   : > { %v16018_v25 = vld [vmem:[%s16889_s26 + $0x15c4] sm:$0xf]  ;;  %v12985_v55 = vld [vmem:[%s16889_s26 + $0x15d0] sm:$0xf0]  ;;  %8750 = vmatpush.bf16.msra.mxu1 %v12380_v46  ;;  %v12860_v62 = vor.u32 %v15986_v53, %v12857_v58 }
 0x218   : > { %v16050_v56 = vld [vmem:[%s16889_s26 + $0x16c4] sm:$0xf]  ;;  %v13113_v11 = vld [vmem:[%s16889_s26 + $0x16d0] sm:$0xf0]  ;;  %8763 = vmatpush.bf16.msra.mxu2 %v12508_v51  ;;  %v12988_v12 = vor.u32 %v16018_v25, %v12985_v55 }
 0x219   : > { %v16082_v24 = vld [vmem:[%s16889_s26 + $0x17c4] sm:$0xf]  ;;  %v13241_v57 = vld [vmem:[%s16889_s26 + $0x17d0] sm:$0xf0]  ;;  %8776 = vmatpush.bf16.msra.mxu3 %v12636_v20  ;;  %v13116_v6 = vor.u32 %v16050_v56, %v13113_v11  ;;  %8738 = vmatmul.bf16.vlgmr.msra.gmra.mxu0 %v17296_v10 }
 0x21a   : > { %8782 = vmatpush.bf16.msrb.mxu0 %v12876_v44  ;;  %v15982_v7 = vld [vmem:[%s16889_s26 + $0x14a4] sm:$0xf]  ;;  %v12841_v26 = vld [vmem:[%s16889_s26 + $0x14b0] sm:$0xf0]  ;;  %v13244_v29 = vor.u32 %v16082_v24, %v13241_v57  ;;  %8751 = vmatmul.bf16.vlgmr.msra.gmra.mxu1 %v17302_v15 }
 0x21b   : > { %8795 = vmatpush.bf16.msrb.mxu1 %v13004_v45  ;;  %v16014_v28 = vld [vmem:[%s16889_s26 + $0x15a4] sm:$0xf]  ;;  %v12969_v30 = vld [vmem:[%s16889_s26 + $0x15b0] sm:$0xf0]  ;;  %8764 = vmatmul.bf16.vlgmr.msra.gmra.mxu2 %v17300_v14  ;;  %v12844_v34 = vor.u32 %v15982_v7, %v12841_v26 }
 0x21c   : > { %8808 = vmatpush.bf16.msrb.mxu2 %v13132_v52  ;;  %v16046_v31 = vld [vmem:[%s16889_s26 + $0x16a4] sm:$0xf]  ;;  %v13097_v32 = vld [vmem:[%s16889_s26 + $0x16b0] sm:$0xf0]  ;;  %8777 = vmatmul.bf16.vlgmr.msra.gmra.mxu3 %v17304_v19  ;;  %v12972_v37 = vor.u32 %v16014_v28, %v12969_v30 }
 0x21d   : > { %8821 = vmatpush.bf16.msrb.mxu3 %v13260_v54  ;;  %v16078_v42 = vld [vmem:[%s16889_s26 + $0x17a4] sm:$0xf]  ;;  %v13225_v33 = vld [vmem:[%s16889_s26 + $0x17b0] sm:$0xf0]  ;;  %v13100_v46 = vor.u32 %v16046_v31, %v13097_v32  ;;  %v8531_v54 = vpop.f32.mrf.mxu0 }
 0x21e   : > { %8783 = vmatpush.bf16.msrb.mxu0 %v12860_v62  ;;  %v15978_v51 = vld [vmem:[%s16889_s26 + $0x1484] sm:$0xf]  ;;  %v12825_v38 = vld [vmem:[%s16889_s26 + $0x1490] sm:$0xf0]  ;;  %v13228_v20 = vor.u32 %v16078_v42, %v13225_v33  ;;  %v8544_v62 = vpop.f32.mrf.mxu1 }
 0x21f   : > { %8796 = vmatpush.bf16.msrb.mxu1 %v12988_v12  ;;  %v16010_v43 = vld [vmem:[%s16889_s26 + $0x1584] sm:$0xf]  ;;  %v12953_v44 = vld [vmem:[%s16889_s26 + $0x1590] sm:$0xf0]  ;;  %v12828_v25 = vor.u32 %v15978_v51, %v12825_v38  ;;  %v8545_v28 = vadd.f32 %v8544_v62, %v8531_v54 }
 0x220   : > { %8809 = vmatpush.bf16.msrb.mxu2 %v13116_v6  ;;  %v16042_v45 = vld [vmem:[%s16889_s26 + $0x1684] sm:$0xf]  ;;  %v13081_v52 = vld [vmem:[%s16889_s26 + $0x1690] sm:$0xf0]  ;;  %v12956_v55 = vor.u32 %v16010_v43, %v12953_v44 }
 0x221   : > { %8822 = vmatpush.bf16.msrb.mxu3 %v13244_v29  ;;  %v16074_v53 = vld [vmem:[%s16889_s26 + $0x1784] sm:$0xf]  ;;  %v13209_v58 = vld [vmem:[%s16889_s26 + $0x1790] sm:$0xf0]  ;;  %v13084_v56 = vor.u32 %v16042_v45, %v13081_v52  ;;  %v8570_v45 = vpop.f32.mrf.mxu3 }
 0x222   : > { %8784 = vmatpush.bf16.msrb.mxu0 %v12844_v34  ;;  %v15974_v11 = vld [vmem:[%s16889_s26 + $0x1464] sm:$0xf]  ;;  %v12809_v24 = vld [vmem:[%s16889_s26 + $0x1470] sm:$0xf0]  ;;  %v13212_v12 = vor.u32 %v16074_v53, %v13209_v58 }
 0x223   : > { %8797 = vmatpush.bf16.msrb.mxu1 %v12972_v37  ;;  %v16006_v57 = vld [vmem:[%s16889_s26 + $0x1564] sm:$0xf]  ;;  %v12937_v6 = vld [vmem:[%s16889_s26 + $0x1570] sm:$0xf0]  ;;  %v12812_v31 = vor.u32 %v15974_v11, %v12809_v24 }
 0x224   : > { %8810 = vmatpush.bf16.msrb.mxu2 %v13100_v46  ;;  %v16038_v7 = vld [vmem:[%s16889_s26 + $0x1664] sm:$0xf]  ;;  %v13065_v26 = vld [vmem:[%s16889_s26 + $0x1670] sm:$0xf0]  ;;  %v12940_v32 = vor.u32 %v16006_v57, %v12937_v6  ;;  %v8557_v46 = vpop.f32.mrf.mxu2 }
 0x225   : > { %8823 = vmatpush.bf16.msrb.mxu3 %v13228_v20  ;;  %v16070_v29 = vld [vmem:[%s16889_s26 + $0x1764] sm:$0xf]  ;;  %v13193_v30 = vld [vmem:[%s16889_s26 + $0x1770] sm:$0xf0]  ;;  %v13068_v42 = vor.u32 %v16038_v7, %v13065_v26  ;;  %v8558_v44 = vadd.f32 %v8557_v46, %v8545_v28  ;;  %v8533_v54 = vpop.f32.mrf.mxu0 }
 0x226   : > { %8785 = vmatpush.bf16.msrb.mxu0 %v12828_v25  ;;  %v15970_v33 = vld [vmem:[%s16889_s26 + $0x1444] sm:$0xf]  ;;  %v12793_v34 = vld [vmem:[%s16889_s26 + $0x1450] sm:$0xf0]  ;;  %v13196_v51 = vor.u32 %v16070_v29, %v13193_v30  ;;  %v8546_v62 = vpop.f32.mrf.mxu1 }
 0x227   : > { %8798 = vmatpush.bf16.msrb.mxu1 %v12956_v55  ;;  %v16002_v37 = vld [vmem:[%s16889_s26 + $0x1544] sm:$0xf]  ;;  %v12921_v38 = vld [vmem:[%s16889_s26 + $0x1550] sm:$0xf0]  ;;  %v12796_v58 = vor.u32 %v15970_v33, %v12793_v34  ;;  %v18069_v25 = vadd.f32 %v8570_v45, %v8558_v44 }
 0x228   : > { %8811 = vmatpush.bf16.msrb.mxu2 %v13084_v56  ;;  %v16034_v43 = vld [vmem:[%s16889_s26 + $0x1644] sm:$0xf]  ;;  %v13049_v20 = vld [vmem:[%s16889_s26 + $0x1650] sm:$0xf0]  ;;  %v12924_v55 = vor.u32 %v16002_v37, %v12921_v38 }
 0x229   : > { %8824 = vmatpush.bf16.msrb.mxu3 %v13212_v12  ;;  %v16066_v52 = vld [vmem:[%s16889_s26 + $0x1744] sm:$0xf]  ;;  %v13177_v53 = vld [vmem:[%s16889_s26 + $0x1750] sm:$0xf0]  ;;  %v13052_v56 = vor.u32 %v16034_v43, %v13049_v20  ;;  %v8572_v45 = vpop.f32.mrf.mxu3 }
 0x22a   : > { %8786 = vmatpush.bf16.msrb.mxu0 %v12812_v31  ;;  %v15966_v11 = vld [vmem:[%s16889_s26 + $0x1424] sm:$0xf]  ;;  %v12777_v24 = vld [vmem:[%s16889_s26 + $0x1430] sm:$0xf0]  ;;  %v13180_v12 = vor.u32 %v16066_v52, %v13177_v53 }
 0x22b   : > { %8799 = vmatpush.bf16.msrb.mxu1 %v12940_v32  ;;  %v15998_v57 = vld [vmem:[%s16889_s26 + $0x1524] sm:$0xf]  ;;  %v12905_v6 = vld [vmem:[%s16889_s26 + $0x1530] sm:$0xf0]  ;;  %v12780_v30 = vor.u32 %v15966_v11, %v12777_v24 }
 0x22c   : > { %8812 = vmatpush.bf16.msrb.mxu2 %v13068_v42  ;;  %v16030_v7 = vld [vmem:[%s16889_s26 + $0x1624] sm:$0xf]  ;;  %v13033_v26 = vld [vmem:[%s16889_s26 + $0x1630] sm:$0xf0]  ;;  %v12908_v42 = vor.u32 %v15998_v57, %v12905_v6 }
 0x22d   : > { %8825 = vmatpush.bf16.msrb.mxu3 %v13196_v51  ;;  %v16062_v28 = vld [vmem:[%s16889_s26 + $0x1724] sm:$0xf]  ;;  %v13161_v29 = vld [vmem:[%s16889_s26 + $0x1730] sm:$0xf0]  ;;  %v13036_v33 = vor.u32 %v16030_v7, %v13033_v26  ;;  %v8559_v51 = vpop.f32.mrf.mxu2 }
 0x22e   : > { %8787 = vmatpush.bf16.msrb.mxu0 %v12796_v58  ;;  %v15962_v31 = vld [vmem:[%s16889_s26 + $0x1404] sm:$0xf]  ;;  %v12761_v32 = vld [vmem:[%s16889_s26 + $0x1410] sm:$0xf0]  ;;  %v13164_v38 = vor.u32 %v16062_v28, %v13161_v29 }
 0x22f   : > { %8800 = vmatpush.bf16.msrb.mxu1 %v12924_v55  ;;  %v15994_v34 = vld [vmem:[%s16889_s26 + $0x1504] sm:$0xf]  ;;  %v12889_v37 = vld [vmem:[%s16889_s26 + $0x1510] sm:$0xf0]  ;;  %v12764_v54 = vor.u32 %v15962_v31, %v12761_v32 }
 0x230   : > { %8813 = vmatpush.bf16.msrb.mxu2 %v13052_v56  ;;  %v16026_v46 = vld [vmem:[%s16889_s26 + $0x1604] sm:$0xf]  ;;  %v13017_v43 = vld [vmem:[%s16889_s26 + $0x1610] sm:$0xf0]  ;;  %v12892_v24 = vor.u32 %v15994_v34, %v12889_v37 }
 0x231   : > { %8826 = vmatpush.bf16.msrb.mxu3 %v13180_v12  ;;  %v16058_v20 = vld [vmem:[%s16889_s26 + $0x1704] sm:$0xf]  ;;  %v13145_v44 = vld [vmem:[%s16889_s26 + $0x1710] sm:$0xf0]  ;;  %v13020_v57 = vor.u32 %v16026_v46, %v13017_v43 }
 0x232   : > { %v16118_v52 = vld [vmem:[%s16889_s26 + $0x18e4] sm:$0xf]  ;;  %v13385_v53 = vld [vmem:[%s16889_s26 + $0x18f0] sm:$0xf0]  ;;  %8788 = vmatpush.bf16.msrb.mxu0 %v12780_v30  ;;  %v13148_v6 = vor.u32 %v16058_v20, %v13145_v44 }
 0x233   : > { %v16150_v58 = vld [vmem:[%s16889_s26 + $0x19e4] sm:$0xf]  ;;  %v13513_v55 = vld [vmem:[%s16889_s26 + $0x19f0] sm:$0xf0]  ;;  %8801 = vmatpush.bf16.msrb.mxu1 %v12908_v42  ;;  %v13388_v7 = vor.u32 %v16118_v52, %v13385_v53 }
 0x234   : > { %v16182_v56 = vld [vmem:[%s16889_s26 + $0x1ae4] sm:$0xf]  ;;  %v13641_v11 = vld [vmem:[%s16889_s26 + $0x1af0] sm:$0xf0]  ;;  %8814 = vmatpush.bf16.msrb.mxu2 %v13036_v33  ;;  %v13516_v26 = vor.u32 %v16150_v58, %v13513_v55 }
 0x235   : > { %v16214_v62 = vld [vmem:[%s16889_s26 + $0x1be4] sm:$0xf]  ;;  %v13769_v12 = vld [vmem:[%s16889_s26 + $0x1bf0] sm:$0xf0]  ;;  %8827 = vmatpush.bf16.msrb.mxu3 %v13164_v38  ;;  %v13644_v28 = vor.u32 %v16182_v56, %v13641_v11 }
 0x236   : > { %v16114_v29 = vld [vmem:[%s16889_s26 + $0x18c4] sm:$0xf]  ;;  %v13369_v30 = vld [vmem:[%s16889_s26 + $0x18d0] sm:$0xf0]  ;;  %8789 = vmatpush.bf16.msrb.mxu0 %v12764_v54  ;;  %v13772_v32 = vor.u32 %v16214_v62, %v13769_v12 }
 0x237   : > { %v16146_v31 = vld [vmem:[%s16889_s26 + $0x19c4] sm:$0xf]  ;;  %v13497_v42 = vld [vmem:[%s16889_s26 + $0x19d0] sm:$0xf0]  ;;  %8802 = vmatpush.bf16.msrb.mxu1 %v12892_v24  ;;  %v13372_v51 = vor.u32 %v16114_v29, %v13369_v30 }
 0x238   : > { %v16178_v33 = vld [vmem:[%s16889_s26 + $0x1ac4] sm:$0xf]  ;;  %v13625_v34 = vld [vmem:[%s16889_s26 + $0x1ad0] sm:$0xf0]  ;;  %8815 = vmatpush.bf16.msrb.mxu2 %v13020_v57  ;;  %v13500_v38 = vor.u32 %v16146_v31, %v13497_v42  ;;  %v8583_v42 = vpop.f32.mrf.mxu0 }
 0x239   : > { %v16210_v37 = vld [vmem:[%s16889_s26 + $0x1bc4] sm:$0xf]  ;;  %v13753_v46 = vld [vmem:[%s16889_s26 + $0x1bd0] sm:$0xf0]  ;;  %8828 = vmatpush.bf16.msrb.mxu3 %v13148_v6  ;;  %v13628_v43 = vor.u32 %v16178_v33, %v13625_v34  ;;  %8790 = vmatmul.bf16.vlgmr.msrb.gmra.mxu0 %v17362_v4 }
 0x23a   : > { %8834 = vmatpush.bf16.msra.mxu0 %v13388_v7  ;;  %v16110_v20 = vld [vmem:[%s16889_s26 + $0x18a4] sm:$0xf]  ;;  %v13353_v44 = vld [vmem:[%s16889_s26 + $0x18b0] sm:$0xf0]  ;;  %v13756_v52 = vor.u32 %v16210_v37, %v13753_v46  ;;  %8803 = vmatmul.bf16.vlgmr.msrb.gmra.mxu1 %v17366_v8 }
 0x23b   : > { %8847 = vmatpush.bf16.msra.mxu1 %v13516_v26  ;;  %v16142_v45 = vld [vmem:[%s16889_s26 + $0x19a4] sm:$0xf]  ;;  %v13481_v53 = vld [vmem:[%s16889_s26 + $0x19b0] sm:$0xf0]  ;;  %8816 = vmatmul.bf16.vlgmr.msrb.gmra.mxu2 %v17364_v5  ;;  %v13356_v11 = vor.u32 %v16110_v20, %v13353_v44 }
 0x23c   : > { %8860 = vmatpush.bf16.msra.mxu2 %v13644_v28  ;;  %v16174_v58 = vld [vmem:[%s16889_s26 + $0x1aa4] sm:$0xf]  ;;  %v13609_v54 = vld [vmem:[%s16889_s26 + $0x1ab0] sm:$0xf0]  ;;  %8829 = vmatmul.bf16.vlgmr.msrb.gmra.mxu3 %v17368_v9  ;;  %v13484_v24 = vor.u32 %v16142_v45, %v13481_v53 }
 0x23d   : > { %8873 = vmatpush.bf16.msra.mxu3 %v13772_v32  ;;  %v16206_v55 = vld [vmem:[%s16889_s26 + $0x1ba4] sm:$0xf]  ;;  %v13737_v56 = vld [vmem:[%s16889_s26 + $0x1bb0] sm:$0xf0]  ;;  %v13612_v57 = vor.u32 %v16174_v58, %v13609_v54 }
 0x23e   : > { %8835 = vmatpush.bf16.msra.mxu0 %v13372_v51  ;;  %v16106_v62 = vld [vmem:[%s16889_s26 + $0x1884] sm:$0xf]  ;;  %v13337_v12 = vld [vmem:[%s16889_s26 + $0x1890] sm:$0xf0]  ;;  %v13740_v7 = vor.u32 %v16206_v55, %v13737_v56 }
 0x23f   : > { %8848 = vmatpush.bf16.msra.mxu1 %v13500_v38  ;;  %v16138_v6 = vld [vmem:[%s16889_s26 + $0x1984] sm:$0xf]  ;;  %v13465_v26 = vld [vmem:[%s16889_s26 + $0x1990] sm:$0xf0]  ;;  %v13340_v32 = vor.u32 %v16106_v62, %v13337_v12  ;;  %v8584_v38 = vadd.f32 %v8583_v42, %v18069_v25  ;;  %v8609_v62 = vpop.f32.mrf.mxu2 }
 0x240   : > { %8861 = vmatpush.bf16.msra.mxu2 %v13628_v43  ;;  %v16170_v28 = vld [vmem:[%s16889_s26 + $0x1a84] sm:$0xf]  ;;  %v13593_v29 = vld [vmem:[%s16889_s26 + $0x1a90] sm:$0xf0]  ;;  %v13468_v33 = vor.u32 %v16138_v6, %v13465_v26  ;;  %v8596_v43 = vpop.f32.mrf.mxu1 }
 0x241   : > { %8874 = vmatpush.bf16.msra.mxu3 %v13756_v52  ;;  %v16202_v30 = vld [vmem:[%s16889_s26 + $0x1b84] sm:$0xf]  ;;  %v13721_v31 = vld [vmem:[%s16889_s26 + $0x1b90] sm:$0xf0]  ;;  %v13596_v34 = vor.u32 %v16170_v28, %v13593_v29  ;;  %v8597_v54 = vadd.f32 %v8596_v43, %v8584_v38  ;;  %v8622_v29 = vpop.f32.mrf.mxu3 }
 0x242   : > { %8836 = vmatpush.bf16.msra.mxu0 %v13356_v11  ;;  %v16102_v37 = vld [vmem:[%s16889_s26 + $0x1864] sm:$0xf]  ;;  %v13321_v46 = vld [vmem:[%s16889_s26 + $0x1870] sm:$0xf0]  ;;  %v13724_v20 = vor.u32 %v16202_v30, %v13721_v31 }
 0x243   : > { %8849 = vmatpush.bf16.msra.mxu1 %v13484_v24  ;;  %v16134_v51 = vld [vmem:[%s16889_s26 + $0x1964] sm:$0xf]  ;;  %v13449_v44 = vld [vmem:[%s16889_s26 + $0x1970] sm:$0xf0]  ;;  %v13324_v55 = vor.u32 %v16102_v37, %v13321_v46  ;;  %v8610_v28 = vadd.f32 %v8609_v62, %v8597_v54 }
 0x244   : > { %8862 = vmatpush.bf16.msra.mxu2 %v13612_v57  ;;  %v16166_v45 = vld [vmem:[%s16889_s26 + $0x1a64] sm:$0xf]  ;;  %v13577_v52 = vld [vmem:[%s16889_s26 + $0x1a70] sm:$0xf0]  ;;  %v13452_v25 = vor.u32 %v16134_v51, %v13449_v44 }
 0x245   : > { %8875 = vmatpush.bf16.msra.mxu3 %v13740_v7  ;;  %v16198_v53 = vld [vmem:[%s16889_s26 + $0x1b64] sm:$0xf]  ;;  %v13705_v58 = vld [vmem:[%s16889_s26 + $0x1b70] sm:$0xf0]  ;;  %v13580_v56 = vor.u32 %v16166_v45, %v13577_v52  ;;  %v18140_v42 = vadd.f32 %v8622_v29, %v8610_v28 }
 0x246   : > { %8837 = vmatpush.bf16.msra.mxu0 %v13340_v32  ;;  %v16098_v11 = vld [vmem:[%s16889_s26 + $0x1844] sm:$0xf]  ;;  %v13305_v24 = vld [vmem:[%s16889_s26 + $0x1850] sm:$0xf0]  ;;  %v13708_v12 = vor.u32 %v16198_v53, %v13705_v58 }
 0x247   : > { %8850 = vmatpush.bf16.msra.mxu1 %v13468_v33  ;;  %v16130_v57 = vld [vmem:[%s16889_s26 + $0x1944] sm:$0xf]  ;;  %v13433_v6 = vld [vmem:[%s16889_s26 + $0x1950] sm:$0xf0]  ;;  %v13308_v32 = vor.u32 %v16098_v11, %v13305_v24  ;;  %v8585_v33 = vpop.f32.mrf.mxu0 }
 0x248   : > { %8863 = vmatpush.bf16.msra.mxu2 %v13596_v34  ;;  %v16162_v7 = vld [vmem:[%s16889_s26 + $0x1a44] sm:$0xf]  ;;  %v13561_v26 = vld [vmem:[%s16889_s26 + $0x1a50] sm:$0xf0]  ;;  %v13436_v34 = vor.u32 %v16130_v57, %v13433_v6  ;;  %v8598_v43 = vpop.f32.mrf.mxu1 }
 0x249   : > { %8876 = vmatpush.bf16.msra.mxu3 %v13724_v20  ;;  %v16194_v30 = vld [vmem:[%s16889_s26 + $0x1b44] sm:$0xf]  ;;  %v13689_v31 = vld [vmem:[%s16889_s26 + $0x1b50] sm:$0xf0]  ;;  %v13564_v37 = vor.u32 %v16162_v7, %v13561_v26  ;;  %v8624_v29 = vpop.f32.mrf.mxu3 }
 0x24a   : > { %8838 = vmatpush.bf16.msra.mxu0 %v13324_v55  ;;  %v16094_v46 = vld [vmem:[%s16889_s26 + $0x1824] sm:$0xf]  ;;  %v13289_v51 = vld [vmem:[%s16889_s26 + $0x1830] sm:$0xf0]  ;;  %v13692_v20 = vor.u32 %v16194_v30, %v13689_v31 }
 0x24b   : > { %8851 = vmatpush.bf16.msra.mxu1 %v13452_v25  ;;  %v16126_v38 = vld [vmem:[%s16889_s26 + $0x1924] sm:$0xf]  ;;  %v13417_v44 = vld [vmem:[%s16889_s26 + $0x1930] sm:$0xf0]  ;;  %v13292_v54 = vor.u32 %v16094_v46, %v13289_v51 }
 0x24c   : > { %8864 = vmatpush.bf16.msra.mxu2 %v13580_v56  ;;  %v16158_v45 = vld [vmem:[%s16889_s26 + $0x1a24] sm:$0xf]  ;;  %v13545_v52 = vld [vmem:[%s16889_s26 + $0x1a30] sm:$0xf0]  ;;  %v13420_v56 = vor.u32 %v16126_v38, %v13417_v44 }
 0x24d   : > { %8877 = vmatpush.bf16.msra.mxu3 %v13708_v12  ;;  %v16190_v53 = vld [vmem:[%s16889_s26 + $0x1b24] sm:$0xf]  ;;  %v13673_v58 = vld [vmem:[%s16889_s26 + $0x1b30] sm:$0xf0]  ;;  %v13548_v11 = vor.u32 %v16158_v45, %v13545_v52  ;;  %v8611_v12 = vpop.f32.mrf.mxu2 }
 0x24e   : > { %8839 = vmatpush.bf16.msra.mxu0 %v13308_v32  ;;  %v16090_v55 = vld [vmem:[%s16889_s26 + $0x1804] sm:$0xf]  ;;  %v13273_v25 = vld [vmem:[%s16889_s26 + $0x1810] sm:$0xf0]  ;;  %v13676_v6 = vor.u32 %v16190_v53, %v13673_v58 }
 0x24f   : > { %8852 = vmatpush.bf16.msra.mxu1 %v13436_v34  ;;  %v16122_v24 = vld [vmem:[%s16889_s26 + $0x1904] sm:$0xf]  ;;  %v13401_v57 = vld [vmem:[%s16889_s26 + $0x1910] sm:$0xf0]  ;;  %v13276_v33 = vor.u32 %v16090_v55, %v13273_v25 }
 0x250   : > { %8865 = vmatpush.bf16.msra.mxu2 %v13564_v37  ;;  %v16154_v62 = vld [vmem:[%s16889_s26 + $0x1a04] sm:$0xf]  ;;  %v13529_v7 = vld [vmem:[%s16889_s26 + $0x1a10] sm:$0xf0]  ;;  %v13404_v51 = vor.u32 %v16122_v24, %v13401_v57 }
 0x251   : > { %8878 = vmatpush.bf16.msra.mxu3 %v13692_v20  ;;  %v16186_v26 = vld [vmem:[%s16889_s26 + $0x1b04] sm:$0xf]  ;;  %v13657_v28 = vld [vmem:[%s16889_s26 + $0x1b10] sm:$0xf0]  ;;  %v13532_v38 = vor.u32 %v16154_v62, %v13529_v7 }
 0x252   : > { %v16246_v30 = vld [vmem:[%s16889_s26 + $0x1ce4] sm:$0xf]  ;;  %v13897_v31 = vld [vmem:[%s16889_s26 + $0x1cf0] sm:$0xf0]  ;;  %8840 = vmatpush.bf16.msra.mxu0 %v13292_v54  ;;  %v13660_v44 = vor.u32 %v16186_v26, %v13657_v28 }
 0x253   : > { %v16278_v32 = vld [vmem:[%s16889_s26 + $0x1de4] sm:$0xf]  ;;  %v14025_v34 = vld [vmem:[%s16889_s26 + $0x1df0] sm:$0xf0]  ;;  %8853 = vmatpush.bf16.msra.mxu1 %v13420_v56  ;;  %v13900_v45 = vor.u32 %v16246_v30, %v13897_v31 }
 0x254   : > { %v16310_v37 = vld [vmem:[%s16889_s26 + $0x1ee4] sm:$0xf]  ;;  %v14153_v46 = vld [vmem:[%s16889_s26 + $0x1ef0] sm:$0xf0]  ;;  %8866 = vmatpush.bf16.msra.mxu2 %v13548_v11  ;;  %v14028_v52 = vor.u32 %v16278_v32, %v14025_v34 }
 0x255   : > { %v16342_v43 = vld [vmem:[%s16889_s26 + $0x1fe4] sm:$0xf]  ;;  %v14281_v20 = vld [vmem:[%s16889_s26 + $0x1ff0] sm:$0xf0]  ;;  %8879 = vmatpush.bf16.msra.mxu3 %v13676_v6  ;;  %v14156_v53 = vor.u32 %v16310_v37, %v14153_v46 }
 0x256   : > { %v16242_v58 = vld [vmem:[%s16889_s26 + $0x1cc4] sm:$0xf]  ;;  %v13881_v54 = vld [vmem:[%s16889_s26 + $0x1cd0] sm:$0xf0]  ;;  %8841 = vmatpush.bf16.msra.mxu0 %v13276_v33  ;;  %v14284_v25 = vor.u32 %v16342_v43, %v14281_v20 }
 0x257   : > { %v16274_v55 = vld [vmem:[%s16889_s26 + $0x1dc4] sm:$0xf]  ;;  %v14009_v56 = vld [vmem:[%s16889_s26 + $0x1dd0] sm:$0xf0]  ;;  %8854 = vmatpush.bf16.msra.mxu1 %v13404_v51  ;;  %v13884_v12 = vor.u32 %v16242_v58, %v13881_v54  ;;  %v8635_v54 = vpop.f32.mrf.mxu0 }
 0x258   : > { %v16306_v11 = vld [vmem:[%s16889_s26 + $0x1ec4] sm:$0xf]  ;;  %v14137_v24 = vld [vmem:[%s16889_s26 + $0x1ed0] sm:$0xf0]  ;;  %8867 = vmatpush.bf16.msra.mxu2 %v13532_v38  ;;  %v14012_v6 = vor.u32 %v16274_v55, %v14009_v56  ;;  %v8636_v56 = vadd.f32 %v8635_v54, %v18140_v42 }
 0x259   : > { %v16338_v57 = vld [vmem:[%s16889_s26 + $0x1fc4] sm:$0xf]  ;;  %v14265_v62 = vld [vmem:[%s16889_s26 + $0x1fd0] sm:$0xf0]  ;;  %8880 = vmatpush.bf16.msra.mxu3 %v13660_v44  ;;  %v14140_v7 = vor.u32 %v16306_v11, %v14137_v24  ;;  %8842 = vmatmul.bf16.vlgmr.msra.gmra.mxu0 %v17454_v36  ;;  %v8648_v24 = vpop.f32.mrf.mxu1 }
 0x25a   : > { %8886 = vmatpush.bf16.msrb.mxu0 %v13900_v45  ;;  %v16238_v26 = vld [vmem:[%s16889_s26 + $0x1ca4] sm:$0xf]  ;;  %v13865_v28 = vld [vmem:[%s16889_s26 + $0x1cb0] sm:$0xf0]  ;;  %v14268_v30 = vor.u32 %v16338_v57, %v14265_v62  ;;  %8855 = vmatmul.bf16.vlgmr.msra.gmra.mxu1 %v17460_v40 }
 0x25b   : > { %8899 = vmatpush.bf16.msrb.mxu1 %v14028_v52  ;;  %v16270_v29 = vld [vmem:[%s16889_s26 + $0x1da4] sm:$0xf]  ;;  %v13993_v31 = vld [vmem:[%s16889_s26 + $0x1db0] sm:$0xf0]  ;;  %8868 = vmatmul.bf16.vlgmr.msra.gmra.mxu2 %v17458_v39  ;;  %v13868_v46 = vor.u32 %v16238_v26, %v13865_v28  ;;  %v8649_v28 = vadd.f32 %v8648_v24, %v8636_v56 }
 0x25c   : > { %8912 = vmatpush.bf16.msrb.mxu2 %v14156_v53  ;;  %v16302_v32 = vld [vmem:[%s16889_s26 + $0x1ea4] sm:$0xf]  ;;  %v14121_v33 = vld [vmem:[%s16889_s26 + $0x1eb0] sm:$0xf0]  ;;  %8881 = vmatmul.bf16.vlgmr.msra.gmra.mxu3 %v17462_v41  ;;  %v13996_v51 = vor.u32 %v16270_v29, %v13993_v31 }
 0x25d   : > { %8925 = vmatpush.bf16.msrb.mxu3 %v14284_v25  ;;  %v16334_v34 = vld [vmem:[%s16889_s26 + $0x1fa4] sm:$0xf]  ;;  %v14249_v37 = vld [vmem:[%s16889_s26 + $0x1fb0] sm:$0xf0]  ;;  %v14124_v38 = vor.u32 %v16302_v32, %v14121_v33 }
 0x25e   : > { %8887 = vmatpush.bf16.msrb.mxu0 %v13884_v12  ;;  %v16234_v43 = vld [vmem:[%s16889_s26 + $0x1c84] sm:$0xf]  ;;  %v13849_v20 = vld [vmem:[%s16889_s26 + $0x1c90] sm:$0xf0]  ;;  %v14252_v45 = vor.u32 %v16334_v34, %v14249_v37 }
 0x25f   : > { %8900 = vmatpush.bf16.msrb.mxu1 %v14012_v6  ;;  %v16266_v44 = vld [vmem:[%s16889_s26 + $0x1d84] sm:$0xf]  ;;  %v13977_v52 = vld [vmem:[%s16889_s26 + $0x1d90] sm:$0xf0]  ;;  %v13852_v11 = vor.u32 %v16234_v43, %v13849_v20  ;;  %v8661_v20 = vpop.f32.mrf.mxu2 }
 0x260   : > { %8913 = vmatpush.bf16.msrb.mxu2 %v14140_v7  ;;  %v16298_v53 = vld [vmem:[%s16889_s26 + $0x1e84] sm:$0xf]  ;;  %v14105_v58 = vld [vmem:[%s16889_s26 + $0x1e90] sm:$0xf0]  ;;  %v13980_v57 = vor.u32 %v16266_v44, %v13977_v52 }
 0x261   : > { %8926 = vmatpush.bf16.msrb.mxu3 %v14268_v30  ;;  %v16330_v55 = vld [vmem:[%s16889_s26 + $0x1f84] sm:$0xf]  ;;  %v14233_v25 = vld [vmem:[%s16889_s26 + $0x1f90] sm:$0xf0]  ;;  %v14108_v62 = vor.u32 %v16298_v53, %v14105_v58  ;;  %v8662_v53 = vadd.f32 %v8661_v20, %v8649_v28  ;;  %v8674_v58 = vpop.f32.mrf.mxu3 }
 0x262   : > { %8888 = vmatpush.bf16.msrb.mxu0 %v13868_v46  ;;  %v16230_v12 = vld [vmem:[%s16889_s26 + $0x1c64] sm:$0xf]  ;;  %v13833_v6 = vld [vmem:[%s16889_s26 + $0x1c70] sm:$0xf0]  ;;  %v14236_v26 = vor.u32 %v16330_v55, %v14233_v25  ;;  %v8637_v25 = vpop.f32.mrf.mxu0 }
 0x263   : > { %8901 = vmatpush.bf16.msrb.mxu1 %v13996_v51  ;;  %v16262_v7 = vld [vmem:[%s16889_s26 + $0x1d64] sm:$0xf]  ;;  %v13961_v29 = vld [vmem:[%s16889_s26 + $0x1d70] sm:$0xf0]  ;;  %v13836_v33 = vor.u32 %v16230_v12, %v13833_v6  ;;  %v18211_v24 = vadd.f32 %v8674_v58, %v8662_v53 }
 0x264   : > { %8914 = vmatpush.bf16.msrb.mxu2 %v14124_v38  ;;  %v16294_v30 = vld [vmem:[%s16889_s26 + $0x1e64] sm:$0xf]  ;;  %v14089_v42 = vld [vmem:[%s16889_s26 + $0x1e70] sm:$0xf0]  ;;  %v13964_v34 = vor.u32 %v16262_v7, %v13961_v29 }
 0x265   : > { %8927 = vmatpush.bf16.msrb.mxu3 %v14252_v45  ;;  %v16326_v31 = vld [vmem:[%s16889_s26 + $0x1f64] sm:$0xf]  ;;  %v14217_v32 = vld [vmem:[%s16889_s26 + $0x1f70] sm:$0xf0]  ;;  %v14092_v37 = vor.u32 %v16294_v30, %v14089_v42 }
 0x266   : > { %8889 = vmatpush.bf16.msrb.mxu0 %v13852_v11  ;;  %v16226_v46 = vld [vmem:[%s16889_s26 + $0x1c44] sm:$0xf]  ;;  %v13817_v51 = vld [vmem:[%s16889_s26 + $0x1c50] sm:$0xf0]  ;;  %v14220_v43 = vor.u32 %v16326_v31, %v14217_v32  ;;  %v8650_v11 = vpop.f32.mrf.mxu1 }
 0x267   : > { %8902 = vmatpush.bf16.msrb.mxu1 %v13980_v57  ;;  %v16258_v38 = vld [vmem:[%s16889_s26 + $0x1d44] sm:$0xf]  ;;  %v13945_v44 = vld [vmem:[%s16889_s26 + $0x1d50] sm:$0xf0]  ;;  %v13820_v56 = vor.u32 %v16226_v46, %v13817_v51  ;;  %v8663_v53 = vpop.f32.mrf.mxu2 }
 0x268   : > { %8915 = vmatpush.bf16.msrb.mxu2 %v14108_v62  ;;  %v16290_v45 = vld [vmem:[%s16889_s26 + $0x1e44] sm:$0xf]  ;;  %v14073_v52 = vld [vmem:[%s16889_s26 + $0x1e50] sm:$0xf0]  ;;  %v13948_v57 = vor.u32 %v16258_v38, %v13945_v44 }
 0x269   : > { %8928 = vmatpush.bf16.msrb.mxu3 %v14236_v26  ;;  %v16322_v54 = vld [vmem:[%s16889_s26 + $0x1f44] sm:$0xf]  ;;  %v14201_v55 = vld [vmem:[%s16889_s26 + $0x1f50] sm:$0xf0]  ;;  %v14076_v62 = vor.u32 %v16290_v45, %v14073_v52  ;;  %v8676_v25 = vpop.f32.mrf.mxu3 }
 0x26a   : > { %8890 = vmatpush.bf16.msrb.mxu0 %v13836_v33  ;;  %v16222_v12 = vld [vmem:[%s16889_s26 + $0x1c24] sm:$0xf]  ;;  %v13801_v6 = vld [vmem:[%s16889_s26 + $0x1c30] sm:$0xf0]  ;;  %v14204_v26 = vor.u32 %v16322_v54, %v14201_v55 }
 0x26b   : > { %8903 = vmatpush.bf16.msrb.mxu1 %v13964_v34  ;;  %v16254_v7 = vld [vmem:[%s16889_s26 + $0x1d24] sm:$0xf]  ;;  %v13929_v28 = vld [vmem:[%s16889_s26 + $0x1d30] sm:$0xf0]  ;;  %v13804_v32 = vor.u32 %v16222_v12, %v13801_v6 }
 0x26c   : > { %8916 = vmatpush.bf16.msrb.mxu2 %v14092_v37  ;;  %v16286_v29 = vld [vmem:[%s16889_s26 + $0x1e24] sm:$0xf]  ;;  %v14057_v30 = vld [vmem:[%s16889_s26 + $0x1e30] sm:$0xf0]  ;;  %v13932_v37 = vor.u32 %v16254_v7, %v13929_v28 }
 0x26d   : > { %8929 = vmatpush.bf16.msrb.mxu3 %v14220_v43  ;;  %v16318_v42 = vld [vmem:[%s16889_s26 + $0x1f24] sm:$0xf]  ;;  %v14185_v31 = vld [vmem:[%s16889_s26 + $0x1f30] sm:$0xf0]  ;;  %v14060_v46 = vor.u32 %v16286_v29, %v14057_v30 }
 0x26e   : > { %8891 = vmatpush.bf16.msrb.mxu0 %v13820_v56  ;;  %v16218_v33 = vld [vmem:[%s16889_s26 + $0x1c04] sm:$0xf]  ;;  %v13785_v34 = vld [vmem:[%s16889_s26 + $0x1c10] sm:$0xf0]  ;;  %v14188_v20 = vor.u32 %v16318_v42, %v14185_v31 }
 0x26f   : > { %8904 = vmatpush.bf16.msrb.mxu1 %v13948_v57  ;;  %v16250_v51 = vld [vmem:[%s16889_s26 + $0x1d04] sm:$0xf]  ;;  %v13913_v38 = vld [vmem:[%s16889_s26 + $0x1d10] sm:$0xf0]  ;;  %v13788_v56 = vor.u32 %v16218_v33, %v13785_v34 }
 0x270   : > { %8917 = vmatpush.bf16.msrb.mxu2 %v14076_v62  ;;  %v16282_v43 = vld [vmem:[%s16889_s26 + $0x1e04] sm:$0xf]  ;;  %v14041_v44 = vld [vmem:[%s16889_s26 + $0x1e10] sm:$0xf0]  ;;  %v13916_v12 = vor.u32 %v16250_v51, %v13913_v38 }
 0x271   : > { %8930 = vmatpush.bf16.msrb.mxu3 %v14204_v26  ;;  %v16314_v45 = vld [vmem:[%s16889_s26 + $0x1f04] sm:$0xf]  ;;  %v14169_v52 = vld [vmem:[%s16889_s26 + $0x1f10] sm:$0xf0]  ;;  %v14044_v6 = vor.u32 %v16282_v43, %v14041_v44 }
 0x272   : > { %v16374_v58 = vld [vmem:[%s16889_s26 + $0x20e4] sm:$0xf]  ;;  %v14409_v54 = vld [vmem:[%s16889_s26 + $0x20f0] sm:$0xf0]  ;;  %8892 = vmatpush.bf16.msrb.mxu0 %v13804_v32  ;;  %v14172_v28 = vor.u32 %v16314_v45, %v14169_v52 }
 0x273   : > { %v16406_v55 = vld [vmem:[%s16889_s26 + $0x21e4] sm:$0xf]  ;;  %v14537_v11 = vld [vmem:[%s16889_s26 + $0x21f0] sm:$0xf0]  ;;  %8905 = vmatpush.bf16.msrb.mxu1 %v13932_v37  ;;  %v14412_v29 = vor.u32 %v16374_v58, %v14409_v54 }
 0x274   : > { %v16438_v57 = vld [vmem:[%s16889_s26 + $0x22e4] sm:$0xf]  ;;  %v14665_v62 = vld [vmem:[%s16889_s26 + $0x22f0] sm:$0xf0]  ;;  %8918 = vmatpush.bf16.msrb.mxu2 %v14060_v46  ;;  %v14540_v30 = vor.u32 %v16406_v55, %v14537_v11 }
 0x275   : > { %v16470_v7 = vld [vmem:[%s16889_s26 + $0x23e4] sm:$0xf]  ;;  %v14793_v26 = vld [vmem:[%s16889_s26 + $0x23f0] sm:$0xf0]  ;;  %8931 = vmatpush.bf16.msrb.mxu3 %v14188_v20  ;;  %v14668_v42 = vor.u32 %v16438_v57, %v14665_v62 }
 0x276   : > { %v16370_v31 = vld [vmem:[%s16889_s26 + $0x20c4] sm:$0xf]  ;;  %v14393_v32 = vld [vmem:[%s16889_s26 + $0x20d0] sm:$0xf0]  ;;  %8893 = vmatpush.bf16.msrb.mxu0 %v13788_v56  ;;  %v14796_v34 = vor.u32 %v16470_v7, %v14793_v26 }
 0x277   : > { %v16402_v33 = vld [vmem:[%s16889_s26 + $0x21c4] sm:$0xf]  ;;  %v14521_v37 = vld [vmem:[%s16889_s26 + $0x21d0] sm:$0xf0]  ;;  %8906 = vmatpush.bf16.msrb.mxu1 %v13916_v12  ;;  %v14396_v20 = vor.u32 %v16370_v31, %v14393_v32  ;;  %v8687_v32 = vpop.f32.mrf.mxu0 }
 0x278   : > { %v16434_v46 = vld [vmem:[%s16889_s26 + $0x22c4] sm:$0xf]  ;;  %v14649_v51 = vld [vmem:[%s16889_s26 + $0x22d0] sm:$0xf0]  ;;  %8919 = vmatpush.bf16.msrb.mxu2 %v14044_v6  ;;  %v14524_v44 = vor.u32 %v16402_v33, %v14521_v37  ;;  %v8688_v37 = vadd.f32 %v8687_v32, %v18211_v24 }
 0x279   : > { %v16466_v38 = vld [vmem:[%s16889_s26 + $0x23c4] sm:$0xf]  ;;  %v14777_v43 = vld [vmem:[%s16889_s26 + $0x23d0] sm:$0xf0]  ;;  %8932 = vmatpush.bf16.msrb.mxu3 %v14172_v28  ;;  %v14652_v45 = vor.u32 %v16434_v46, %v14649_v51  ;;  %8894 = vmatmul.bf16.vlgmr.msrb.gmra.mxu0 %v17523_v59  ;;  %v8700_v51 = vpop.f32.mrf.mxu1 }
 0x27a   : > { %8938 = vmatpush.bf16.msra.mxu0 %v14412_v29  ;;  %v16366_v52 = vld [vmem:[%s16889_s26 + $0x20a4] sm:$0xf]  ;;  %v14377_v53 = vld [vmem:[%s16889_s26 + $0x20b0] sm:$0xf0]  ;;  %v14780_v54 = vor.u32 %v16466_v38, %v14777_v43  ;;  %8907 = vmatmul.bf16.vlgmr.msrb.gmra.mxu1 %v17527_v63 }
 0x27b   : > { %8951 = vmatpush.bf16.msra.mxu1 %v14540_v30  ;;  %v16398_v58 = vld [vmem:[%s16889_s26 + $0x21a4] sm:$0xf]  ;;  %v14505_v55 = vld [vmem:[%s16889_s26 + $0x21b0] sm:$0xf0]  ;;  %8920 = vmatmul.bf16.vlgmr.msrb.gmra.mxu2 %v17525_v60  ;;  %v14380_v62 = vor.u32 %v16366_v52, %v14377_v53  ;;  %v8701_v53 = vadd.f32 %v8700_v51, %v8688_v37 }
 0x27c   : > { %8964 = vmatpush.bf16.msra.mxu2 %v14668_v42  ;;  %v16430_v25 = vld [vmem:[%s16889_s26 + $0x22a4] sm:$0xf]  ;;  %v14633_v56 = vld [vmem:[%s16889_s26 + $0x22b0] sm:$0xf0]  ;;  %8933 = vmatmul.bf16.vlgmr.msrb.gmra.mxu3 %v17529_v0  ;;  %v14508_v12 = vor.u32 %v16398_v58, %v14505_v55 }
 0x27d   : > { %8977 = vmatpush.bf16.msra.mxu3 %v14796_v34  ;;  %v16462_v11 = vld [vmem:[%s16889_s26 + $0x23a4] sm:$0xf]  ;;  %v14761_v57 = vld [vmem:[%s16889_s26 + $0x23b0] sm:$0xf0]  ;;  %v14636_v6 = vor.u32 %v16430_v25, %v14633_v56 }
 0x27e   : > { %8939 = vmatpush.bf16.msra.mxu0 %v14396_v20  ;;  %v16362_v7 = vld [vmem:[%s16889_s26 + $0x2084] sm:$0xf]  ;;  %v14361_v26 = vld [vmem:[%s16889_s26 + $0x2090] sm:$0xf0]  ;;  %v14764_v29 = vor.u32 %v16462_v11, %v14761_v57 }
 0x27f   : > { %8952 = vmatpush.bf16.msra.mxu1 %v14524_v44  ;;  %v16394_v28 = vld [vmem:[%s16889_s26 + $0x2184] sm:$0xf]  ;;  %v14489_v30 = vld [vmem:[%s16889_s26 + $0x2190] sm:$0xf0]  ;;  %v14364_v46 = vor.u32 %v16362_v7, %v14361_v26  ;;  %v8713_v26 = vpop.f32.mrf.mxu2 }
 0x280   : > { %8965 = vmatpush.bf16.msra.mxu2 %v14652_v45  ;;  %v16426_v42 = vld [vmem:[%s16889_s26 + $0x2284] sm:$0xf]  ;;  %v14617_v31 = vld [vmem:[%s16889_s26 + $0x2290] sm:$0xf0]  ;;  %v14492_v38 = vor.u32 %v16394_v28, %v14489_v30 }
 0x281   : > { %8978 = vmatpush.bf16.msra.mxu3 %v14780_v54  ;;  %v16458_v33 = vld [vmem:[%s16889_s26 + $0x2384] sm:$0xf]  ;;  %v14745_v34 = vld [vmem:[%s16889_s26 + $0x2390] sm:$0xf0]  ;;  %v14620_v43 = vor.u32 %v16426_v42, %v14617_v31  ;;  %v8714_v42 = vadd.f32 %v8713_v26, %v8701_v53  ;;  %v8726_v31 = vpop.f32.mrf.mxu3 }
 0x282   : > { %8940 = vmatpush.bf16.msra.mxu0 %v14380_v62  ;;  %v16358_v20 = vld [vmem:[%s16889_s26 + $0x2064] sm:$0xf]  ;;  %v14345_v44 = vld [vmem:[%s16889_s26 + $0x2070] sm:$0xf0]  ;;  %v14748_v52 = vor.u32 %v16458_v33, %v14745_v34  ;;  %v8689_v34 = vpop.f32.mrf.mxu0 }
 0x283   : > { %8953 = vmatpush.bf16.msra.mxu1 %v14508_v12  ;;  %v16390_v45 = vld [vmem:[%s16889_s26 + $0x2164] sm:$0xf]  ;;  %v14473_v58 = vld [vmem:[%s16889_s26 + $0x2170] sm:$0xf0]  ;;  %v14348_v56 = vor.u32 %v16358_v20, %v14345_v44  ;;  %v18282_v51 = vadd.f32 %v8726_v31, %v8714_v42 }
 0x284   : > { %8966 = vmatpush.bf16.msra.mxu2 %v14636_v6  ;;  %v16422_v54 = vld [vmem:[%s16889_s26 + $0x2264] sm:$0xf]  ;;  %v14601_v24 = vld [vmem:[%s16889_s26 + $0x2270] sm:$0xf0]  ;;  %v14476_v11 = vor.u32 %v16390_v45, %v14473_v58 }
 0x285   : > { %8979 = vmatpush.bf16.msra.mxu3 %v14764_v29  ;;  %v16454_v55 = vld [vmem:[%s16889_s26 + $0x2364] sm:$0xf]  ;;  %v14729_v25 = vld [vmem:[%s16889_s26 + $0x2370] sm:$0xf0]  ;;  %v14604_v57 = vor.u32 %v16422_v54, %v14601_v24 }
 0x286   : > { %8941 = vmatpush.bf16.msra.mxu0 %v14364_v46  ;;  %v16354_v62 = vld [vmem:[%s16889_s26 + $0x2044] sm:$0xf]  ;;  %v14329_v12 = vld [vmem:[%s16889_s26 + $0x2050] sm:$0xf0]  ;;  %v14732_v7 = vor.u32 %v16454_v55, %v14729_v25  ;;  %v8702_v46 = vpop.f32.mrf.mxu1 }
 0x287   : > { %8954 = vmatpush.bf16.msra.mxu1 %v14492_v38  ;;  %v16386_v6 = vld [vmem:[%s16889_s26 + $0x2144] sm:$0xf]  ;;  %v14457_v28 = vld [vmem:[%s16889_s26 + $0x2150] sm:$0xf0]  ;;  %v14332_v37 = vor.u32 %v16354_v62, %v14329_v12  ;;  %v8715_v42 = vpop.f32.mrf.mxu2 }
 0x288   : > { %8967 = vmatpush.bf16.msra.mxu2 %v14620_v43  ;;  %v16418_v29 = vld [vmem:[%s16889_s26 + $0x2244] sm:$0xf]  ;;  %v14585_v30 = vld [vmem:[%s16889_s26 + $0x2250] sm:$0xf0]  ;;  %v14460_v38 = vor.u32 %v16386_v6, %v14457_v28 }
 0x289   : > { %8980 = vmatpush.bf16.msra.mxu3 %v14748_v52  ;;  %v16450_v32 = vld [vmem:[%s16889_s26 + $0x2344] sm:$0xf]  ;;  %v14713_v33 = vld [vmem:[%s16889_s26 + $0x2350] sm:$0xf0]  ;;  %v14588_v43 = vor.u32 %v16418_v29, %v14585_v30  ;;  %v8728_v34 = vpop.f32.mrf.mxu3 }
 0x28a   : > { %8942 = vmatpush.bf16.msra.mxu0 %v14348_v56  ;;  %v16350_v20 = vld [vmem:[%s16889_s26 + $0x2024] sm:$0xf]  ;;  %v14313_v44 = vld [vmem:[%s16889_s26 + $0x2030] sm:$0xf0]  ;;  %v14716_v52 = vor.u32 %v16450_v32, %v14713_v33 }
 0x28b   : > { %8955 = vmatpush.bf16.msra.mxu1 %v14476_v11  ;;  %v16382_v45 = vld [vmem:[%s16889_s26 + $0x2124] sm:$0xf]  ;;  %v14441_v53 = vld [vmem:[%s16889_s26 + $0x2130] sm:$0xf0]  ;;  %v14316_v25 = vor.u32 %v16350_v20, %v14313_v44 }
 0x28c   : > { %8968 = vmatpush.bf16.msra.mxu2 %v14604_v57  ;;  %v16414_v58 = vld [vmem:[%s16889_s26 + $0x2224] sm:$0xf]  ;;  %v14569_v54 = vld [vmem:[%s16889_s26 + $0x2230] sm:$0xf0]  ;;  %v14444_v57 = vor.u32 %v16382_v45, %v14441_v53 }
 0x28d   : > { %8981 = vmatpush.bf16.msra.mxu3 %v14732_v7  ;;  %v16446_v24 = vld [vmem:[%s16889_s26 + $0x2324] sm:$0xf]  ;;  %v14697_v55 = vld [vmem:[%s16889_s26 + $0x2330] sm:$0xf0]  ;;  %v14572_v62 = vor.u32 %v16414_v58, %v14569_v54 }
 0x28e   : > { %8943 = vmatpush.bf16.msra.mxu0 %v14332_v37  ;;  %v16346_v56 = vld [vmem:[%s16889_s26 + $0x2004] sm:$0xf]  ;;  %v14297_v11 = vld [vmem:[%s16889_s26 + $0x2010] sm:$0xf0]  ;;  %v14700_v26 = vor.u32 %v16446_v24, %v14697_v55 }
 0x28f   : > { %8956 = vmatpush.bf16.msra.mxu1 %v14460_v38  ;;  %v16378_v12 = vld [vmem:[%s16889_s26 + $0x2104] sm:$0xf]  ;;  %v14425_v6 = vld [vmem:[%s16889_s26 + $0x2110] sm:$0xf0]  ;;  %v14300_v37 = vor.u32 %v16346_v56, %v14297_v11 }
 0x290   : > { %8969 = vmatpush.bf16.msra.mxu2 %v14588_v43  ;;  %v16410_v7 = vld [vmem:[%s16889_s26 + $0x2204] sm:$0xf]  ;;  %v14553_v28 = vld [vmem:[%s16889_s26 + $0x2210] sm:$0xf0]  ;;  %v14428_v20 = vor.u32 %v16378_v12, %v14425_v6 }
 0x291   : > { %8982 = vmatpush.bf16.msra.mxu3 %v14716_v52  ;;  %v16442_v29 = vld [vmem:[%s16889_s26 + $0x2304] sm:$0xf]  ;;  %v14681_v30 = vld [vmem:[%s16889_s26 + $0x2310] sm:$0xf0]  ;;  %v14556_v44 = vor.u32 %v16410_v7, %v14553_v28 }
 0x292   : > { %v16502_v31 = vld [vmem:[%s16889_s26 + $0x24e4] sm:$0xf]  ;;  %v14921_v32 = vld [vmem:[%s16889_s26 + $0x24f0] sm:$0xf0]  ;;  %8944 = vmatpush.bf16.msra.mxu0 %v14316_v25  ;;  %v14684_v53 = vor.u32 %v16442_v29, %v14681_v30 }
 0x293   : > { %v16534_v33 = vld [vmem:[%s16889_s26 + $0x25e4] sm:$0xf]  ;;  %v15049_v46 = vld [vmem:[%s16889_s26 + $0x25f0] sm:$0xf0]  ;;  %8957 = vmatpush.bf16.msra.mxu1 %v14444_v57  ;;  %v14924_v58 = vor.u32 %v16502_v31, %v14921_v32  ;;  %v16679_v32 = vld [vmem:[#allocation1] sm:$0xff] }
 0x294   : > { %v16566_v38 = vld [vmem:[%s16889_s26 + $0x26e4] sm:$0xf]  ;;  %v15177_v43 = vld [vmem:[%s16889_s26 + $0x26f0] sm:$0xf0]  ;;  %8970 = vmatpush.bf16.msra.mxu2 %v14572_v62  ;;  %v15052_v54 = vor.u32 %v16534_v33, %v15049_v46 }
 0x295   : > { %v16598_v45 = vld [vmem:[%s16889_s26 + $0x27e4] sm:$0xf]  ;;  %v15305_v52 = vld [vmem:[%s16889_s26 + $0x27f0] sm:$0xf0]  ;;  %8983 = vmatpush.bf16.msra.mxu3 %v14700_v26  ;;  %v15180_v24 = vor.u32 %v16566_v38, %v15177_v43  ;;  %v16680_v38 = vld [vmem:[#allocation1 + $0x12] sm:$0xff] }
 0x296   : > { %v16498_v55 = vld [vmem:[%s16889_s26 + $0x24c4] sm:$0xf]  ;;  %v14905_v25 = vld [vmem:[%s16889_s26 + $0x24d0] sm:$0xf0]  ;;  %8945 = vmatpush.bf16.msra.mxu0 %v14300_v37  ;;  %v15308_v11 = vor.u32 %v16598_v45, %v15305_v52 }
 0x297   : > { %v16530_v56 = vld [vmem:[%s16889_s26 + $0x25c4] sm:$0xf]  ;;  %v15033_v57 = vld [vmem:[%s16889_s26 + $0x25d0] sm:$0xf0]  ;;  %8958 = vmatpush.bf16.msra.mxu1 %v14428_v20  ;;  %v14908_v26 = vor.u32 %v16498_v55, %v14905_v25 }
 0x298   : > { %v16562_v62 = vld [vmem:[%s16889_s26 + $0x26c4] sm:$0xf]  ;;  %v15161_v12 = vld [vmem:[%s16889_s26 + $0x26d0] sm:$0xf0]  ;;  %8971 = vmatpush.bf16.msra.mxu2 %v14556_v44  ;;  %v15036_v28 = vor.u32 %v16530_v56, %v15033_v57 }
 0x299   : > { %v16594_v6 = vld [vmem:[%s16889_s26 + $0x27c4] sm:$0xf]  ;;  %v15289_v7 = vld [vmem:[%s16889_s26 + $0x27d0] sm:$0xf0]  ;;  %8984 = vmatpush.bf16.msra.mxu3 %v14684_v53  ;;  %v15164_v29 = vor.u32 %v16562_v62, %v15161_v12  ;;  %8946 = vmatmul.bf16.vlgmr.msra.gmra.mxu0 %v16679_v32  ;;  %v8739_v62 = vpop.f32.mrf.mxu0 }
 0x29a   : > { %8990 = vmatpush.bf16.msrb.mxu0 %v14924_v58  ;;  %v16494_v30 = vld [vmem:[%s16889_s26 + $0x24a4] sm:$0xf]  ;;  %v14889_v42 = vld [vmem:[%s16889_s26 + $0x24b0] sm:$0xf0]  ;;  %v15292_v33 = vor.u32 %v16594_v6, %v15289_v7  ;;  %v8740_v7 = vadd.f32 %v8739_v62, %v18282_v51 }
 0x29b   : > { %9003 = vmatpush.bf16.msrb.mxu1 %v15052_v54  ;;  %v16526_v31 = vld [vmem:[%s16889_s26 + $0x25a4] sm:$0xf]  ;;  %v15017_v34 = vld [vmem:[%s16889_s26 + $0x25b0] sm:$0xf0]  ;;  %8972 = vmatmul.bf16.vlgmr.msra.gmra.mxu2 %v16680_v38  ;;  %v14892_v52 = vor.u32 %v16494_v30, %v14889_v42 }
 0x29c   : > { %9016 = vmatpush.bf16.msrb.mxu2 %v15180_v24  ;;  %v16558_v37 = vld [vmem:[%s16889_s26 + $0x26a4] sm:$0xf]  ;;  %v15145_v46 = vld [vmem:[%s16889_s26 + $0x26b0] sm:$0xf0]  ;;  %v15020_v53 = vor.u32 %v16526_v31, %v15017_v34 }
 0x29d   : > { %9029 = vmatpush.bf16.msrb.mxu3 %v15308_v11  ;;  %v16681_v43 = vld [vmem:[#allocation1 + $0x9] sm:$0xff]  ;;  %v15273_v44 = vld [vmem:[%s16889_s26 + $0x27b0] sm:$0xf0]  ;;  %v15148_v58 = vor.u32 %v16558_v37, %v15145_v46 }
 0x29e   : > { %8959 = vmatmul.bf16.vlgmr.msra.gmra.mxu1 %v16681_v43  ;;  %v16590_v20 = vld [vmem:[%s16889_s26 + $0x27a4] sm:$0xf]  ;;  %v16682_v45 = vld [vmem:[#allocation1 + $0x1b] sm:$0xff]  ;;  %8991 = vmatpush.bf16.msrb.mxu0 %v14908_v26 }
 0x29f   : > { %8985 = vmatmul.bf16.vlgmr.msra.gmra.mxu3 %v16682_v45  ;;  %9004 = vmatpush.bf16.msrb.mxu1 %v15036_v28  ;;  %v16490_v54 = vld [vmem:[%s16889_s26 + $0x2484] sm:$0xf]  ;;  %v14873_v24 = vld [vmem:[%s16889_s26 + $0x2490] sm:$0xf0]  ;;  %v15276_v25 = vor.u32 %v16590_v20, %v15273_v44  ;;  %v8752_v28 = vpop.f32.mrf.mxu1 }
 0x2a0   : > { %9017 = vmatpush.bf16.msrb.mxu2 %v15164_v29  ;;  %v16522_v55 = vld [vmem:[%s16889_s26 + $0x2584] sm:$0xf]  ;;  %v15001_v56 = vld [vmem:[%s16889_s26 + $0x2590] sm:$0xf0]  ;;  %v14876_v26 = vor.u32 %v16490_v54, %v14873_v24  ;;  %v8753_v34 = vadd.f32 %v8752_v28, %v8740_v7  ;;  %v8765_v24 = vpop.f32.mrf.mxu2 }
 0x2a1   : > { %9030 = vmatpush.bf16.msrb.mxu3 %v15292_v33  ;;  %v16554_v11 = vld [vmem:[%s16889_s26 + $0x2684] sm:$0xf]  ;;  %v15129_v57 = vld [vmem:[%s16889_s26 + $0x2690] sm:$0xf0]  ;;  %v15004_v29 = vor.u32 %v16522_v55, %v15001_v56 }
 0x2a2   : > { %v16586_v12 = vld [vmem:[%s16889_s26 + $0x2784] sm:$0xf]  ;;  %v15257_v6 = vld [vmem:[%s16889_s26 + $0x2790] sm:$0xf0]  ;;  %8992 = vmatpush.bf16.msrb.mxu0 %v14892_v52  ;;  %v15132_v30 = vor.u32 %v16554_v11, %v15129_v57  ;;  %v8766_v11 = vadd.f32 %v8765_v24, %v8753_v34  ;;  %v8778_v57 = vpop.f32.mrf.mxu3 }
 0x2a3   : > { %9005 = vmatpush.bf16.msrb.mxu1 %v15020_v53  ;;  %v16486_v42 = vld [vmem:[%s16889_s26 + $0x2464] sm:$0xf]  ;;  %v14857_v31 = vld [vmem:[%s16889_s26 + $0x2470] sm:$0xf0]  ;;  %v15260_v33 = vor.u32 %v16586_v12, %v15257_v6  ;;  %v8741_v6 = vpop.f32.mrf.mxu0 }
 0x2a4   : > { %9018 = vmatpush.bf16.msrb.mxu2 %v15148_v58  ;;  %v16518_v32 = vld [vmem:[%s16889_s26 + $0x2564] sm:$0xf]  ;;  %v14985_v37 = vld [vmem:[%s16889_s26 + $0x2570] sm:$0xf0]  ;;  %v14860_v20 = vor.u32 %v16486_v42, %v14857_v31  ;;  %v18349_v28 = vadd.f32 %v8778_v57, %v8766_v11  ;;  %v10319_v57 = vld [vmem:[%s16889_s26 + $0xe8] sm:$0xf] }
 0x2a5   : > { %9031 = vmatpush.bf16.msrb.mxu3 %v15276_v25  ;;  %v16550_v46 = vld [vmem:[%s16889_s26 + $0x2664] sm:$0xf]  ;;  %v15113_v51 = vld [vmem:[%s16889_s26 + $0x2670] sm:$0xf0]  ;;  %v14988_v44 = vor.u32 %v16518_v32, %v14985_v37 }
 0x2a6   : > { %v16582_v38 = vld [vmem:[%s16889_s26 + $0x2764] sm:$0xf]  ;;  %v15241_v43 = vld [vmem:[%s16889_s26 + $0x2770] sm:$0xf0]  ;;  %8993 = vmatpush.bf16.msrb.mxu0 %v14876_v26  ;;  %v15116_v45 = vor.u32 %v16550_v46, %v15113_v51 }
 0x2a7   : > { %9006 = vmatpush.bf16.msrb.mxu1 %v15004_v29  ;;  %v16482_v52 = vld [vmem:[%s16889_s26 + $0x2444] sm:$0xf]  ;;  %v14841_v53 = vld [vmem:[%s16889_s26 + $0x2450] sm:$0xf0]  ;;  %v15244_v54 = vor.u32 %v16582_v38, %v15241_v43  ;;  %v8754_v26 = vpop.f32.mrf.mxu1 }
 0x2a8   : > { %9019 = vmatpush.bf16.msrb.mxu2 %v15132_v30  ;;  %v16514_v58 = vld [vmem:[%s16889_s26 + $0x2544] sm:$0xf]  ;;  %v14969_v55 = vld [vmem:[%s16889_s26 + $0x2550] sm:$0xf0]  ;;  %v14844_v7 = vor.u32 %v16482_v52, %v14841_v53  ;;  %v8767_v11 = vpop.f32.mrf.mxu2  ;;  %v15385_v26 = vld [vmem:[%s16889_s26 + $0x1f4] sm:$0xf0] }
 0x2a9   : > { %9032 = vmatpush.bf16.msrb.mxu3 %v15260_v33  ;;  %v16546_v25 = vld [vmem:[%s16889_s26 + $0x2644] sm:$0xf]  ;;  %v15097_v56 = vld [vmem:[%s16889_s26 + $0x2650] sm:$0xf0]  ;;  %v14972_v29 = vor.u32 %v16514_v58, %v14969_v55  ;;  %v15345_v11 = vld [vmem:[%s16889_s26 + $0xb4] sm:$0xf0] }
 0x2aa   : > { %v16578_v62 = vld [vmem:[%s16889_s26 + $0x2744] sm:$0xf]  ;;  %v15225_v12 = vld [vmem:[%s16889_s26 + $0x2750] sm:$0xf0]  ;;  %8994 = vmatpush.bf16.msrb.mxu0 %v14860_v20  ;;  %v15100_v30 = vor.u32 %v16546_v25, %v15097_v56  ;;  %v8780_v6 = vpop.f32.mrf.mxu3 }
 0x2ab   : > { %9007 = vmatpush.bf16.msrb.mxu1 %v14988_v44  ;;  %v16478_v42 = vld [vmem:[%s16889_s26 + $0x2424] sm:$0xf]  ;;  %v14825_v31 = vld [vmem:[%s16889_s26 + $0x2430] sm:$0xf0]  ;;  %v15228_v33 = vor.u32 %v16578_v62, %v15225_v12  ;;  %v15353_v62 = vld [vmem:[%s16889_s26 + $0xf4] sm:$0xf0] }
 0x2ac   : > { %9020 = vmatpush.bf16.msrb.mxu2 %v15116_v45  ;;  %v16510_v32 = vld [vmem:[%s16889_s26 + $0x2524] sm:$0xf]  ;;  %v14953_v34 = vld [vmem:[%s16889_s26 + $0x2530] sm:$0xf0]  ;;  %v14828_v43 = vor.u32 %v16478_v42, %v14825_v31  ;;  %v10447_v12 = vld [vmem:[%s16889_s26 + $0x1e8] sm:$0xf] }
 0x2ad   : > { %9033 = vmatpush.bf16.msrb.mxu3 %v15244_v54  ;;  %v16542_v37 = vld [vmem:[%s16889_s26 + $0x2624] sm:$0xf]  ;;  %v15081_v46 = vld [vmem:[%s16889_s26 + $0x2630] sm:$0xf0]  ;;  %v14956_v45 = vor.u32 %v16510_v32, %v14953_v34  ;;  %v10703_v32 = vld [vmem:[%s16889_s26 + $0x3e8] sm:$0xf] }
 0x2ae   : > { %v16574_v51 = vld [vmem:[%s16889_s26 + $0x2724] sm:$0xf]  ;;  %v15209_v38 = vld [vmem:[%s16889_s26 + $0x2730] sm:$0xf0]  ;;  %8995 = vmatpush.bf16.msrb.mxu0 %v14844_v7  ;;  %v15084_v52 = vor.u32 %v16542_v37, %v15081_v46  ;;  %v10320_v37 = vor.u32 %v15353_v62, %v10319_v57  ;;  %v10448_v46 = vor.u32 %v15385_v26, %v10447_v12  ;;  %v10415_v57 = vld [vmem:[%s16889_s26 + $0x1a8] sm:$0xf] }
 0x2af   : > { %v16474_v20 = vld [vmem:[%s16889_s26 + $0x2404] sm:$0xf]  ;;  %v14809_v44 = vld [vmem:[%s16889_s26 + $0x2410] sm:$0xf0]  ;;  %9008 = vmatpush.bf16.msrb.mxu1 %v14972_v29  ;;  %v15212_v24 = vor.u32 %v16574_v51, %v15209_v38  ;;  %v10575_v29 = vld [vmem:[%s16889_s26 + $0x2e8] sm:$0xf] }
 0x2b0   : > { %9021 = vmatpush.bf16.msrb.mxu2 %v15100_v30  ;;  %v16506_v53 = vld [vmem:[%s16889_s26 + $0x2504] sm:$0xf]  ;;  %v14937_v58 = vld [vmem:[%s16889_s26 + $0x2510] sm:$0xf0]  ;;  %v14812_v7 = vor.u32 %v16474_v20, %v14809_v44  ;;  %v15417_v30 = vld [vmem:[%s16889_s26 + $0x2f4] sm:$0xf0] }
 0x2b1   : > { %v16538_v54 = vld [vmem:[%s16889_s26 + $0x2604] sm:$0xf]  ;;  %9034 = vmatpush.bf16.msrb.mxu3 %v15228_v33  ;;  %v15065_v55 = vld [vmem:[%s16889_s26 + $0x2610] sm:$0xf0]  ;;  %v14940_v42 = vor.u32 %v16506_v53, %v14937_v58  ;;  %v15449_v33 = vld [vmem:[%s16889_s26 + $0x3f4] sm:$0xf0]  ;;  %v10576_v51 = vor.u32 %v15417_v30, %v10575_v29 }
 0x2b2   : > { %v16570_v25 = vld [vmem:[%s16889_s26 + $0x2704] sm:$0xf]  ;;  %v15193_v56 = vld [vmem:[%s16889_s26 + $0x2710] sm:$0xf0]  ;;  %8996 = vmatpush.bf16.msrb.mxu0 %v14828_v43  ;;  %v15068_v31 = vor.u32 %v16538_v54, %v15065_v55  ;;  %v10303_v38 = vld [vmem:[%s16889_s26 + $0xc8] sm:$0xf]  ;;  %v10704_v44 = vor.u32 %v15449_v33, %v10703_v32 }
 0x2b3   : > { %9009 = vmatpush.bf16.msrb.mxu1 %v14956_v45  ;;  %v15196_v34 = vor.u32 %v16570_v25, %v15193_v56  ;;  %v15349_v43 = vld [vmem:[%s16889_s26 + $0xd4] sm:$0xf0]  ;;  %v10431_v20 = vld [vmem:[%s16889_s26 + $0x1c8] sm:$0xf]  ;;  %v16683_v62 = vld [vmem:[#allocation1 + $0x24] sm:$0xff] }
 0x2b4   : > { %9022 = vmatpush.bf16.msrb.mxu2 %v15084_v52  ;;  %v15381_v45 = vld [vmem:[%s16889_s26 + $0x1d4] sm:$0xf0]  ;;  %v10559_v52 = vld [vmem:[%s16889_s26 + $0x2c8] sm:$0xf]  ;;  %v16684_v29 = vld [vmem:[#allocation1 + $0x36] sm:$0xff] }
 0x2b5   : > { %9035 = vmatpush.bf16.msrb.mxu3 %v15212_v24  ;;  %v15413_v53 = vld [vmem:[%s16889_s26 + $0x2d4] sm:$0xf0]  ;;  %v10687_v58 = vld [vmem:[%s16889_s26 + $0x3c8] sm:$0xf]  ;;  %v10304_v24 = vor.u32 %v15349_v43, %v10303_v38  ;;  %v10432_v55 = vor.u32 %v15381_v45, %v10431_v20 }
 0x2b6   : > { %8997 = vmatpush.bf16.msrb.mxu0 %v14812_v7  ;;  %v15445_v54 = vld [vmem:[%s16889_s26 + $0x3d4] sm:$0xf0]  ;;  %v10560_v25 = vor.u32 %v15413_v53, %v10559_v52  ;;  %v10287_v56 = vld [vmem:[%s16889_s26 + $0xa8] sm:$0xf]  ;;  %v8791_v52 = vpop.f32.mrf.mxu0 }
 0x2b7   : > { %9010 = vmatpush.bf16.msrb.mxu1 %v14940_v42  ;;  %v10688_v12 = vor.u32 %v15445_v54, %v10687_v58  ;;  %v15377_v6 = vld [vmem:[%s16889_s26 + $0x1b4] sm:$0xf0]  ;;  %v10543_v7 = vld [vmem:[%s16889_s26 + $0x2a8] sm:$0xf]  ;;  %v10288_v33 = vor.u32 %v15345_v11, %v10287_v56  ;;  %v8792_v54 = vadd.f32 %v8791_v52, %v18349_v28 }
 0x2b8   : > { %9023 = vmatpush.bf16.msrb.mxu2 %v15068_v31  ;;  %v15409_v26 = vld [vmem:[%s16889_s26 + $0x2b4] sm:$0xf0]  ;;  %v16685_v30 = vld [vmem:[#allocation1 + $0x2d] sm:$0xff] }
 0x2b9   : > { %9036 = vmatpush.bf16.msrb.mxu3 %v15196_v34  ;;  %8998 = vmatmul.bf16.vlgmr.msrb.gmra.mxu0 %v16683_v62  ;;  %v10671_v42 = vld [vmem:[%s16889_s26 + $0x3a8] sm:$0xf]  ;;  %v15441_v31 = vld [vmem:[%s16889_s26 + $0x3b4] sm:$0xf0]  ;;  %v10416_v34 = vor.u32 %v15377_v6, %v10415_v57 }
 0x2ba   : > { %9042 = vmatpush.bf16.msra.mxu0 %v10320_v37  ;;  %9011 = vmatmul.bf16.vlgmr.msrb.gmra.mxu1 %v16685_v30  ;;  %v16686_v32 = vld [vmem:[#allocation1 + $0x3f] sm:$0xff]  ;;  %v10544_v37 = vor.u32 %v15409_v26, %v10543_v7  ;;  %v10399_v38 = vld [vmem:[%s16889_s26 + $0x188] sm:$0xf]  ;;  %v10672_v43 = vor.u32 %v15441_v31, %v10671_v42 }
 0x2bb   : > { %9055 = vmatpush.bf16.msra.mxu1 %v10448_v46  ;;  %9024 = vmatmul.bf16.vlgmr.msrb.gmra.mxu2 %v16684_v29  ;;  %v10271_v46 = vld [vmem:[%s16889_s26 + $0x88] sm:$0xf]  ;;  %v15373_v20 = vld [vmem:[%s16889_s26 + $0x194] sm:$0xf0] }
 0x2bc   : > { %9068 = vmatpush.bf16.msra.mxu2 %v10576_v51  ;;  %9037 = vmatmul.bf16.vlgmr.msrb.gmra.mxu3 %v16686_v32  ;;  %v15341_v51 = vld [vmem:[%s16889_s26 + $0x94] sm:$0xf0]  ;;  %v10655_v53 = vld [vmem:[%s16889_s26 + $0x388] sm:$0xf] }
 0x2bd   : > { %9081 = vmatpush.bf16.msra.mxu3 %v10704_v44  ;;  %v10527_v44 = vld [vmem:[%s16889_s26 + $0x288] sm:$0xf]  ;;  %v15405_v45 = vld [vmem:[%s16889_s26 + $0x294] sm:$0xf0] }
 0x2be   : > { %9043 = vmatpush.bf16.msra.mxu0 %v10304_v24  ;;  %v15437_v58 = vld [vmem:[%s16889_s26 + $0x394] sm:$0xf0]  ;;  %v10272_v24 = vor.u32 %v15341_v51, %v10271_v46  ;;  %v10528_v56 = vor.u32 %v15405_v45, %v10527_v44  ;;  %v10255_v11 = vld [vmem:[%s16889_s26 + $0x68] sm:$0xf]  ;;  %v8817_v51 = vpop.f32.mrf.mxu2 }
 0x2bf   : > { %9056 = vmatpush.bf16.msra.mxu1 %v10432_v55  ;;  %v8804_v55 = vpop.f32.mrf.mxu1  ;;  %v15337_v57 = vld [vmem:[%s16889_s26 + $0x74] sm:$0xf0]  ;;  %v10383_v62 = vld [vmem:[%s16889_s26 + $0x168] sm:$0xf]  ;;  %v8830_v45 = vpop.f32.mrf.mxu3 }
 0x2c0   : > { %9069 = vmatpush.bf16.msra.mxu2 %v10560_v25  ;;  %v10400_v25 = vor.u32 %v15373_v20, %v10399_v38  ;;  %v8805_v6 = vadd.f32 %v8804_v55, %v8792_v54  ;;  %v15369_v7 = vld [vmem:[%s16889_s26 + $0x174] sm:$0xf0]  ;;  %v10511_v26 = vld [vmem:[%s16889_s26 + $0x268] sm:$0xf]  ;;  %v10256_v42 = vor.u32 %v15337_v57, %v10255_v11 }
 0x2c1   : > { %9082 = vmatpush.bf16.msra.mxu3 %v10688_v12  ;;  %v10656_v12 = vor.u32 %v15437_v58, %v10655_v53  ;;  %v15401_v28 = vld [vmem:[%s16889_s26 + $0x274] sm:$0xf0]  ;;  %v10639_v29 = vld [vmem:[%s16889_s26 + $0x368] sm:$0xf]  ;;  %v10384_v31 = vor.u32 %v15369_v7, %v10383_v62  ;;  %v8793_v58 = vpop.f32.mrf.mxu0 }
 0x2c2   : > { %9044 = vmatpush.bf16.msra.mxu0 %v10288_v33  ;;  %v15433_v30 = vld [vmem:[%s16889_s26 + $0x374] sm:$0xf0]  ;;  %v10512_v32 = vor.u32 %v15401_v28, %v10511_v26  ;;  %v10239_v33 = vld [vmem:[%s16889_s26 + $0x48] sm:$0xf]  ;;  %v8818_v44 = vadd.f32 %v8817_v51, %v8805_v6 }
 0x2c3   : > { %9057 = vmatpush.bf16.msra.mxu1 %v10416_v34  ;;  %v15333_v34 = vld [vmem:[%s16889_s26 + $0x54] sm:$0xf0]  ;;  %v10640_v46 = vor.u32 %v15433_v30, %v10639_v29  ;;  %v10623_v52 = vld [vmem:[%s16889_s26 + $0x348] sm:$0xf] }
 0x2c4   : > { %9070 = vmatpush.bf16.msra.mxu2 %v10544_v37  ;;  %v10367_v37 = vld [vmem:[%s16889_s26 + $0x148] sm:$0xf]  ;;  %v15365_v38 = vld [vmem:[%s16889_s26 + $0x154] sm:$0xf0]  ;;  %v10240_v54 = vor.u32 %v15333_v34, %v10239_v33  ;;  %v18416_v55 = vadd.f32 %v8830_v45, %v8818_v44 }
 0x2c5   : > { %9083 = vmatpush.bf16.msra.mxu3 %v10672_v43  ;;  %v10495_v43 = vld [vmem:[%s16889_s26 + $0x248] sm:$0xf]  ;;  %v15397_v20 = vld [vmem:[%s16889_s26 + $0x254] sm:$0xf0] }
 0x2c6   : > { %9045 = vmatpush.bf16.msra.mxu0 %v10272_v24  ;;  %v15429_v53 = vld [vmem:[%s16889_s26 + $0x354] sm:$0xf0]  ;;  %v10223_v11 = vld [vmem:[%s16889_s26 + $0x28] sm:$0xf]  ;;  %v8819_v44 = vpop.f32.mrf.mxu2 }
 0x2c7   : > { %9058 = vmatpush.bf16.msra.mxu1 %v10400_v25  ;;  %v8806_v24 = vpop.f32.mrf.mxu1  ;;  %v10368_v25 = vor.u32 %v15365_v38, %v10367_v37  ;;  %v15329_v57 = vld [vmem:[%s16889_s26 + $0x34] sm:$0xf0]  ;;  %v10351_v62 = vld [vmem:[%s16889_s26 + $0x128] sm:$0xf]  ;;  %v8832_v58 = vpop.f32.mrf.mxu3 }
 0x2c8   : > { %9071 = vmatpush.bf16.msra.mxu2 %v10528_v56  ;;  %v10496_v56 = vor.u32 %v15397_v20, %v10495_v43  ;;  %v15361_v6 = vld [vmem:[%s16889_s26 + $0x134] sm:$0xf0]  ;;  %v10479_v7 = vld [vmem:[%s16889_s26 + $0x228] sm:$0xf]  ;;  %v10224_v30 = vor.u32 %v15329_v57, %v10223_v11 }
 0x2c9   : > { %9084 = vmatpush.bf16.msra.mxu3 %v10656_v12  ;;  %v10624_v12 = vor.u32 %v15429_v53, %v10623_v52  ;;  %v15393_v26 = vld [vmem:[%s16889_s26 + $0x234] sm:$0xf0]  ;;  %v10607_v28 = vld [vmem:[%s16889_s26 + $0x328] sm:$0xf] }
 0x2ca   : > { %9046 = vmatpush.bf16.msra.mxu0 %v10256_v42  ;;  %v15425_v29 = vld [vmem:[%s16889_s26 + $0x334] sm:$0xf0]  ;;  %v10207_v42 = vld [vmem:[%s16889_s26 + $0x8] sm:$0xf]  ;;  %v10480_v33 = vor.u32 %v15393_v26, %v10479_v7 }
 0x2cb   : > { %9059 = vmatpush.bf16.msra.mxu1 %v10384_v31  ;;  %v15325_v31 = vld [vmem:[%s16889_s26 + $0x14] sm:$0xf0]  ;;  %v10335_v34 = vld [vmem:[%s16889_s26 + $0x108] sm:$0xf]  ;;  %v10608_v51 = vor.u32 %v15425_v29, %v10607_v28 }
 0x2cc   : > { %9072 = vmatpush.bf16.msra.mxu2 %v10512_v32  ;;  %v10352_v32 = vor.u32 %v15361_v6, %v10351_v62  ;;  %v15357_v37 = vld [vmem:[%s16889_s26 + $0x114] sm:$0xf0]  ;;  %v10591_v43 = vld [vmem:[%s16889_s26 + $0x308] sm:$0xf] }
 0x2cd   : > { %9085 = vmatpush.bf16.msra.mxu3 %v10640_v46  ;;  %v10463_v46 = vld [vmem:[%s16889_s26 + $0x208] sm:$0xf]  ;;  %v15389_v38 = vld [vmem:[%s16889_s26 + $0x214] sm:$0xf0]  ;;  %v10336_v11 = vor.u32 %v15357_v37, %v10335_v34 }
 0x2ce   : > { %9047 = vmatpush.bf16.msra.mxu0 %v10240_v54  ;;  %v15421_v20 = vld [vmem:[%s16889_s26 + $0x314] sm:$0xf0]  ;;  %v10831_v45 = vld [vmem:[%s16889_s26 + $0x4e8] sm:$0xf]  ;;  %v10208_v54 = vor.u32 %v15325_v31, %v10207_v42  ;;  %v10464_v57 = vor.u32 %v15389_v38, %v10463_v46 }
 0x2cf   : > { %9060 = vmatpush.bf16.msra.mxu1 %v10368_v25  ;;  %v15481_v52 = vld [vmem:[%s16889_s26 + $0x4f4] sm:$0xf0]  ;;  %v10959_v53 = vld [vmem:[%s16889_s26 + $0x5e8] sm:$0xf]  ;;  %v10592_v6 = vor.u32 %v15421_v20, %v10591_v43 }
 0x2d0   : > { %9073 = vmatpush.bf16.msra.mxu2 %v10496_v56  ;;  %v15513_v24 = vld [vmem:[%s16889_s26 + $0x5f4] sm:$0xf0]  ;;  %v11087_v25 = vld [vmem:[%s16889_s26 + $0x6e8] sm:$0xf]  ;;  %v10832_v7 = vor.u32 %v15481_v52, %v10831_v45 }
 0x2d1   : > { %9086 = vmatpush.bf16.msra.mxu3 %v10624_v12  ;;  %v15545_v56 = vld [vmem:[%s16889_s26 + $0x6f4] sm:$0xf0]  ;;  %v11215_v62 = vld [vmem:[%s16889_s26 + $0x7e8] sm:$0xf]  ;;  %v10960_v26 = vor.u32 %v15513_v24, %v10959_v53 }
 0x2d2   : > { %9048 = vmatpush.bf16.msra.mxu0 %v10224_v30  ;;  %v15577_v12 = vld [vmem:[%s16889_s26 + $0x7f4] sm:$0xf0]  ;;  %v11088_v28 = vor.u32 %v15545_v56, %v11087_v25  ;;  %v10815_v29 = vld [vmem:[%s16889_s26 + $0x4c8] sm:$0xf] }
 0x2d3   : > { %9061 = vmatpush.bf16.msra.mxu1 %v10352_v32  ;;  %v15477_v30 = vld [vmem:[%s16889_s26 + $0x4d4] sm:$0xf0]  ;;  %v10943_v42 = vld [vmem:[%s16889_s26 + $0x5c8] sm:$0xf]  ;;  %v11216_v31 = vor.u32 %v15577_v12, %v11215_v62 }
 0x2d4   : > { %9074 = vmatpush.bf16.msra.mxu2 %v10480_v33  ;;  %v15509_v32 = vld [vmem:[%s16889_s26 + $0x5d4] sm:$0xf0]  ;;  %v11071_v33 = vld [vmem:[%s16889_s26 + $0x6c8] sm:$0xf] }
 0x2d5   : > { %9087 = vmatpush.bf16.msra.mxu3 %v10608_v51  ;;  %v15541_v34 = vld [vmem:[%s16889_s26 + $0x6d4] sm:$0xf0]  ;;  %v11199_v37 = vld [vmem:[%s16889_s26 + $0x7c8] sm:$0xf]  ;;  %v10816_v51 = vor.u32 %v15477_v30, %v10815_v29  ;;  %v10944_v38 = vor.u32 %v15509_v32, %v10943_v42 }
 0x2d6   : > { %9049 = vmatpush.bf16.msra.mxu0 %v10208_v54  ;;  %v15573_v46 = vld [vmem:[%s16889_s26 + $0x7d4] sm:$0xf0]  ;;  %v11072_v43 = vor.u32 %v15541_v34, %v11071_v33  ;;  %v10799_v20 = vld [vmem:[%s16889_s26 + $0x4a8] sm:$0xf]  ;;  %v8843_v30 = vpop.f32.mrf.mxu0 }
 0x2d7   : > { %9062 = vmatpush.bf16.msra.mxu1 %v10336_v11  ;;  %v15473_v44 = vld [vmem:[%s16889_s26 + $0x4b4] sm:$0xf0]  ;;  %v10927_v45 = vld [vmem:[%s16889_s26 + $0x5a8] sm:$0xf]  ;;  %v11200_v52 = vor.u32 %v15573_v46, %v11199_v37  ;;  %v8844_v32 = vadd.f32 %v8843_v30, %v18416_v55  ;;  %v8856_v34 = vpop.f32.mrf.mxu1 }
 0x2d8   : > { %9075 = vmatpush.bf16.msra.mxu2 %v10464_v57  ;;  %v15505_v53 = vld [vmem:[%s16889_s26 + $0x5b4] sm:$0xf0]  ;;  %v11055_v58 = vld [vmem:[%s16889_s26 + $0x6a8] sm:$0xf]  ;;  %v10800_v56 = vor.u32 %v15473_v44, %v10799_v20 }
 0x2d9   : > { %9088 = vmatpush.bf16.msra.mxu3 %v10592_v6  ;;  %v15537_v54 = vld [vmem:[%s16889_s26 + $0x6b4] sm:$0xf0]  ;;  %v11183_v24 = vld [vmem:[%s16889_s26 + $0x7a8] sm:$0xf]  ;;  %9050 = vmatmul.bf16.vlgmr.msra.gmra.mxu0 %v17014_v22  ;;  %v10928_v11 = vor.u32 %v15505_v53, %v10927_v45  ;;  %v8857_v44 = vadd.f32 %v8856_v34, %v8844_v32 }
 0x2da   : > { %9094 = vmatpush.bf16.msrb.mxu0 %v10832_v7  ;;  %v15569_v25 = vld [vmem:[%s16889_s26 + $0x7b4] sm:$0xf0]  ;;  %9063 = vmatmul.bf16.vlgmr.msra.gmra.mxu1 %v17021_v27  ;;  %v11056_v57 = vor.u32 %v15537_v54, %v11055_v58  ;;  %v10783_v62 = vld [vmem:[%s16889_s26 + $0x488] sm:$0xf] }
 0x2db   : > { %9107 = vmatpush.bf16.msrb.mxu1 %v10960_v26  ;;  %9076 = vmatmul.bf16.vlgmr.msra.gmra.mxu2 %v17012_v21  ;;  %v15469_v12 = vld [vmem:[%s16889_s26 + $0x494] sm:$0xf0]  ;;  %v10911_v6 = vld [vmem:[%s16889_s26 + $0x588] sm:$0xf]  ;;  %v11184_v7 = vor.u32 %v15569_v25, %v11183_v24 }
 0x2dc   : > { %9120 = vmatpush.bf16.msrb.mxu2 %v11088_v28  ;;  %9089 = vmatmul.bf16.vlgmr.msra.gmra.mxu3 %v17016_v23  ;;  %v15501_v26 = vld [vmem:[%s16889_s26 + $0x594] sm:$0xf0]  ;;  %v11039_v28 = vld [vmem:[%s16889_s26 + $0x688] sm:$0xf]  ;;  %v10784_v33 = vor.u32 %v15469_v12, %v10783_v62 }
 0x2dd   : > { %9133 = vmatpush.bf16.msrb.mxu3 %v11216_v31  ;;  %v15533_v29 = vld [vmem:[%s16889_s26 + $0x694] sm:$0xf0]  ;;  %v11167_v42 = vld [vmem:[%s16889_s26 + $0x788] sm:$0xf]  ;;  %v10912_v37 = vor.u32 %v15501_v26, %v10911_v6 }
 0x2de   : > { %9095 = vmatpush.bf16.msrb.mxu0 %v10816_v51  ;;  %v15565_v31 = vld [vmem:[%s16889_s26 + $0x794] sm:$0xf0]  ;;  %v11040_v46 = vor.u32 %v15533_v29, %v11039_v28  ;;  %v10767_v51 = vld [vmem:[%s16889_s26 + $0x468] sm:$0xf]  ;;  %v8869_v12 = vpop.f32.mrf.mxu2 }
 0x2df   : > { %9108 = vmatpush.bf16.msrb.mxu1 %v10944_v38  ;;  %v15465_v38 = vld [vmem:[%s16889_s26 + $0x474] sm:$0xf0]  ;;  %v11168_v20 = vor.u32 %v15565_v31, %v11167_v42  ;;  %v11151_v53 = vld [vmem:[%s16889_s26 + $0x768] sm:$0xf]  ;;  %v8870_v28 = vadd.f32 %v8869_v12, %v8857_v44  ;;  %v8882_v29 = vpop.f32.mrf.mxu3  ;;  %v8845_v31 = vpop.f32.mrf.mxu0 }
 0x2e0   : > { %9121 = vmatpush.bf16.msrb.mxu2 %v11072_v43  ;;  %v10895_v43 = vld [vmem:[%s16889_s26 + $0x568] sm:$0xf]  ;;  %v15497_v45 = vld [vmem:[%s16889_s26 + $0x574] sm:$0xf0]  ;;  %v10768_v54 = vor.u32 %v15465_v38, %v10767_v51 }
 0x2e1   : > { %9134 = vmatpush.bf16.msrb.mxu3 %v11200_v52  ;;  %v11023_v52 = vld [vmem:[%s16889_s26 + $0x668] sm:$0xf]  ;;  %v15529_v55 = vld [vmem:[%s16889_s26 + $0x674] sm:$0xf0]  ;;  %v10896_v24 = vor.u32 %v15497_v45, %v10895_v43  ;;  %v18487_v34 = vadd.f32 %v8882_v29, %v8870_v28 }
 0x2e2   : > { %9096 = vmatpush.bf16.msrb.mxu0 %v10800_v56  ;;  %v15561_v58 = vld [vmem:[%s16889_s26 + $0x774] sm:$0xf0]  ;;  %v11024_v25 = vor.u32 %v15529_v55, %v11023_v52  ;;  %v10751_v56 = vld [vmem:[%s16889_s26 + $0x448] sm:$0xf] }
 0x2e3   : > { %9109 = vmatpush.bf16.msrb.mxu1 %v10928_v11  ;;  %v15461_v11 = vld [vmem:[%s16889_s26 + $0x454] sm:$0xf0]  ;;  %v11152_v62 = vor.u32 %v15561_v58, %v11151_v53  ;;  %v11135_v30 = vld [vmem:[%s16889_s26 + $0x748] sm:$0xf] }
 0x2e4   : > { %9122 = vmatpush.bf16.msrb.mxu2 %v11056_v57  ;;  %v10879_v57 = vld [vmem:[%s16889_s26 + $0x548] sm:$0xf]  ;;  %v15493_v6 = vld [vmem:[%s16889_s26 + $0x554] sm:$0xf0]  ;;  %v10752_v32 = vor.u32 %v15461_v11, %v10751_v56 }
 0x2e5   : > { %9135 = vmatpush.bf16.msrb.mxu3 %v11184_v7  ;;  %v11007_v7 = vld [vmem:[%s16889_s26 + $0x648] sm:$0xf]  ;;  %v15525_v26 = vld [vmem:[%s16889_s26 + $0x654] sm:$0xf0] }
 0x2e6   : > { %9097 = vmatpush.bf16.msrb.mxu0 %v10784_v33  ;;  %v15557_v42 = vld [vmem:[%s16889_s26 + $0x754] sm:$0xf0]  ;;  %v8858_v33 = vpop.f32.mrf.mxu1  ;;  %v10735_v51 = vld [vmem:[%s16889_s26 + $0x428] sm:$0xf]  ;;  %v8871_v28 = vpop.f32.mrf.mxu2 }
 0x2e7   : > { %9110 = vmatpush.bf16.msrb.mxu1 %v10912_v37  ;;  %v10880_v37 = vor.u32 %v15493_v6, %v10879_v57  ;;  %v15457_v38 = vld [vmem:[%s16889_s26 + $0x434] sm:$0xf0]  ;;  %v10863_v43 = vld [vmem:[%s16889_s26 + $0x528] sm:$0xf]  ;;  %v8884_v31 = vpop.f32.mrf.mxu3 }
 0x2e8   : > { %9123 = vmatpush.bf16.msrb.mxu2 %v11040_v46  ;;  %v11008_v46 = vor.u32 %v15525_v26, %v11007_v7  ;;  %v15489_v44 = vld [vmem:[%s16889_s26 + $0x534] sm:$0xf0]  ;;  %v10991_v45 = vld [vmem:[%s16889_s26 + $0x628] sm:$0xf]  ;;  %v10736_v58 = vor.u32 %v15457_v38, %v10735_v51 }
 0x2e9   : > { %9136 = vmatpush.bf16.msrb.mxu3 %v11168_v20  ;;  %v11136_v20 = vor.u32 %v15557_v42, %v11135_v30  ;;  %v15521_v52 = vld [vmem:[%s16889_s26 + $0x634] sm:$0xf0]  ;;  %v11119_v55 = vld [vmem:[%s16889_s26 + $0x728] sm:$0xf] }
 0x2ea   : > { %9098 = vmatpush.bf16.msrb.mxu0 %v10768_v54  ;;  %v15553_v53 = vld [vmem:[%s16889_s26 + $0x734] sm:$0xf0]  ;;  %v10719_v54 = vld [vmem:[%s16889_s26 + $0x408] sm:$0xf]  ;;  %v10992_v56 = vor.u32 %v15521_v52, %v10991_v45 }
 0x2eb   : > { %9111 = vmatpush.bf16.msrb.mxu1 %v10896_v24  ;;  %v15453_v24 = vld [vmem:[%s16889_s26 + $0x414] sm:$0xf0]  ;;  %v10847_v11 = vld [vmem:[%s16889_s26 + $0x508] sm:$0xf]  ;;  %v11120_v12 = vor.u32 %v15553_v53, %v11119_v55 }
 0x2ec   : > { %9124 = vmatpush.bf16.msrb.mxu2 %v11024_v25  ;;  %v10864_v25 = vor.u32 %v15489_v44, %v10863_v43  ;;  %v15485_v57 = vld [vmem:[%s16889_s26 + $0x514] sm:$0xf0]  ;;  %v11103_v7 = vld [vmem:[%s16889_s26 + $0x708] sm:$0xf] }
 0x2ed   : > { %9137 = vmatpush.bf16.msrb.mxu3 %v11152_v62  ;;  %v10975_v62 = vld [vmem:[%s16889_s26 + $0x608] sm:$0xf]  ;;  %v15517_v6 = vld [vmem:[%s16889_s26 + $0x614] sm:$0xf0]  ;;  %v10848_v51 = vor.u32 %v15485_v57, %v10847_v11 }
 0x2ee   : > { %9099 = vmatpush.bf16.msrb.mxu0 %v10752_v32  ;;  %v15549_v26 = vld [vmem:[%s16889_s26 + $0x714] sm:$0xf0]  ;;  %v11343_v29 = vld [vmem:[%s16889_s26 + $0x8e8] sm:$0xf]  ;;  %v10720_v32 = vor.u32 %v15453_v24, %v10719_v54  ;;  %v10976_v38 = vor.u32 %v15517_v6, %v10975_v62 }
 0x2ef   : > { %9112 = vmatpush.bf16.msrb.mxu1 %v10880_v37  ;;  %v15609_v30 = vld [vmem:[%s16889_s26 + $0x8f4] sm:$0xf0]  ;;  %v11471_v42 = vld [vmem:[%s16889_s26 + $0x9e8] sm:$0xf]  ;;  %v11104_v44 = vor.u32 %v15549_v26, %v11103_v7 }
 0x2f0   : > { %9125 = vmatpush.bf16.msrb.mxu2 %v11008_v46  ;;  %v15641_v33 = vld [vmem:[%s16889_s26 + $0x9f4] sm:$0xf0]  ;;  %v11599_v37 = vld [vmem:[%s16889_s26 + $0xae8] sm:$0xf]  ;;  %v11344_v45 = vor.u32 %v15609_v30, %v11343_v29 }
 0x2f1   : > { %9138 = vmatpush.bf16.msrb.mxu3 %v11136_v20  ;;  %v15673_v46 = vld [vmem:[%s16889_s26 + $0xaf4] sm:$0xf0]  ;;  %v11727_v43 = vld [vmem:[%s16889_s26 + $0xbe8] sm:$0xf]  ;;  %v11472_v52 = vor.u32 %v15641_v33, %v11471_v42 }
 0x2f2   : > { %9100 = vmatpush.bf16.msrb.mxu0 %v10736_v58  ;;  %v15705_v20 = vld [vmem:[%s16889_s26 + $0xbf4] sm:$0xf0]  ;;  %v11600_v55 = vor.u32 %v15673_v46, %v11599_v37  ;;  %v11327_v53 = vld [vmem:[%s16889_s26 + $0x8c8] sm:$0xf] }
 0x2f3   : > { %9113 = vmatpush.bf16.msrb.mxu1 %v10864_v25  ;;  %v15605_v58 = vld [vmem:[%s16889_s26 + $0x8d4] sm:$0xf0]  ;;  %v11455_v54 = vld [vmem:[%s16889_s26 + $0x9c8] sm:$0xf]  ;;  %v11728_v24 = vor.u32 %v15705_v20, %v11727_v43 }
 0x2f4   : > { %9126 = vmatpush.bf16.msrb.mxu2 %v10992_v56  ;;  %v15637_v25 = vld [vmem:[%s16889_s26 + $0x9d4] sm:$0xf0]  ;;  %v11583_v56 = vld [vmem:[%s16889_s26 + $0xac8] sm:$0xf] }
 0x2f5   : > { %9139 = vmatpush.bf16.msrb.mxu3 %v11120_v12  ;;  %v15669_v11 = vld [vmem:[%s16889_s26 + $0xad4] sm:$0xf0]  ;;  %v11711_v57 = vld [vmem:[%s16889_s26 + $0xbc8] sm:$0xf]  ;;  %v11328_v12 = vor.u32 %v15605_v58, %v11327_v53  ;;  %v11456_v6 = vor.u32 %v15637_v25, %v11455_v54 }
 0x2f6   : > { %9101 = vmatpush.bf16.msrb.mxu0 %v10720_v32  ;;  %v15701_v62 = vld [vmem:[%s16889_s26 + $0xbd4] sm:$0xf0]  ;;  %v11584_v7 = vor.u32 %v15669_v11, %v11583_v56  ;;  %v11311_v26 = vld [vmem:[%s16889_s26 + $0x8a8] sm:$0xf]  ;;  %v8895_v58 = vpop.f32.mrf.mxu0 }
 0x2f7   : > { %9114 = vmatpush.bf16.msrb.mxu1 %v10848_v51  ;;  %v15601_v28 = vld [vmem:[%s16889_s26 + $0x8b4] sm:$0xf0]  ;;  %v11439_v29 = vld [vmem:[%s16889_s26 + $0x9a8] sm:$0xf]  ;;  %v11712_v30 = vor.u32 %v15701_v62, %v11711_v57  ;;  %v8896_v25 = vadd.f32 %v8895_v58, %v18487_v34  ;;  %v8908_v11 = vpop.f32.mrf.mxu1 }
 0x2f8   : > { %9127 = vmatpush.bf16.msrb.mxu2 %v10976_v38  ;;  %v15633_v42 = vld [vmem:[%s16889_s26 + $0x9b4] sm:$0xf0]  ;;  %v11567_v31 = vld [vmem:[%s16889_s26 + $0xaa8] sm:$0xf]  ;;  %v11312_v46 = vor.u32 %v15601_v28, %v11311_v26 }
 0x2f9   : > { %9140 = vmatpush.bf16.msrb.mxu3 %v11104_v44  ;;  %v15665_v32 = vld [vmem:[%s16889_s26 + $0xab4] sm:$0xf0]  ;;  %9102 = vmatmul.bf16.vlgmr.msrb.gmra.mxu0 %v17053_v1  ;;  %v11695_v33 = vld [vmem:[%s16889_s26 + $0xba8] sm:$0xf]  ;;  %v11440_v51 = vor.u32 %v15633_v42, %v11439_v29  ;;  %v8909_v28 = vadd.f32 %v8908_v11, %v8896_v25 }
 0x2fa   : > { %9146 = vmatpush.bf16.msra.mxu0 %v11344_v45  ;;  %v15697_v37 = vld [vmem:[%s16889_s26 + $0xbb4] sm:$0xf0]  ;;  %9115 = vmatmul.bf16.vlgmr.msrb.gmra.mxu1 %v17057_v3  ;;  %v11568_v38 = vor.u32 %v15665_v32, %v11567_v31  ;;  %v11295_v43 = vld [vmem:[%s16889_s26 + $0x888] sm:$0xf] }
 0x2fb   : > { %9159 = vmatpush.bf16.msra.mxu1 %v11472_v52  ;;  %9128 = vmatmul.bf16.vlgmr.msrb.gmra.mxu2 %v17050_v61  ;;  %v15597_v20 = vld [vmem:[%s16889_s26 + $0x894] sm:$0xf0]  ;;  %v11423_v44 = vld [vmem:[%s16889_s26 + $0x988] sm:$0xf]  ;;  %v11696_v45 = vor.u32 %v15697_v37, %v11695_v33 }
 0x2fc   : > { %9172 = vmatpush.bf16.msra.mxu2 %v11600_v55  ;;  %9141 = vmatmul.bf16.vlgmr.msrb.gmra.mxu3 %v17055_v2  ;;  %v15629_v52 = vld [vmem:[%s16889_s26 + $0x994] sm:$0xf0]  ;;  %v11551_v55 = vld [vmem:[%s16889_s26 + $0xa88] sm:$0xf]  ;;  %v11296_v56 = vor.u32 %v15597_v20, %v11295_v43 }
 0x2fd   : > { %9185 = vmatpush.bf16.msra.mxu3 %v11728_v24  ;;  %v15661_v53 = vld [vmem:[%s16889_s26 + $0xa94] sm:$0xf0]  ;;  %v11679_v54 = vld [vmem:[%s16889_s26 + $0xb88] sm:$0xf]  ;;  %v11424_v57 = vor.u32 %v15629_v52, %v11423_v44 }
 0x2fe   : > { %9147 = vmatpush.bf16.msra.mxu0 %v11328_v12  ;;  %v15693_v24 = vld [vmem:[%s16889_s26 + $0xb94] sm:$0xf0]  ;;  %v11552_v62 = vor.u32 %v15661_v53, %v11551_v55  ;;  %v11279_v12 = vld [vmem:[%s16889_s26 + $0x868] sm:$0xf]  ;;  %v8921_v20 = vpop.f32.mrf.mxu2 }
 0x2ff   : > { %9160 = vmatpush.bf16.msra.mxu1 %v11456_v6  ;;  %v15593_v6 = vld [vmem:[%s16889_s26 + $0x874] sm:$0xf0]  ;;  %v11680_v26 = vor.u32 %v15693_v24, %v11679_v54  ;;  %v11663_v42 = vld [vmem:[%s16889_s26 + $0xb68] sm:$0xf]  ;;  %v8922_v55 = vadd.f32 %v8921_v20, %v8909_v28  ;;  %v8934_v53 = vpop.f32.mrf.mxu3  ;;  %v8897_v24 = vpop.f32.mrf.mxu0 }
 0x300   : > { %9173 = vmatpush.bf16.msra.mxu2 %v11584_v7  ;;  %v11407_v7 = vld [vmem:[%s16889_s26 + $0x968] sm:$0xf]  ;;  %v15625_v29 = vld [vmem:[%s16889_s26 + $0x974] sm:$0xf0]  ;;  %v11280_v32 = vor.u32 %v15593_v6, %v11279_v12 }
 0x301   : > { %9186 = vmatpush.bf16.msra.mxu3 %v11712_v30  ;;  %v11535_v30 = vld [vmem:[%s16889_s26 + $0xa68] sm:$0xf]  ;;  %v15657_v34 = vld [vmem:[%s16889_s26 + $0xa74] sm:$0xf0]  ;;  %v11408_v33 = vor.u32 %v15625_v29, %v11407_v7  ;;  %v18558_v11 = vadd.f32 %v8934_v53, %v8922_v55 }
 0x302   : > { %9148 = vmatpush.bf16.msra.mxu0 %v11312_v46  ;;  %v15689_v31 = vld [vmem:[%s16889_s26 + $0xb74] sm:$0xf0]  ;;  %v11536_v37 = vor.u32 %v15657_v34, %v11535_v30  ;;  %v11263_v46 = vld [vmem:[%s16889_s26 + $0x848] sm:$0xf] }
 0x303   : > { %9161 = vmatpush.bf16.msra.mxu1 %v11440_v51  ;;  %v15589_v51 = vld [vmem:[%s16889_s26 + $0x854] sm:$0xf0]  ;;  %v11664_v43 = vor.u32 %v15689_v31, %v11663_v42  ;;  %v11647_v58 = vld [vmem:[%s16889_s26 + $0xb48] sm:$0xf] }
 0x304   : > { %9174 = vmatpush.bf16.msra.mxu2 %v11568_v38  ;;  %v11391_v38 = vld [vmem:[%s16889_s26 + $0x948] sm:$0xf]  ;;  %v15621_v44 = vld [vmem:[%s16889_s26 + $0x954] sm:$0xf0]  ;;  %v11264_v25 = vor.u32 %v15589_v51, %v11263_v46 }
 0x305   : > { %9187 = vmatpush.bf16.msra.mxu3 %v11696_v45  ;;  %v11519_v45 = vld [vmem:[%s16889_s26 + $0xa48] sm:$0xf]  ;;  %v15653_v52 = vld [vmem:[%s16889_s26 + $0xa54] sm:$0xf0] }
 0x306   : > { %9149 = vmatpush.bf16.msra.mxu0 %v11296_v56  ;;  %v15685_v54 = vld [vmem:[%s16889_s26 + $0xb54] sm:$0xf0]  ;;  %v8910_v56 = vpop.f32.mrf.mxu1  ;;  %v11247_v12 = vld [vmem:[%s16889_s26 + $0x828] sm:$0xf]  ;;  %v8923_v55 = vpop.f32.mrf.mxu2 }
 0x307   : > { %9162 = vmatpush.bf16.msra.mxu1 %v11424_v57  ;;  %v11392_v57 = vor.u32 %v15621_v44, %v11391_v38  ;;  %v15585_v6 = vld [vmem:[%s16889_s26 + $0x834] sm:$0xf0]  ;;  %v11375_v7 = vld [vmem:[%s16889_s26 + $0x928] sm:$0xf]  ;;  %v8936_v24 = vpop.f32.mrf.mxu3 }
 0x308   : > { %9175 = vmatpush.bf16.msra.mxu2 %v11552_v62  ;;  %v11520_v62 = vor.u32 %v15653_v52, %v11519_v45  ;;  %v15617_v28 = vld [vmem:[%s16889_s26 + $0x934] sm:$0xf0]  ;;  %v11503_v29 = vld [vmem:[%s16889_s26 + $0xa28] sm:$0xf]  ;;  %v11248_v31 = vor.u32 %v15585_v6, %v11247_v12 }
 0x309   : > { %9188 = vmatpush.bf16.msra.mxu3 %v11680_v26  ;;  %v11648_v26 = vor.u32 %v15685_v54, %v11647_v58  ;;  %v15649_v30 = vld [vmem:[%s16889_s26 + $0xa34] sm:$0xf0]  ;;  %v11631_v34 = vld [vmem:[%s16889_s26 + $0xb28] sm:$0xf] }
 0x30a   : > { %9150 = vmatpush.bf16.msra.mxu0 %v11280_v32  ;;  %v15681_v42 = vld [vmem:[%s16889_s26 + $0xb34] sm:$0xf0]  ;;  %v11231_v32 = vld [vmem:[%s16889_s26 + $0x808] sm:$0xf]  ;;  %v11504_v46 = vor.u32 %v15649_v30, %v11503_v29 }
 0x30b   : > { %9163 = vmatpush.bf16.msra.mxu1 %v11408_v33  ;;  %v15581_v33 = vld [vmem:[%s16889_s26 + $0x814] sm:$0xf0]  ;;  %v11359_v51 = vld [vmem:[%s16889_s26 + $0x908] sm:$0xf]  ;;  %v11632_v20 = vor.u32 %v15681_v42, %v11631_v34 }
 0x30c   : > { %9176 = vmatpush.bf16.msra.mxu2 %v11536_v37  ;;  %v11376_v37 = vor.u32 %v15617_v28, %v11375_v7  ;;  %v15613_v38 = vld [vmem:[%s16889_s26 + $0x914] sm:$0xf0]  ;;  %v11615_v45 = vld [vmem:[%s16889_s26 + $0xb08] sm:$0xf] }
 0x30d   : > { %9189 = vmatpush.bf16.msra.mxu3 %v11664_v43  ;;  %v11487_v43 = vld [vmem:[%s16889_s26 + $0xa08] sm:$0xf]  ;;  %v15645_v44 = vld [vmem:[%s16889_s26 + $0xa14] sm:$0xf0]  ;;  %v11360_v12 = vor.u32 %v15613_v38, %v11359_v51 }
 0x30e   : > { %9151 = vmatpush.bf16.msra.mxu0 %v11264_v25  ;;  %v15677_v52 = vld [vmem:[%s16889_s26 + $0xb14] sm:$0xf0]  ;;  %v11855_v53 = vld [vmem:[%s16889_s26 + $0xce8] sm:$0xf]  ;;  %v11232_v25 = vor.u32 %v15581_v33, %v11231_v32  ;;  %v11488_v6 = vor.u32 %v15645_v44, %v11487_v43 }
 0x30f   : > { %9164 = vmatpush.bf16.msra.mxu1 %v11392_v57  ;;  %v15737_v58 = vld [vmem:[%s16889_s26 + $0xcf4] sm:$0xf0]  ;;  %v11983_v54 = vld [vmem:[%s16889_s26 + $0xde8] sm:$0xf]  ;;  %v11616_v28 = vor.u32 %v15677_v52, %v11615_v45 }
 0x310   : > { %9177 = vmatpush.bf16.msra.mxu2 %v11520_v62  ;;  %v15769_v56 = vld [vmem:[%s16889_s26 + $0xdf4] sm:$0xf0]  ;;  %v12111_v57 = vld [vmem:[%s16889_s26 + $0xee8] sm:$0xf]  ;;  %v11856_v29 = vor.u32 %v15737_v58, %v11855_v53 }
 0x311   : > { %9190 = vmatpush.bf16.msra.mxu3 %v11648_v26  ;;  %v15801_v62 = vld [vmem:[%s16889_s26 + $0xef4] sm:$0xf0]  ;;  %v12239_v7 = vld [vmem:[%s16889_s26 + $0xfe8] sm:$0xf]  ;;  %v11984_v30 = vor.u32 %v15769_v56, %v11983_v54 }
 0x312   : > { %9152 = vmatpush.bf16.msra.mxu0 %v11248_v31  ;;  %v15833_v26 = vld [vmem:[%s16889_s26 + $0xff4] sm:$0xf0]  ;;  %v12112_v34 = vor.u32 %v15801_v62, %v12111_v57  ;;  %v11839_v42 = vld [vmem:[%s16889_s26 + $0xcc8] sm:$0xf] }
 0x313   : > { %9165 = vmatpush.bf16.msra.mxu1 %v11376_v37  ;;  %v15733_v31 = vld [vmem:[%s16889_s26 + $0xcd4] sm:$0xf0]  ;;  %v11967_v32 = vld [vmem:[%s16889_s26 + $0xdc8] sm:$0xf]  ;;  %v12240_v33 = vor.u32 %v15833_v26, %v12239_v7 }
 0x314   : > { %9178 = vmatpush.bf16.msra.mxu2 %v11504_v46  ;;  %v15765_v37 = vld [vmem:[%s16889_s26 + $0xdd4] sm:$0xf0]  ;;  %v12095_v46 = vld [vmem:[%s16889_s26 + $0xec8] sm:$0xf] }
 0x315   : > { %9191 = vmatpush.bf16.msra.mxu3 %v11632_v20  ;;  %v15797_v51 = vld [vmem:[%s16889_s26 + $0xed4] sm:$0xf0]  ;;  %v12223_v38 = vld [vmem:[%s16889_s26 + $0xfc8] sm:$0xf]  ;;  %v11840_v20 = vor.u32 %v15733_v31, %v11839_v42  ;;  %v11968_v44 = vor.u32 %v15765_v37, %v11967_v32 }
 0x316   : > { %9153 = vmatpush.bf16.msra.mxu0 %v11232_v25  ;;  %v15829_v43 = vld [vmem:[%s16889_s26 + $0xfd4] sm:$0xf0]  ;;  %v12096_v45 = vor.u32 %v15797_v51, %v12095_v46  ;;  %v11823_v52 = vld [vmem:[%s16889_s26 + $0xca8] sm:$0xf]  ;;  %v8947_v31 = vpop.f32.mrf.mxu0 }
 0x317   : > { %9166 = vmatpush.bf16.msra.mxu1 %v11360_v12  ;;  %v15729_v55 = vld [vmem:[%s16889_s26 + $0xcb4] sm:$0xf0]  ;;  %v11951_v53 = vld [vmem:[%s16889_s26 + $0xda8] sm:$0xf]  ;;  %v12224_v58 = vor.u32 %v15829_v43, %v12223_v38  ;;  %v8948_v37 = vadd.f32 %v8947_v31, %v18558_v11 }
 0x318   : > { %9179 = vmatpush.bf16.msra.mxu2 %v11488_v6  ;;  %v15761_v54 = vld [vmem:[%s16889_s26 + $0xdb4] sm:$0xf0]  ;;  %v12079_v24 = vld [vmem:[%s16889_s26 + $0xea8] sm:$0xf]  ;;  %v11824_v62 = vor.u32 %v15729_v55, %v11823_v52 }
 0x319   : > { %9192 = vmatpush.bf16.msra.mxu3 %v11616_v28  ;;  %9154 = vmatmul.bf16.vlgmr.msra.gmra.mxu0 %v17143_v13  ;;  %v15793_v25 = vld [vmem:[%s16889_s26 + $0xeb4] sm:$0xf0]  ;;  %v12207_v56 = vld [vmem:[%s16889_s26 + $0xfa8] sm:$0xf]  ;;  %v11952_v12 = vor.u32 %v15761_v54, %v11951_v53 }
 0x31a   : > { %9198 = vmatpush.bf16.msrb.mxu0 %v11856_v29  ;;  %9167 = vmatmul.bf16.vlgmr.msra.gmra.mxu1 %v17149_v17  ;;  %v15825_v57 = vld [vmem:[%s16889_s26 + $0xfb4] sm:$0xf0]  ;;  %v12080_v6 = vor.u32 %v15793_v25, %v12079_v24  ;;  %v11807_v7 = vld [vmem:[%s16889_s26 + $0xc88] sm:$0xf] }
 0x31b   : > { %9211 = vmatpush.bf16.msrb.mxu1 %v11984_v30  ;;  %9180 = vmatmul.bf16.vlgmr.msra.gmra.mxu2 %v17147_v16  ;;  %v15725_v26 = vld [vmem:[%s16889_s26 + $0xc94] sm:$0xf0]  ;;  %v11935_v28 = vld [vmem:[%s16889_s26 + $0xd88] sm:$0xf]  ;;  %v12208_v29 = vor.u32 %v15825_v57, %v12207_v56  ;;  %v8960_v51 = vpop.f32.mrf.mxu1 }
 0x31c   : > { %9224 = vmatpush.bf16.msrb.mxu2 %v12112_v34  ;;  %9193 = vmatmul.bf16.vlgmr.msra.gmra.mxu3 %v17151_v18  ;;  %v15757_v30 = vld [vmem:[%s16889_s26 + $0xd94] sm:$0xf0]  ;;  %v12063_v34 = vld [vmem:[%s16889_s26 + $0xe88] sm:$0xf]  ;;  %v11808_v46 = vor.u32 %v15725_v26, %v11807_v7  ;;  %v8961_v55 = vadd.f32 %v8960_v51, %v8948_v37 }
 0x31d   : > { %9237 = vmatpush.bf16.msrb.mxu3 %v12240_v33  ;;  %v15789_v42 = vld [vmem:[%s16889_s26 + $0xe94] sm:$0xf0]  ;;  %v12191_v32 = vld [vmem:[%s16889_s26 + $0xf88] sm:$0xf]  ;;  %v11936_v38 = vor.u32 %v15757_v30, %v11935_v28 }
 0x31e   : > { %9199 = vmatpush.bf16.msrb.mxu0 %v11840_v20  ;;  %v15821_v33 = vld [vmem:[%s16889_s26 + $0xf94] sm:$0xf0]  ;;  %v12064_v43 = vor.u32 %v15789_v42, %v12063_v34  ;;  %v11791_v20 = vld [vmem:[%s16889_s26 + $0xc68] sm:$0xf]  ;;  %v8973_v26 = vpop.f32.mrf.mxu2 }
 0x31f   : > { %9212 = vmatpush.bf16.msrb.mxu1 %v11968_v44  ;;  %v15721_v44 = vld [vmem:[%s16889_s26 + $0xc74] sm:$0xf0]  ;;  %v12192_v52 = vor.u32 %v15821_v33, %v12191_v32  ;;  %v12175_v54 = vld [vmem:[%s16889_s26 + $0xf68] sm:$0xf]  ;;  %v8974_v34 = vadd.f32 %v8973_v26, %v8961_v55  ;;  %v8949_v33 = vpop.f32.mrf.mxu0 }
 0x320   : > { %9225 = vmatpush.bf16.msrb.mxu2 %v12096_v45  ;;  %v11919_v45 = vld [vmem:[%s16889_s26 + $0xd68] sm:$0xf]  ;;  %v15753_v53 = vld [vmem:[%s16889_s26 + $0xd74] sm:$0xf0]  ;;  %v11792_v25 = vor.u32 %v15721_v44, %v11791_v20 }
 0x321   : > { %9238 = vmatpush.bf16.msrb.mxu3 %v12224_v58  ;;  %v12047_v58 = vld [vmem:[%s16889_s26 + $0xe68] sm:$0xf]  ;;  %v15785_v11 = vld [vmem:[%s16889_s26 + $0xe74] sm:$0xf0]  ;;  %v11920_v56 = vor.u32 %v15753_v53, %v11919_v45 }
 0x322   : > { %9200 = vmatpush.bf16.msrb.mxu0 %v11824_v62  ;;  %v15817_v24 = vld [vmem:[%s16889_s26 + $0xf74] sm:$0xf0]  ;;  %v12048_v57 = vor.u32 %v15785_v11, %v12047_v58  ;;  %v11775_v62 = vld [vmem:[%s16889_s26 + $0xc48] sm:$0xf]  ;;  %v8986_v42 = vpop.f32.mrf.mxu3 }
 0x323   : > { %9213 = vmatpush.bf16.msrb.mxu1 %v11952_v12  ;;  %v15717_v12 = vld [vmem:[%s16889_s26 + $0xc54] sm:$0xf0]  ;;  %v12176_v7 = vor.u32 %v15817_v24, %v12175_v54  ;;  %v12159_v31 = vld [vmem:[%s16889_s26 + $0xf48] sm:$0xf]  ;;  %v18629_v51 = vadd.f32 %v8986_v42, %v8974_v34 }
 0x324   : > { %9226 = vmatpush.bf16.msrb.mxu2 %v12080_v6  ;;  %v11903_v6 = vld [vmem:[%s16889_s26 + $0xd48] sm:$0xf]  ;;  %v15749_v28 = vld [vmem:[%s16889_s26 + $0xd54] sm:$0xf0]  ;;  %v11776_v37 = vor.u32 %v15717_v12, %v11775_v62 }
 0x325   : > { %9239 = vmatpush.bf16.msrb.mxu3 %v12208_v29  ;;  %v12031_v29 = vld [vmem:[%s16889_s26 + $0xe48] sm:$0xf]  ;;  %v15781_v30 = vld [vmem:[%s16889_s26 + $0xe54] sm:$0xf0] }
 0x326   : > { %9201 = vmatpush.bf16.msrb.mxu0 %v11808_v46  ;;  %v15813_v32 = vld [vmem:[%s16889_s26 + $0xf54] sm:$0xf0]  ;;  %v8962_v46 = vpop.f32.mrf.mxu1  ;;  %v11759_v20 = vld [vmem:[%s16889_s26 + $0xc28] sm:$0xf]  ;;  %v8975_v34 = vpop.f32.mrf.mxu2 }
 0x327   : > { %9214 = vmatpush.bf16.msrb.mxu1 %v11936_v38  ;;  %v11904_v38 = vor.u32 %v15749_v28, %v11903_v6  ;;  %v15713_v44 = vld [vmem:[%s16889_s26 + $0xc34] sm:$0xf0]  ;;  %v11887_v45 = vld [vmem:[%s16889_s26 + $0xd28] sm:$0xf] }
 0x328   : > { %9227 = vmatpush.bf16.msrb.mxu2 %v12064_v43  ;;  %v12032_v43 = vor.u32 %v15781_v30, %v12031_v29  ;;  %v15745_v55 = vld [vmem:[%s16889_s26 + $0xd34] sm:$0xf0]  ;;  %v12015_v53 = vld [vmem:[%s16889_s26 + $0xe28] sm:$0xf]  ;;  %v11760_v24 = vor.u32 %v15713_v44, %v11759_v20 }
 0x329   : > { %9240 = vmatpush.bf16.msrb.mxu3 %v12192_v52  ;;  %v12160_v52 = vor.u32 %v15813_v32, %v12159_v31  ;;  %v15777_v58 = vld [vmem:[%s16889_s26 + $0xe34] sm:$0xf0]  ;;  %v12143_v11 = vld [vmem:[%s16889_s26 + $0xf28] sm:$0xf] }
 0x32a   : > { %9202 = vmatpush.bf16.msrb.mxu0 %v11792_v25  ;;  %v15809_v54 = vld [vmem:[%s16889_s26 + $0xf34] sm:$0xf0]  ;;  %v11743_v25 = vld [vmem:[%s16889_s26 + $0xc08] sm:$0xf]  ;;  %v12016_v62 = vor.u32 %v15777_v58, %v12015_v53  ;;  %v8988_v33 = vpop.f32.mrf.mxu3 }
 0x32b   : > { %9215 = vmatpush.bf16.msrb.mxu1 %v11920_v56  ;;  %v15709_v56 = vld [vmem:[%s16889_s26 + $0xc14] sm:$0xf0]  ;;  %v11871_v12 = vld [vmem:[%s16889_s26 + $0xd08] sm:$0xf]  ;;  %v12144_v26 = vor.u32 %v15809_v54, %v12143_v11 }
 0x32c   : > { %9228 = vmatpush.bf16.msrb.mxu2 %v12048_v57  ;;  %v11888_v57 = vor.u32 %v15745_v55, %v11887_v45  ;;  %v15741_v6 = vld [vmem:[%s16889_s26 + $0xd14] sm:$0xf0]  ;;  %v12127_v29 = vld [vmem:[%s16889_s26 + $0xf08] sm:$0xf] }
 0x32d   : > { %9241 = vmatpush.bf16.msrb.mxu3 %v12176_v7  ;;  %v11999_v7 = vld [vmem:[%s16889_s26 + $0xe08] sm:$0xf]  ;;  %v15773_v28 = vld [vmem:[%s16889_s26 + $0xe14] sm:$0xf0]  ;;  %v11872_v20 = vor.u32 %v15741_v6, %v11871_v12 }
 0x32e   : > { %9203 = vmatpush.bf16.msrb.mxu0 %v11776_v37  ;;  %v15805_v30 = vld [vmem:[%s16889_s26 + $0xf14] sm:$0xf0]  ;;  %v12367_v42 = vld [vmem:[%s16889_s26 + $0x10e8] sm:$0xf]  ;;  %v11744_v37 = vor.u32 %v15709_v56, %v11743_v25  ;;  %v12000_v44 = vor.u32 %v15773_v28, %v11999_v7 }
 0x32f   : > { %9216 = vmatpush.bf16.msrb.mxu1 %v11904_v38  ;;  %v15865_v31 = vld [vmem:[%s16889_s26 + $0x10f4] sm:$0xf0]  ;;  %v12495_v32 = vld [vmem:[%s16889_s26 + $0x11e8] sm:$0xf]  ;;  %v12128_v55 = vor.u32 %v15805_v30, %v12127_v29 }
 0x330   : > { %9229 = vmatpush.bf16.msrb.mxu2 %v12032_v43  ;;  %v15897_v46 = vld [vmem:[%s16889_s26 + $0x11f4] sm:$0xf0]  ;;  %v12623_v38 = vld [vmem:[%s16889_s26 + $0x12e8] sm:$0xf]  ;;  %v12368_v53 = vor.u32 %v15865_v31, %v12367_v42 }
 0x331   : > { %9242 = vmatpush.bf16.msrb.mxu3 %v12160_v52  ;;  %v15929_v43 = vld [vmem:[%s16889_s26 + $0x12f4] sm:$0xf0]  ;;  %v12751_v45 = vld [vmem:[%s16889_s26 + $0x13e8] sm:$0xf]  ;;  %v12496_v58 = vor.u32 %v15897_v46, %v12495_v32 }
 0x332   : > { %9204 = vmatpush.bf16.msrb.mxu0 %v11760_v24  ;;  %v15961_v52 = vld [vmem:[%s16889_s26 + $0x13f4] sm:$0xf0]  ;;  %v12624_v11 = vor.u32 %v15929_v43, %v12623_v38  ;;  %v12351_v54 = vld [vmem:[%s16889_s26 + $0x10c8] sm:$0xf] }
 0x333   : > { %9217 = vmatpush.bf16.msrb.mxu1 %v11888_v57  ;;  %v15861_v24 = vld [vmem:[%s16889_s26 + $0x10d4] sm:$0xf0]  ;;  %v12479_v25 = vld [vmem:[%s16889_s26 + $0x11c8] sm:$0xf]  ;;  %v12752_v56 = vor.u32 %v15961_v52, %v12751_v45 }
 0x334   : > { %9230 = vmatpush.bf16.msrb.mxu2 %v12016_v62  ;;  %v15893_v57 = vld [vmem:[%s16889_s26 + $0x11d4] sm:$0xf0]  ;;  %v12607_v62 = vld [vmem:[%s16889_s26 + $0x12c8] sm:$0xf] }
 0x335   : > { %9243 = vmatpush.bf16.msrb.mxu3 %v12144_v26  ;;  %v15925_v12 = vld [vmem:[%s16889_s26 + $0x12d4] sm:$0xf0]  ;;  %v12735_v6 = vld [vmem:[%s16889_s26 + $0x13c8] sm:$0xf]  ;;  %v12352_v26 = vor.u32 %v15861_v24, %v12351_v54  ;;  %v12480_v28 = vor.u32 %v15893_v57, %v12479_v25 }
 0x336   : > { %9205 = vmatpush.bf16.msrb.mxu0 %v11744_v37  ;;  %v15957_v7 = vld [vmem:[%s16889_s26 + $0x13d4] sm:$0xf0]  ;;  %v12608_v29 = vor.u32 %v15925_v12, %v12607_v62  ;;  %v12335_v30 = vld [vmem:[%s16889_s26 + $0x10a8] sm:$0xf]  ;;  %v8999_v24 = vpop.f32.mrf.mxu0 }
 0x337   : > { %9218 = vmatpush.bf16.msrb.mxu1 %v11872_v20  ;;  %v15857_v34 = vld [vmem:[%s16889_s26 + $0x10b4] sm:$0xf0]  ;;  %v12463_v42 = vld [vmem:[%s16889_s26 + $0x11a8] sm:$0xf]  ;;  %v12736_v31 = vor.u32 %v15957_v7, %v12735_v6  ;;  %v9000_v57 = vadd.f32 %v8999_v24, %v18629_v51  ;;  %v9012_v12 = vpop.f32.mrf.mxu1 }
 0x338   : > { %9231 = vmatpush.bf16.msrb.mxu2 %v12000_v44  ;;  %v15889_v32 = vld [vmem:[%s16889_s26 + $0x11b4] sm:$0xf0]  ;;  %v12591_v33 = vld [vmem:[%s16889_s26 + $0x12a8] sm:$0xf]  ;;  %v12336_v43 = vor.u32 %v15857_v34, %v12335_v30 }
 0x339   : > { %9244 = vmatpush.bf16.msrb.mxu3 %v12128_v55  ;;  %9206 = vmatmul.bf16.vlgmr.msrb.gmra.mxu0 %v17209_v47  ;;  %v15921_v37 = vld [vmem:[%s16889_s26 + $0x12b4] sm:$0xf0]  ;;  %v12719_v46 = vld [vmem:[%s16889_s26 + $0x13a8] sm:$0xf]  ;;  %v12464_v20 = vor.u32 %v15889_v32, %v12463_v42  ;;  %v9013_v34 = vadd.f32 %v9012_v12, %v9000_v57 }
 0x33a   : > { %9250 = vmatpush.bf16.msra.mxu0 %v12368_v53  ;;  %9219 = vmatmul.bf16.vlgmr.msrb.gmra.mxu1 %v17213_v49  ;;  %v15953_v38 = vld [vmem:[%s16889_s26 + $0x13b4] sm:$0xf0]  ;;  %v12592_v44 = vor.u32 %v15921_v37, %v12591_v33  ;;  %v12319_v45 = vld [vmem:[%s16889_s26 + $0x1088] sm:$0xf] }
 0x33b   : > { %9263 = vmatpush.bf16.msra.mxu1 %v12496_v58  ;;  %9232 = vmatmul.bf16.vlgmr.msrb.gmra.mxu2 %v17211_v48  ;;  %v15853_v52 = vld [vmem:[%s16889_s26 + $0x1094] sm:$0xf0]  ;;  %v12447_v55 = vld [vmem:[%s16889_s26 + $0x1188] sm:$0xf]  ;;  %v12720_v53 = vor.u32 %v15953_v38, %v12719_v46 }
 0x33c   : > { %9276 = vmatpush.bf16.msra.mxu2 %v12624_v11  ;;  %9245 = vmatmul.bf16.vlgmr.msrb.gmra.mxu3 %v17215_v50  ;;  %v15885_v58 = vld [vmem:[%s16889_s26 + $0x1194] sm:$0xf0]  ;;  %v12575_v11 = vld [vmem:[%s16889_s26 + $0x1288] sm:$0xf]  ;;  %v12320_v62 = vor.u32 %v15853_v52, %v12319_v45 }
 0x33d   : > { %9289 = vmatpush.bf16.msra.mxu3 %v12752_v56  ;;  %v15917_v54 = vld [vmem:[%s16889_s26 + $0x1294] sm:$0xf0]  ;;  %v12703_v25 = vld [vmem:[%s16889_s26 + $0x1388] sm:$0xf]  ;;  %v12448_v6 = vor.u32 %v15885_v58, %v12447_v55 }
 0x33e   : > { %9251 = vmatpush.bf16.msra.mxu0 %v12352_v26  ;;  %v15949_v56 = vld [vmem:[%s16889_s26 + $0x1394] sm:$0xf0]  ;;  %v12576_v7 = vor.u32 %v15917_v54, %v12575_v11  ;;  %v12303_v26 = vld [vmem:[%s16889_s26 + $0x1068] sm:$0xf]  ;;  %v9025_v52 = vpop.f32.mrf.mxu2 }
 0x33f   : > { %9264 = vmatpush.bf16.msra.mxu1 %v12480_v28  ;;  %v15849_v28 = vld [vmem:[%s16889_s26 + $0x1074] sm:$0xf0]  ;;  %v12704_v30 = vor.u32 %v15949_v56, %v12703_v25  ;;  %v12687_v32 = vld [vmem:[%s16889_s26 + $0x1368] sm:$0xf]  ;;  %v9026_v11 = vadd.f32 %v9025_v52, %v9013_v34  ;;  %v9038_v54 = vpop.f32.mrf.mxu3  ;;  %v9001_v56 = vpop.f32.mrf.mxu0 }
 0x340   : > { %9277 = vmatpush.bf16.msra.mxu2 %v12608_v29  ;;  %v12431_v29 = vld [vmem:[%s16889_s26 + $0x1168] sm:$0xf]  ;;  %v15881_v42 = vld [vmem:[%s16889_s26 + $0x1174] sm:$0xf0]  ;;  %v12304_v37 = vor.u32 %v15849_v28, %v12303_v26 }
 0x341   : > { %9290 = vmatpush.bf16.msra.mxu3 %v12736_v31  ;;  %v12559_v31 = vld [vmem:[%s16889_s26 + $0x1268] sm:$0xf]  ;;  %v15913_v51 = vld [vmem:[%s16889_s26 + $0x1274] sm:$0xf0]  ;;  %v12432_v46 = vor.u32 %v15881_v42, %v12431_v29  ;;  %v9039_v12 = vadd.f32 %v9038_v54, %v9026_v11 }
 0x342   : > { %9252 = vmatpush.bf16.msra.mxu0 %v12336_v43  ;;  %v15945_v33 = vld [vmem:[%s16889_s26 + $0x1374] sm:$0xf0]  ;;  %v12560_v38 = vor.u32 %v15913_v51, %v12559_v31  ;;  %v12287_v43 = vld [vmem:[%s16889_s26 + $0x1048] sm:$0xf] }
 0x343   : > { %9265 = vmatpush.bf16.msra.mxu1 %v12464_v20  ;;  %v15845_v20 = vld [vmem:[%s16889_s26 + $0x1054] sm:$0xf0]  ;;  %v12688_v45 = vor.u32 %v15945_v33, %v12687_v32  ;;  %v12671_v24 = vld [vmem:[%s16889_s26 + $0x1348] sm:$0xf]  ;;  %v10086_v51 = vrot.slane %v9039_v12, 6 }
 0x344   : > { %9278 = vmatpush.bf16.msra.mxu2 %v12592_v44  ;;  %v12415_v44 = vld [vmem:[%s16889_s26 + $0x1148] sm:$0xf]  ;;  %v15877_v55 = vld [vmem:[%s16889_s26 + $0x1154] sm:$0xf0]  ;;  %v12288_v57 = vor.u32 %v15845_v20, %v12287_v43 }
 0x345   : > { %9291 = vmatpush.bf16.msra.mxu3 %v12720_v53  ;;  %v12543_v53 = vld [vmem:[%s16889_s26 + $0x1248] sm:$0xf]  ;;  %v15909_v58 = vld [vmem:[%s16889_s26 + $0x1254] sm:$0xf0]  ;;  %v18712_v43 = vsel %vm10089_vm0, %v17999_v35, %v10086_v51 }
 0x346   : > { %9253 = vmatpush.bf16.msra.mxu0 %v12320_v62  ;;  %v15941_v25 = vld [vmem:[%s16889_s26 + $0x1354] sm:$0xf0]  ;;  %v9014_v62 = vpop.f32.mrf.mxu1  ;;  %v12271_v26 = vld [vmem:[%s16889_s26 + $0x1028] sm:$0xf]  ;;  %v9027_v35 = vpop.f32.mrf.mxu2 }
 0x347   : > { %9266 = vmatpush.bf16.msra.mxu1 %v12448_v6  ;;  %v12416_v6 = vor.u32 %v15877_v55, %v12415_v44  ;;  %v15841_v28 = vld [vmem:[%s16889_s26 + $0x1034] sm:$0xf0]  ;;  %v12399_v29 = vld [vmem:[%s16889_s26 + $0x1128] sm:$0xf] }
 0x348   : > { %9279 = vmatpush.bf16.msra.mxu2 %v12576_v7  ;;  %v12544_v7 = vor.u32 %v15909_v58, %v12543_v53  ;;  %v15873_v34 = vld [vmem:[%s16889_s26 + $0x1134] sm:$0xf0]  ;;  %v12527_v42 = vld [vmem:[%s16889_s26 + $0x1228] sm:$0xf] }
 0x349   : > { %9292 = vmatpush.bf16.msra.mxu3 %v12704_v30  ;;  %v12672_v30 = vor.u32 %v15941_v25, %v12671_v24  ;;  %v15905_v31 = vld [vmem:[%s16889_s26 + $0x1234] sm:$0xf0]  ;;  %v12655_v32 = vld [vmem:[%s16889_s26 + $0x1328] sm:$0xf]  ;;  %v12400_v20 = vor.u32 %v15873_v34, %v12399_v29 }
 0x34a   : > { %9254 = vmatpush.bf16.msra.mxu0 %v12304_v37  ;;  %v15937_v33 = vld [vmem:[%s16889_s26 + $0x1334] sm:$0xf0]  ;;  %v12272_v37 = vor.u32 %v15841_v28, %v12271_v26  ;;  %v12528_v44 = vor.u32 %v15905_v31, %v12527_v42  ;;  %v12511_v55 = vld [vmem:[%s16889_s26 + $0x1208] sm:$0xf] }
 0x34b   : > { %9267 = vmatpush.bf16.msra.mxu1 %v12432_v46  ;;  %v12255_v46 = vld [vmem:[%s16889_s26 + $0x1008] sm:$0xf]  ;;  %v15869_v52 = vld [vmem:[%s16889_s26 + $0x1114] sm:$0xf0]  ;;  %v12656_v53 = vor.u32 %v15937_v33, %v12655_v32 }
 0x34c   : > { %9280 = vmatpush.bf16.msra.mxu2 %v12560_v38  ;;  %v15837_v38 = vld [vmem:[%s16889_s26 + $0x1014] sm:$0xf0]  ;;  %v12639_v11 = vld [vmem:[%s16889_s26 + $0x1308] sm:$0xf] }
 0x34d   : > { %9293 = vmatpush.bf16.msra.mxu3 %v12688_v45  ;;  %v12383_v45 = vld [vmem:[%s16889_s26 + $0x1108] sm:$0xf]  ;;  %v15901_v58 = vld [vmem:[%s16889_s26 + $0x1214] sm:$0xf0]  ;;  %v12256_v62 = vor.u32 %v15837_v38, %v12255_v46 }
 0x34e   : > { %9255 = vmatpush.bf16.msra.mxu0 %v12288_v57  ;;  %v15933_v54 = vld [vmem:[%s16889_s26 + $0x1314] sm:$0xf0]  ;;  %v12879_v24 = vld [vmem:[%s16889_s26 + $0x14e8] sm:$0xf]  ;;  %v9040_v57 = vpop.f32.mrf.mxu3  ;;  %v12384_v26 = vor.u32 %v15869_v52, %v12383_v45  ;;  %v12512_v28 = vor.u32 %v15901_v58, %v12511_v55 }
 0x34f   : > { %9268 = vmatpush.bf16.msra.mxu1 %v12416_v6  ;;  %v15993_v25 = vld [vmem:[%s16889_s26 + $0x14f4] sm:$0xf0]  ;;  %v13007_v56 = vld [vmem:[%s16889_s26 + $0x15e8] sm:$0xf]  ;;  %v12640_v34 = vor.u32 %v15933_v54, %v12639_v11 }
 0x350   : > { %9281 = vmatpush.bf16.msra.mxu2 %v12544_v7  ;;  %v16025_v12 = vld [vmem:[%s16889_s26 + $0x15f4] sm:$0xf0]  ;;  %v13135_v6 = vld [vmem:[%s16889_s26 + $0x16e8] sm:$0xf]  ;;  %v12880_v42 = vor.u32 %v15993_v25, %v12879_v24 }
 0x351   : > { %9294 = vmatpush.bf16.msra.mxu3 %v12672_v30  ;;  %v16057_v7 = vld [vmem:[%s16889_s26 + $0x16f4] sm:$0xf0]  ;;  %v13263_v29 = vld [vmem:[%s16889_s26 + $0x17e8] sm:$0xf]  ;;  %v13008_v31 = vor.u32 %v16025_v12, %v13007_v56 }
 0x352   : > { %9256 = vmatpush.bf16.msra.mxu0 %v12272_v37  ;;  %v16089_v30 = vld [vmem:[%s16889_s26 + $0x17f4] sm:$0xf0]  ;;  %v13136_v51 = vor.u32 %v16057_v7, %v13135_v6  ;;  %v12863_v32 = vld [vmem:[%s16889_s26 + $0x14c8] sm:$0xf] }
 0x353   : > { %9269 = vmatpush.bf16.msra.mxu1 %v12400_v20  ;;  %v15989_v33 = vld [vmem:[%s16889_s26 + $0x14d4] sm:$0xf0]  ;;  %v12991_v37 = vld [vmem:[%s16889_s26 + $0x15c8] sm:$0xf]  ;;  %v13264_v46 = vor.u32 %v16089_v30, %v13263_v29 }
 0x354   : > { %9282 = vmatpush.bf16.msra.mxu2 %v12528_v44  ;;  %v16021_v38 = vld [vmem:[%s16889_s26 + $0x15d4] sm:$0xf0]  ;;  %v13119_v20 = vld [vmem:[%s16889_s26 + $0x16c8] sm:$0xf]  ;;  %v12864_v55 = vor.u32 %v15989_v33, %v12863_v32 }
 0x355   : > { %9295 = vmatpush.bf16.msra.mxu3 %v12656_v53  ;;  %v16053_v44 = vld [vmem:[%s16889_s26 + $0x16d4] sm:$0xf0]  ;;  %v13247_v45 = vld [vmem:[%s16889_s26 + $0x17c8] sm:$0xf]  ;;  %v12992_v53 = vor.u32 %v16021_v38, %v12991_v37 }
 0x356   : > { %9257 = vmatpush.bf16.msra.mxu0 %v12256_v62  ;;  %v16085_v52 = vld [vmem:[%s16889_s26 + $0x17d4] sm:$0xf0]  ;;  %v13120_v58 = vor.u32 %v16053_v44, %v13119_v20  ;;  %v12847_v11 = vld [vmem:[%s16889_s26 + $0x14a8] sm:$0xf] }
 0x357   : > { %9270 = vmatpush.bf16.msra.mxu1 %v12384_v26  ;;  %v15985_v54 = vld [vmem:[%s16889_s26 + $0x14b4] sm:$0xf0]  ;;  %v12975_v35 = vld [vmem:[%s16889_s26 + $0x15a8] sm:$0xf]  ;;  %v13248_v24 = vor.u32 %v16085_v52, %v13247_v45 }
 0x358   : > { %9283 = vmatpush.bf16.msra.mxu2 %v12512_v28  ;;  %v16017_v25 = vld [vmem:[%s16889_s26 + $0x15b4] sm:$0xf0]  ;;  %v13103_v56 = vld [vmem:[%s16889_s26 + $0x16a8] sm:$0xf]  ;;  %v12848_v6 = vor.u32 %v15985_v54, %v12847_v11 }
 0x359   : > { %9296 = vmatpush.bf16.msra.mxu3 %v12640_v34  ;;  %9258 = vmatmul.bf16.vlgmr.msra.gmra.mxu0 %v17296_v10  ;;  %v16049_v57 = vld [vmem:[%s16889_s26 + $0x16b4] sm:$0xf0]  ;;  %v13231_v62 = vld [vmem:[%s16889_s26 + $0x17a8] sm:$0xf]  ;;  %v12976_v7 = vor.u32 %v16017_v25, %v12975_v35 }
 0x35a   : > { %9302 = vmatpush.bf16.msrb.mxu0 %v12880_v42  ;;  %9271 = vmatmul.bf16.vlgmr.msra.gmra.mxu1 %v17302_v15  ;;  %v16081_v12 = vld [vmem:[%s16889_s26 + $0x17b4] sm:$0xf0]  ;;  %v13104_v26 = vor.u32 %v16049_v57, %v13103_v56  ;;  %v12831_v28 = vld [vmem:[%s16889_s26 + $0x1488] sm:$0xf] }
 0x35b   : > { %9315 = vmatpush.bf16.msrb.mxu1 %v13008_v31  ;;  %9284 = vmatmul.bf16.vlgmr.msra.gmra.mxu2 %v17300_v14  ;;  %v15981_v29 = vld [vmem:[%s16889_s26 + $0x1494] sm:$0xf0]  ;;  %v12959_v30 = vld [vmem:[%s16889_s26 + $0x1588] sm:$0xf]  ;;  %v13232_v34 = vor.u32 %v16081_v12, %v13231_v62 }
 0x35c   : > { %9328 = vmatpush.bf16.msrb.mxu2 %v13136_v51  ;;  %9297 = vmatmul.bf16.vlgmr.msra.gmra.mxu3 %v17304_v19  ;;  %v16013_v42 = vld [vmem:[%s16889_s26 + $0x1594] sm:$0xf0]  ;;  %v13087_v31 = vld [vmem:[%s16889_s26 + $0x1688] sm:$0xf]  ;;  %v12832_v37 = vor.u32 %v15981_v29, %v12831_v28 }
 0x35d   : > { %9341 = vmatpush.bf16.msrb.mxu3 %v13264_v46  ;;  %v16045_v51 = vld [vmem:[%s16889_s26 + $0x1694] sm:$0xf0]  ;;  %v13215_v32 = vld [vmem:[%s16889_s26 + $0x1788] sm:$0xf]  ;;  %v9051_v46 = vpop.f32.mrf.mxu0  ;;  %v12960_v38 = vor.u32 %v16013_v42, %v12959_v30 }
 0x35e   : > { %9303 = vmatpush.bf16.msrb.mxu0 %v12864_v55  ;;  %v16077_v33 = vld [vmem:[%s16889_s26 + $0x1794] sm:$0xf0]  ;;  %v13088_v20 = vor.u32 %v16045_v51, %v13087_v31  ;;  %v12815_v44 = vld [vmem:[%s16889_s26 + $0x1468] sm:$0xf]  ;;  %v9064_v55 = vpop.f32.mrf.mxu1 }
 0x35f   : > { %9316 = vmatpush.bf16.msrb.mxu1 %v12992_v53  ;;  %v15977_v45 = vld [vmem:[%s16889_s26 + $0x1474] sm:$0xf0]  ;;  %v12943_v52 = vld [vmem:[%s16889_s26 + $0x1568] sm:$0xf]  ;;  %v13216_v53 = vor.u32 %v16077_v33, %v13215_v32  ;;  %v9065_v35 = vadd.f32 %v9064_v55, %v9051_v46  ;;  %v9090_v31 = vpop.f32.mrf.mxu3 }
 0x360   : > { %9329 = vmatpush.bf16.msrb.mxu2 %v13120_v58  ;;  %v16009_v58 = vld [vmem:[%s16889_s26 + $0x1574] sm:$0xf0]  ;;  %v13071_v11 = vld [vmem:[%s16889_s26 + $0x1668] sm:$0xf]  ;;  %v12816_v56 = vor.u32 %v15977_v45, %v12815_v44 }
 0x361   : > { %9342 = vmatpush.bf16.msrb.mxu3 %v13248_v24  ;;  %v16041_v54 = vld [vmem:[%s16889_s26 + $0x1674] sm:$0xf0]  ;;  %v13199_v24 = vld [vmem:[%s16889_s26 + $0x1768] sm:$0xf]  ;;  %v12944_v57 = vor.u32 %v16009_v58, %v12943_v52 }
 0x362   : > { %9304 = vmatpush.bf16.msrb.mxu0 %v12848_v6  ;;  %v16073_v25 = vld [vmem:[%s16889_s26 + $0x1774] sm:$0xf0]  ;;  %v13072_v62 = vor.u32 %v16041_v54, %v13071_v11  ;;  %v12799_v12 = vld [vmem:[%s16889_s26 + $0x1448] sm:$0xf] }
 0x363   : > { %9317 = vmatpush.bf16.msrb.mxu1 %v12976_v7  ;;  %v15973_v6 = vld [vmem:[%s16889_s26 + $0x1454] sm:$0xf0]  ;;  %v12927_v7 = vld [vmem:[%s16889_s26 + $0x1548] sm:$0xf]  ;;  %v13200_v28 = vor.u32 %v16073_v25, %v13199_v24 }
 0x364   : > { %9330 = vmatpush.bf16.msrb.mxu2 %v13104_v26  ;;  %v9077_v26 = vpop.f32.mrf.mxu2  ;;  %v16005_v29 = vld [vmem:[%s16889_s26 + $0x1554] sm:$0xf0]  ;;  %v13055_v30 = vld [vmem:[%s16889_s26 + $0x1648] sm:$0xf]  ;;  %v12800_v33 = vor.u32 %v15973_v6, %v12799_v12 }
 0x365   : > { %9343 = vmatpush.bf16.msrb.mxu3 %v13232_v34  ;;  %v16037_v34 = vld [vmem:[%s16889_s26 + $0x1654] sm:$0xf0]  ;;  %v9078_v42 = vadd.f32 %v9077_v26, %v9065_v35  ;;  %v13183_v51 = vld [vmem:[%s16889_s26 + $0x1748] sm:$0xf]  ;;  %v9053_v46 = vpop.f32.mrf.mxu0 }
 0x366   : > { %9305 = vmatpush.bf16.msrb.mxu0 %v12832_v37  ;;  %v16069_v32 = vld [vmem:[%s16889_s26 + $0x1754] sm:$0xf0]  ;;  %v12783_v44 = vld [vmem:[%s16889_s26 + $0x1428] sm:$0xf]  ;;  %v9066_v55 = vpop.f32.mrf.mxu1 }
 0x367   : > { %9318 = vmatpush.bf16.msrb.mxu1 %v12960_v38  ;;  %v18772_v37 = vadd.f32 %v9090_v31, %v9078_v42  ;;  %v12928_v38 = vor.u32 %v16005_v29, %v12927_v7  ;;  %v15969_v45 = vld [vmem:[%s16889_s26 + $0x1434] sm:$0xf0]  ;;  %v12911_v52 = vld [vmem:[%s16889_s26 + $0x1528] sm:$0xf]  ;;  %v9092_v31 = vpop.f32.mrf.mxu3 }
 0x368   : > { %9331 = vmatpush.bf16.msrb.mxu2 %v13088_v20  ;;  %v13056_v20 = vor.u32 %v16037_v34, %v13055_v30  ;;  %v16001_v58 = vld [vmem:[%s16889_s26 + $0x1534] sm:$0xf0]  ;;  %v13039_v11 = vld [vmem:[%s16889_s26 + $0x1628] sm:$0xf]  ;;  %v12784_v25 = vor.u32 %v15969_v45, %v12783_v44 }
 0x369   : > { %9344 = vmatpush.bf16.msrb.mxu3 %v13216_v53  ;;  %v13184_v53 = vor.u32 %v16069_v32, %v13183_v51  ;;  %v16033_v54 = vld [vmem:[%s16889_s26 + $0x1634] sm:$0xf0]  ;;  %v13167_v35 = vld [vmem:[%s16889_s26 + $0x1728] sm:$0xf] }
 0x36a   : > { %9306 = vmatpush.bf16.msrb.mxu0 %v12816_v56  ;;  %v16065_v24 = vld [vmem:[%s16889_s26 + $0x1734] sm:$0xf0]  ;;  %v12767_v56 = vld [vmem:[%s16889_s26 + $0x1408] sm:$0xf]  ;;  %v13040_v12 = vor.u32 %v16033_v54, %v13039_v11 }
 0x36b   : > { %9319 = vmatpush.bf16.msrb.mxu1 %v12944_v57  ;;  %v15965_v57 = vld [vmem:[%s16889_s26 + $0x1414] sm:$0xf0]  ;;  %v12895_v6 = vld [vmem:[%s16889_s26 + $0x1508] sm:$0xf]  ;;  %v13168_v29 = vor.u32 %v16065_v24, %v13167_v35 }
 0x36c   : > { %9332 = vmatpush.bf16.msrb.mxu2 %v13072_v62  ;;  %v12912_v62 = vor.u32 %v16001_v58, %v12911_v52  ;;  %v15997_v7 = vld [vmem:[%s16889_s26 + $0x1514] sm:$0xf0]  ;;  %v13023_v26 = vld [vmem:[%s16889_s26 + $0x1608] sm:$0xf]  ;;  %v12768_v46 = vor.u32 %v15965_v57, %v12767_v56 }
 0x36d   : > { %9345 = vmatpush.bf16.msrb.mxu3 %v13200_v28  ;;  %v9079_v28 = vpop.f32.mrf.mxu2  ;;  %v16029_v30 = vld [vmem:[%s16889_s26 + $0x1614] sm:$0xf0]  ;;  %v13151_v34 = vld [vmem:[%s16889_s26 + $0x1708] sm:$0xf]  ;;  %v12896_v45 = vor.u32 %v15997_v7, %v12895_v6 }
 0x36e   : > { %9307 = vmatpush.bf16.msrb.mxu0 %v12800_v33  ;;  %v16061_v42 = vld [vmem:[%s16889_s26 + $0x1714] sm:$0xf0]  ;;  %v13391_v51 = vld [vmem:[%s16889_s26 + $0x18e8] sm:$0xf]  ;;  %v13024_v52 = vor.u32 %v16029_v30, %v13023_v26 }
 0x36f   : > { %9320 = vmatpush.bf16.msrb.mxu1 %v12928_v38  ;;  %v16121_v32 = vld [vmem:[%s16889_s26 + $0x18f4] sm:$0xf0]  ;;  %v13519_v33 = vld [vmem:[%s16889_s26 + $0x19e8] sm:$0xf]  ;;  %v13152_v58 = vor.u32 %v16061_v42, %v13151_v34 }
 0x370   : > { %9333 = vmatpush.bf16.msrb.mxu2 %v13056_v20  ;;  %v16153_v38 = vld [vmem:[%s16889_s26 + $0x19f4] sm:$0xf0]  ;;  %v13647_v20 = vld [vmem:[%s16889_s26 + $0x1ae8] sm:$0xf]  ;;  %v13392_v11 = vor.u32 %v16121_v32, %v13391_v51 }
 0x371   : > { %9346 = vmatpush.bf16.msrb.mxu3 %v13184_v53  ;;  %v16185_v44 = vld [vmem:[%s16889_s26 + $0x1af4] sm:$0xf0]  ;;  %v13775_v55 = vld [vmem:[%s16889_s26 + $0x1be8] sm:$0xf]  ;;  %v13520_v54 = vor.u32 %v16153_v38, %v13519_v33 }
 0x372   : > { %9308 = vmatpush.bf16.msrb.mxu0 %v12784_v25  ;;  %v16217_v53 = vld [vmem:[%s16889_s26 + $0x1bf4] sm:$0xf0]  ;;  %v13648_v35 = vor.u32 %v16185_v44, %v13647_v20  ;;  %v13375_v24 = vld [vmem:[%s16889_s26 + $0x18c8] sm:$0xf] }
 0x373   : > { %9321 = vmatpush.bf16.msrb.mxu1 %v12912_v62  ;;  %v16117_v25 = vld [vmem:[%s16889_s26 + $0x18d4] sm:$0xf0]  ;;  %v13503_v56 = vld [vmem:[%s16889_s26 + $0x19c8] sm:$0xf]  ;;  %v13776_v57 = vor.u32 %v16217_v53, %v13775_v55 }
 0x374   : > { %9334 = vmatpush.bf16.msrb.mxu2 %v13040_v12  ;;  %v16149_v62 = vld [vmem:[%s16889_s26 + $0x19d4] sm:$0xf0]  ;;  %v13631_v12 = vld [vmem:[%s16889_s26 + $0x1ac8] sm:$0xf]  ;;  %v13376_v28 = vor.u32 %v16117_v25, %v13375_v24 }
 0x375   : > { %9347 = vmatpush.bf16.msrb.mxu3 %v13168_v29  ;;  %v16181_v6 = vld [vmem:[%s16889_s26 + $0x1ad4] sm:$0xf0]  ;;  %v13759_v7 = vld [vmem:[%s16889_s26 + $0x1bc8] sm:$0xf]  ;;  %v13504_v29 = vor.u32 %v16149_v62, %v13503_v56 }
 0x376   : > { %9309 = vmatpush.bf16.msrb.mxu0 %v12768_v46  ;;  %v16213_v26 = vld [vmem:[%s16889_s26 + $0x1bd4] sm:$0xf0]  ;;  %v13632_v30 = vor.u32 %v16181_v6, %v13631_v12  ;;  %v13359_v34 = vld [vmem:[%s16889_s26 + $0x18a8] sm:$0xf]  ;;  %v9103_v62 = vpop.f32.mrf.mxu0 }
 0x377   : > { %9322 = vmatpush.bf16.msrb.mxu1 %v12896_v45  ;;  %v16113_v42 = vld [vmem:[%s16889_s26 + $0x18b4] sm:$0xf0]  ;;  %v13487_v31 = vld [vmem:[%s16889_s26 + $0x19a8] sm:$0xf]  ;;  %v13760_v51 = vor.u32 %v16213_v26, %v13759_v7 }
 0x378   : > { %9335 = vmatpush.bf16.msrb.mxu2 %v13024_v52  ;;  %v16145_v32 = vld [vmem:[%s16889_s26 + $0x19b4] sm:$0xf0]  ;;  %v13615_v33 = vld [vmem:[%s16889_s26 + $0x1aa8] sm:$0xf]  ;;  %v13360_v44 = vor.u32 %v16113_v42, %v13359_v34 }
 0x379   : > { %9348 = vmatpush.bf16.msrb.mxu3 %v13152_v58  ;;  %9310 = vmatmul.bf16.vlgmr.msrb.gmra.mxu0 %v17362_v4  ;;  %v16177_v46 = vld [vmem:[%s16889_s26 + $0x1ab4] sm:$0xf0]  ;;  %v13743_v38 = vld [vmem:[%s16889_s26 + $0x1ba8] sm:$0xf]  ;;  %v13488_v45 = vor.u32 %v16145_v32, %v13487_v31 }
 0x37a   : > { %9354 = vmatpush.bf16.msra.mxu0 %v13392_v11  ;;  %9323 = vmatmul.bf16.vlgmr.msrb.gmra.mxu1 %v17366_v8  ;;  %v16209_v20 = vld [vmem:[%s16889_s26 + $0x1bb4] sm:$0xf0]  ;;  %v13616_v52 = vor.u32 %v16177_v46, %v13615_v33  ;;  %v13343_v55 = vld [vmem:[%s16889_s26 + $0x1888] sm:$0xf] }
 0x37b   : > { %9367 = vmatpush.bf16.msra.mxu1 %v13520_v54  ;;  %9336 = vmatmul.bf16.vlgmr.msrb.gmra.mxu2 %v17364_v5  ;;  %v16109_v53 = vld [vmem:[%s16889_s26 + $0x1894] sm:$0xf0]  ;;  %v13471_v58 = vld [vmem:[%s16889_s26 + $0x1988] sm:$0xf]  ;;  %v13744_v11 = vor.u32 %v16209_v20, %v13743_v38 }
 0x37c   : > { %9380 = vmatpush.bf16.msra.mxu2 %v13648_v35  ;;  %9349 = vmatmul.bf16.vlgmr.msrb.gmra.mxu3 %v17368_v9  ;;  %v16141_v54 = vld [vmem:[%s16889_s26 + $0x1994] sm:$0xf0]  ;;  %v13599_v35 = vld [vmem:[%s16889_s26 + $0x1a88] sm:$0xf] }
 0x37d   : > { %9393 = vmatpush.bf16.msra.mxu3 %v13776_v57  ;;  %v16173_v24 = vld [vmem:[%s16889_s26 + $0x1a94] sm:$0xf0]  ;;  %v13727_v25 = vld [vmem:[%s16889_s26 + $0x1b88] sm:$0xf]  ;;  %v13344_v57 = vor.u32 %v16109_v53, %v13343_v55  ;;  %v13472_v12 = vor.u32 %v16141_v54, %v13471_v58 }
 0x37e   : > { %9355 = vmatpush.bf16.msra.mxu0 %v13376_v28  ;;  %v16205_v56 = vld [vmem:[%s16889_s26 + $0x1b94] sm:$0xf0]  ;;  %v13600_v6 = vor.u32 %v16173_v24, %v13599_v35  ;;  %v13327_v7 = vld [vmem:[%s16889_s26 + $0x1868] sm:$0xf]  ;;  %v9129_v55 = vpop.f32.mrf.mxu2 }
 0x37f   : > { %9368 = vmatpush.bf16.msra.mxu1 %v13504_v29  ;;  %v16105_v26 = vld [vmem:[%s16889_s26 + $0x1874] sm:$0xf0]  ;;  %v13455_v28 = vld [vmem:[%s16889_s26 + $0x1968] sm:$0xf]  ;;  %v9104_v29 = vadd.f32 %v9103_v62, %v18772_v37  ;;  %v13728_v34 = vor.u32 %v16205_v56, %v13727_v25  ;;  %v9142_v24 = vpop.f32.mrf.mxu3 }
 0x380   : > { %9381 = vmatpush.bf16.msra.mxu2 %v13632_v30  ;;  %v9116_v30 = vpop.f32.mrf.mxu1  ;;  %v16137_v42 = vld [vmem:[%s16889_s26 + $0x1974] sm:$0xf0]  ;;  %v13583_v31 = vld [vmem:[%s16889_s26 + $0x1a68] sm:$0xf]  ;;  %v13328_v38 = vor.u32 %v16105_v26, %v13327_v7 }
 0x381   : > { %9394 = vmatpush.bf16.msra.mxu3 %v13760_v51  ;;  %v16169_v51 = vld [vmem:[%s16889_s26 + $0x1a74] sm:$0xf0]  ;;  %v13711_v32 = vld [vmem:[%s16889_s26 + $0x1b68] sm:$0xf]  ;;  %v9117_v46 = vadd.f32 %v9116_v30, %v9104_v29  ;;  %v13456_v37 = vor.u32 %v16137_v42, %v13455_v28 }
 0x382   : > { %9356 = vmatpush.bf16.msra.mxu0 %v13360_v44  ;;  %v16201_v33 = vld [vmem:[%s16889_s26 + $0x1b74] sm:$0xf0]  ;;  %v13584_v20 = vor.u32 %v16169_v51, %v13583_v31  ;;  %v13311_v44 = vld [vmem:[%s16889_s26 + $0x1848] sm:$0xf] }
 0x383   : > { %9369 = vmatpush.bf16.msra.mxu1 %v13488_v45  ;;  %v16101_v45 = vld [vmem:[%s16889_s26 + $0x1854] sm:$0xf0]  ;;  %v13712_v53 = vor.u32 %v16201_v33, %v13711_v32  ;;  %v9130_v35 = vadd.f32 %v9129_v55, %v9117_v46  ;;  %v13695_v25 = vld [vmem:[%s16889_s26 + $0x1b48] sm:$0xf] }
 0x384   : > { %9382 = vmatpush.bf16.msra.mxu2 %v13616_v52  ;;  %v13439_v52 = vld [vmem:[%s16889_s26 + $0x1948] sm:$0xf]  ;;  %v16133_v58 = vld [vmem:[%s16889_s26 + $0x1954] sm:$0xf0] }
 0x385   : > { %9395 = vmatpush.bf16.msra.mxu3 %v13744_v11  ;;  %v13567_v11 = vld [vmem:[%s16889_s26 + $0x1a48] sm:$0xf]  ;;  %v16165_v54 = vld [vmem:[%s16889_s26 + $0x1a54] sm:$0xf0]  ;;  %v18843_v62 = vadd.f32 %v9142_v24, %v9130_v35 }
 0x386   : > { %9357 = vmatpush.bf16.msra.mxu0 %v13344_v57  ;;  %v16197_v56 = vld [vmem:[%s16889_s26 + $0x1b54] sm:$0xf0]  ;;  %v13312_v57 = vor.u32 %v16101_v45, %v13311_v44  ;;  %v13568_v7 = vor.u32 %v16165_v54, %v13567_v11  ;;  %v13295_v26 = vld [vmem:[%s16889_s26 + $0x1828] sm:$0xf] }
 0x387   : > { %9370 = vmatpush.bf16.msra.mxu1 %v13472_v12  ;;  %v9105_v12 = vpop.f32.mrf.mxu0  ;;  %v16097_v28 = vld [vmem:[%s16889_s26 + $0x1834] sm:$0xf0]  ;;  %v13423_v29 = vld [vmem:[%s16889_s26 + $0x1928] sm:$0xf]  ;;  %v9144_v24 = vpop.f32.mrf.mxu3 }
 0x388   : > { %9383 = vmatpush.bf16.msra.mxu2 %v13600_v6  ;;  %v13440_v6 = vor.u32 %v16133_v58, %v13439_v52  ;;  %v9118_v30 = vpop.f32.mrf.mxu1  ;;  %v16129_v42 = vld [vmem:[%s16889_s26 + $0x1934] sm:$0xf0]  ;;  %v13551_v31 = vld [vmem:[%s16889_s26 + $0x1a28] sm:$0xf]  ;;  %v13296_v46 = vor.u32 %v16097_v28, %v13295_v26 }
 0x389   : > { %9396 = vmatpush.bf16.msra.mxu3 %v13728_v34  ;;  %v13696_v34 = vor.u32 %v16197_v56, %v13695_v25  ;;  %v16161_v51 = vld [vmem:[%s16889_s26 + $0x1a34] sm:$0xf0]  ;;  %v13679_v32 = vld [vmem:[%s16889_s26 + $0x1b28] sm:$0xf] }
 0x38a   : > { %9358 = vmatpush.bf16.msra.mxu0 %v13328_v38  ;;  %v16193_v33 = vld [vmem:[%s16889_s26 + $0x1b34] sm:$0xf0]  ;;  %v13279_v38 = vld [vmem:[%s16889_s26 + $0x1808] sm:$0xf]  ;;  %v13552_v44 = vor.u32 %v16161_v51, %v13551_v31 }
 0x38b   : > { %9371 = vmatpush.bf16.msra.mxu1 %v13456_v37  ;;  %v16093_v37 = vld [vmem:[%s16889_s26 + $0x1814] sm:$0xf0]  ;;  %v13407_v45 = vld [vmem:[%s16889_s26 + $0x1908] sm:$0xf]  ;;  %v13680_v58 = vor.u32 %v16193_v33, %v13679_v32 }
 0x38c   : > { %9384 = vmatpush.bf16.msra.mxu2 %v13584_v20  ;;  %v13424_v20 = vor.u32 %v16129_v42, %v13423_v29  ;;  %v16125_v52 = vld [vmem:[%s16889_s26 + $0x1914] sm:$0xf0]  ;;  %v13535_v55 = vld [vmem:[%s16889_s26 + $0x1a08] sm:$0xf]  ;;  %v13280_v12 = vor.u32 %v16093_v37, %v13279_v38 }
 0x38d   : > { %9397 = vmatpush.bf16.msra.mxu3 %v13712_v53  ;;  %v9131_v53 = vpop.f32.mrf.mxu2  ;;  %v16157_v11 = vld [vmem:[%s16889_s26 + $0x1a14] sm:$0xf0]  ;;  %v13663_v54 = vld [vmem:[%s16889_s26 + $0x1b08] sm:$0xf]  ;;  %v13408_v28 = vor.u32 %v16125_v52, %v13407_v45 }
 0x38e   : > { %9359 = vmatpush.bf16.msra.mxu0 %v13312_v57  ;;  %v16189_v35 = vld [vmem:[%s16889_s26 + $0x1b14] sm:$0xf0]  ;;  %v13903_v25 = vld [vmem:[%s16889_s26 + $0x1ce8] sm:$0xf]  ;;  %v13536_v29 = vor.u32 %v16157_v11, %v13535_v55 }
 0x38f   : > { %9372 = vmatpush.bf16.msra.mxu1 %v13440_v6  ;;  %v16249_v56 = vld [vmem:[%s16889_s26 + $0x1cf4] sm:$0xf0]  ;;  %v14031_v57 = vld [vmem:[%s16889_s26 + $0x1de8] sm:$0xf]  ;;  %v13664_v42 = vor.u32 %v16189_v35, %v13663_v54 }
 0x390   : > { %9385 = vmatpush.bf16.msra.mxu2 %v13568_v7  ;;  %v16281_v6 = vld [vmem:[%s16889_s26 + $0x1df4] sm:$0xf0]  ;;  %v14159_v7 = vld [vmem:[%s16889_s26 + $0x1ee8] sm:$0xf]  ;;  %v13904_v31 = vor.u32 %v16249_v56, %v13903_v25 }
 0x391   : > { %9398 = vmatpush.bf16.msra.mxu3 %v13696_v34  ;;  %v16313_v26 = vld [vmem:[%s16889_s26 + $0x1ef4] sm:$0xf0]  ;;  %v14287_v30 = vld [vmem:[%s16889_s26 + $0x1fe8] sm:$0xf]  ;;  %v14032_v51 = vor.u32 %v16281_v6, %v14031_v57 }
 0x392   : > { %9360 = vmatpush.bf16.msra.mxu0 %v13296_v46  ;;  %v16345_v34 = vld [vmem:[%s16889_s26 + $0x1ff4] sm:$0xf0]  ;;  %v14160_v32 = vor.u32 %v16313_v26, %v14159_v7  ;;  %v13887_v33 = vld [vmem:[%s16889_s26 + $0x1cc8] sm:$0xf] }
 0x393   : > { %9373 = vmatpush.bf16.msra.mxu1 %v13424_v20  ;;  %v16245_v46 = vld [vmem:[%s16889_s26 + $0x1cd4] sm:$0xf0]  ;;  %v14015_v38 = vld [vmem:[%s16889_s26 + $0x1dc8] sm:$0xf]  ;;  %v14288_v37 = vor.u32 %v16345_v34, %v14287_v30 }
 0x394   : > { %9386 = vmatpush.bf16.msra.mxu2 %v13552_v44  ;;  %v16277_v20 = vld [vmem:[%s16889_s26 + $0x1dd4] sm:$0xf0]  ;;  %v14143_v44 = vld [vmem:[%s16889_s26 + $0x1ec8] sm:$0xf]  ;;  %v13888_v53 = vor.u32 %v16245_v46, %v13887_v33 }
 0x395   : > { %9399 = vmatpush.bf16.msra.mxu3 %v13680_v58  ;;  %v16309_v45 = vld [vmem:[%s16889_s26 + $0x1ed4] sm:$0xf0]  ;;  %v14271_v52 = vld [vmem:[%s16889_s26 + $0x1fc8] sm:$0xf]  ;;  %v14016_v58 = vor.u32 %v16277_v20, %v14015_v38 }
 0x396   : > { %9361 = vmatpush.bf16.msra.mxu0 %v13280_v12  ;;  %v16341_v55 = vld [vmem:[%s16889_s26 + $0x1fd4] sm:$0xf0]  ;;  %v14144_v11 = vor.u32 %v16309_v45, %v14143_v44  ;;  %v13871_v54 = vld [vmem:[%s16889_s26 + $0x1ca8] sm:$0xf]  ;;  %v9155_v46 = vpop.f32.mrf.mxu0 }
 0x397   : > { %9374 = vmatpush.bf16.msra.mxu1 %v13408_v28  ;;  %v16241_v35 = vld [vmem:[%s16889_s26 + $0x1cb4] sm:$0xf0]  ;;  %v13999_v24 = vld [vmem:[%s16889_s26 + $0x1da8] sm:$0xf]  ;;  %v14272_v25 = vor.u32 %v16341_v55, %v14271_v52  ;;  %v9156_v20 = vadd.f32 %v9155_v46, %v18843_v62  ;;  %v9168_v45 = vpop.f32.mrf.mxu1 }
 0x398   : > { %9387 = vmatpush.bf16.msra.mxu2 %v13536_v29  ;;  %v16273_v56 = vld [vmem:[%s16889_s26 + $0x1db4] sm:$0xf0]  ;;  %v14127_v57 = vld [vmem:[%s16889_s26 + $0x1ea8] sm:$0xf]  ;;  %v13872_v26 = vor.u32 %v16241_v35, %v13871_v54 }
 0x399   : > { %9400 = vmatpush.bf16.msra.mxu3 %v13664_v42  ;;  %9362 = vmatmul.bf16.vlgmr.msra.gmra.mxu0 %v17454_v36  ;;  %v16305_v12 = vld [vmem:[%s16889_s26 + $0x1eb4] sm:$0xf0]  ;;  %v14255_v6 = vld [vmem:[%s16889_s26 + $0x1fa8] sm:$0xf]  ;;  %v14000_v28 = vor.u32 %v16273_v56, %v13999_v24  ;;  %v9169_v35 = vadd.f32 %v9168_v45, %v9156_v20 }
 0x39a   : > { %9406 = vmatpush.bf16.msrb.mxu0 %v13904_v31  ;;  %9375 = vmatmul.bf16.vlgmr.msra.gmra.mxu1 %v17460_v40  ;;  %v16337_v7 = vld [vmem:[%s16889_s26 + $0x1fb4] sm:$0xf0]  ;;  %v14128_v29 = vor.u32 %v16305_v12, %v14127_v57  ;;  %v13855_v30 = vld [vmem:[%s16889_s26 + $0x1c88] sm:$0xf] }
 0x39b   : > { %9419 = vmatpush.bf16.msrb.mxu1 %v14032_v51  ;;  %9388 = vmatmul.bf16.vlgmr.msra.gmra.mxu2 %v17458_v39  ;;  %v16237_v34 = vld [vmem:[%s16889_s26 + $0x1c94] sm:$0xf0]  ;;  %v13983_v42 = vld [vmem:[%s16889_s26 + $0x1d88] sm:$0xf]  ;;  %v14256_v31 = vor.u32 %v16337_v7, %v14255_v6 }
 0x39c   : > { %9432 = vmatpush.bf16.msrb.mxu2 %v14160_v32  ;;  %9401 = vmatmul.bf16.vlgmr.msra.gmra.mxu3 %v17462_v41  ;;  %v16269_v51 = vld [vmem:[%s16889_s26 + $0x1d94] sm:$0xf0]  ;;  %v14111_v32 = vld [vmem:[%s16889_s26 + $0x1e88] sm:$0xf]  ;;  %v13856_v44 = vor.u32 %v16237_v34, %v13855_v30 }
 0x39d   : > { %9445 = vmatpush.bf16.msrb.mxu3 %v14288_v37  ;;  %v16301_v33 = vld [vmem:[%s16889_s26 + $0x1e94] sm:$0xf0]  ;;  %v14239_v38 = vld [vmem:[%s16889_s26 + $0x1f88] sm:$0xf]  ;;  %v13984_v52 = vor.u32 %v16269_v51, %v13983_v42 }
 0x39e   : > { %9407 = vmatpush.bf16.msrb.mxu0 %v13888_v53  ;;  %v16333_v37 = vld [vmem:[%s16889_s26 + $0x1f94] sm:$0xf0]  ;;  %v14112_v55 = vor.u32 %v16301_v33, %v14111_v32  ;;  %v13839_v53 = vld [vmem:[%s16889_s26 + $0x1c68] sm:$0xf]  ;;  %v9181_v34 = vpop.f32.mrf.mxu2 }
 0x39f   : > { %9420 = vmatpush.bf16.msrb.mxu1 %v14016_v58  ;;  %v16233_v58 = vld [vmem:[%s16889_s26 + $0x1c74] sm:$0xf0]  ;;  %v14240_v54 = vor.u32 %v16333_v37, %v14239_v38  ;;  %v14223_v56 = vld [vmem:[%s16889_s26 + $0x1f68] sm:$0xf]  ;;  %v9182_v32 = vadd.f32 %v9181_v34, %v9169_v35  ;;  %v9194_v33 = vpop.f32.mrf.mxu3  ;;  %v9157_v37 = vpop.f32.mrf.mxu0 }
 0x3a0   : > { %9433 = vmatpush.bf16.msrb.mxu2 %v14144_v11  ;;  %v13967_v11 = vld [vmem:[%s16889_s26 + $0x1d68] sm:$0xf]  ;;  %v16265_v24 = vld [vmem:[%s16889_s26 + $0x1d74] sm:$0xf0]  ;;  %v13840_v12 = vor.u32 %v16233_v58, %v13839_v53 }
 0x3a1   : > { %9446 = vmatpush.bf16.msrb.mxu3 %v14272_v25  ;;  %v14095_v25 = vld [vmem:[%s16889_s26 + $0x1e68] sm:$0xf]  ;;  %v16297_v62 = vld [vmem:[%s16889_s26 + $0x1e74] sm:$0xf0]  ;;  %v13968_v6 = vor.u32 %v16265_v24, %v13967_v11  ;;  %v18914_v45 = vadd.f32 %v9194_v33, %v9182_v32 }
 0x3a2   : > { %9408 = vmatpush.bf16.msrb.mxu0 %v13872_v26  ;;  %v16329_v57 = vld [vmem:[%s16889_s26 + $0x1f74] sm:$0xf0]  ;;  %v14096_v7 = vor.u32 %v16297_v62, %v14095_v25  ;;  %v13823_v26 = vld [vmem:[%s16889_s26 + $0x1c48] sm:$0xf] }
 0x3a3   : > { %9421 = vmatpush.bf16.msrb.mxu1 %v14000_v28  ;;  %v16229_v28 = vld [vmem:[%s16889_s26 + $0x1c54] sm:$0xf0]  ;;  %v14224_v30 = vor.u32 %v16329_v57, %v14223_v56  ;;  %v14207_v46 = vld [vmem:[%s16889_s26 + $0x1f48] sm:$0xf] }
 0x3a4   : > { %9434 = vmatpush.bf16.msrb.mxu2 %v14128_v29  ;;  %v13951_v29 = vld [vmem:[%s16889_s26 + $0x1d48] sm:$0xf]  ;;  %v16261_v42 = vld [vmem:[%s16889_s26 + $0x1d54] sm:$0xf0]  ;;  %v13824_v20 = vor.u32 %v16229_v28, %v13823_v26 }
 0x3a5   : > { %9447 = vmatpush.bf16.msrb.mxu3 %v14256_v31  ;;  %v14079_v31 = vld [vmem:[%s16889_s26 + $0x1e48] sm:$0xf]  ;;  %v16293_v51 = vld [vmem:[%s16889_s26 + $0x1e54] sm:$0xf0] }
 0x3a6   : > { %9409 = vmatpush.bf16.msrb.mxu0 %v13856_v44  ;;  %v16325_v38 = vld [vmem:[%s16889_s26 + $0x1f54] sm:$0xf0]  ;;  %v9170_v44 = vpop.f32.mrf.mxu1  ;;  %v13807_v53 = vld [vmem:[%s16889_s26 + $0x1c28] sm:$0xf]  ;;  %v9183_v32 = vpop.f32.mrf.mxu2 }
 0x3a7   : > { %9422 = vmatpush.bf16.msrb.mxu1 %v13984_v52  ;;  %v13952_v52 = vor.u32 %v16261_v42, %v13951_v29  ;;  %v16225_v58 = vld [vmem:[%s16889_s26 + $0x1c34] sm:$0xf0]  ;;  %v13935_v11 = vld [vmem:[%s16889_s26 + $0x1d28] sm:$0xf]  ;;  %v9196_v37 = vpop.f32.mrf.mxu3 }
 0x3a8   : > { %9435 = vmatpush.bf16.msrb.mxu2 %v14112_v55  ;;  %v14080_v55 = vor.u32 %v16293_v51, %v14079_v31  ;;  %v16257_v35 = vld [vmem:[%s16889_s26 + $0x1d34] sm:$0xf0]  ;;  %v14063_v24 = vld [vmem:[%s16889_s26 + $0x1e28] sm:$0xf]  ;;  %v13808_v57 = vor.u32 %v16225_v58, %v13807_v53 }
 0x3a9   : > { %9448 = vmatpush.bf16.msrb.mxu3 %v14240_v54  ;;  %v14208_v54 = vor.u32 %v16325_v38, %v14207_v46  ;;  %v16289_v25 = vld [vmem:[%s16889_s26 + $0x1e34] sm:$0xf0]  ;;  %v14191_v62 = vld [vmem:[%s16889_s26 + $0x1f28] sm:$0xf] }
 0x3aa   : > { %9410 = vmatpush.bf16.msrb.mxu0 %v13840_v12  ;;  %v16321_v56 = vld [vmem:[%s16889_s26 + $0x1f34] sm:$0xf0]  ;;  %v13791_v12 = vld [vmem:[%s16889_s26 + $0x1c08] sm:$0xf]  ;;  %v14064_v26 = vor.u32 %v16289_v25, %v14063_v24 }
 0x3ab   : > { %9423 = vmatpush.bf16.msrb.mxu1 %v13968_v6  ;;  %v16221_v6 = vld [vmem:[%s16889_s26 + $0x1c14] sm:$0xf0]  ;;  %v13919_v28 = vld [vmem:[%s16889_s26 + $0x1d08] sm:$0xf]  ;;  %v14192_v34 = vor.u32 %v16321_v56, %v14191_v62 }
 0x3ac   : > { %9436 = vmatpush.bf16.msrb.mxu2 %v14096_v7  ;;  %v13936_v7 = vor.u32 %v16257_v35, %v13935_v11  ;;  %v16253_v29 = vld [vmem:[%s16889_s26 + $0x1d14] sm:$0xf0]  ;;  %v14175_v31 = vld [vmem:[%s16889_s26 + $0x1f08] sm:$0xf] }
 0x3ad   : > { %9449 = vmatpush.bf16.msrb.mxu3 %v14224_v30  ;;  %v14047_v30 = vld [vmem:[%s16889_s26 + $0x1e08] sm:$0xf]  ;;  %v16285_v42 = vld [vmem:[%s16889_s26 + $0x1e14] sm:$0xf0]  ;;  %v13920_v53 = vor.u32 %v16253_v29, %v13919_v28 }
 0x3ae   : > { %9411 = vmatpush.bf16.msrb.mxu0 %v13824_v20  ;;  %v16317_v51 = vld [vmem:[%s16889_s26 + $0x1f14] sm:$0xf0]  ;;  %v14415_v33 = vld [vmem:[%s16889_s26 + $0x20e8] sm:$0xf]  ;;  %v13792_v20 = vor.u32 %v16221_v6, %v13791_v12  ;;  %v14048_v58 = vor.u32 %v16285_v42, %v14047_v30 }
 0x3af   : > { %9424 = vmatpush.bf16.msrb.mxu1 %v13952_v52  ;;  %v16377_v46 = vld [vmem:[%s16889_s26 + $0x20f4] sm:$0xf0]  ;;  %v14543_v38 = vld [vmem:[%s16889_s26 + $0x21e8] sm:$0xf]  ;;  %v14176_v35 = vor.u32 %v16317_v51, %v14175_v31 }
 0x3b0   : > { %9437 = vmatpush.bf16.msrb.mxu2 %v14080_v55  ;;  %v16409_v44 = vld [vmem:[%s16889_s26 + $0x21f4] sm:$0xf0]  ;;  %v14671_v52 = vld [vmem:[%s16889_s26 + $0x22e8] sm:$0xf]  ;;  %v14416_v24 = vor.u32 %v16377_v46, %v14415_v33 }
 0x3b1   : > { %9450 = vmatpush.bf16.msrb.mxu3 %v14208_v54  ;;  %v16441_v55 = vld [vmem:[%s16889_s26 + $0x22f4] sm:$0xf0]  ;;  %v14799_v11 = vld [vmem:[%s16889_s26 + $0x23e8] sm:$0xf]  ;;  %v14544_v25 = vor.u32 %v16409_v44, %v14543_v38 }
 0x3b2   : > { %9412 = vmatpush.bf16.msrb.mxu0 %v13808_v57  ;;  %v16473_v54 = vld [vmem:[%s16889_s26 + $0x23f4] sm:$0xf0]  ;;  %v14672_v62 = vor.u32 %v16441_v55, %v14671_v52  ;;  %v14399_v56 = vld [vmem:[%s16889_s26 + $0x20c8] sm:$0xf] }
 0x3b3   : > { %9425 = vmatpush.bf16.msrb.mxu1 %v13936_v7  ;;  %v16373_v57 = vld [vmem:[%s16889_s26 + $0x20d4] sm:$0xf0]  ;;  %v14527_v12 = vld [vmem:[%s16889_s26 + $0x21c8] sm:$0xf]  ;;  %v14800_v6 = vor.u32 %v16473_v54, %v14799_v11 }
 0x3b4   : > { %9438 = vmatpush.bf16.msrb.mxu2 %v14064_v26  ;;  %v16405_v7 = vld [vmem:[%s16889_s26 + $0x21d4] sm:$0xf0]  ;;  %v14655_v26 = vld [vmem:[%s16889_s26 + $0x22c8] sm:$0xf] }
 0x3b5   : > { %9451 = vmatpush.bf16.msrb.mxu3 %v14192_v34  ;;  %v16437_v28 = vld [vmem:[%s16889_s26 + $0x22d4] sm:$0xf0]  ;;  %v14783_v29 = vld [vmem:[%s16889_s26 + $0x23c8] sm:$0xf]  ;;  %v14400_v34 = vor.u32 %v16373_v57, %v14399_v56  ;;  %v14528_v42 = vor.u32 %v16405_v7, %v14527_v12 }
 0x3b6   : > { %9413 = vmatpush.bf16.msrb.mxu0 %v13792_v20  ;;  %v16469_v30 = vld [vmem:[%s16889_s26 + $0x23d4] sm:$0xf0]  ;;  %v14656_v31 = vor.u32 %v16437_v28, %v14655_v26  ;;  %v14383_v51 = vld [vmem:[%s16889_s26 + $0x20a8] sm:$0xf]  ;;  %v9207_v57 = vpop.f32.mrf.mxu0 }
 0x3b7   : > { %9426 = vmatpush.bf16.msrb.mxu1 %v13920_v53  ;;  %v16369_v32 = vld [vmem:[%s16889_s26 + $0x20b4] sm:$0xf0]  ;;  %v14511_v33 = vld [vmem:[%s16889_s26 + $0x21a8] sm:$0xf]  ;;  %v14784_v46 = vor.u32 %v16469_v30, %v14783_v29  ;;  %v9208_v7 = vadd.f32 %v9207_v57, %v18914_v45  ;;  %v9220_v28 = vpop.f32.mrf.mxu1 }
 0x3b8   : > { %9439 = vmatpush.bf16.msrb.mxu2 %v14048_v58  ;;  %v16401_v38 = vld [vmem:[%s16889_s26 + $0x21b4] sm:$0xf0]  ;;  %v14639_v37 = vld [vmem:[%s16889_s26 + $0x22a8] sm:$0xf]  ;;  %v14384_v55 = vor.u32 %v16369_v32, %v14383_v51 }
 0x3b9   : > { %9452 = vmatpush.bf16.msrb.mxu3 %v14176_v35  ;;  %9414 = vmatmul.bf16.vlgmr.msrb.gmra.mxu0 %v17523_v59  ;;  %v16433_v20 = vld [vmem:[%s16889_s26 + $0x22b4] sm:$0xf0]  ;;  %v14767_v44 = vld [vmem:[%s16889_s26 + $0x23a8] sm:$0xf]  ;;  %v14512_v53 = vor.u32 %v16401_v38, %v14511_v33  ;;  %v9221_v32 = vadd.f32 %v9220_v28, %v9208_v7 }
 0x3ba   : > { %9458 = vmatpush.bf16.msra.mxu0 %v14416_v24  ;;  %9427 = vmatmul.bf16.vlgmr.msrb.gmra.mxu1 %v17527_v63  ;;  %v16465_v52 = vld [vmem:[%s16889_s26 + $0x23b4] sm:$0xf0]  ;;  %v14640_v58 = vor.u32 %v16433_v20, %v14639_v37  ;;  %v14367_v11 = vld [vmem:[%s16889_s26 + $0x2088] sm:$0xf] }
 0x3bb   : > { %9471 = vmatpush.bf16.msra.mxu1 %v14544_v25  ;;  %9440 = vmatmul.bf16.vlgmr.msrb.gmra.mxu2 %v17525_v60  ;;  %v16365_v54 = vld [vmem:[%s16889_s26 + $0x2094] sm:$0xf0]  ;;  %v14495_v35 = vld [vmem:[%s16889_s26 + $0x2188] sm:$0xf]  ;;  %v14768_v24 = vor.u32 %v16465_v52, %v14767_v44 }
 0x3bc   : > { %9484 = vmatpush.bf16.msra.mxu2 %v14672_v62  ;;  %9453 = vmatmul.bf16.vlgmr.msrb.gmra.mxu3 %v17529_v0  ;;  %v16397_v25 = vld [vmem:[%s16889_s26 + $0x2194] sm:$0xf0]  ;;  %v14623_v62 = vld [vmem:[%s16889_s26 + $0x2288] sm:$0xf]  ;;  %v14368_v26 = vor.u32 %v16365_v54, %v14367_v11 }
 0x3bd   : > { %9497 = vmatpush.bf16.msra.mxu3 %v14800_v6  ;;  %v16429_v56 = vld [vmem:[%s16889_s26 + $0x2294] sm:$0xf0]  ;;  %v14751_v12 = vld [vmem:[%s16889_s26 + $0x2388] sm:$0xf]  ;;  %v14496_v29 = vor.u32 %v16397_v25, %v14495_v35 }
 0x3be   : > { %9459 = vmatpush.bf16.msra.mxu0 %v14400_v34  ;;  %v16461_v6 = vld [vmem:[%s16889_s26 + $0x2394] sm:$0xf0]  ;;  %v14624_v30 = vor.u32 %v16429_v56, %v14623_v62  ;;  %v14351_v34 = vld [vmem:[%s16889_s26 + $0x2068] sm:$0xf]  ;;  %v9233_v54 = vpop.f32.mrf.mxu2 }
 0x3bf   : > { %9472 = vmatpush.bf16.msra.mxu1 %v14528_v42  ;;  %v16361_v42 = vld [vmem:[%s16889_s26 + $0x2074] sm:$0xf0]  ;;  %v14752_v51 = vor.u32 %v16461_v6, %v14751_v12  ;;  %v14735_v38 = vld [vmem:[%s16889_s26 + $0x2368] sm:$0xf]  ;;  %v9234_v62 = vadd.f32 %v9233_v54, %v9221_v32  ;;  %v9246_v56 = vpop.f32.mrf.mxu3  ;;  %v9209_v6 = vpop.f32.mrf.mxu0 }
 0x3c0   : > { %9485 = vmatpush.bf16.msra.mxu2 %v14656_v31  ;;  %v14479_v31 = vld [vmem:[%s16889_s26 + $0x2168] sm:$0xf]  ;;  %v16393_v33 = vld [vmem:[%s16889_s26 + $0x2174] sm:$0xf0]  ;;  %v14352_v20 = vor.u32 %v16361_v42, %v14351_v34 }
 0x3c1   : > { %9498 = vmatpush.bf16.msra.mxu3 %v14784_v46  ;;  %v14607_v46 = vld [vmem:[%s16889_s26 + $0x2268] sm:$0xf]  ;;  %v16425_v45 = vld [vmem:[%s16889_s26 + $0x2274] sm:$0xf0]  ;;  %v14480_v44 = vor.u32 %v16393_v33, %v14479_v31  ;;  %v18985_v28 = vadd.f32 %v9246_v56, %v9234_v62 }
 0x3c2   : > { %9460 = vmatpush.bf16.msra.mxu0 %v14384_v55  ;;  %v16457_v37 = vld [vmem:[%s16889_s26 + $0x2374] sm:$0xf0]  ;;  %v14608_v52 = vor.u32 %v16425_v45, %v14607_v46  ;;  %v14335_v55 = vld [vmem:[%s16889_s26 + $0x2048] sm:$0xf] }
 0x3c3   : > { %9473 = vmatpush.bf16.msra.mxu1 %v14512_v53  ;;  %v16357_v53 = vld [vmem:[%s16889_s26 + $0x2054] sm:$0xf0]  ;;  %v14736_v11 = vor.u32 %v16457_v37, %v14735_v38  ;;  %v14719_v57 = vld [vmem:[%s16889_s26 + $0x2348] sm:$0xf] }
 0x3c4   : > { %9486 = vmatpush.bf16.msra.mxu2 %v14640_v58  ;;  %v14463_v58 = vld [vmem:[%s16889_s26 + $0x2148] sm:$0xf]  ;;  %v16389_v35 = vld [vmem:[%s16889_s26 + $0x2154] sm:$0xf0]  ;;  %v14336_v7 = vor.u32 %v16357_v53, %v14335_v55 }
 0x3c5   : > { %9499 = vmatpush.bf16.msra.mxu3 %v14768_v24  ;;  %v14591_v24 = vld [vmem:[%s16889_s26 + $0x2248] sm:$0xf]  ;;  %v16421_v25 = vld [vmem:[%s16889_s26 + $0x2254] sm:$0xf0] }
 0x3c6   : > { %9461 = vmatpush.bf16.msra.mxu0 %v14368_v26  ;;  %v16453_v12 = vld [vmem:[%s16889_s26 + $0x2354] sm:$0xf0]  ;;  %v9222_v26 = vpop.f32.mrf.mxu1  ;;  %v14319_v34 = vld [vmem:[%s16889_s26 + $0x2028] sm:$0xf]  ;;  %v9235_v62 = vpop.f32.mrf.mxu2 }
 0x3c7   : > { %9474 = vmatpush.bf16.msra.mxu1 %v14496_v29  ;;  %v14464_v29 = vor.u32 %v16389_v35, %v14463_v58  ;;  %v16353_v42 = vld [vmem:[%s16889_s26 + $0x2034] sm:$0xf0]  ;;  %v14447_v31 = vld [vmem:[%s16889_s26 + $0x2128] sm:$0xf]  ;;  %v9248_v6 = vpop.f32.mrf.mxu3 }
 0x3c8   : > { %9487 = vmatpush.bf16.msra.mxu2 %v14624_v30  ;;  %v14592_v30 = vor.u32 %v16421_v25, %v14591_v24  ;;  %v16385_v32 = vld [vmem:[%s16889_s26 + $0x2134] sm:$0xf0]  ;;  %v14575_v33 = vld [vmem:[%s16889_s26 + $0x2228] sm:$0xf]  ;;  %v14320_v37 = vor.u32 %v16353_v42, %v14319_v34 }
 0x3c9   : > { %9500 = vmatpush.bf16.msra.mxu3 %v14752_v51  ;;  %v14720_v51 = vor.u32 %v16453_v12, %v14719_v57  ;;  %v16417_v46 = vld [vmem:[%s16889_s26 + $0x2234] sm:$0xf0]  ;;  %v14703_v45 = vld [vmem:[%s16889_s26 + $0x2328] sm:$0xf] }
 0x3ca   : > { %9462 = vmatpush.bf16.msra.mxu0 %v14352_v20  ;;  %v16449_v38 = vld [vmem:[%s16889_s26 + $0x2334] sm:$0xf0]  ;;  %v14303_v20 = vld [vmem:[%s16889_s26 + $0x2008] sm:$0xf]  ;;  %v14576_v55 = vor.u32 %v16417_v46, %v14575_v33 }
 0x3cb   : > { %9475 = vmatpush.bf16.msra.mxu1 %v14480_v44  ;;  %v16349_v44 = vld [vmem:[%s16889_s26 + $0x2014] sm:$0xf0]  ;;  %v14431_v53 = vld [vmem:[%s16889_s26 + $0x2108] sm:$0xf]  ;;  %v14704_v54 = vor.u32 %v16449_v38, %v14703_v45 }
 0x3cc   : > { %9488 = vmatpush.bf16.msra.mxu2 %v14608_v52  ;;  %v14448_v52 = vor.u32 %v16385_v32, %v14447_v31  ;;  %v16381_v58 = vld [vmem:[%s16889_s26 + $0x2114] sm:$0xf0]  ;;  %v14687_v24 = vld [vmem:[%s16889_s26 + $0x2308] sm:$0xf] }
 0x3cd   : > { %9501 = vmatpush.bf16.msra.mxu3 %v14736_v11  ;;  %v14559_v11 = vld [vmem:[%s16889_s26 + $0x2208] sm:$0xf]  ;;  %v16413_v35 = vld [vmem:[%s16889_s26 + $0x2214] sm:$0xf0]  ;;  %v14432_v34 = vor.u32 %v16381_v58, %v14431_v53 }
 0x3ce   : > { %9463 = vmatpush.bf16.msra.mxu0 %v14336_v7  ;;  %v16445_v25 = vld [vmem:[%s16889_s26 + $0x2314] sm:$0xf0]  ;;  %v14927_v56 = vld [vmem:[%s16889_s26 + $0x24e8] sm:$0xf]  ;;  %v14304_v7 = vor.u32 %v16349_v44, %v14303_v20  ;;  %v14560_v42 = vor.u32 %v16413_v35, %v14559_v11 }
 0x3cf   : > { %9476 = vmatpush.bf16.msra.mxu1 %v14464_v29  ;;  %v16505_v57 = vld [vmem:[%s16889_s26 + $0x24f4] sm:$0xf0]  ;;  %v15055_v12 = vld [vmem:[%s16889_s26 + $0x25e8] sm:$0xf]  ;;  %v14688_v32 = vor.u32 %v16445_v25, %v14687_v24 }
 0x3d0   : > { %9489 = vmatpush.bf16.msra.mxu2 %v14592_v30  ;;  %v16537_v26 = vld [vmem:[%s16889_s26 + $0x25f4] sm:$0xf0]  ;;  %v15183_v29 = vld [vmem:[%s16889_s26 + $0x26e8] sm:$0xf]  ;;  %v14928_v33 = vor.u32 %v16505_v57, %v14927_v56 }
 0x3d1   : > { %9502 = vmatpush.bf16.msra.mxu3 %v14720_v51  ;;  %v16569_v30 = vld [vmem:[%s16889_s26 + $0x26f4] sm:$0xf0]  ;;  %v15311_v31 = vld [vmem:[%s16889_s26 + $0x27e8] sm:$0xf]  ;;  %v15056_v46 = vor.u32 %v16537_v26, %v15055_v12 }
 0x3d2   : > { %9464 = vmatpush.bf16.msra.mxu0 %v14320_v37  ;;  %v16601_v51 = vld [vmem:[%s16889_s26 + $0x27f4] sm:$0xf0]  ;;  %v15184_v45 = vor.u32 %v16569_v30, %v15183_v29  ;;  %v14911_v38 = vld [vmem:[%s16889_s26 + $0x24c8] sm:$0xf] }
 0x3d3   : > { %9477 = vmatpush.bf16.msra.mxu1 %v14448_v52  ;;  %v16501_v37 = vld [vmem:[%s16889_s26 + $0x24d4] sm:$0xf0]  ;;  %v15039_v20 = vld [vmem:[%s16889_s26 + $0x25c8] sm:$0xf]  ;;  %v15312_v44 = vor.u32 %v16601_v51, %v15311_v31 }
 0x3d4   : > { %9490 = vmatpush.bf16.msra.mxu2 %v14576_v55  ;;  %v16533_v52 = vld [vmem:[%s16889_s26 + $0x25d4] sm:$0xf0]  ;;  %v15167_v55 = vld [vmem:[%s16889_s26 + $0x26c8] sm:$0xf] }
 0x3d5   : > { %9503 = vmatpush.bf16.msra.mxu3 %v14704_v54  ;;  %v16565_v53 = vld [vmem:[%s16889_s26 + $0x26d4] sm:$0xf0]  ;;  %v15295_v58 = vld [vmem:[%s16889_s26 + $0x27c8] sm:$0xf]  ;;  %v14912_v54 = vor.u32 %v16501_v37, %v14911_v38  ;;  %v15040_v35 = vor.u32 %v16533_v52, %v15039_v20 }
 0x3d6   : > { %9465 = vmatpush.bf16.msra.mxu0 %v14304_v7  ;;  %v16597_v11 = vld [vmem:[%s16889_s26 + $0x27d4] sm:$0xf0]  ;;  %v15168_v24 = vor.u32 %v16565_v53, %v15167_v55  ;;  %v14895_v25 = vld [vmem:[%s16889_s26 + $0x24a8] sm:$0xf]  ;;  %v9259_v55 = vpop.f32.mrf.mxu0 }
 0x3d7   : > { %9478 = vmatpush.bf16.msra.mxu1 %v14432_v34  ;;  %v16497_v62 = vld [vmem:[%s16889_s26 + $0x24b4] sm:$0xf0]  ;;  %v15023_v56 = vld [vmem:[%s16889_s26 + $0x25a8] sm:$0xf]  ;;  %v15296_v12 = vor.u32 %v16597_v11, %v15295_v58  ;;  %v9260_v11 = vadd.f32 %v9259_v55, %v18985_v28 }
 0x3d8   : > { %9491 = vmatpush.bf16.msra.mxu2 %v14560_v42  ;;  %v16687_v57 = vld [vmem:[#allocation1] sm:$0xff]  ;;  %v15151_v7 = vld [vmem:[%s16889_s26 + $0x26a8] sm:$0xf]  ;;  %v14896_v51 = vor.u32 %v16497_v62, %v14895_v25 }
 0x3d9   : > { %9504 = vmatpush.bf16.msra.mxu3 %v14688_v32  ;;  %9466 = vmatmul.bf16.vlgmr.msra.gmra.mxu0 %v16687_v57  ;;  %v16529_v6 = vld [vmem:[%s16889_s26 + $0x25b4] sm:$0xf0]  ;;  %v16688_v29 = vld [vmem:[#allocation1 + $0x12] sm:$0xff]  ;;  %v16689_v30 = vld [vmem:[#allocation1 + $0x9] sm:$0xff] }
 0x3da   : > { %9510 = vmatpush.bf16.msrb.mxu0 %v14928_v33  ;;  %v16561_v26 = vld [vmem:[%s16889_s26 + $0x26b4] sm:$0xf0]  ;;  %9479 = vmatmul.bf16.vlgmr.msra.gmra.mxu1 %v16689_v30  ;;  %v15279_v34 = vld [vmem:[%s16889_s26 + $0x27a8] sm:$0xf]  ;;  %v15024_v32 = vor.u32 %v16529_v6, %v15023_v56 }
 0x3db   : > { %9523 = vmatpush.bf16.msrb.mxu1 %v15056_v46  ;;  %9492 = vmatmul.bf16.vlgmr.msra.gmra.mxu2 %v16688_v29  ;;  %v16593_v42 = vld [vmem:[%s16889_s26 + $0x27b4] sm:$0xf0]  ;;  %v15152_v33 = vor.u32 %v16561_v26, %v15151_v7  ;;  %v14879_v46 = vld [vmem:[%s16889_s26 + $0x2488] sm:$0xf] }
 0x3dc   : > { %9536 = vmatpush.bf16.msrb.mxu2 %v15184_v45  ;;  %v16690_v31 = vld [vmem:[#allocation1 + $0x1b] sm:$0xff]  ;;  %v15007_v38 = vld [vmem:[%s16889_s26 + $0x2588] sm:$0xf]  ;;  %v15280_v37 = vor.u32 %v16593_v42, %v15279_v34 }
 0x3dd   : > { %9549 = vmatpush.bf16.msrb.mxu3 %v15312_v44  ;;  %v16493_v45 = vld [vmem:[%s16889_s26 + $0x2494] sm:$0xf0]  ;;  %v15135_v44 = vld [vmem:[%s16889_s26 + $0x2688] sm:$0xf] }
 0x3de   : > { %9505 = vmatmul.bf16.vlgmr.msra.gmra.mxu3 %v16690_v31  ;;  %9511 = vmatpush.bf16.msrb.mxu0 %v14912_v54  ;;  %v16525_v20 = vld [vmem:[%s16889_s26 + $0x2594] sm:$0xf0]  ;;  %v15263_v53 = vld [vmem:[%s16889_s26 + $0x2788] sm:$0xf]  ;;  %v14880_v54 = vor.u32 %v16493_v45, %v14879_v46  ;;  %v9285_v45 = vpop.f32.mrf.mxu2 }
 0x3df   : > { %9524 = vmatpush.bf16.msrb.mxu1 %v15040_v35  ;;  %v16557_v52 = vld [vmem:[%s16889_s26 + $0x2694] sm:$0xf0]  ;;  %v9272_v35 = vpop.f32.mrf.mxu1  ;;  %v14863_v62 = vld [vmem:[%s16889_s26 + $0x2468] sm:$0xf] }
 0x3e0   : > { %9537 = vmatpush.bf16.msrb.mxu2 %v15168_v24  ;;  %v16589_v58 = vld [vmem:[%s16889_s26 + $0x2794] sm:$0xf0]  ;;  %v15008_v24 = vor.u32 %v16525_v20, %v15007_v38  ;;  %v15136_v25 = vor.u32 %v16557_v52, %v15135_v44  ;;  %v14991_v57 = vld [vmem:[%s16889_s26 + $0x2568] sm:$0xf]  ;;  %v9273_v6 = vadd.f32 %v9272_v35, %v9260_v11  ;;  %v9298_v52 = vpop.f32.mrf.mxu3 }
 0x3e1   : > { %9550 = vmatpush.bf16.msrb.mxu3 %v15296_v12  ;;  %v16489_v56 = vld [vmem:[%s16889_s26 + $0x2474] sm:$0xf0]  ;;  %v15264_v12 = vor.u32 %v16589_v58, %v15263_v53  ;;  %v15119_v26 = vld [vmem:[%s16889_s26 + $0x2668] sm:$0xf]  ;;  %v9261_v58 = vpop.f32.mrf.mxu0 }
 0x3e2   : > { %9512 = vmatpush.bf16.msrb.mxu0 %v14896_v51  ;;  %v16521_v7 = vld [vmem:[%s16889_s26 + $0x2574] sm:$0xf0]  ;;  %v15247_v29 = vld [vmem:[%s16889_s26 + $0x2768] sm:$0xf]  ;;  %v14864_v34 = vor.u32 %v16489_v56, %v14863_v62  ;;  %v9286_v44 = vadd.f32 %v9285_v45, %v9273_v6 }
 0x3e3   : > { %9525 = vmatpush.bf16.msrb.mxu1 %v15024_v32  ;;  %v16553_v28 = vld [vmem:[%s16889_s26 + $0x2674] sm:$0xf0]  ;;  %v14992_v42 = vor.u32 %v16521_v7, %v14991_v57  ;;  %v14847_v51 = vld [vmem:[%s16889_s26 + $0x2448] sm:$0xf] }
 0x3e4   : > { %9538 = vmatpush.bf16.msrb.mxu2 %v15152_v33  ;;  %v16585_v30 = vld [vmem:[%s16889_s26 + $0x2774] sm:$0xf0]  ;;  %v15120_v31 = vor.u32 %v16553_v28, %v15119_v26  ;;  %v14975_v33 = vld [vmem:[%s16889_s26 + $0x2548] sm:$0xf]  ;;  %v19052_v35 = vadd.f32 %v9298_v52, %v9286_v44  ;;  %v15351_v52 = vld [vmem:[%s16889_s26 + $0xec] sm:$0xf] }
 0x3e5   : > { %9551 = vmatpush.bf16.msrb.mxu3 %v15280_v37  ;;  %v16485_v32 = vld [vmem:[%s16889_s26 + $0x2454] sm:$0xf0]  ;;  %v15248_v46 = vor.u32 %v16585_v30, %v15247_v29  ;;  %v15103_v37 = vld [vmem:[%s16889_s26 + $0x2648] sm:$0xf] }
 0x3e6   : > { %9513 = vmatpush.bf16.msrb.mxu0 %v14880_v54  ;;  %v16517_v38 = vld [vmem:[%s16889_s26 + $0x2554] sm:$0xf0]  ;;  %v15231_v55 = vld [vmem:[%s16889_s26 + $0x2748] sm:$0xf]  ;;  %v14848_v11 = vor.u32 %v16485_v32, %v14847_v51  ;;  %v9287_v44 = vpop.f32.mrf.mxu2 }
 0x3e7   : > { %9526 = vmatpush.bf16.msrb.mxu1 %v15008_v24  ;;  %v16549_v20 = vld [vmem:[%s16889_s26 + $0x2654] sm:$0xf0]  ;;  %v9274_v54 = vpop.f32.mrf.mxu1  ;;  %v14976_v24 = vor.u32 %v16517_v38, %v14975_v33  ;;  %v14831_v62 = vld [vmem:[%s16889_s26 + $0x2428] sm:$0xf]  ;;  %v10289_v44 = vld [vmem:[%s16889_s26 + $0xb8] sm:$0xf0] }
 0x3e8   : > { %9539 = vmatpush.bf16.msrb.mxu2 %v15136_v25  ;;  %v16581_v53 = vld [vmem:[%s16889_s26 + $0x2754] sm:$0xf0]  ;;  %v15104_v25 = vor.u32 %v16549_v20, %v15103_v37  ;;  %v14959_v57 = vld [vmem:[%s16889_s26 + $0x2528] sm:$0xf]  ;;  %v9300_v58 = vpop.f32.mrf.mxu3  ;;  %v10449_v54 = vld [vmem:[%s16889_s26 + $0x1f8] sm:$0xf0] }
 0x3e9   : > { %9552 = vmatpush.bf16.msrb.mxu3 %v15264_v12  ;;  %v16481_v56 = vld [vmem:[%s16889_s26 + $0x2434] sm:$0xf0]  ;;  %v15232_v12 = vor.u32 %v16581_v53, %v15231_v55  ;;  %v15087_v7 = vld [vmem:[%s16889_s26 + $0x2628] sm:$0xf]  ;;  %v10321_v55 = vld [vmem:[%s16889_s26 + $0xf8] sm:$0xf0] }
 0x3ea   : > { %9514 = vmatpush.bf16.msrb.mxu0 %v14864_v34  ;;  %v16513_v6 = vld [vmem:[%s16889_s26 + $0x2534] sm:$0xf0]  ;;  %v15215_v28 = vld [vmem:[%s16889_s26 + $0x2728] sm:$0xf]  ;;  %v14832_v30 = vor.u32 %v16481_v56, %v14831_v62  ;;  %v15383_v53 = vld [vmem:[%s16889_s26 + $0x1ec] sm:$0xf] }
 0x3eb   : > { %9527 = vmatpush.bf16.msrb.mxu1 %v14992_v42  ;;  %v16545_v26 = vld [vmem:[%s16889_s26 + $0x2634] sm:$0xf0]  ;;  %v14815_v34 = vld [vmem:[%s16889_s26 + $0x2408] sm:$0xf]  ;;  %v10417_v58 = vld [vmem:[%s16889_s26 + $0x1b8] sm:$0xf0] }
 0x3ec   : > { %9540 = vmatpush.bf16.msrb.mxu2 %v15120_v31  ;;  %v16577_v29 = vld [vmem:[%s16889_s26 + $0x2734] sm:$0xf0]  ;;  %v14960_v31 = vor.u32 %v16513_v6, %v14959_v57  ;;  %v15088_v51 = vor.u32 %v16545_v26, %v15087_v7  ;;  %v14943_v32 = vld [vmem:[%s16889_s26 + $0x2508] sm:$0xf]  ;;  %v15447_v57 = vld [vmem:[%s16889_s26 + $0x3ec] sm:$0xf]  ;;  %v10324_v7 = vor.u32 %v15351_v52, %v10321_v55  ;;  %v10452_v26 = vor.u32 %v15383_v53, %v10449_v54 }
 0x3ed   : > { %9553 = vmatpush.bf16.msrb.mxu3 %v15248_v46  ;;  %v16477_v42 = vld [vmem:[%s16889_s26 + $0x2414] sm:$0xf0]  ;;  %v15071_v46 = vld [vmem:[%s16889_s26 + $0x2608] sm:$0xf]  ;;  %v15216_v45 = vor.u32 %v16577_v29, %v15215_v28  ;;  %v15347_v29 = vld [vmem:[%s16889_s26 + $0xcc] sm:$0xf] }
 0x3ee   : > { %9515 = vmatpush.bf16.msrb.mxu0 %v14848_v11  ;;  %v16509_v33 = vld [vmem:[%s16889_s26 + $0x2514] sm:$0xf0]  ;;  %v15199_v37 = vld [vmem:[%s16889_s26 + $0x2708] sm:$0xf]  ;;  %v14816_v11 = vor.u32 %v16477_v42, %v14815_v34  ;;  %v15379_v34 = vld [vmem:[%s16889_s26 + $0x1cc] sm:$0xf] }
 0x3ef   : > { %9528 = vmatpush.bf16.msrb.mxu1 %v14976_v24  ;;  %v16541_v38 = vld [vmem:[%s16889_s26 + $0x2614] sm:$0xf0]  ;;  %v15415_v24 = vld [vmem:[%s16889_s26 + $0x2ec] sm:$0xf]  ;;  %v14944_v62 = vor.u32 %v16509_v33, %v14943_v32  ;;  %v10561_v32 = vld [vmem:[%s16889_s26 + $0x2d8] sm:$0xf0] }
 0x3f0   : > { %9541 = vmatpush.bf16.msrb.mxu2 %v15104_v25  ;;  %v16573_v20 = vld [vmem:[%s16889_s26 + $0x2714] sm:$0xf0]  ;;  %v10577_v25 = vld [vmem:[%s16889_s26 + $0x2f8] sm:$0xf0]  ;;  %v15072_v56 = vor.u32 %v16541_v38, %v15071_v46  ;;  %v15443_v33 = vld [vmem:[%s16889_s26 + $0x3cc] sm:$0xf] }
 0x3f1   : > { %9554 = vmatpush.bf16.msrb.mxu3 %v15232_v12  ;;  %v10705_v12 = vld [vmem:[%s16889_s26 + $0x3f8] sm:$0xf0]  ;;  %v15200_v6 = vor.u32 %v16573_v20, %v15199_v37  ;;  %v10580_v28 = vor.u32 %v15415_v24, %v10577_v25  ;;  %v15343_v20 = vld [vmem:[%s16889_s26 + $0xac] sm:$0xf] }
 0x3f2   : > { %9516 = vmatpush.bf16.msrb.mxu0 %v14832_v30  ;;  %v10305_v30 = vld [vmem:[%s16889_s26 + $0xd8] sm:$0xf0]  ;;  %v10708_v42 = vor.u32 %v15447_v57, %v10705_v12  ;;  %v15375_v52 = vld [vmem:[%s16889_s26 + $0x1ac] sm:$0xf]  ;;  %v10292_v12 = vor.u32 %v15343_v20, %v10289_v44 }
 0x3f3   : > { %9529 = vmatpush.bf16.msrb.mxu1 %v14960_v31  ;;  %v10433_v31 = vld [vmem:[%s16889_s26 + $0x1d8] sm:$0xf0]  ;;  %v16692_v24 = vld [vmem:[#allocation1 + $0x36] sm:$0xff]  ;;  %v16693_v25 = vld [vmem:[#allocation1 + $0x2d] sm:$0xff] }
 0x3f4   : > { %9542 = vmatpush.bf16.msrb.mxu2 %v15088_v51  ;;  %v15411_v51 = vld [vmem:[%s16889_s26 + $0x2cc] sm:$0xf]  ;;  %v10689_v46 = vld [vmem:[%s16889_s26 + $0x3d8] sm:$0xf0]  ;;  %v10436_v38 = vor.u32 %v15379_v34, %v10433_v31 }
 0x3f5   : > { %9555 = vmatpush.bf16.msrb.mxu3 %v15216_v45  ;;  %v10308_v45 = vor.u32 %v15347_v29, %v10305_v30  ;;  %v10564_v37 = vor.u32 %v15411_v51, %v10561_v32  ;;  %v16691_v55 = vld [vmem:[#allocation1 + $0x24] sm:$0xff]  ;;  %v10692_v53 = vor.u32 %v15443_v33, %v10689_v46  ;;  %v15371_v29 = vld [vmem:[%s16889_s26 + $0x18c] sm:$0xf] }
 0x3f6   : > { %9517 = vmatpush.bf16.msrb.mxu0 %v14816_v11  ;;  %v15407_v11 = vld [vmem:[%s16889_s26 + $0x2ac] sm:$0xf]  ;;  %v10545_v54 = vld [vmem:[%s16889_s26 + $0x2b8] sm:$0xf0]  ;;  %v9311_v51 = vpop.f32.mrf.mxu0 }
 0x3f7   : > { %9530 = vmatpush.bf16.msrb.mxu1 %v14944_v62  ;;  %v15439_v62 = vld [vmem:[%s16889_s26 + $0x3ac] sm:$0xf]  ;;  %v16694_v57 = vld [vmem:[#allocation1 + $0x3f] sm:$0xff]  ;;  %v9312_v46 = vadd.f32 %v9311_v51, %v19052_v35 }
 0x3f8   : > { %9543 = vmatpush.bf16.msrb.mxu2 %v15072_v56  ;;  %v10673_v56 = vld [vmem:[%s16889_s26 + $0x3b8] sm:$0xf0]  ;;  %v15435_v32 = vld [vmem:[%s16889_s26 + $0x38c] sm:$0xf] }
 0x3f9   : > { %9556 = vmatpush.bf16.msrb.mxu3 %v15200_v6  ;;  %9518 = vmatmul.bf16.vlgmr.msrb.gmra.mxu0 %v16691_v55  ;;  %v10420_v6 = vor.u32 %v15375_v52, %v10417_v58  ;;  %v10676_v30 = vor.u32 %v15439_v62, %v10673_v56  ;;  %v10401_v34 = vld [vmem:[%s16889_s26 + $0x198] sm:$0xf0]  ;;  %v15335_v44 = vld [vmem:[%s16889_s26 + $0x6c] sm:$0xf] }
 0x3fa   : > { %9562 = vmatpush.bf16.msra.mxu0 %v10324_v7  ;;  %9531 = vmatmul.bf16.vlgmr.msrb.gmra.mxu1 %v16693_v25  ;;  %v10548_v7 = vor.u32 %v15407_v11, %v10545_v54  ;;  %v10529_v31 = vld [vmem:[%s16889_s26 + $0x298] sm:$0xf0]  ;;  %v15367_v55 = vld [vmem:[%s16889_s26 + $0x16c] sm:$0xf] }
 0x3fb   : > { %9575 = vmatpush.bf16.msra.mxu1 %v10452_v26  ;;  %9544 = vmatmul.bf16.vlgmr.msrb.gmra.mxu2 %v16692_v24  ;;  %v15339_v26 = vld [vmem:[%s16889_s26 + $0x8c] sm:$0xf]  ;;  %v10657_v33 = vld [vmem:[%s16889_s26 + $0x398] sm:$0xf0] }
 0x3fc   : > { %9588 = vmatpush.bf16.msra.mxu2 %v10580_v28  ;;  %9557 = vmatmul.bf16.vlgmr.msrb.gmra.mxu3 %v16694_v57  ;;  %v10273_v28 = vld [vmem:[%s16889_s26 + $0x98] sm:$0xf0]  ;;  %v15399_v54 = vld [vmem:[%s16889_s26 + $0x26c] sm:$0xf] }
 0x3fd   : > { %9601 = vmatpush.bf16.msra.mxu3 %v10708_v42  ;;  %v15403_v42 = vld [vmem:[%s16889_s26 + $0x28c] sm:$0xf]  ;;  %v10257_v52 = vld [vmem:[%s16889_s26 + $0x78] sm:$0xf0] }
 0x3fe   : > { %9563 = vmatpush.bf16.msra.mxu0 %v10308_v45  ;;  %v10276_v45 = vor.u32 %v15339_v26, %v10273_v28  ;;  %v10532_v20 = vor.u32 %v15403_v42, %v10529_v31  ;;  %v10385_v11 = vld [vmem:[%s16889_s26 + $0x178] sm:$0xf0]  ;;  %v15431_v24 = vld [vmem:[%s16889_s26 + $0x36c] sm:$0xf]  ;;  %v10260_v62 = vor.u32 %v15335_v44, %v10257_v52  ;;  %v9337_v28 = vpop.f32.mrf.mxu2 }
 0x3ff   : > { %9576 = vmatpush.bf16.msra.mxu1 %v10436_v38  ;;  %v9324_v38 = vpop.f32.mrf.mxu1  ;;  %v10513_v35 = vld [vmem:[%s16889_s26 + $0x278] sm:$0xf0]  ;;  %v10388_v56 = vor.u32 %v15367_v55, %v10385_v11  ;;  %v9350_v31 = vpop.f32.mrf.mxu3  ;;  %v15427_v51 = vld [vmem:[%s16889_s26 + $0x34c] sm:$0xf] }
 0x400   : > { %9589 = vmatpush.bf16.msra.mxu2 %v10564_v37  ;;  %v10404_v37 = vor.u32 %v15371_v29, %v10401_v34  ;;  %v9325_v58 = vadd.f32 %v9324_v38, %v9312_v46  ;;  %v10641_v25 = vld [vmem:[%s16889_s26 + $0x378] sm:$0xf0]  ;;  %v10516_v57 = vor.u32 %v15399_v54, %v10513_v35  ;;  %v15327_v44 = vld [vmem:[%s16889_s26 + $0x2c] sm:$0xf] }
 0x401   : > { %9602 = vmatpush.bf16.msra.mxu3 %v10692_v53  ;;  %v10660_v53 = vor.u32 %v15435_v32, %v10657_v33  ;;  %v10644_v26 = vor.u32 %v15431_v24, %v10641_v25  ;;  %v10369_v29 = vld [vmem:[%s16889_s26 + $0x158] sm:$0xf0]  ;;  %v9313_v33 = vpop.f32.mrf.mxu0  ;;  %v15359_v55 = vld [vmem:[%s16889_s26 + $0x12c] sm:$0xf] }
 0x402   : > { %9564 = vmatpush.bf16.msra.mxu0 %v10292_v12  ;;  %v15331_v12 = vld [vmem:[%s16889_s26 + $0x4c] sm:$0xf]  ;;  %v10497_v34 = vld [vmem:[%s16889_s26 + $0x258] sm:$0xf0]  ;;  %v9338_v42 = vadd.f32 %v9337_v28, %v9325_v58 }
 0x403   : > { %9577 = vmatpush.bf16.msra.mxu1 %v10420_v6  ;;  %v10241_v6 = vld [vmem:[%s16889_s26 + $0x58] sm:$0xf0]  ;;  %v15391_v11 = vld [vmem:[%s16889_s26 + $0x22c] sm:$0xf] }
 0x404   : > { %9590 = vmatpush.bf16.msra.mxu2 %v10548_v7  ;;  %v15363_v7 = vld [vmem:[%s16889_s26 + $0x14c] sm:$0xf]  ;;  %v10625_v32 = vld [vmem:[%s16889_s26 + $0x358] sm:$0xf0]  ;;  %v10244_v46 = vor.u32 %v15331_v12, %v10241_v6  ;;  %v19119_v38 = vadd.f32 %v9350_v31, %v9338_v42 }
 0x405   : > { %9603 = vmatpush.bf16.msra.mxu3 %v10676_v30  ;;  %v15395_v30 = vld [vmem:[%s16889_s26 + $0x24c] sm:$0xf]  ;;  %v10225_v52 = vld [vmem:[%s16889_s26 + $0x38] sm:$0xf0] }
 0x406   : > { %9565 = vmatpush.bf16.msra.mxu0 %v10276_v45  ;;  %v10353_v58 = vld [vmem:[%s16889_s26 + $0x138] sm:$0xf0]  ;;  %v15423_v35 = vld [vmem:[%s16889_s26 + $0x32c] sm:$0xf]  ;;  %v10228_v25 = vor.u32 %v15327_v44, %v10225_v52  ;;  %v9339_v42 = vpop.f32.mrf.mxu2 }
 0x407   : > { %9578 = vmatpush.bf16.msra.mxu1 %v10404_v37  ;;  %v9326_v45 = vpop.f32.mrf.mxu1  ;;  %v10372_v37 = vor.u32 %v15363_v7, %v10369_v29  ;;  %v10481_v54 = vld [vmem:[%s16889_s26 + $0x238] sm:$0xf0]  ;;  %v15355_v6 = vld [vmem:[%s16889_s26 + $0x10c] sm:$0xf]  ;;  %v9352_v33 = vpop.f32.mrf.mxu3 }
 0x408   : > { %9591 = vmatpush.bf16.msra.mxu2 %v10532_v20  ;;  %v10500_v20 = vor.u32 %v15395_v30, %v10497_v34  ;;  %v10609_v24 = vld [vmem:[%s16889_s26 + $0x338] sm:$0xf0]  ;;  %v10484_v12 = vor.u32 %v15391_v11, %v10481_v54  ;;  %v15419_v30 = vld [vmem:[%s16889_s26 + $0x30c] sm:$0xf] }
 0x409   : > { %9604 = vmatpush.bf16.msra.mxu3 %v10660_v53  ;;  %v10628_v53 = vor.u32 %v15427_v51, %v10625_v32  ;;  %v10337_v7 = vld [vmem:[%s16889_s26 + $0x118] sm:$0xf0]  ;;  %v10612_v28 = vor.u32 %v15423_v35, %v10609_v24  ;;  %v15479_v31 = vld [vmem:[%s16889_s26 + $0x4ec] sm:$0xf] }
 0x40a   : > { %9566 = vmatpush.bf16.msra.mxu0 %v10260_v62  ;;  %v15323_v62 = vld [vmem:[%s16889_s26 + $0xc] sm:$0xf]  ;;  %v10465_v29 = vld [vmem:[%s16889_s26 + $0x218] sm:$0xf0]  ;;  %v10340_v44 = vor.u32 %v15355_v6, %v10337_v7 }
 0x40b   : > { %9579 = vmatpush.bf16.msra.mxu1 %v10388_v56  ;;  %v10209_v56 = vld [vmem:[%s16889_s26 + $0x18] sm:$0xf0]  ;;  %v15511_v32 = vld [vmem:[%s16889_s26 + $0x5ec] sm:$0xf] }
 0x40c   : > { %9592 = vmatpush.bf16.msra.mxu2 %v10516_v57  ;;  %v10356_v57 = vor.u32 %v15359_v55, %v10353_v58  ;;  %v10593_v34 = vld [vmem:[%s16889_s26 + $0x318] sm:$0xf0]  ;;  %v15575_v55 = vld [vmem:[%s16889_s26 + $0x7ec] sm:$0xf] }
 0x40d   : > { %9605 = vmatpush.bf16.msra.mxu3 %v10644_v26  ;;  %v15387_v26 = vld [vmem:[%s16889_s26 + $0x20c] sm:$0xf]  ;;  %v10833_v51 = vld [vmem:[%s16889_s26 + $0x4f8] sm:$0xf0]  ;;  %v10596_v58 = vor.u32 %v15419_v30, %v10593_v34 }
 0x40e   : > { %9567 = vmatpush.bf16.msra.mxu0 %v10244_v46  ;;  %v10212_v46 = vor.u32 %v15323_v62, %v10209_v56  ;;  %v10961_v45 = vld [vmem:[%s16889_s26 + $0x5f8] sm:$0xf0]  ;;  %v10468_v52 = vor.u32 %v15387_v26, %v10465_v29  ;;  %v10836_v11 = vor.u32 %v15479_v31, %v10833_v51  ;;  %v15475_v24 = vld [vmem:[%s16889_s26 + $0x4cc] sm:$0xf] }
 0x40f   : > { %9580 = vmatpush.bf16.msra.mxu1 %v10372_v37  ;;  %v15543_v37 = vld [vmem:[%s16889_s26 + $0x6ec] sm:$0xf]  ;;  %v10964_v54 = vor.u32 %v15511_v32, %v10961_v45  ;;  %v11073_v6 = vld [vmem:[%s16889_s26 + $0x6d8] sm:$0xf0] }
 0x410   : > { %9593 = vmatpush.bf16.msra.mxu2 %v10500_v20  ;;  %v11089_v20 = vld [vmem:[%s16889_s26 + $0x6f8] sm:$0xf0]  ;;  %v15507_v62 = vld [vmem:[%s16889_s26 + $0x5cc] sm:$0xf] }
 0x411   : > { %9606 = vmatpush.bf16.msra.mxu3 %v10628_v53  ;;  %v11217_v53 = vld [vmem:[%s16889_s26 + $0x7f8] sm:$0xf0]  ;;  %v11092_v35 = vor.u32 %v15543_v37, %v11089_v20  ;;  %v15571_v7 = vld [vmem:[%s16889_s26 + $0x7cc] sm:$0xf] }
 0x412   : > { %9568 = vmatpush.bf16.msra.mxu0 %v10228_v25  ;;  %v10817_v25 = vld [vmem:[%s16889_s26 + $0x4d8] sm:$0xf0]  ;;  %v11220_v56 = vor.u32 %v15575_v55, %v11217_v53  ;;  %v15471_v34 = vld [vmem:[%s16889_s26 + $0x4ac] sm:$0xf] }
 0x413   : > { %9581 = vmatpush.bf16.msra.mxu1 %v10356_v57  ;;  %v10945_v57 = vld [vmem:[%s16889_s26 + $0x5d8] sm:$0xf0]  ;;  %v15503_v31 = vld [vmem:[%s16889_s26 + $0x5ac] sm:$0xf] }
 0x414   : > { %9594 = vmatpush.bf16.msra.mxu2 %v10484_v12  ;;  %v15539_v12 = vld [vmem:[%s16889_s26 + $0x6cc] sm:$0xf]  ;;  %v11201_v26 = vld [vmem:[%s16889_s26 + $0x7d8] sm:$0xf0]  ;;  %v10948_v29 = vor.u32 %v15507_v62, %v10945_v57 }
 0x415   : > { %9607 = vmatpush.bf16.msra.mxu3 %v10612_v28  ;;  %v10820_v28 = vor.u32 %v15475_v24, %v10817_v25  ;;  %v11076_v30 = vor.u32 %v15539_v12, %v11073_v6  ;;  %v10801_v42 = vld [vmem:[%s16889_s26 + $0x4b8] sm:$0xf0]  ;;  %v11204_v51 = vor.u32 %v15571_v7, %v11201_v26  ;;  %v15535_v33 = vld [vmem:[%s16889_s26 + $0x6ac] sm:$0xf] }
 0x416   : > { %9569 = vmatpush.bf16.msra.mxu0 %v10212_v46  ;;  %v10929_v32 = vld [vmem:[%s16889_s26 + $0x5b8] sm:$0xf0]  ;;  %v15567_v45 = vld [vmem:[%s16889_s26 + $0x7ac] sm:$0xf]  ;;  %v10804_v20 = vor.u32 %v15471_v34, %v10801_v42 }
 0x417   : > { %9582 = vmatpush.bf16.msra.mxu1 %v10340_v44  ;;  %v11057_v46 = vld [vmem:[%s16889_s26 + $0x6b8] sm:$0xf0]  ;;  %v10932_v44 = vor.u32 %v15503_v31, %v10929_v32  ;;  %v15499_v53 = vld [vmem:[%s16889_s26 + $0x58c] sm:$0xf]  ;;  %v9376_v62 = vpop.f32.mrf.mxu1 }
 0x418   : > { %9595 = vmatpush.bf16.msra.mxu2 %v10468_v52  ;;  %v11185_v37 = vld [vmem:[%s16889_s26 + $0x7b8] sm:$0xf0]  ;;  %v11060_v52 = vor.u32 %v15535_v33, %v11057_v46  ;;  %v15463_v12 = vld [vmem:[%s16889_s26 + $0x46c] sm:$0xf] }
 0x419   : > { %9608 = vmatpush.bf16.msra.mxu3 %v10596_v58  ;;  %9570 = vmatmul.bf16.vlgmr.msra.gmra.mxu0 %v17014_v22  ;;  %v10785_v55 = vld [vmem:[%s16889_s26 + $0x498] sm:$0xf0]  ;;  %v11188_v58 = vor.u32 %v15567_v45, %v11185_v37  ;;  %v15495_v7 = vld [vmem:[%s16889_s26 + $0x56c] sm:$0xf] }
 0x41a   : > { %9614 = vmatpush.bf16.msrb.mxu0 %v10836_v11  ;;  %9583 = vmatmul.bf16.vlgmr.msra.gmra.mxu1 %v17021_v27  ;;  %v10913_v22 = vld [vmem:[%s16889_s26 + $0x598] sm:$0xf0]  ;;  %v15559_v34 = vld [vmem:[%s16889_s26 + $0x76c] sm:$0xf] }
 0x41b   : > { %9627 = vmatpush.bf16.msrb.mxu1 %v10964_v54  ;;  %9596 = vmatmul.bf16.vlgmr.msra.gmra.mxu2 %v17012_v21  ;;  %v15467_v21 = vld [vmem:[%s16889_s26 + $0x48c] sm:$0xf]  ;;  %v11041_v11 = vld [vmem:[%s16889_s26 + $0x698] sm:$0xf0]  ;;  %v9363_v54 = vpop.f32.mrf.mxu0 }
 0x41c   : > { %9640 = vmatpush.bf16.msrb.mxu2 %v11092_v35  ;;  %9609 = vmatmul.bf16.vlgmr.msra.gmra.mxu3 %v17016_v23  ;;  %v15531_v23 = vld [vmem:[%s16889_s26 + $0x68c] sm:$0xf]  ;;  %v11169_v24 = vld [vmem:[%s16889_s26 + $0x798] sm:$0xf0]  ;;  %v9364_v27 = vadd.f32 %v9363_v54, %v19119_v38  ;;  %v10788_v25 = vor.u32 %v15467_v21, %v10785_v55 }
 0x41d   : > { %9653 = vmatpush.bf16.msrb.mxu3 %v11220_v56  ;;  %v15563_v35 = vld [vmem:[%s16889_s26 + $0x78c] sm:$0xf]  ;;  %v10916_v56 = vor.u32 %v15499_v53, %v10913_v22  ;;  %v11044_v57 = vor.u32 %v15531_v23, %v11041_v11  ;;  %v10769_v6 = vld [vmem:[%s16889_s26 + $0x478] sm:$0xf0] }
 0x41e   : > { %9615 = vmatpush.bf16.msrb.mxu0 %v10820_v28  ;;  %v11172_v26 = vor.u32 %v15563_v35, %v11169_v24  ;;  %v9377_v28 = vadd.f32 %v9376_v62, %v9364_v27  ;;  %v11025_v38 = vld [vmem:[%s16889_s26 + $0x678] sm:$0xf0]  ;;  %v10772_v31 = vor.u32 %v15463_v12, %v10769_v6  ;;  %v15459_v33 = vld [vmem:[%s16889_s26 + $0x44c] sm:$0xf] }
 0x41f   : > { %9628 = vmatpush.bf16.msrb.mxu1 %v10948_v29  ;;  %v10897_v29 = vld [vmem:[%s16889_s26 + $0x578] sm:$0xf0]  ;;  %v15491_v45 = vld [vmem:[%s16889_s26 + $0x54c] sm:$0xf]  ;;  %v9402_v53 = vpop.f32.mrf.mxu3  ;;  %v9378_v54 = vpop.f32.mrf.mxu1 }
 0x420   : > { %9641 = vmatpush.bf16.msrb.mxu2 %v11076_v30  ;;  %v15527_v30 = vld [vmem:[%s16889_s26 + $0x66c] sm:$0xf]  ;;  %v11153_v42 = vld [vmem:[%s16889_s26 + $0x778] sm:$0xf0] }
 0x421   : > { %9654 = vmatpush.bf16.msrb.mxu3 %v11204_v51  ;;  %v10900_v51 = vor.u32 %v15495_v7, %v10897_v29  ;;  %v11028_v32 = vor.u32 %v15527_v30, %v11025_v38  ;;  %v10753_v46 = vld [vmem:[%s16889_s26 + $0x458] sm:$0xf0]  ;;  %v11156_v37 = vor.u32 %v15559_v34, %v11153_v42  ;;  %v15519_v6 = vld [vmem:[%s16889_s26 + $0x62c] sm:$0xf] }
 0x422   : > { %9616 = vmatpush.bf16.msrb.mxu0 %v10804_v20  ;;  %v9389_v20 = vpop.f32.mrf.mxu2  ;;  %v11009_v21 = vld [vmem:[%s16889_s26 + $0x658] sm:$0xf0]  ;;  %v10756_v11 = vor.u32 %v15459_v33, %v10753_v46  ;;  %v15451_v30 = vld [vmem:[%s16889_s26 + $0x40c] sm:$0xf] }
 0x423   : > { %9629 = vmatpush.bf16.msrb.mxu1 %v10932_v44  ;;  %v10881_v44 = vld [vmem:[%s16889_s26 + $0x558] sm:$0xf0]  ;;  %v9390_v55 = vadd.f32 %v9389_v20, %v9377_v28  ;;  %v9365_v23 = vpop.f32.mrf.mxu0 }
 0x424   : > { %9642 = vmatpush.bf16.msrb.mxu2 %v11060_v52  ;;  %v15523_v52 = vld [vmem:[%s16889_s26 + $0x64c] sm:$0xf]  ;;  %v11137_v22 = vld [vmem:[%s16889_s26 + $0x758] sm:$0xf0]  ;;  %v10884_v24 = vor.u32 %v15491_v45, %v10881_v44 }
 0x425   : > { %9655 = vmatpush.bf16.msrb.mxu3 %v11188_v58  ;;  %v15555_v58 = vld [vmem:[%s16889_s26 + $0x74c] sm:$0xf]  ;;  %v19190_v35 = vadd.f32 %v9402_v53, %v9390_v55  ;;  %v11012_v27 = vor.u32 %v15523_v52, %v11009_v21  ;;  %v10737_v62 = vld [vmem:[%s16889_s26 + $0x438] sm:$0xf0] }
 0x426   : > { %9617 = vmatpush.bf16.msrb.mxu0 %v10788_v25  ;;  %v15455_v25 = vld [vmem:[%s16889_s26 + $0x42c] sm:$0xf]  ;;  %v10865_v12 = vld [vmem:[%s16889_s26 + $0x538] sm:$0xf0] }
 0x427   : > { %9630 = vmatpush.bf16.msrb.mxu1 %v10916_v56  ;;  %v15487_v56 = vld [vmem:[%s16889_s26 + $0x52c] sm:$0xf]  ;;  %v10993_v7 = vld [vmem:[%s16889_s26 + $0x638] sm:$0xf0]  ;;  %v10740_v29 = vor.u32 %v15455_v25, %v10737_v62  ;;  %v9404_v55 = vpop.f32.mrf.mxu3 }
 0x428   : > { %9643 = vmatpush.bf16.msrb.mxu2 %v11044_v57  ;;  %v11140_v57 = vor.u32 %v15555_v58, %v11137_v22  ;;  %v11121_v28 = vld [vmem:[%s16889_s26 + $0x738] sm:$0xf0]  ;;  %v10868_v34 = vor.u32 %v15487_v56, %v10865_v12  ;;  %v10996_v42 = vor.u32 %v15519_v6, %v10993_v7  ;;  %v15547_v45 = vld [vmem:[%s16889_s26 + $0x70c] sm:$0xf] }
 0x429   : > { %9656 = vmatpush.bf16.msrb.mxu3 %v11172_v26  ;;  %v15551_v26 = vld [vmem:[%s16889_s26 + $0x72c] sm:$0xf]  ;;  %v10721_v38 = vld [vmem:[%s16889_s26 + $0x418] sm:$0xf0] }
 0x42a   : > { %9618 = vmatpush.bf16.msrb.mxu0 %v10772_v31  ;;  %v15483_v31 = vld [vmem:[%s16889_s26 + $0x50c] sm:$0xf]  ;;  %v11124_v33 = vor.u32 %v15551_v26, %v11121_v28  ;;  %v10977_v46 = vld [vmem:[%s16889_s26 + $0x618] sm:$0xf0]  ;;  %v9391_v20 = vpop.f32.mrf.mxu2  ;;  %v10724_v53 = vor.u32 %v15451_v30, %v10721_v38 }
 0x42b   : > { %9631 = vmatpush.bf16.msrb.mxu1 %v10900_v51  ;;  %v10849_v51 = vld [vmem:[%s16889_s26 + $0x518] sm:$0xf0]  ;;  %v15607_v44 = vld [vmem:[%s16889_s26 + $0x8ec] sm:$0xf] }
 0x42c   : > { %9644 = vmatpush.bf16.msrb.mxu2 %v11028_v32  ;;  %v15515_v32 = vld [vmem:[%s16889_s26 + $0x60c] sm:$0xf]  ;;  %v11345_v52 = vld [vmem:[%s16889_s26 + $0x8f8] sm:$0xf0] }
 0x42d   : > { %9657 = vmatpush.bf16.msrb.mxu3 %v11156_v37  ;;  %v11105_v37 = vld [vmem:[%s16889_s26 + $0x718] sm:$0xf0]  ;;  %v15639_v21 = vld [vmem:[%s16889_s26 + $0x9ec] sm:$0xf]  ;;  %v10980_v54 = vor.u32 %v15515_v32, %v10977_v46  ;;  %v11348_v62 = vor.u32 %v15607_v44, %v11345_v52 }
 0x42e   : > { %9619 = vmatpush.bf16.msrb.mxu0 %v10756_v11  ;;  %v11473_v58 = vld [vmem:[%s16889_s26 + $0x9f8] sm:$0xf0]  ;;  %v15671_v22 = vld [vmem:[%s16889_s26 + $0xaec] sm:$0xf]  ;;  %v10852_v11 = vor.u32 %v15483_v31, %v10849_v51  ;;  %v11108_v25 = vor.u32 %v15547_v45, %v11105_v37 }
 0x42f   : > { %9632 = vmatpush.bf16.msrb.mxu1 %v10884_v24  ;;  %v11601_v23 = vld [vmem:[%s16889_s26 + $0xaf8] sm:$0xf0]  ;;  %v15703_v24 = vld [vmem:[%s16889_s26 + $0xbec] sm:$0xf]  ;;  %v11476_v56 = vor.u32 %v15639_v21, %v11473_v58 }
 0x430   : > { %9645 = vmatpush.bf16.msrb.mxu2 %v11012_v27  ;;  %v11729_v27 = vld [vmem:[%s16889_s26 + $0xbf8] sm:$0xf0]  ;;  %v15603_v12 = vld [vmem:[%s16889_s26 + $0x8cc] sm:$0xf] }
 0x431   : > { %9658 = vmatpush.bf16.msrb.mxu3 %v11140_v57  ;;  %v11604_v57 = vor.u32 %v15671_v22, %v11601_v23  ;;  %v11329_v6 = vld [vmem:[%s16889_s26 + $0x8d8] sm:$0xf0]  ;;  %v15635_v7 = vld [vmem:[%s16889_s26 + $0x9cc] sm:$0xf]  ;;  %v11732_v26 = vor.u32 %v15703_v24, %v11729_v27 }
 0x432   : > { %9620 = vmatpush.bf16.msrb.mxu0 %v10740_v29  ;;  %v11457_v28 = vld [vmem:[%s16889_s26 + $0x9d8] sm:$0xf0]  ;;  %v15667_v29 = vld [vmem:[%s16889_s26 + $0xacc] sm:$0xf] }
 0x433   : > { %9633 = vmatpush.bf16.msrb.mxu1 %v10868_v34  ;;  %v11585_v30 = vld [vmem:[%s16889_s26 + $0xad8] sm:$0xf0]  ;;  %v15699_v38 = vld [vmem:[%s16889_s26 + $0xbcc] sm:$0xf]  ;;  %v11460_v31 = vor.u32 %v15635_v7, %v11457_v28 }
 0x434   : > { %9646 = vmatpush.bf16.msrb.mxu2 %v10996_v42  ;;  %v11713_v34 = vld [vmem:[%s16889_s26 + $0xbd8] sm:$0xf0]  ;;  %v11332_v42 = vor.u32 %v15603_v12, %v11329_v6  ;;  %v11588_v51 = vor.u32 %v15667_v29, %v11585_v30  ;;  %v15599_v32 = vld [vmem:[%s16889_s26 + $0x8ac] sm:$0xf] }
 0x435   : > { %9659 = vmatpush.bf16.msrb.mxu3 %v11124_v33  ;;  %v11313_v33 = vld [vmem:[%s16889_s26 + $0x8b8] sm:$0xf0]  ;;  %v15631_v46 = vld [vmem:[%s16889_s26 + $0x9ac] sm:$0xf]  ;;  %v11716_v45 = vor.u32 %v15699_v38, %v11713_v34 }
 0x436   : > { %9621 = vmatpush.bf16.msrb.mxu0 %v10724_v53  ;;  %v11441_v37 = vld [vmem:[%s16889_s26 + $0x9b8] sm:$0xf0]  ;;  %v15663_v20 = vld [vmem:[%s16889_s26 + $0xaac] sm:$0xf]  ;;  %v11316_v55 = vor.u32 %v15599_v32, %v11313_v33  ;;  %v9415_v24 = vpop.f32.mrf.mxu0 }
 0x437   : > { %9634 = vmatpush.bf16.msrb.mxu1 %v10852_v11  ;;  %v11569_v44 = vld [vmem:[%s16889_s26 + $0xab8] sm:$0xf0]  ;;  %v15695_v52 = vld [vmem:[%s16889_s26 + $0xbac] sm:$0xf] }
 0x438   : > { %9647 = vmatpush.bf16.msrb.mxu2 %v10980_v54  ;;  %v11697_v21 = vld [vmem:[%s16889_s26 + $0xbb8] sm:$0xf0]  ;;  %v11572_v53 = vor.u32 %v15663_v20, %v11569_v44  ;;  %v15595_v58 = vld [vmem:[%s16889_s26 + $0x88c] sm:$0xf] }
 0x439   : > { %9660 = vmatpush.bf16.msrb.mxu3 %v11108_v25  ;;  %9622 = vmatmul.bf16.vlgmr.msrb.gmra.mxu0 %v17053_v1  ;;  %v11297_v22 = vld [vmem:[%s16889_s26 + $0x898] sm:$0xf0]  ;;  %v15627_v1 = vld [vmem:[%s16889_s26 + $0x98c] sm:$0xf] }
 0x43a   : > { %9666 = vmatpush.bf16.msra.mxu0 %v11348_v62  ;;  %9635 = vmatmul.bf16.vlgmr.msrb.gmra.mxu1 %v17057_v3  ;;  %v11425_v23 = vld [vmem:[%s16889_s26 + $0x998] sm:$0xf0]  ;;  %v15659_v11 = vld [vmem:[%s16889_s26 + $0xa8c] sm:$0xf]  ;;  %v9416_v3 = vadd.f32 %v9415_v24, %v19190_v35  ;;  %v11300_v62 = vor.u32 %v15595_v58, %v11297_v22 }
 0x43b   : > { %9679 = vmatpush.bf16.msra.mxu1 %v11476_v56  ;;  %9648 = vmatmul.bf16.vlgmr.msrb.gmra.mxu2 %v17050_v61  ;;  %v11444_v61 = vor.u32 %v15631_v46, %v11441_v37  ;;  %v11553_v54 = vld [vmem:[%s16889_s26 + $0xa98] sm:$0xf0]  ;;  %v15691_v27 = vld [vmem:[%s16889_s26 + $0xb8c] sm:$0xf]  ;;  %v9428_v56 = vpop.f32.mrf.mxu1 }
 0x43c   : > { %9692 = vmatpush.bf16.msra.mxu2 %v11604_v57  ;;  %9661 = vmatmul.bf16.vlgmr.msrb.gmra.mxu3 %v17055_v2  ;;  %v11700_v2 = vor.u32 %v15695_v52, %v11697_v21  ;;  %v11681_v25 = vld [vmem:[%s16889_s26 + $0xb98] sm:$0xf0]  ;;  %v11428_v57 = vor.u32 %v15627_v1, %v11425_v23  ;;  %v11556_v12 = vor.u32 %v15659_v11, %v11553_v54  ;;  %v15591_v6 = vld [vmem:[%s16889_s26 + $0x86c] sm:$0xf] }
 0x43d   : > { %9705 = vmatpush.bf16.msra.mxu3 %v11732_v26  ;;  %v11281_v7 = vld [vmem:[%s16889_s26 + $0x878] sm:$0xf0]  ;;  %v15623_v26 = vld [vmem:[%s16889_s26 + $0x96c] sm:$0xf]  ;;  %v11684_v28 = vor.u32 %v15691_v27, %v11681_v25  ;;  %v9429_v29 = vadd.f32 %v9428_v56, %v9416_v3 }
 0x43e   : > { %9667 = vmatpush.bf16.msra.mxu0 %v11332_v42  ;;  %v11409_v30 = vld [vmem:[%s16889_s26 + $0x978] sm:$0xf0]  ;;  %v15655_v38 = vld [vmem:[%s16889_s26 + $0xa6c] sm:$0xf]  ;;  %v9441_v20 = vpop.f32.mrf.mxu2  ;;  %v9417_v22 = vpop.f32.mrf.mxu0 }
 0x43f   : > { %9680 = vmatpush.bf16.msra.mxu1 %v11460_v31  ;;  %v11537_v35 = vld [vmem:[%s16889_s26 + $0xa78] sm:$0xf0]  ;;  %v15687_v34 = vld [vmem:[%s16889_s26 + $0xb6c] sm:$0xf]  ;;  %v11284_v31 = vor.u32 %v15591_v6, %v11281_v7 }
 0x440   : > { %9693 = vmatpush.bf16.msra.mxu2 %v11588_v51  ;;  %v11665_v42 = vld [vmem:[%s16889_s26 + $0xb78] sm:$0xf0]  ;;  %v11412_v51 = vor.u32 %v15623_v26, %v11409_v30  ;;  %v11540_v32 = vor.u32 %v15655_v38, %v11537_v35  ;;  %v15587_v33 = vld [vmem:[%s16889_s26 + $0x84c] sm:$0xf] }
 0x441   : > { %9706 = vmatpush.bf16.msra.mxu3 %v11716_v45  ;;  %v11265_v46 = vld [vmem:[%s16889_s26 + $0x858] sm:$0xf0]  ;;  %v15619_v45 = vld [vmem:[%s16889_s26 + $0x94c] sm:$0xf]  ;;  %v11668_v37 = vor.u32 %v15687_v34, %v11665_v42 }
 0x442   : > { %9668 = vmatpush.bf16.msra.mxu0 %v11316_v55  ;;  %v11393_v44 = vld [vmem:[%s16889_s26 + $0x958] sm:$0xf0]  ;;  %v15651_v52 = vld [vmem:[%s16889_s26 + $0xa4c] sm:$0xf]  ;;  %v9442_v55 = vadd.f32 %v9441_v20, %v9429_v29  ;;  %v11268_v1 = vor.u32 %v15587_v33, %v11265_v46 }
 0x443   : > { %9681 = vmatpush.bf16.msra.mxu1 %v11444_v61  ;;  %v11521_v21 = vld [vmem:[%s16889_s26 + $0xa58] sm:$0xf0]  ;;  %v9454_v61 = vpop.f32.mrf.mxu3  ;;  %v11396_v11 = vor.u32 %v15619_v45, %v11393_v44  ;;  %v15583_v24 = vld [vmem:[%s16889_s26 + $0x82c] sm:$0xf] }
 0x444   : > { %9694 = vmatpush.bf16.msra.mxu2 %v11572_v53  ;;  %v15683_v53 = vld [vmem:[%s16889_s26 + $0xb4c] sm:$0xf]  ;;  %v11649_v58 = vld [vmem:[%s16889_s26 + $0xb58] sm:$0xf0]  ;;  %v19261_v23 = vadd.f32 %v9454_v61, %v9442_v55  ;;  %v11524_v54 = vor.u32 %v15651_v52, %v11521_v21 }
 0x445   : > { %9707 = vmatpush.bf16.msra.mxu3 %v11700_v2  ;;  %v9430_v2 = vpop.f32.mrf.mxu1  ;;  %v11249_v27 = vld [vmem:[%s16889_s26 + $0x838] sm:$0xf0]  ;;  %v15615_v25 = vld [vmem:[%s16889_s26 + $0x92c] sm:$0xf]  ;;  %v11652_v3 = vor.u32 %v15683_v53, %v11649_v58 }
 0x446   : > { %9669 = vmatpush.bf16.msra.mxu0 %v11300_v62  ;;  %v11377_v62 = vld [vmem:[%s16889_s26 + $0x938] sm:$0xf0]  ;;  %v15647_v56 = vld [vmem:[%s16889_s26 + $0xa2c] sm:$0xf]  ;;  %v11252_v7 = vor.u32 %v15583_v24, %v11249_v27  ;;  %v9443_v33 = vpop.f32.mrf.mxu2 }
 0x447   : > { %9682 = vmatpush.bf16.msra.mxu1 %v11428_v57  ;;  %v11505_v57 = vld [vmem:[%s16889_s26 + $0xa38] sm:$0xf0]  ;;  %v15579_v26 = vld [vmem:[%s16889_s26 + $0x80c] sm:$0xf]  ;;  %v11380_v29 = vor.u32 %v15615_v25, %v11377_v62 }
 0x448   : > { %9695 = vmatpush.bf16.msra.mxu2 %v11556_v12  ;;  %v15679_v12 = vld [vmem:[%s16889_s26 + $0xb2c] sm:$0xf]  ;;  %v11633_v6 = vld [vmem:[%s16889_s26 + $0xb38] sm:$0xf0]  ;;  %v11508_v30 = vor.u32 %v15647_v56, %v11505_v57 }
 0x449   : > { %9708 = vmatpush.bf16.msra.mxu3 %v11684_v28  ;;  %v11233_v28 = vld [vmem:[%s16889_s26 + $0x818] sm:$0xf0]  ;;  %v15611_v38 = vld [vmem:[%s16889_s26 + $0x90c] sm:$0xf]  ;;  %v11636_v42 = vor.u32 %v15679_v12, %v11633_v6 }
 0x44a   : > { %9670 = vmatpush.bf16.msra.mxu0 %v11284_v31  ;;  %v11361_v35 = vld [vmem:[%s16889_s26 + $0x918] sm:$0xf0]  ;;  %v15643_v34 = vld [vmem:[%s16889_s26 + $0xa0c] sm:$0xf]  ;;  %v11236_v44 = vor.u32 %v15579_v26, %v11233_v28 }
 0x44b   : > { %9683 = vmatpush.bf16.msra.mxu1 %v11412_v51  ;;  %v11489_v31 = vld [vmem:[%s16889_s26 + $0xa18] sm:$0xf0]  ;;  %v15675_v51 = vld [vmem:[%s16889_s26 + $0xb0c] sm:$0xf]  ;;  %v9456_v20 = vpop.f32.mrf.mxu3  ;;  %v11364_v61 = vor.u32 %v15611_v38, %v11361_v35 }
 0x44c   : > { %9696 = vmatpush.bf16.msra.mxu2 %v11540_v32  ;;  %v11617_v32 = vld [vmem:[%s16889_s26 + $0xb18] sm:$0xf0]  ;;  %v15735_v46 = vld [vmem:[%s16889_s26 + $0xcec] sm:$0xf]  ;;  %v11492_v53 = vor.u32 %v15643_v34, %v11489_v31 }
 0x44d   : > { %9709 = vmatpush.bf16.msra.mxu3 %v11668_v37  ;;  %v11857_v45 = vld [vmem:[%s16889_s26 + $0xcf8] sm:$0xf0]  ;;  %v15767_v37 = vld [vmem:[%s16889_s26 + $0xdec] sm:$0xf] }
 0x44e   : > { %9671 = vmatpush.bf16.msra.mxu0 %v11268_v1  ;;  %v11985_v52 = vld [vmem:[%s16889_s26 + $0xdf8] sm:$0xf0]  ;;  %v15799_v21 = vld [vmem:[%s16889_s26 + $0xeec] sm:$0xf]  ;;  %v11620_v1 = vor.u32 %v15675_v51, %v11617_v32  ;;  %v11860_v2 = vor.u32 %v15735_v46, %v11857_v45 }
 0x44f   : > { %9684 = vmatpush.bf16.msra.mxu1 %v11396_v11  ;;  %v12113_v55 = vld [vmem:[%s16889_s26 + $0xef8] sm:$0xf0]  ;;  %v15831_v58 = vld [vmem:[%s16889_s26 + $0xfec] sm:$0xf]  ;;  %v11988_v11 = vor.u32 %v15767_v37, %v11985_v52 }
 0x450   : > { %9697 = vmatpush.bf16.msra.mxu2 %v11524_v54  ;;  %v12241_v22 = vld [vmem:[%s16889_s26 + $0xff8] sm:$0xf0]  ;;  %v12116_v54 = vor.u32 %v15799_v21, %v12113_v55  ;;  %v15731_v24 = vld [vmem:[%s16889_s26 + $0xccc] sm:$0xf] }
 0x451   : > { %9710 = vmatpush.bf16.msra.mxu3 %v11652_v3  ;;  %v11841_v27 = vld [vmem:[%s16889_s26 + $0xcd8] sm:$0xf0]  ;;  %v15763_v25 = vld [vmem:[%s16889_s26 + $0xdcc] sm:$0xf]  ;;  %v12244_v3 = vor.u32 %v15831_v58, %v12241_v22 }
 0x452   : > { %9672 = vmatpush.bf16.msra.mxu0 %v11252_v7  ;;  %v11969_v62 = vld [vmem:[%s16889_s26 + $0xdd8] sm:$0xf0]  ;;  %v15795_v56 = vld [vmem:[%s16889_s26 + $0xecc] sm:$0xf]  ;;  %v11844_v7 = vor.u32 %v15731_v24, %v11841_v27 }
 0x453   : > { %9685 = vmatpush.bf16.msra.mxu1 %v11380_v29  ;;  %v12097_v57 = vld [vmem:[%s16889_s26 + $0xed8] sm:$0xf0]  ;;  %v15827_v12 = vld [vmem:[%s16889_s26 + $0xfcc] sm:$0xf]  ;;  %v11972_v26 = vor.u32 %v15763_v25, %v11969_v62 }
 0x454   : > { %9698 = vmatpush.bf16.msra.mxu2 %v11508_v30  ;;  %v12225_v6 = vld [vmem:[%s16889_s26 + $0xfd8] sm:$0xf0]  ;;  %v12100_v28 = vor.u32 %v15795_v56, %v12097_v57  ;;  %v15727_v29 = vld [vmem:[%s16889_s26 + $0xcac] sm:$0xf] }
 0x455   : > { %9711 = vmatpush.bf16.msra.mxu3 %v11636_v42  ;;  %v11825_v30 = vld [vmem:[%s16889_s26 + $0xcb8] sm:$0xf0]  ;;  %v15759_v38 = vld [vmem:[%s16889_s26 + $0xdac] sm:$0xf]  ;;  %v12228_v35 = vor.u32 %v15827_v12, %v12225_v6 }
 0x456   : > { %9673 = vmatpush.bf16.msra.mxu0 %v11236_v44  ;;  %v11953_v34 = vld [vmem:[%s16889_s26 + $0xdb8] sm:$0xf0]  ;;  %v15791_v42 = vld [vmem:[%s16889_s26 + $0xeac] sm:$0xf] }
 0x457   : > { %9686 = vmatpush.bf16.msra.mxu1 %v11364_v61  ;;  %v12081_v31 = vld [vmem:[%s16889_s26 + $0xeb8] sm:$0xf0]  ;;  %v15823_v51 = vld [vmem:[%s16889_s26 + $0xfac] sm:$0xf]  ;;  %v11956_v33 = vor.u32 %v15759_v38, %v11953_v34  ;;  %v9480_v58 = vpop.f32.mrf.mxu1 }
 0x458   : > { %9699 = vmatpush.bf16.msra.mxu2 %v11492_v53  ;;  %v12209_v32 = vld [vmem:[%s16889_s26 + $0xfb8] sm:$0xf0]  ;;  %v12084_v46 = vor.u32 %v15791_v42, %v12081_v31  ;;  %v15723_v45 = vld [vmem:[%s16889_s26 + $0xc8c] sm:$0xf] }
 0x459   : > { %9712 = vmatpush.bf16.msra.mxu3 %v11620_v1  ;;  %9674 = vmatmul.bf16.vlgmr.msra.gmra.mxu0 %v17143_v13  ;;  %v11828_v13 = vor.u32 %v15727_v29, %v11825_v30  ;;  %v11809_v37 = vld [vmem:[%s16889_s26 + $0xc98] sm:$0xf0]  ;;  %v15787_v44 = vld [vmem:[%s16889_s26 + $0xe8c] sm:$0xf] }
 0x45a   : > { %9718 = vmatpush.bf16.msrb.mxu0 %v11860_v2  ;;  %9687 = vmatmul.bf16.vlgmr.msra.gmra.mxu1 %v17149_v17  ;;  %v12212_v17 = vor.u32 %v15823_v51, %v12209_v32  ;;  %v11937_v20 = vld [vmem:[%s16889_s26 + $0xd98] sm:$0xf0]  ;;  %v15819_v21 = vld [vmem:[%s16889_s26 + $0xf8c] sm:$0xf]  ;;  %v11812_v53 = vor.u32 %v15723_v45, %v11809_v37 }
 0x45b   : > { %9731 = vmatpush.bf16.msrb.mxu1 %v11988_v11  ;;  %9700 = vmatmul.bf16.vlgmr.msra.gmra.mxu2 %v17147_v16  ;;  %v15755_v16 = vld [vmem:[%s16889_s26 + $0xd8c] sm:$0xf]  ;;  %v12065_v52 = vld [vmem:[%s16889_s26 + $0xe98] sm:$0xf0] }
 0x45c   : > { %9744 = vmatpush.bf16.msrb.mxu2 %v12116_v54  ;;  %9713 = vmatmul.bf16.vlgmr.msra.gmra.mxu3 %v17151_v18  ;;  %v9467_v18 = vpop.f32.mrf.mxu0  ;;  %v12193_v55 = vld [vmem:[%s16889_s26 + $0xf98] sm:$0xf0]  ;;  %v11940_v22 = vor.u32 %v15755_v16, %v11937_v20  ;;  %v12068_v1 = vor.u32 %v15787_v44, %v12065_v52  ;;  %v15719_v2 = vld [vmem:[%s16889_s26 + $0xc6c] sm:$0xf] }
 0x45d   : > { %9757 = vmatpush.bf16.msrb.mxu3 %v12244_v3  ;;  %v9468_v61 = vadd.f32 %v9467_v18, %v19261_v23  ;;  %v11793_v11 = vld [vmem:[%s16889_s26 + $0xc78] sm:$0xf0]  ;;  %v15751_v54 = vld [vmem:[%s16889_s26 + $0xd6c] sm:$0xf]  ;;  %v12196_v24 = vor.u32 %v15819_v21, %v12193_v55 }
 0x45e   : > { %9719 = vmatpush.bf16.msrb.mxu0 %v11844_v7  ;;  %v11921_v25 = vld [vmem:[%s16889_s26 + $0xd78] sm:$0xf0]  ;;  %v15783_v3 = vld [vmem:[%s16889_s26 + $0xe6c] sm:$0xf]  ;;  %v11796_v57 = vor.u32 %v15719_v2, %v11793_v11  ;;  %v9493_v30 = vpop.f32.mrf.mxu2 }
 0x45f   : > { %9732 = vmatpush.bf16.msrb.mxu1 %v11972_v26  ;;  %v9481_v27 = vadd.f32 %v9480_v58, %v9468_v61  ;;  %v12049_v23 = vld [vmem:[%s16889_s26 + $0xe78] sm:$0xf0]  ;;  %v15815_v62 = vld [vmem:[%s16889_s26 + $0xf6c] sm:$0xf]  ;;  %v11924_v12 = vor.u32 %v15751_v54, %v11921_v25 }
 0x460   : > { %9745 = vmatpush.bf16.msrb.mxu2 %v12100_v28  ;;  %v12177_v56 = vld [vmem:[%s16889_s26 + $0xf78] sm:$0xf0]  ;;  %v12052_v6 = vor.u32 %v15783_v3, %v12049_v23  ;;  %v15715_v7 = vld [vmem:[%s16889_s26 + $0xc4c] sm:$0xf] }
 0x461   : > { %9758 = vmatpush.bf16.msrb.mxu3 %v12228_v35  ;;  %v11777_v26 = vld [vmem:[%s16889_s26 + $0xc58] sm:$0xf0]  ;;  %v15747_v28 = vld [vmem:[%s16889_s26 + $0xd4c] sm:$0xf]  ;;  %v12180_v29 = vor.u32 %v15815_v62, %v12177_v56  ;;  %v9494_v42 = vadd.f32 %v9493_v30, %v9481_v27  ;;  %v9506_v31 = vpop.f32.mrf.mxu3 }
 0x462   : > { %9720 = vmatpush.bf16.msrb.mxu0 %v11828_v13  ;;  %v11905_v38 = vld [vmem:[%s16889_s26 + $0xd58] sm:$0xf0]  ;;  %v15779_v35 = vld [vmem:[%s16889_s26 + $0xe4c] sm:$0xf] }
 0x463   : > { %9733 = vmatpush.bf16.msrb.mxu1 %v11956_v33  ;;  %v12033_v34 = vld [vmem:[%s16889_s26 + $0xe58] sm:$0xf0]  ;;  %v15811_v51 = vld [vmem:[%s16889_s26 + $0xf4c] sm:$0xf]  ;;  %v11780_v33 = vor.u32 %v15715_v7, %v11777_v26  ;;  %v19332_v45 = vadd.f32 %v9506_v31, %v9494_v42  ;;  %v11908_v37 = vor.u32 %v15747_v28, %v11905_v38 }
 0x464   : > { %9746 = vmatpush.bf16.msrb.mxu2 %v12084_v46  ;;  %v12161_v32 = vld [vmem:[%s16889_s26 + $0xf58] sm:$0xf0]  ;;  %v9469_v13 = vpop.f32.mrf.mxu0  ;;  %v9482_v46 = vpop.f32.mrf.mxu1  ;;  %v12036_v16 = vor.u32 %v15779_v35, %v12033_v34  ;;  %v15743_v44 = vld [vmem:[%s16889_s26 + $0xd2c] sm:$0xf] }
 0x465   : > { %9759 = vmatpush.bf16.msrb.mxu3 %v12212_v17  ;;  %v15711_v17 = vld [vmem:[%s16889_s26 + $0xc2c] sm:$0xf]  ;;  %v11761_v20 = vld [vmem:[%s16889_s26 + $0xc38] sm:$0xf0]  ;;  %v12164_v52 = vor.u32 %v15811_v51, %v12161_v32 }
 0x466   : > { %9721 = vmatpush.bf16.msrb.mxu0 %v11812_v53  ;;  %v11889_v18 = vld [vmem:[%s16889_s26 + $0xd38] sm:$0xf0]  ;;  %v15775_v21 = vld [vmem:[%s16889_s26 + $0xe2c] sm:$0xf]  ;;  %v11764_v58 = vor.u32 %v15711_v17, %v11761_v20  ;;  %v9495_v56 = vpop.f32.mrf.mxu2 }
 0x467   : > { %9734 = vmatpush.bf16.msrb.mxu1 %v11940_v22  ;;  %v12017_v55 = vld [vmem:[%s16889_s26 + $0xe38] sm:$0xf0]  ;;  %v15807_v61 = vld [vmem:[%s16889_s26 + $0xf2c] sm:$0xf]  ;;  %v11892_v2 = vor.u32 %v15743_v44, %v11889_v18 }
 0x468   : > { %9747 = vmatpush.bf16.msrb.mxu2 %v12068_v1  ;;  %v12145_v53 = vld [vmem:[%s16889_s26 + $0xf38] sm:$0xf0]  ;;  %v15707_v22 = vld [vmem:[%s16889_s26 + $0xc0c] sm:$0xf]  ;;  %v12020_v11 = vor.u32 %v15775_v21, %v12017_v55 }
 0x469   : > { %9760 = vmatpush.bf16.msrb.mxu3 %v12196_v24  ;;  %v11745_v1 = vld [vmem:[%s16889_s26 + $0xc18] sm:$0xf0]  ;;  %v15739_v54 = vld [vmem:[%s16889_s26 + $0xd0c] sm:$0xf]  ;;  %v12148_v25 = vor.u32 %v15807_v61, %v12145_v53  ;;  %v9508_v7 = vpop.f32.mrf.mxu3 }
 0x46a   : > { %9722 = vmatpush.bf16.msrb.mxu0 %v11796_v57  ;;  %v11873_v24 = vld [vmem:[%s16889_s26 + $0xd18] sm:$0xf0]  ;;  %v15771_v27 = vld [vmem:[%s16889_s26 + $0xe0c] sm:$0xf]  ;;  %v11748_v26 = vor.u32 %v15707_v22, %v11745_v1 }
 0x46b   : > { %9735 = vmatpush.bf16.msrb.mxu1 %v11924_v12  ;;  %v12001_v3 = vld [vmem:[%s16889_s26 + $0xe18] sm:$0xf0]  ;;  %v15803_v23 = vld [vmem:[%s16889_s26 + $0xf0c] sm:$0xf]  ;;  %v11876_v38 = vor.u32 %v15739_v54, %v11873_v24 }
 0x46c   : > { %9748 = vmatpush.bf16.msrb.mxu2 %v12052_v6  ;;  %v12129_v62 = vld [vmem:[%s16889_s26 + $0xf18] sm:$0xf0]  ;;  %v15863_v57 = vld [vmem:[%s16889_s26 + $0x10ec] sm:$0xf]  ;;  %v12004_v35 = vor.u32 %v15771_v27, %v12001_v3 }
 0x46d   : > { %9761 = vmatpush.bf16.msrb.mxu3 %v12180_v29  ;;  %v12369_v12 = vld [vmem:[%s16889_s26 + $0x10f8] sm:$0xf0]  ;;  %v15895_v6 = vld [vmem:[%s16889_s26 + $0x11ec] sm:$0xf]  ;;  %v12132_v31 = vor.u32 %v15803_v23, %v12129_v62 }
 0x46e   : > { %9723 = vmatpush.bf16.msrb.mxu0 %v11780_v33  ;;  %v12497_v28 = vld [vmem:[%s16889_s26 + $0x11f8] sm:$0xf0]  ;;  %v15927_v29 = vld [vmem:[%s16889_s26 + $0x12ec] sm:$0xf]  ;;  %v12372_v51 = vor.u32 %v15863_v57, %v12369_v12 }
 0x46f   : > { %9736 = vmatpush.bf16.msrb.mxu1 %v11908_v37  ;;  %v12625_v30 = vld [vmem:[%s16889_s26 + $0x12f8] sm:$0xf0]  ;;  %v15959_v34 = vld [vmem:[%s16889_s26 + $0x13ec] sm:$0xf]  ;;  %v12500_v32 = vor.u32 %v15895_v6, %v12497_v28 }
 0x470   : > { %9749 = vmatpush.bf16.msrb.mxu2 %v12036_v16  ;;  %v12753_v42 = vld [vmem:[%s16889_s26 + $0x13f8] sm:$0xf0]  ;;  %v12628_v13 = vor.u32 %v15927_v29, %v12625_v30  ;;  %v15859_v33 = vld [vmem:[%s16889_s26 + $0x10cc] sm:$0xf] }
 0x471   : > { %9762 = vmatpush.bf16.msrb.mxu3 %v12164_v52  ;;  %v12353_v46 = vld [vmem:[%s16889_s26 + $0x10d8] sm:$0xf0]  ;;  %v15891_v37 = vld [vmem:[%s16889_s26 + $0x11cc] sm:$0xf]  ;;  %v12756_v16 = vor.u32 %v15959_v34, %v12753_v42 }
 0x472   : > { %9724 = vmatpush.bf16.msrb.mxu0 %v11764_v58  ;;  %v12481_v17 = vld [vmem:[%s16889_s26 + $0x11d8] sm:$0xf0]  ;;  %v15923_v20 = vld [vmem:[%s16889_s26 + $0x12cc] sm:$0xf]  ;;  %v12356_v21 = vor.u32 %v15859_v33, %v12353_v46 }
 0x473   : > { %9737 = vmatpush.bf16.msrb.mxu1 %v11892_v2  ;;  %v12609_v44 = vld [vmem:[%s16889_s26 + $0x12d8] sm:$0xf0]  ;;  %v15955_v52 = vld [vmem:[%s16889_s26 + $0x13cc] sm:$0xf]  ;;  %v12484_v55 = vor.u32 %v15891_v37, %v12481_v17 }
 0x474   : > { %9750 = vmatpush.bf16.msrb.mxu2 %v12020_v11  ;;  %v12737_v18 = vld [vmem:[%s16889_s26 + $0x13d8] sm:$0xf0]  ;;  %v12612_v61 = vor.u32 %v15923_v20, %v12609_v44  ;;  %v15855_v53 = vld [vmem:[%s16889_s26 + $0x10ac] sm:$0xf] }
 0x475   : > { %9763 = vmatpush.bf16.msrb.mxu3 %v12148_v25  ;;  %v12337_v58 = vld [vmem:[%s16889_s26 + $0x10b8] sm:$0xf0]  ;;  %v15887_v22 = vld [vmem:[%s16889_s26 + $0x11ac] sm:$0xf]  ;;  %v12740_v1 = vor.u32 %v15955_v52, %v12737_v18 }
 0x476   : > { %9725 = vmatpush.bf16.msrb.mxu0 %v11748_v26  ;;  %v12465_v2 = vld [vmem:[%s16889_s26 + $0x11b8] sm:$0xf0]  ;;  %v15919_v11 = vld [vmem:[%s16889_s26 + $0x12ac] sm:$0xf] }
 0x477   : > { %9738 = vmatpush.bf16.msrb.mxu1 %v11876_v38  ;;  %v12593_v54 = vld [vmem:[%s16889_s26 + $0x12b8] sm:$0xf0]  ;;  %v15951_v24 = vld [vmem:[%s16889_s26 + $0x13ac] sm:$0xf]  ;;  %v12468_v25 = vor.u32 %v15887_v22, %v12465_v2  ;;  %v9532_v29 = vpop.f32.mrf.mxu1 }
 0x478   : > { %9751 = vmatpush.bf16.msrb.mxu2 %v12004_v35  ;;  %v12721_v27 = vld [vmem:[%s16889_s26 + $0x13b8] sm:$0xf0]  ;;  %v12596_v3 = vor.u32 %v15919_v11, %v12593_v54  ;;  %v15851_v23 = vld [vmem:[%s16889_s26 + $0x108c] sm:$0xf] }
 0x479   : > { %9764 = vmatpush.bf16.msrb.mxu3 %v12132_v31  ;;  %9726 = vmatmul.bf16.vlgmr.msrb.gmra.mxu0 %v17209_v47  ;;  %v12340_v47 = vor.u32 %v15855_v53, %v12337_v58  ;;  %v12321_v62 = vld [vmem:[%s16889_s26 + $0x1098] sm:$0xf0]  ;;  %v15915_v57 = vld [vmem:[%s16889_s26 + $0x128c] sm:$0xf] }
 0x47a   : > { %9770 = vmatpush.bf16.msra.mxu0 %v12372_v51  ;;  %9739 = vmatmul.bf16.vlgmr.msrb.gmra.mxu1 %v17213_v49  ;;  %v12724_v49 = vor.u32 %v15951_v24, %v12721_v27  ;;  %v12449_v56 = vld [vmem:[%s16889_s26 + $0x1198] sm:$0xf0]  ;;  %v15947_v6 = vld [vmem:[%s16889_s26 + $0x138c] sm:$0xf]  ;;  %v12324_v28 = vor.u32 %v15851_v23, %v12321_v62 }
 0x47b   : > { %9783 = vmatpush.bf16.msra.mxu1 %v12500_v32  ;;  %9752 = vmatmul.bf16.vlgmr.msrb.gmra.mxu2 %v17211_v48  ;;  %v15883_v48 = vld [vmem:[%s16889_s26 + $0x118c] sm:$0xf]  ;;  %v12577_v12 = vld [vmem:[%s16889_s26 + $0x1298] sm:$0xf0] }
 0x47c   : > { %9796 = vmatpush.bf16.msra.mxu2 %v12628_v13  ;;  %9765 = vmatmul.bf16.vlgmr.msrb.gmra.mxu3 %v17215_v50  ;;  %v9519_v50 = vpop.f32.mrf.mxu0  ;;  %v12705_v7 = vld [vmem:[%s16889_s26 + $0x1398] sm:$0xf0]  ;;  %v12452_v30 = vor.u32 %v15883_v48, %v12449_v56  ;;  %v12580_v38 = vor.u32 %v15915_v57, %v12577_v12  ;;  %v15847_v35 = vld [vmem:[%s16889_s26 + $0x106c] sm:$0xf] }
 0x47d   : > { %9809 = vmatpush.bf16.msra.mxu3 %v12756_v16  ;;  %v9520_v26 = vadd.f32 %v9519_v50, %v19332_v45  ;;  %v12305_v34 = vld [vmem:[%s16889_s26 + $0x1078] sm:$0xf0]  ;;  %v15879_v42 = vld [vmem:[%s16889_s26 + $0x116c] sm:$0xf]  ;;  %v12708_v31 = vor.u32 %v15947_v6, %v12705_v7 }
 0x47e   : > { %9771 = vmatpush.bf16.msra.mxu0 %v12356_v21  ;;  %v12433_v32 = vld [vmem:[%s16889_s26 + $0x1178] sm:$0xf0]  ;;  %v15911_v13 = vld [vmem:[%s16889_s26 + $0x126c] sm:$0xf]  ;;  %v12308_v37 = vor.u32 %v15847_v35, %v12305_v34  ;;  %v9545_v21 = vpop.f32.mrf.mxu2 }
 0x47f   : > { %9784 = vmatpush.bf16.msra.mxu1 %v12484_v55  ;;  %v9533_v51 = vadd.f32 %v9532_v29, %v9520_v26  ;;  %v12561_v45 = vld [vmem:[%s16889_s26 + $0x1278] sm:$0xf0]  ;;  %v15943_v33 = vld [vmem:[%s16889_s26 + $0x136c] sm:$0xf]  ;;  %v12436_v16 = vor.u32 %v15879_v42, %v12433_v32  ;;  %v9558_v22 = vpop.f32.mrf.mxu3  ;;  %v9534_v24 = vpop.f32.mrf.mxu1 }
 0x480   : > { %9797 = vmatpush.bf16.msra.mxu2 %v12612_v61  ;;  %v12689_v46 = vld [vmem:[%s16889_s26 + $0x1378] sm:$0xf0]  ;;  %v12564_v17 = vor.u32 %v15911_v13, %v12561_v45  ;;  %v15843_v20 = vld [vmem:[%s16889_s26 + $0x104c] sm:$0xf] }
 0x481   : > { %9810 = vmatpush.bf16.msra.mxu3 %v12740_v1  ;;  %v12289_v44 = vld [vmem:[%s16889_s26 + $0x1058] sm:$0xf0]  ;;  %v15875_v52 = vld [vmem:[%s16889_s26 + $0x114c] sm:$0xf]  ;;  %v12692_v18 = vor.u32 %v15943_v33, %v12689_v46  ;;  %v9546_v58 = vadd.f32 %v9545_v21, %v9533_v51 }
 0x482   : > { %9772 = vmatpush.bf16.msra.mxu0 %v12340_v47  ;;  %v12417_v55 = vld [vmem:[%s16889_s26 + $0x1158] sm:$0xf0]  ;;  %v15907_v61 = vld [vmem:[%s16889_s26 + $0x124c] sm:$0xf]  ;;  %v12292_v54 = vor.u32 %v15843_v20, %v12289_v44 }
 0x483   : > { %9785 = vmatpush.bf16.msra.mxu1 %v12468_v25  ;;  %v12545_v53 = vld [vmem:[%s16889_s26 + $0x1258] sm:$0xf0]  ;;  %v15939_v1 = vld [vmem:[%s16889_s26 + $0x134c] sm:$0xf]  ;;  %v19403_v27 = vadd.f32 %v9558_v22, %v9546_v58  ;;  %v12420_v47 = vor.u32 %v15875_v52, %v12417_v55 }
 0x484   : > { %9798 = vmatpush.bf16.msra.mxu2 %v12596_v3  ;;  %v12673_v2 = vld [vmem:[%s16889_s26 + $0x1358] sm:$0xf0]  ;;  %v9521_v11 = vpop.f32.mrf.mxu0  ;;  %v12548_v25 = vor.u32 %v15907_v61, %v12545_v53  ;;  %v15839_v3 = vld [vmem:[%s16889_s26 + $0x102c] sm:$0xf] }
 0x485   : > { %9811 = vmatpush.bf16.msra.mxu3 %v12724_v49  ;;  %v12273_v23 = vld [vmem:[%s16889_s26 + $0x1038] sm:$0xf0]  ;;  %v15871_v62 = vld [vmem:[%s16889_s26 + $0x112c] sm:$0xf]  ;;  %v12676_v48 = vor.u32 %v15939_v1, %v12673_v2 }
 0x486   : > { %9773 = vmatpush.bf16.msra.mxu0 %v12324_v28  ;;  %v12401_v49 = vld [vmem:[%s16889_s26 + $0x1138] sm:$0xf0]  ;;  %v15903_v56 = vld [vmem:[%s16889_s26 + $0x122c] sm:$0xf]  ;;  %v12276_v6 = vor.u32 %v15839_v3, %v12273_v23  ;;  %v9547_v32 = vpop.f32.mrf.mxu2 }
 0x487   : > { %9786 = vmatpush.bf16.msra.mxu1 %v12452_v30  ;;  %v12529_v57 = vld [vmem:[%s16889_s26 + $0x1238] sm:$0xf0]  ;;  %v15935_v12 = vld [vmem:[%s16889_s26 + $0x132c] sm:$0xf]  ;;  %v12404_v28 = vor.u32 %v15871_v62, %v12401_v49  ;;  %v9560_v46 = vpop.f32.mrf.mxu3 }
 0x488   : > { %9799 = vmatpush.bf16.msra.mxu2 %v12580_v38  ;;  %v12657_v50 = vld [vmem:[%s16889_s26 + $0x1338] sm:$0xf0]  ;;  %v15835_v7 = vld [vmem:[%s16889_s26 + $0x100c] sm:$0xf]  ;;  %v12532_v29 = vor.u32 %v15903_v56, %v12529_v57 }
 0x489   : > { %9812 = vmatpush.bf16.msra.mxu3 %v12708_v31  ;;  %v12257_v26 = vld [vmem:[%s16889_s26 + $0x1018] sm:$0xf0]  ;;  %v15867_v30 = vld [vmem:[%s16889_s26 + $0x110c] sm:$0xf]  ;;  %v12660_v34 = vor.u32 %v15935_v12, %v12657_v50 }
 0x48a   : > { %9774 = vmatpush.bf16.msra.mxu0 %v12308_v37  ;;  %v12385_v38 = vld [vmem:[%s16889_s26 + $0x1118] sm:$0xf0]  ;;  %v15899_v35 = vld [vmem:[%s16889_s26 + $0x120c] sm:$0xf]  ;;  %v12260_v37 = vor.u32 %v15835_v7, %v12257_v26 }
 0x48b   : > { %9787 = vmatpush.bf16.msra.mxu1 %v12436_v16  ;;  %v12513_v42 = vld [vmem:[%s16889_s26 + $0x1218] sm:$0xf0]  ;;  %v15931_v31 = vld [vmem:[%s16889_s26 + $0x130c] sm:$0xf]  ;;  %v12388_v44 = vor.u32 %v15867_v30, %v12385_v38 }
 0x48c   : > { %9800 = vmatpush.bf16.msra.mxu2 %v12564_v17  ;;  %v12641_v51 = vld [vmem:[%s16889_s26 + $0x1318] sm:$0xf0]  ;;  %v15991_v13 = vld [vmem:[%s16889_s26 + $0x14ec] sm:$0xf]  ;;  %v12516_v52 = vor.u32 %v15899_v35, %v12513_v42 }
 0x48d   : > { %9813 = vmatpush.bf16.msra.mxu3 %v12692_v18  ;;  %v12881_v45 = vld [vmem:[%s16889_s26 + $0x14f8] sm:$0xf0]  ;;  %v16023_v33 = vld [vmem:[%s16889_s26 + $0x15ec] sm:$0xf]  ;;  %v12644_v55 = vor.u32 %v15931_v31, %v12641_v51 }
 0x48e   : > { %9775 = vmatpush.bf16.msra.mxu0 %v12292_v54  ;;  %v13009_v16 = vld [vmem:[%s16889_s26 + $0x15f8] sm:$0xf0]  ;;  %v16055_v17 = vld [vmem:[%s16889_s26 + $0x16ec] sm:$0xf]  ;;  %v12884_v61 = vor.u32 %v15991_v13, %v12881_v45 }
 0x48f   : > { %9788 = vmatpush.bf16.msra.mxu1 %v12420_v47  ;;  %v13137_v20 = vld [vmem:[%s16889_s26 + $0x16f8] sm:$0xf0]  ;;  %v16087_v18 = vld [vmem:[%s16889_s26 + $0x17ec] sm:$0xf]  ;;  %v13012_v53 = vor.u32 %v16023_v33, %v13009_v16 }
 0x490   : > { %9801 = vmatpush.bf16.msra.mxu2 %v12548_v25  ;;  %v13265_v21 = vld [vmem:[%s16889_s26 + $0x17f8] sm:$0xf0]  ;;  %v13140_v58 = vor.u32 %v16055_v17, %v13137_v20  ;;  %v15987_v22 = vld [vmem:[%s16889_s26 + $0x14cc] sm:$0xf] }
 0x491   : > { %9814 = vmatpush.bf16.msra.mxu3 %v12676_v48  ;;  %v12865_v1 = vld [vmem:[%s16889_s26 + $0x14d8] sm:$0xf0]  ;;  %v16019_v2 = vld [vmem:[%s16889_s26 + $0x15cc] sm:$0xf]  ;;  %v13268_v11 = vor.u32 %v16087_v18, %v13265_v21 }
 0x492   : > { %9776 = vmatpush.bf16.msra.mxu0 %v12276_v6  ;;  %v12993_v54 = vld [vmem:[%s16889_s26 + $0x15d8] sm:$0xf0]  ;;  %v16051_v24 = vld [vmem:[%s16889_s26 + $0x16cc] sm:$0xf]  ;;  %v12868_v23 = vor.u32 %v15987_v22, %v12865_v1 }
 0x493   : > { %9789 = vmatpush.bf16.msra.mxu1 %v12404_v28  ;;  %v13121_v47 = vld [vmem:[%s16889_s26 + $0x16d8] sm:$0xf0]  ;;  %v16083_v25 = vld [vmem:[%s16889_s26 + $0x17cc] sm:$0xf]  ;;  %v12996_v62 = vor.u32 %v16019_v2, %v12993_v54 }
 0x494   : > { %9802 = vmatpush.bf16.msra.mxu2 %v12532_v29  ;;  %v13249_v3 = vld [vmem:[%s16889_s26 + $0x17d8] sm:$0xf0]  ;;  %v13124_v48 = vor.u32 %v16051_v24, %v13121_v47  ;;  %v15983_v49 = vld [vmem:[%s16889_s26 + $0x14ac] sm:$0xf] }
 0x495   : > { %9815 = vmatpush.bf16.msra.mxu3 %v12660_v34  ;;  %v12849_v56 = vld [vmem:[%s16889_s26 + $0x14b8] sm:$0xf0]  ;;  %v16015_v57 = vld [vmem:[%s16889_s26 + $0x15ac] sm:$0xf]  ;;  %v13252_v12 = vor.u32 %v16083_v25, %v13249_v3 }
 0x496   : > { %9777 = vmatpush.bf16.msra.mxu0 %v12260_v37  ;;  %v12977_v50 = vld [vmem:[%s16889_s26 + $0x15b8] sm:$0xf0]  ;;  %v16047_v6 = vld [vmem:[%s16889_s26 + $0x16ac] sm:$0xf]  ;;  %v9571_v13 = vpop.f32.mrf.mxu0 }
 0x497   : > { %9790 = vmatpush.bf16.msra.mxu1 %v12388_v44  ;;  %v13105_v7 = vld [vmem:[%s16889_s26 + $0x16b8] sm:$0xf0]  ;;  %v16079_v26 = vld [vmem:[%s16889_s26 + $0x17ac] sm:$0xf]  ;;  %v12980_v29 = vor.u32 %v16015_v57, %v12977_v50  ;;  %v9584_v17 = vpop.f32.mrf.mxu1 }
 0x498   : > { %9803 = vmatpush.bf16.msra.mxu2 %v12516_v52  ;;  %v13233_v28 = vld [vmem:[%s16889_s26 + $0x17b8] sm:$0xf0]  ;;  %v13108_v30 = vor.u32 %v16047_v6, %v13105_v7  ;;  %v15979_v38 = vld [vmem:[%s16889_s26 + $0x148c] sm:$0xf]  ;;  %v9585_v21 = vadd.f32 %v9584_v17, %v9571_v13 }
 0x499   : > { %9816 = vmatpush.bf16.msra.mxu3 %v12644_v55  ;;  %9778 = vmatmul.bf16.vlgmr.msra.gmra.mxu0 %v17296_v10  ;;  %v12852_v10 = vor.u32 %v15983_v49, %v12849_v56  ;;  %v12833_v35 = vld [vmem:[%s16889_s26 + $0x1498] sm:$0xf0]  ;;  %v16043_v42 = vld [vmem:[%s16889_s26 + $0x168c] sm:$0xf] }
 0x49a   : > { %9822 = vmatpush.bf16.msrb.mxu0 %v12884_v61  ;;  %9791 = vmatmul.bf16.vlgmr.msra.gmra.mxu1 %v17302_v15  ;;  %v13236_v15 = vor.u32 %v16079_v26, %v13233_v28  ;;  %v12961_v34 = vld [vmem:[%s16889_s26 + $0x1598] sm:$0xf0]  ;;  %v12836_v32 = vor.u32 %v15979_v38, %v12833_v35  ;;  %v15975_v46 = vld [vmem:[%s16889_s26 + $0x146c] sm:$0xf] }
 0x49b   : > { %9835 = vmatpush.bf16.msrb.mxu1 %v13012_v53  ;;  %9804 = vmatmul.bf16.vlgmr.msra.gmra.mxu2 %v17300_v14  ;;  %v16011_v14 = vld [vmem:[%s16889_s26 + $0x158c] sm:$0xf]  ;;  %v13089_v31 = vld [vmem:[%s16889_s26 + $0x1698] sm:$0xf0] }
 0x49c   : > { %9848 = vmatpush.bf16.msrb.mxu2 %v13140_v58  ;;  %9817 = vmatmul.bf16.vlgmr.msra.gmra.mxu3 %v17304_v19  ;;  %v16075_v19 = vld [vmem:[%s16889_s26 + $0x178c] sm:$0xf]  ;;  %v13217_v51 = vld [vmem:[%s16889_s26 + $0x1798] sm:$0xf0]  ;;  %v12964_v45 = vor.u32 %v16011_v14, %v12961_v34  ;;  %v13092_v33 = vor.u32 %v16043_v42, %v13089_v31 }
 0x49d   : > { %9861 = vmatpush.bf16.msrb.mxu3 %v13268_v11  ;;  %v12817_v37 = vld [vmem:[%s16889_s26 + $0x1478] sm:$0xf0]  ;;  %v16007_v16 = vld [vmem:[%s16889_s26 + $0x156c] sm:$0xf]  ;;  %v13220_v20 = vor.u32 %v16075_v19, %v13217_v51 }
 0x49e   : > { %9823 = vmatpush.bf16.msrb.mxu0 %v12868_v23  ;;  %v12945_v44 = vld [vmem:[%s16889_s26 + $0x1578] sm:$0xf0]  ;;  %v16039_v52 = vld [vmem:[%s16889_s26 + $0x166c] sm:$0xf]  ;;  %v12820_v53 = vor.u32 %v15975_v46, %v12817_v37  ;;  %v9597_v54 = vpop.f32.mrf.mxu2 }
 0x49f   : > { %9836 = vmatpush.bf16.msrb.mxu1 %v12996_v62  ;;  %v13073_v18 = vld [vmem:[%s16889_s26 + $0x1678] sm:$0xf0]  ;;  %v16071_v55 = vld [vmem:[%s16889_s26 + $0x176c] sm:$0xf]  ;;  %v12948_v58 = vor.u32 %v16007_v16, %v12945_v44  ;;  %v9598_v23 = vadd.f32 %v9597_v54, %v9585_v21  ;;  %v9610_v62 = vpop.f32.mrf.mxu3 }
 0x4a0   : > { %9849 = vmatpush.bf16.msrb.mxu2 %v13124_v48  ;;  %v13201_v61 = vld [vmem:[%s16889_s26 + $0x1778] sm:$0xf0]  ;;  %v13076_v22 = vor.u32 %v16039_v52, %v13073_v18  ;;  %v15971_v1 = vld [vmem:[%s16889_s26 + $0x144c] sm:$0xf] }
 0x4a1   : > { %9862 = vmatpush.bf16.msrb.mxu3 %v13252_v12  ;;  %v12801_v2 = vld [vmem:[%s16889_s26 + $0x1458] sm:$0xf0]  ;;  %v16003_v11 = vld [vmem:[%s16889_s26 + $0x154c] sm:$0xf]  ;;  %v13204_v24 = vor.u32 %v16071_v55, %v13201_v61  ;;  %v19473_v57 = vadd.f32 %v9610_v62, %v9598_v23  ;;  %v9573_v12 = vpop.f32.mrf.mxu0 }
 0x4a2   : > { %9824 = vmatpush.bf16.msrb.mxu0 %v12852_v10  ;;  %v12929_v47 = vld [vmem:[%s16889_s26 + $0x1558] sm:$0xf0]  ;;  %v16035_v25 = vld [vmem:[%s16889_s26 + $0x164c] sm:$0xf]  ;;  %v12804_v56 = vor.u32 %v15971_v1, %v12801_v2  ;;  %v9586_v10 = vpop.f32.mrf.mxu1 }
 0x4a3   : > { %9837 = vmatpush.bf16.msrb.mxu1 %v12980_v29  ;;  %v13057_v3 = vld [vmem:[%s16889_s26 + $0x1658] sm:$0xf0]  ;;  %v16067_v48 = vld [vmem:[%s16889_s26 + $0x174c] sm:$0xf]  ;;  %v12932_v50 = vor.u32 %v16003_v11, %v12929_v47 }
 0x4a4   : > { %9850 = vmatpush.bf16.msrb.mxu2 %v13108_v30  ;;  %v13185_v49 = vld [vmem:[%s16889_s26 + $0x1758] sm:$0xf0]  ;;  %v13060_v6 = vor.u32 %v16035_v25, %v13057_v3  ;;  %v15967_v7 = vld [vmem:[%s16889_s26 + $0x142c] sm:$0xf] }
 0x4a5   : > { %9863 = vmatpush.bf16.msrb.mxu3 %v13236_v15  ;;  %v12785_v26 = vld [vmem:[%s16889_s26 + $0x1438] sm:$0xf0]  ;;  %v15999_v28 = vld [vmem:[%s16889_s26 + $0x152c] sm:$0xf]  ;;  %v13188_v29 = vor.u32 %v16067_v48, %v13185_v49 }
 0x4a6   : > { %9825 = vmatpush.bf16.msrb.mxu0 %v12836_v32  ;;  %v12913_v30 = vld [vmem:[%s16889_s26 + $0x1538] sm:$0xf0]  ;;  %v16031_v38 = vld [vmem:[%s16889_s26 + $0x162c] sm:$0xf]  ;;  %v12788_v34 = vor.u32 %v15967_v7, %v12785_v26 }
 0x4a7   : > { %9838 = vmatpush.bf16.msrb.mxu1 %v12964_v45  ;;  %v13041_v35 = vld [vmem:[%s16889_s26 + $0x1638] sm:$0xf0]  ;;  %v16063_v14 = vld [vmem:[%s16889_s26 + $0x172c] sm:$0xf]  ;;  %v12916_v19 = vor.u32 %v15999_v28, %v12913_v30 }
 0x4a8   : > { %9851 = vmatpush.bf16.msrb.mxu2 %v13092_v33  ;;  %v13169_v15 = vld [vmem:[%s16889_s26 + $0x1738] sm:$0xf0]  ;;  %v15963_v42 = vld [vmem:[%s16889_s26 + $0x140c] sm:$0xf]  ;;  %v13044_v51 = vor.u32 %v16031_v38, %v13041_v35  ;;  %v9599_v33 = vpop.f32.mrf.mxu2 }
 0x4a9   : > { %9864 = vmatpush.bf16.msrb.mxu3 %v13220_v20  ;;  %v12769_v31 = vld [vmem:[%s16889_s26 + $0x1418] sm:$0xf0]  ;;  %v15995_v32 = vld [vmem:[%s16889_s26 + $0x150c] sm:$0xf]  ;;  %v13172_v46 = vor.u32 %v16063_v14, %v13169_v15  ;;  %v9612_v20 = vpop.f32.mrf.mxu3 }
 0x4aa   : > { %9826 = vmatpush.bf16.msrb.mxu0 %v12820_v53  ;;  %v12897_v13 = vld [vmem:[%s16889_s26 + $0x1518] sm:$0xf0]  ;;  %v16027_v45 = vld [vmem:[%s16889_s26 + $0x160c] sm:$0xf]  ;;  %v12772_v21 = vor.u32 %v15963_v42, %v12769_v31 }
 0x4ab   : > { %9839 = vmatpush.bf16.msrb.mxu1 %v12948_v58  ;;  %v13025_v37 = vld [vmem:[%s16889_s26 + $0x1618] sm:$0xf0]  ;;  %v16059_v16 = vld [vmem:[%s16889_s26 + $0x170c] sm:$0xf]  ;;  %v12900_v58 = vor.u32 %v15995_v32, %v12897_v13 }
 0x4ac   : > { %9852 = vmatpush.bf16.msrb.mxu2 %v13076_v22  ;;  %v13153_v17 = vld [vmem:[%s16889_s26 + $0x1718] sm:$0xf0]  ;;  %v16119_v44 = vld [vmem:[%s16889_s26 + $0x18ec] sm:$0xf]  ;;  %v13028_v22 = vor.u32 %v16027_v45, %v13025_v37 }
 0x4ad   : > { %9865 = vmatpush.bf16.msrb.mxu3 %v13204_v24  ;;  %v13393_v52 = vld [vmem:[%s16889_s26 + $0x18f8] sm:$0xf0]  ;;  %v16151_v18 = vld [vmem:[%s16889_s26 + $0x19ec] sm:$0xf]  ;;  %v13156_v11 = vor.u32 %v16059_v16, %v13153_v17 }
 0x4ae   : > { %9827 = vmatpush.bf16.msrb.mxu0 %v12804_v56  ;;  %v13521_v55 = vld [vmem:[%s16889_s26 + $0x19f8] sm:$0xf0]  ;;  %v16183_v61 = vld [vmem:[%s16889_s26 + $0x1aec] sm:$0xf]  ;;  %v13396_v54 = vor.u32 %v16119_v44, %v13393_v52 }
 0x4af   : > { %9840 = vmatpush.bf16.msrb.mxu1 %v12932_v50  ;;  %v13649_v53 = vld [vmem:[%s16889_s26 + $0x1af8] sm:$0xf0]  ;;  %v16215_v1 = vld [vmem:[%s16889_s26 + $0x1bec] sm:$0xf]  ;;  %v13524_v24 = vor.u32 %v16151_v18, %v13521_v55 }
 0x4b0   : > { %9853 = vmatpush.bf16.msrb.mxu2 %v13060_v6  ;;  %v13777_v2 = vld [vmem:[%s16889_s26 + $0x1bf8] sm:$0xf0]  ;;  %v13652_v47 = vor.u32 %v16183_v61, %v13649_v53  ;;  %v16115_v25 = vld [vmem:[%s16889_s26 + $0x18cc] sm:$0xf] }
 0x4b1   : > { %9866 = vmatpush.bf16.msrb.mxu3 %v13188_v29  ;;  %v13377_v3 = vld [vmem:[%s16889_s26 + $0x18d8] sm:$0xf0]  ;;  %v16147_v23 = vld [vmem:[%s16889_s26 + $0x19cc] sm:$0xf]  ;;  %v13780_v62 = vor.u32 %v16215_v1, %v13777_v2 }
 0x4b2   : > { %9828 = vmatpush.bf16.msrb.mxu0 %v12788_v34  ;;  %v13505_v48 = vld [vmem:[%s16889_s26 + $0x19d8] sm:$0xf0]  ;;  %v16179_v49 = vld [vmem:[%s16889_s26 + $0x1acc] sm:$0xf]  ;;  %v13380_v6 = vor.u32 %v16115_v25, %v13377_v3 }
 0x4b3   : > { %9841 = vmatpush.bf16.msrb.mxu1 %v12916_v19  ;;  %v13633_v56 = vld [vmem:[%s16889_s26 + $0x1ad8] sm:$0xf0]  ;;  %v16211_v12 = vld [vmem:[%s16889_s26 + $0x1bcc] sm:$0xf]  ;;  %v13508_v7 = vor.u32 %v16147_v23, %v13505_v48 }
 0x4b4   : > { %9854 = vmatpush.bf16.msrb.mxu2 %v13044_v51  ;;  %v13761_v50 = vld [vmem:[%s16889_s26 + $0x1bd8] sm:$0xf0]  ;;  %v13636_v26 = vor.u32 %v16179_v49, %v13633_v56  ;;  %v16111_v28 = vld [vmem:[%s16889_s26 + $0x18ac] sm:$0xf] }
 0x4b5   : > { %9867 = vmatpush.bf16.msrb.mxu3 %v13172_v46  ;;  %v13361_v10 = vld [vmem:[%s16889_s26 + $0x18b8] sm:$0xf0]  ;;  %v16143_v29 = vld [vmem:[%s16889_s26 + $0x19ac] sm:$0xf]  ;;  %v13764_v30 = vor.u32 %v16211_v12, %v13761_v50 }
 0x4b6   : > { %9829 = vmatpush.bf16.msrb.mxu0 %v12772_v21  ;;  %v13489_v38 = vld [vmem:[%s16889_s26 + $0x19b8] sm:$0xf0]  ;;  %v16175_v35 = vld [vmem:[%s16889_s26 + $0x1aac] sm:$0xf]  ;;  %v9623_v37 = vpop.f32.mrf.mxu0 }
 0x4b7   : > { %9842 = vmatpush.bf16.msrb.mxu1 %v12900_v58  ;;  %v13617_v14 = vld [vmem:[%s16889_s26 + $0x1ab8] sm:$0xf0]  ;;  %v16207_v15 = vld [vmem:[%s16889_s26 + $0x1bac] sm:$0xf]  ;;  %v13492_v42 = vor.u32 %v16143_v29, %v13489_v38  ;;  %v9624_v18 = vadd.f32 %v9623_v37, %v19473_v57  ;;  %v9636_v21 = vpop.f32.mrf.mxu1 }
 0x4b8   : > { %9855 = vmatpush.bf16.msrb.mxu2 %v13028_v22  ;;  %v13745_v34 = vld [vmem:[%s16889_s26 + $0x1bb8] sm:$0xf0]  ;;  %v13620_v31 = vor.u32 %v16175_v35, %v13617_v14  ;;  %v16107_v19 = vld [vmem:[%s16889_s26 + $0x188c] sm:$0xf] }
 0x4b9   : > { %9868 = vmatpush.bf16.msrb.mxu3 %v13156_v11  ;;  %9830 = vmatmul.bf16.vlgmr.msrb.gmra.mxu0 %v17362_v4  ;;  %v13364_v4 = vor.u32 %v16111_v28, %v13361_v10  ;;  %v13345_v51 = vld [vmem:[%s16889_s26 + $0x1898] sm:$0xf0]  ;;  %v16171_v13 = vld [vmem:[%s16889_s26 + $0x1a8c] sm:$0xf]  ;;  %v9637_v2 = vadd.f32 %v9636_v21, %v9624_v18 }
 0x4ba   : > { %9874 = vmatpush.bf16.msra.mxu0 %v13396_v54  ;;  %9843 = vmatmul.bf16.vlgmr.msrb.gmra.mxu1 %v17366_v8  ;;  %v13748_v8 = vor.u32 %v16207_v15, %v13745_v34  ;;  %v13473_v32 = vld [vmem:[%s16889_s26 + $0x1998] sm:$0xf0]  ;;  %v16203_v33 = vld [vmem:[%s16889_s26 + $0x1b8c] sm:$0xf]  ;;  %v13348_v46 = vor.u32 %v16107_v19, %v13345_v51 }
 0x4bb   : > { %9887 = vmatpush.bf16.msra.mxu1 %v13524_v24  ;;  %9856 = vmatmul.bf16.vlgmr.msrb.gmra.mxu2 %v17364_v5  ;;  %v16139_v5 = vld [vmem:[%s16889_s26 + $0x198c] sm:$0xf]  ;;  %v13601_v45 = vld [vmem:[%s16889_s26 + $0x1a98] sm:$0xf0] }
 0x4bc   : > { %9900 = vmatpush.bf16.msra.mxu2 %v13652_v47  ;;  %9869 = vmatmul.bf16.vlgmr.msrb.gmra.mxu3 %v17368_v9  ;;  %v13729_v9 = vld [vmem:[%s16889_s26 + $0x1b98] sm:$0xf0]  ;;  %v13476_v16 = vor.u32 %v16139_v5, %v13473_v32  ;;  %v13604_v17 = vor.u32 %v16171_v13, %v13601_v45  ;;  %v16103_v20 = vld [vmem:[%s16889_s26 + $0x186c] sm:$0xf] }
 0x4bd   : > { %9913 = vmatpush.bf16.msra.mxu3 %v13780_v62  ;;  %v13329_v44 = vld [vmem:[%s16889_s26 + $0x1878] sm:$0xf0]  ;;  %v16135_v52 = vld [vmem:[%s16889_s26 + $0x196c] sm:$0xf]  ;;  %v13732_v55 = vor.u32 %v16203_v33, %v13729_v9 }
 0x4be   : > { %9875 = vmatpush.bf16.msra.mxu0 %v13380_v6  ;;  %v13457_v61 = vld [vmem:[%s16889_s26 + $0x1978] sm:$0xf0]  ;;  %v16167_v53 = vld [vmem:[%s16889_s26 + $0x1a6c] sm:$0xf]  ;;  %v13332_v11 = vor.u32 %v16103_v20, %v13329_v44  ;;  %v9649_v3 = vpop.f32.mrf.mxu2  ;;  %v9625_v28 = vpop.f32.mrf.mxu0 }
 0x4bf   : > { %9888 = vmatpush.bf16.msra.mxu1 %v13508_v7  ;;  %v13585_v58 = vld [vmem:[%s16889_s26 + $0x1a78] sm:$0xf0]  ;;  %v16199_v22 = vld [vmem:[%s16889_s26 + $0x1b6c] sm:$0xf]  ;;  %v13460_v57 = vor.u32 %v16135_v52, %v13457_v61  ;;  %v9650_v56 = vadd.f32 %v9649_v3, %v9637_v2  ;;  %v9662_v12 = vpop.f32.mrf.mxu3  ;;  %v9638_v14 = vpop.f32.mrf.mxu1 }
 0x4c0   : > { %9901 = vmatpush.bf16.msra.mxu2 %v13636_v26  ;;  %v13713_v1 = vld [vmem:[%s16889_s26 + $0x1b78] sm:$0xf0]  ;;  %v13588_v54 = vor.u32 %v16167_v53, %v13585_v58  ;;  %v16099_v24 = vld [vmem:[%s16889_s26 + $0x184c] sm:$0xf] }
 0x4c1   : > { %9914 = vmatpush.bf16.msra.mxu3 %v13764_v30  ;;  %v13313_v47 = vld [vmem:[%s16889_s26 + $0x1858] sm:$0xf0]  ;;  %v16131_v25 = vld [vmem:[%s16889_s26 + $0x194c] sm:$0xf]  ;;  %v13716_v23 = vor.u32 %v16199_v22, %v13713_v1  ;;  %v19544_v26 = vadd.f32 %v9662_v12, %v9650_v56 }
 0x4c2   : > { %9876 = vmatpush.bf16.msra.mxu0 %v13364_v4  ;;  %v13441_v62 = vld [vmem:[%s16889_s26 + $0x1958] sm:$0xf0]  ;;  %v16163_v48 = vld [vmem:[%s16889_s26 + $0x1a4c] sm:$0xf]  ;;  %v13316_v7 = vor.u32 %v16099_v24, %v13313_v47 }
 0x4c3   : > { %9889 = vmatpush.bf16.msra.mxu1 %v13492_v42  ;;  %v13569_v49 = vld [vmem:[%s16889_s26 + $0x1a58] sm:$0xf0]  ;;  %v16195_v50 = vld [vmem:[%s16889_s26 + $0x1b4c] sm:$0xf]  ;;  %v13444_v10 = vor.u32 %v16131_v25, %v13441_v62 }
 0x4c4   : > { %9902 = vmatpush.bf16.msra.mxu2 %v13620_v31  ;;  %v13697_v6 = vld [vmem:[%s16889_s26 + $0x1b58] sm:$0xf0]  ;;  %v13572_v29 = vor.u32 %v16163_v48, %v13569_v49  ;;  %v16095_v30 = vld [vmem:[%s16889_s26 + $0x182c] sm:$0xf] }
 0x4c5   : > { %9915 = vmatpush.bf16.msra.mxu3 %v13748_v8  ;;  %v13297_v38 = vld [vmem:[%s16889_s26 + $0x1838] sm:$0xf0]  ;;  %v16127_v35 = vld [vmem:[%s16889_s26 + $0x192c] sm:$0xf]  ;;  %v13700_v15 = vor.u32 %v16195_v50, %v13697_v6 }
 0x4c6   : > { %9877 = vmatpush.bf16.msra.mxu0 %v13348_v46  ;;  %v13425_v34 = vld [vmem:[%s16889_s26 + $0x1938] sm:$0xf0]  ;;  %v16159_v4 = vld [vmem:[%s16889_s26 + $0x1a2c] sm:$0xf]  ;;  %v13300_v51 = vor.u32 %v16095_v30, %v13297_v38  ;;  %v9651_v46 = vpop.f32.mrf.mxu2 }
 0x4c7   : > { %9890 = vmatpush.bf16.msra.mxu1 %v13476_v16  ;;  %v13553_v42 = vld [vmem:[%s16889_s26 + $0x1a38] sm:$0xf0]  ;;  %v16191_v31 = vld [vmem:[%s16889_s26 + $0x1b2c] sm:$0xf]  ;;  %v13428_v32 = vor.u32 %v16127_v35, %v13425_v34  ;;  %v9664_v44 = vpop.f32.mrf.mxu3 }
 0x4c8   : > { %9903 = vmatpush.bf16.msra.mxu2 %v13604_v17  ;;  %v13681_v19 = vld [vmem:[%s16889_s26 + $0x1b38] sm:$0xf0]  ;;  %v16091_v5 = vld [vmem:[%s16889_s26 + $0x180c] sm:$0xf]  ;;  %v13556_v13 = vor.u32 %v16159_v4, %v13553_v42 }
 0x4c9   : > { %9916 = vmatpush.bf16.msra.mxu3 %v13732_v55  ;;  %v13281_v8 = vld [vmem:[%s16889_s26 + $0x1818] sm:$0xf0]  ;;  %v16123_v45 = vld [vmem:[%s16889_s26 + $0x190c] sm:$0xf]  ;;  %v13684_v37 = vor.u32 %v16191_v31, %v13681_v19 }
 0x4ca   : > { %9878 = vmatpush.bf16.msra.mxu0 %v13332_v11  ;;  %v13409_v33 = vld [vmem:[%s16889_s26 + $0x1918] sm:$0xf0]  ;;  %v16155_v9 = vld [vmem:[%s16889_s26 + $0x1a0c] sm:$0xf]  ;;  %v13284_v55 = vor.u32 %v16091_v5, %v13281_v8 }
 0x4cb   : > { %9891 = vmatpush.bf16.msra.mxu1 %v13460_v57  ;;  %v13537_v16 = vld [vmem:[%s16889_s26 + $0x1a18] sm:$0xf0]  ;;  %v16187_v17 = vld [vmem:[%s16889_s26 + $0x1b0c] sm:$0xf]  ;;  %v13412_v22 = vor.u32 %v16123_v45, %v13409_v33 }
 0x4cc   : > { %9904 = vmatpush.bf16.msra.mxu2 %v13588_v54  ;;  %v13665_v20 = vld [vmem:[%s16889_s26 + $0x1b18] sm:$0xf0]  ;;  %v16247_v52 = vld [vmem:[%s16889_s26 + $0x1cec] sm:$0xf]  ;;  %v13540_v1 = vor.u32 %v16155_v9, %v13537_v16 }
 0x4cd   : > { %9917 = vmatpush.bf16.msra.mxu3 %v13716_v23  ;;  %v13905_v18 = vld [vmem:[%s16889_s26 + $0x1cf8] sm:$0xf0]  ;;  %v16279_v21 = vld [vmem:[%s16889_s26 + $0x1dec] sm:$0xf]  ;;  %v13668_v57 = vor.u32 %v16187_v17, %v13665_v20 }
 0x4ce   : > { %9879 = vmatpush.bf16.msra.mxu0 %v13316_v7  ;;  %v14033_v61 = vld [vmem:[%s16889_s26 + $0x1df8] sm:$0xf0]  ;;  %v16311_v53 = vld [vmem:[%s16889_s26 + $0x1eec] sm:$0xf]  ;;  %v13908_v54 = vor.u32 %v16247_v52, %v13905_v18 }
 0x4cf   : > { %9892 = vmatpush.bf16.msra.mxu1 %v13444_v10  ;;  %v14161_v58 = vld [vmem:[%s16889_s26 + $0x1ef8] sm:$0xf0]  ;;  %v16343_v2 = vld [vmem:[%s16889_s26 + $0x1fec] sm:$0xf]  ;;  %v14036_v24 = vor.u32 %v16279_v21, %v14033_v61 }
 0x4d0   : > { %9905 = vmatpush.bf16.msra.mxu2 %v13572_v29  ;;  %v14289_v11 = vld [vmem:[%s16889_s26 + $0x1ff8] sm:$0xf0]  ;;  %v14164_v47 = vor.u32 %v16311_v53, %v14161_v58  ;;  %v16243_v25 = vld [vmem:[%s16889_s26 + $0x1ccc] sm:$0xf] }
 0x4d1   : > { %9918 = vmatpush.bf16.msra.mxu3 %v13700_v15  ;;  %v13889_v3 = vld [vmem:[%s16889_s26 + $0x1cd8] sm:$0xf0]  ;;  %v16275_v23 = vld [vmem:[%s16889_s26 + $0x1dcc] sm:$0xf]  ;;  %v14292_v62 = vor.u32 %v16343_v2, %v14289_v11 }
 0x4d2   : > { %9880 = vmatpush.bf16.msra.mxu0 %v13300_v51  ;;  %v14017_v48 = vld [vmem:[%s16889_s26 + $0x1dd8] sm:$0xf0]  ;;  %v16307_v49 = vld [vmem:[%s16889_s26 + $0x1ecc] sm:$0xf]  ;;  %v13892_v6 = vor.u32 %v16243_v25, %v13889_v3 }
 0x4d3   : > { %9893 = vmatpush.bf16.msra.mxu1 %v13428_v32  ;;  %v14145_v56 = vld [vmem:[%s16889_s26 + $0x1ed8] sm:$0xf0]  ;;  %v16339_v12 = vld [vmem:[%s16889_s26 + $0x1fcc] sm:$0xf]  ;;  %v14020_v7 = vor.u32 %v16275_v23, %v14017_v48 }
 0x4d4   : > { %9906 = vmatpush.bf16.msra.mxu2 %v13556_v13  ;;  %v14273_v50 = vld [vmem:[%s16889_s26 + $0x1fd8] sm:$0xf0]  ;;  %v14148_v28 = vor.u32 %v16307_v49, %v14145_v56  ;;  %v16239_v10 = vld [vmem:[%s16889_s26 + $0x1cac] sm:$0xf] }
 0x4d5   : > { %9919 = vmatpush.bf16.msra.mxu3 %v13684_v37  ;;  %v13873_v29 = vld [vmem:[%s16889_s26 + $0x1cb8] sm:$0xf0]  ;;  %v16271_v30 = vld [vmem:[%s16889_s26 + $0x1dac] sm:$0xf]  ;;  %v14276_v38 = vor.u32 %v16339_v12, %v14273_v50 }
 0x4d6   : > { %9881 = vmatpush.bf16.msra.mxu0 %v13284_v55  ;;  %v14001_v35 = vld [vmem:[%s16889_s26 + $0x1db8] sm:$0xf0]  ;;  %v16303_v14 = vld [vmem:[%s16889_s26 + $0x1eac] sm:$0xf] }
 0x4d7   : > { %9894 = vmatpush.bf16.msra.mxu1 %v13412_v22  ;;  %v14129_v15 = vld [vmem:[%s16889_s26 + $0x1eb8] sm:$0xf0]  ;;  %v16335_v34 = vld [vmem:[%s16889_s26 + $0x1fac] sm:$0xf]  ;;  %v14004_v42 = vor.u32 %v16271_v30, %v14001_v35  ;;  %v9688_v46 = vpop.f32.mrf.mxu1 }
 0x4d8   : > { %9907 = vmatpush.bf16.msra.mxu2 %v13540_v1  ;;  %v14257_v4 = vld [vmem:[%s16889_s26 + $0x1fb8] sm:$0xf0]  ;;  %v14132_v31 = vor.u32 %v16303_v14, %v14129_v15  ;;  %v16235_v19 = vld [vmem:[%s16889_s26 + $0x1c8c] sm:$0xf] }
 0x4d9   : > { %9920 = vmatpush.bf16.msra.mxu3 %v13668_v57  ;;  %9882 = vmatmul.bf16.vlgmr.msra.gmra.mxu0 %v17454_v36  ;;  %v13876_v36 = vor.u32 %v16239_v10, %v13873_v29  ;;  %v13857_v51 = vld [vmem:[%s16889_s26 + $0x1c98] sm:$0xf0]  ;;  %v16299_v8 = vld [vmem:[%s16889_s26 + $0x1e8c] sm:$0xf] }
 0x4da   : > { %9926 = vmatpush.bf16.msrb.mxu0 %v13908_v54  ;;  %9895 = vmatmul.bf16.vlgmr.msra.gmra.mxu1 %v17460_v40  ;;  %v14260_v40 = vor.u32 %v16335_v34, %v14257_v4  ;;  %v13985_v5 = vld [vmem:[%s16889_s26 + $0x1d98] sm:$0xf0]  ;;  %v16331_v13 = vld [vmem:[%s16889_s26 + $0x1f8c] sm:$0xf]  ;;  %v13860_v9 = vor.u32 %v16235_v19, %v13857_v51 }
 0x4db   : > { %9939 = vmatpush.bf16.msrb.mxu1 %v14036_v24  ;;  %9908 = vmatmul.bf16.vlgmr.msra.gmra.mxu2 %v17458_v39  ;;  %v16267_v39 = vld [vmem:[%s16889_s26 + $0x1d8c] sm:$0xf]  ;;  %v14113_v32 = vld [vmem:[%s16889_s26 + $0x1e98] sm:$0xf0] }
 0x4dc   : > { %9952 = vmatpush.bf16.msrb.mxu2 %v14164_v47  ;;  %9921 = vmatmul.bf16.vlgmr.msra.gmra.mxu3 %v17462_v41  ;;  %v9675_v41 = vpop.f32.mrf.mxu0  ;;  %v14241_v45 = vld [vmem:[%s16889_s26 + $0x1f98] sm:$0xf0]  ;;  %v13988_v37 = vor.u32 %v16267_v39, %v13985_v5  ;;  %v14116_v16 = vor.u32 %v16299_v8, %v14113_v32  ;;  %v16231_v17 = vld [vmem:[%s16889_s26 + $0x1c6c] sm:$0xf] }
 0x4dd   : > { %9965 = vmatpush.bf16.msrb.mxu3 %v14292_v62  ;;  %v9676_v33 = vadd.f32 %v9675_v41, %v19544_v26  ;;  %v13841_v20 = vld [vmem:[%s16889_s26 + $0x1c78] sm:$0xf0]  ;;  %v16263_v44 = vld [vmem:[%s16889_s26 + $0x1d6c] sm:$0xf]  ;;  %v14244_v52 = vor.u32 %v16331_v13, %v14241_v45 }
 0x4de   : > { %9927 = vmatpush.bf16.msrb.mxu0 %v13892_v6  ;;  %v13969_v21 = vld [vmem:[%s16889_s26 + $0x1d78] sm:$0xf0]  ;;  %v16295_v55 = vld [vmem:[%s16889_s26 + $0x1e6c] sm:$0xf]  ;;  %v13844_v58 = vor.u32 %v16231_v17, %v13841_v20  ;;  %v9701_v24 = vpop.f32.mrf.mxu2 }
 0x4df   : > { %9940 = vmatpush.bf16.msrb.mxu1 %v14020_v7  ;;  %v9689_v18 = vadd.f32 %v9688_v46, %v9676_v33  ;;  %v14097_v26 = vld [vmem:[%s16889_s26 + $0x1e78] sm:$0xf0]  ;;  %v16327_v61 = vld [vmem:[%s16889_s26 + $0x1f6c] sm:$0xf]  ;;  %v13972_v22 = vor.u32 %v16263_v44, %v13969_v21  ;;  %v9714_v62 = vpop.f32.mrf.mxu3  ;;  %v9690_v50 = vpop.f32.mrf.mxu1 }
 0x4e0   : > { %9953 = vmatpush.bf16.msrb.mxu2 %v14148_v28  ;;  %v14225_v53 = vld [vmem:[%s16889_s26 + $0x1f78] sm:$0xf0]  ;;  %v14100_v1 = vor.u32 %v16295_v55, %v14097_v26  ;;  %v16227_v2 = vld [vmem:[%s16889_s26 + $0x1c4c] sm:$0xf] }
 0x4e1   : > { %9966 = vmatpush.bf16.msrb.mxu3 %v14276_v38  ;;  %v13825_v11 = vld [vmem:[%s16889_s26 + $0x1c58] sm:$0xf0]  ;;  %v16259_v57 = vld [vmem:[%s16889_s26 + $0x1d4c] sm:$0xf]  ;;  %v14228_v54 = vor.u32 %v16327_v61, %v14225_v53  ;;  %v9702_v23 = vadd.f32 %v9701_v24, %v9689_v18 }
 0x4e2   : > { %9928 = vmatpush.bf16.msrb.mxu0 %v13876_v36  ;;  %v13953_v47 = vld [vmem:[%s16889_s26 + $0x1d58] sm:$0xf0]  ;;  %v16291_v25 = vld [vmem:[%s16889_s26 + $0x1e4c] sm:$0xf]  ;;  %v13828_v12 = vor.u32 %v16227_v2, %v13825_v11 }
 0x4e3   : > { %9941 = vmatpush.bf16.msrb.mxu1 %v14004_v42  ;;  %v14081_v3 = vld [vmem:[%s16889_s26 + $0x1e58] sm:$0xf0]  ;;  %v16323_v48 = vld [vmem:[%s16889_s26 + $0x1f4c] sm:$0xf]  ;;  %v19615_v6 = vadd.f32 %v9714_v62, %v9702_v23  ;;  %v13956_v7 = vor.u32 %v16259_v57, %v13953_v47 }
 0x4e4   : > { %9954 = vmatpush.bf16.msrb.mxu2 %v14132_v31  ;;  %v14209_v49 = vld [vmem:[%s16889_s26 + $0x1f58] sm:$0xf0]  ;;  %v9677_v56 = vpop.f32.mrf.mxu0  ;;  %v14084_v28 = vor.u32 %v16291_v25, %v14081_v3  ;;  %v16223_v10 = vld [vmem:[%s16889_s26 + $0x1c2c] sm:$0xf] }
 0x4e5   : > { %9967 = vmatpush.bf16.msrb.mxu3 %v14260_v40  ;;  %v13809_v29 = vld [vmem:[%s16889_s26 + $0x1c38] sm:$0xf0]  ;;  %v16255_v30 = vld [vmem:[%s16889_s26 + $0x1d2c] sm:$0xf]  ;;  %v14212_v38 = vor.u32 %v16323_v48, %v14209_v49 }
 0x4e6   : > { %9929 = vmatpush.bf16.msrb.mxu0 %v13860_v9  ;;  %v13937_v35 = vld [vmem:[%s16889_s26 + $0x1d38] sm:$0xf0]  ;;  %v16287_v14 = vld [vmem:[%s16889_s26 + $0x1e2c] sm:$0xf]  ;;  %v13812_v36 = vor.u32 %v16223_v10, %v13809_v29  ;;  %v9703_v45 = vpop.f32.mrf.mxu2 }
 0x4e7   : > { %9942 = vmatpush.bf16.msrb.mxu1 %v13988_v37  ;;  %v14065_v15 = vld [vmem:[%s16889_s26 + $0x1e38] sm:$0xf0]  ;;  %v16319_v34 = vld [vmem:[%s16889_s26 + $0x1f2c] sm:$0xf]  ;;  %v13940_v19 = vor.u32 %v16255_v30, %v13937_v35  ;;  %v9716_v37 = vpop.f32.mrf.mxu3 }
 0x4e8   : > { %9955 = vmatpush.bf16.msrb.mxu2 %v14116_v16  ;;  %v14193_v4 = vld [vmem:[%s16889_s26 + $0x1f38] sm:$0xf0]  ;;  %v16219_v42 = vld [vmem:[%s16889_s26 + $0x1c0c] sm:$0xf]  ;;  %v14068_v51 = vor.u32 %v16287_v14, %v14065_v15 }
 0x4e9   : > { %9968 = vmatpush.bf16.msrb.mxu3 %v14244_v52  ;;  %v13793_v31 = vld [vmem:[%s16889_s26 + $0x1c18] sm:$0xf0]  ;;  %v16251_v39 = vld [vmem:[%s16889_s26 + $0x1d0c] sm:$0xf]  ;;  %v14196_v8 = vor.u32 %v16319_v34, %v14193_v4 }
 0x4ea   : > { %9930 = vmatpush.bf16.msrb.mxu0 %v13844_v58  ;;  %v13921_v40 = vld [vmem:[%s16889_s26 + $0x1d18] sm:$0xf0]  ;;  %v16283_v5 = vld [vmem:[%s16889_s26 + $0x1e0c] sm:$0xf]  ;;  %v13796_v16 = vor.u32 %v16219_v42, %v13793_v31 }
 0x4eb   : > { %9943 = vmatpush.bf16.msrb.mxu1 %v13972_v22  ;;  %v14049_v32 = vld [vmem:[%s16889_s26 + $0x1e18] sm:$0xf0]  ;;  %v16315_v41 = vld [vmem:[%s16889_s26 + $0x1f0c] sm:$0xf]  ;;  %v13924_v52 = vor.u32 %v16251_v39, %v13921_v40 }
 0x4ec   : > { %9956 = vmatpush.bf16.msrb.mxu2 %v14100_v1  ;;  %v14177_v13 = vld [vmem:[%s16889_s26 + $0x1f18] sm:$0xf0]  ;;  %v16375_v33 = vld [vmem:[%s16889_s26 + $0x20ec] sm:$0xf]  ;;  %v14052_v18 = vor.u32 %v16283_v5, %v14049_v32 }
 0x4ed   : > { %9969 = vmatpush.bf16.msrb.mxu3 %v14228_v54  ;;  %v14417_v9 = vld [vmem:[%s16889_s26 + $0x20f8] sm:$0xf0]  ;;  %v16407_v46 = vld [vmem:[%s16889_s26 + $0x21ec] sm:$0xf]  ;;  %v14180_v26 = vor.u32 %v16315_v41, %v14177_v13 }
 0x4ee   : > { %9931 = vmatpush.bf16.msrb.mxu0 %v13828_v12  ;;  %v14545_v17 = vld [vmem:[%s16889_s26 + $0x21f8] sm:$0xf0]  ;;  %v16439_v20 = vld [vmem:[%s16889_s26 + $0x22ec] sm:$0xf]  ;;  %v14420_v61 = vor.u32 %v16375_v33, %v14417_v9 }
 0x4ef   : > { %9944 = vmatpush.bf16.msrb.mxu1 %v13956_v7  ;;  %v14673_v44 = vld [vmem:[%s16889_s26 + $0x22f8] sm:$0xf0]  ;;  %v16471_v21 = vld [vmem:[%s16889_s26 + $0x23ec] sm:$0xf]  ;;  %v14548_v53 = vor.u32 %v16407_v46, %v14545_v17 }
 0x4f0   : > { %9957 = vmatpush.bf16.msrb.mxu2 %v14084_v28  ;;  %v14801_v55 = vld [vmem:[%s16889_s26 + $0x23f8] sm:$0xf0]  ;;  %v14676_v58 = vor.u32 %v16439_v20, %v14673_v44  ;;  %v16371_v22 = vld [vmem:[%s16889_s26 + $0x20cc] sm:$0xf] }
 0x4f1   : > { %9970 = vmatpush.bf16.msrb.mxu3 %v14212_v38  ;;  %v14401_v1 = vld [vmem:[%s16889_s26 + $0x20d8] sm:$0xf0]  ;;  %v16403_v2 = vld [vmem:[%s16889_s26 + $0x21cc] sm:$0xf]  ;;  %v14804_v11 = vor.u32 %v16471_v21, %v14801_v55 }
 0x4f2   : > { %9932 = vmatpush.bf16.msrb.mxu0 %v13812_v36  ;;  %v14529_v57 = vld [vmem:[%s16889_s26 + $0x21d8] sm:$0xf0]  ;;  %v16435_v54 = vld [vmem:[%s16889_s26 + $0x22cc] sm:$0xf]  ;;  %v14404_v3 = vor.u32 %v16371_v22, %v14401_v1 }
 0x4f3   : > { %9945 = vmatpush.bf16.msrb.mxu1 %v13940_v19  ;;  %v14657_v24 = vld [vmem:[%s16889_s26 + $0x22d8] sm:$0xf0]  ;;  %v16467_v47 = vld [vmem:[%s16889_s26 + $0x23cc] sm:$0xf]  ;;  %v14532_v23 = vor.u32 %v16403_v2, %v14529_v57 }
 0x4f4   : > { %9958 = vmatpush.bf16.msrb.mxu2 %v14068_v51  ;;  %v14785_v25 = vld [vmem:[%s16889_s26 + $0x23d8] sm:$0xf0]  ;;  %v14660_v62 = vor.u32 %v16435_v54, %v14657_v24  ;;  %v16367_v48 = vld [vmem:[%s16889_s26 + $0x20ac] sm:$0xf] }
 0x4f5   : > { %9971 = vmatpush.bf16.msrb.mxu3 %v14196_v8  ;;  %v14385_v49 = vld [vmem:[%s16889_s26 + $0x20b8] sm:$0xf0]  ;;  %v16399_v56 = vld [vmem:[%s16889_s26 + $0x21ac] sm:$0xf]  ;;  %v14788_v12 = vor.u32 %v16467_v47, %v14785_v25 }
 0x4f6   : > { %9933 = vmatpush.bf16.msrb.mxu0 %v13796_v16  ;;  %v14513_v50 = vld [vmem:[%s16889_s26 + $0x21b8] sm:$0xf0]  ;;  %v16431_v7 = vld [vmem:[%s16889_s26 + $0x22ac] sm:$0xf] }
 0x4f7   : > { %9946 = vmatpush.bf16.msrb.mxu1 %v13924_v52  ;;  %v14641_v28 = vld [vmem:[%s16889_s26 + $0x22b8] sm:$0xf0]  ;;  %v16463_v10 = vld [vmem:[%s16889_s26 + $0x23ac] sm:$0xf]  ;;  %v14516_v30 = vor.u32 %v16399_v56, %v14513_v50  ;;  %v9740_v51 = vpop.f32.mrf.mxu1 }
 0x4f8   : > { %9959 = vmatpush.bf16.msrb.mxu2 %v14052_v18  ;;  %v14769_v29 = vld [vmem:[%s16889_s26 + $0x23b8] sm:$0xf0]  ;;  %v14644_v38 = vor.u32 %v16431_v7, %v14641_v28  ;;  %v16363_v35 = vld [vmem:[%s16889_s26 + $0x208c] sm:$0xf] }
 0x4f9   : > { %9972 = vmatpush.bf16.msrb.mxu3 %v14180_v26  ;;  %9934 = vmatmul.bf16.vlgmr.msrb.gmra.mxu0 %v17523_v59  ;;  %v14388_v59 = vor.u32 %v16367_v48, %v14385_v49  ;;  %v14369_v14 = vld [vmem:[%s16889_s26 + $0x2098] sm:$0xf0]  ;;  %v16427_v34 = vld [vmem:[%s16889_s26 + $0x228c] sm:$0xf] }
 0x4fa   : > { %9978 = vmatpush.bf16.msra.mxu0 %v14420_v61  ;;  %9947 = vmatmul.bf16.vlgmr.msrb.gmra.mxu1 %v17527_v63  ;;  %v14772_v63 = vor.u32 %v16463_v10, %v14769_v29  ;;  %v14497_v15 = vld [vmem:[%s16889_s26 + $0x2198] sm:$0xf0]  ;;  %v16459_v36 = vld [vmem:[%s16889_s26 + $0x238c] sm:$0xf]  ;;  %v14372_v19 = vor.u32 %v16363_v35, %v14369_v14 }
 0x4fb   : > { %9991 = vmatpush.bf16.msra.mxu1 %v14548_v53  ;;  %9960 = vmatmul.bf16.vlgmr.msrb.gmra.mxu2 %v17525_v60  ;;  %v16395_v60 = vld [vmem:[%s16889_s26 + $0x218c] sm:$0xf]  ;;  %v14625_v4 = vld [vmem:[%s16889_s26 + $0x2298] sm:$0xf0] }
 0x4fc   : > { %10004 = vmatpush.bf16.msra.mxu2 %v14676_v58  ;;  %9973 = vmatmul.bf16.vlgmr.msrb.gmra.mxu3 %v17529_v0  ;;  %v9727_v0 = vpop.f32.mrf.mxu0  ;;  %v14753_v42 = vld [vmem:[%s16889_s26 + $0x2398] sm:$0xf0]  ;;  %v14500_v39 = vor.u32 %v16395_v60, %v14497_v15  ;;  %v14628_v40 = vor.u32 %v16427_v34, %v14625_v4  ;;  %v16359_v5 = vld [vmem:[%s16889_s26 + $0x206c] sm:$0xf] }
 0x4fd   : > { %10017 = vmatpush.bf16.msra.mxu3 %v14804_v11  ;;  %v9728_v31 = vadd.f32 %v9727_v0, %v19615_v6  ;;  %v14353_v8 = vld [vmem:[%s16889_s26 + $0x2078] sm:$0xf0]  ;;  %v16391_v32 = vld [vmem:[%s16889_s26 + $0x216c] sm:$0xf]  ;;  %v14756_v41 = vor.u32 %v16459_v36, %v14753_v42 }
 0x4fe   : > { %9979 = vmatpush.bf16.msra.mxu0 %v14404_v3  ;;  %v14481_v45 = vld [vmem:[%s16889_s26 + $0x2178] sm:$0xf0]  ;;  %v16423_v33 = vld [vmem:[%s16889_s26 + $0x226c] sm:$0xf]  ;;  %v14356_v37 = vor.u32 %v16359_v5, %v14353_v8  ;;  %v9753_v21 = vpop.f32.mrf.mxu2 }
 0x4ff   : > { %9992 = vmatpush.bf16.msra.mxu1 %v14532_v23  ;;  %v9741_v13 = vadd.f32 %v9740_v51, %v9728_v31  ;;  %v14609_v6 = vld [vmem:[%s16889_s26 + $0x2278] sm:$0xf0]  ;;  %v16455_v9 = vld [vmem:[%s16889_s26 + $0x236c] sm:$0xf]  ;;  %v14484_v16 = vor.u32 %v16391_v32, %v14481_v45  ;;  %v9766_v58 = vpop.f32.mrf.mxu3  ;;  %v9742_v57 = vpop.f32.mrf.mxu1 }
 0x500   : > { %10005 = vmatpush.bf16.msra.mxu2 %v14660_v62  ;;  %v14737_v46 = vld [vmem:[%s16889_s26 + $0x2378] sm:$0xf0]  ;;  %v14612_v17 = vor.u32 %v16423_v33, %v14609_v6  ;;  %v16355_v20 = vld [vmem:[%s16889_s26 + $0x204c] sm:$0xf] }
 0x501   : > { %10018 = vmatpush.bf16.msra.mxu3 %v14788_v12  ;;  %v14337_v44 = vld [vmem:[%s16889_s26 + $0x2058] sm:$0xf0]  ;;  %v16387_v52 = vld [vmem:[%s16889_s26 + $0x214c] sm:$0xf]  ;;  %v14740_v18 = vor.u32 %v16455_v9, %v14737_v46  ;;  %v9754_v53 = vadd.f32 %v9753_v21, %v9741_v13 }
 0x502   : > { %9980 = vmatpush.bf16.msra.mxu0 %v14388_v59  ;;  %v14465_v55 = vld [vmem:[%s16889_s26 + $0x2158] sm:$0xf0]  ;;  %v16419_v26 = vld [vmem:[%s16889_s26 + $0x224c] sm:$0xf]  ;;  %v14340_v11 = vor.u32 %v16355_v20, %v14337_v44 }
 0x503   : > { %9993 = vmatpush.bf16.msra.mxu1 %v14516_v30  ;;  %v14593_v61 = vld [vmem:[%s16889_s26 + $0x2258] sm:$0xf0]  ;;  %v16451_v22 = vld [vmem:[%s16889_s26 + $0x234c] sm:$0xf]  ;;  %v19686_v54 = vadd.f32 %v9766_v58, %v9754_v53  ;;  %v14468_v24 = vor.u32 %v16387_v52, %v14465_v55 }
 0x504   : > { %10006 = vmatpush.bf16.msra.mxu2 %v14644_v38  ;;  %v14721_v1 = vld [vmem:[%s16889_s26 + $0x2358] sm:$0xf0]  ;;  %v9729_v2 = vpop.f32.mrf.mxu0  ;;  %v14596_v47 = vor.u32 %v16419_v26, %v14593_v61  ;;  %v16351_v25 = vld [vmem:[%s16889_s26 + $0x202c] sm:$0xf] }
 0x505   : > { %10019 = vmatpush.bf16.msra.mxu3 %v14772_v63  ;;  %v14321_v3 = vld [vmem:[%s16889_s26 + $0x2038] sm:$0xf0]  ;;  %v16383_v23 = vld [vmem:[%s16889_s26 + $0x212c] sm:$0xf]  ;;  %v14724_v62 = vor.u32 %v16451_v22, %v14721_v1 }
 0x506   : > { %9981 = vmatpush.bf16.msra.mxu0 %v14372_v19  ;;  %v14449_v48 = vld [vmem:[%s16889_s26 + $0x2138] sm:$0xf0]  ;;  %v16415_v49 = vld [vmem:[%s16889_s26 + $0x222c] sm:$0xf]  ;;  %v14324_v7 = vor.u32 %v16351_v25, %v14321_v3  ;;  %v9755_v34 = vpop.f32.mrf.mxu2  ;;  %v16698_v3 = vld [vmem:[#allocation1 + $0x1b] sm:$0xff] }
 0x507   : > { %9994 = vmatpush.bf16.msra.mxu1 %v14500_v39  ;;  %v14577_v56 = vld [vmem:[%s16889_s26 + $0x2238] sm:$0xf0]  ;;  %v16447_v12 = vld [vmem:[%s16889_s26 + $0x232c] sm:$0xf]  ;;  %v14452_v29 = vor.u32 %v16383_v23, %v14449_v48  ;;  %v9768_v42 = vpop.f32.mrf.mxu3 }
 0x508   : > { %10007 = vmatpush.bf16.msra.mxu2 %v14628_v40  ;;  %v14705_v50 = vld [vmem:[%s16889_s26 + $0x2338] sm:$0xf0]  ;;  %v16347_v28 = vld [vmem:[%s16889_s26 + $0x200c] sm:$0xf]  ;;  %v14580_v59 = vor.u32 %v16415_v49, %v14577_v56 }
 0x509   : > { %10020 = vmatpush.bf16.msra.mxu3 %v14756_v41  ;;  %v14305_v10 = vld [vmem:[%s16889_s26 + $0x2018] sm:$0xf0]  ;;  %v16379_v30 = vld [vmem:[%s16889_s26 + $0x210c] sm:$0xf]  ;;  %v14708_v14 = vor.u32 %v16447_v12, %v14705_v50 }
 0x50a   : > { %9982 = vmatpush.bf16.msra.mxu0 %v14356_v37  ;;  %v14433_v38 = vld [vmem:[%s16889_s26 + $0x2118] sm:$0xf0]  ;;  %v16411_v35 = vld [vmem:[%s16889_s26 + $0x220c] sm:$0xf]  ;;  %v14308_v31 = vor.u32 %v16347_v28, %v14305_v10 }
 0x50b   : > { %9995 = vmatpush.bf16.msra.mxu1 %v14484_v16  ;;  %v14561_v60 = vld [vmem:[%s16889_s26 + $0x2218] sm:$0xf0]  ;;  %v16443_v63 = vld [vmem:[%s16889_s26 + $0x230c] sm:$0xf]  ;;  %v14436_v40 = vor.u32 %v16379_v30, %v14433_v38 }
 0x50c   : > { %10008 = vmatpush.bf16.msra.mxu2 %v14612_v17  ;;  %v14689_v15 = vld [vmem:[%s16889_s26 + $0x2318] sm:$0xf0]  ;;  %v16503_v4 = vld [vmem:[%s16889_s26 + $0x24ec] sm:$0xf]  ;;  %v14564_v5 = vor.u32 %v16411_v35, %v14561_v60 }
 0x50d   : > { %10021 = vmatpush.bf16.msra.mxu3 %v14740_v18  ;;  %v14929_v0 = vld [vmem:[%s16889_s26 + $0x24f8] sm:$0xf0]  ;;  %v16535_v36 = vld [vmem:[%s16889_s26 + $0x25ec] sm:$0xf]  ;;  %v14692_v41 = vor.u32 %v16443_v63, %v14689_v15 }
 0x50e   : > { %9983 = vmatpush.bf16.msra.mxu0 %v14340_v11  ;;  %v15057_v19 = vld [vmem:[%s16889_s26 + $0x25f8] sm:$0xf0]  ;;  %v16567_v51 = vld [vmem:[%s16889_s26 + $0x26ec] sm:$0xf]  ;;  %v14932_v13 = vor.u32 %v16503_v4, %v14929_v0 }
 0x50f   : > { %9996 = vmatpush.bf16.msra.mxu1 %v14468_v24  ;;  %v15185_v39 = vld [vmem:[%s16889_s26 + $0x26f8] sm:$0xf0]  ;;  %v16599_v8 = vld [vmem:[%s16889_s26 + $0x27ec] sm:$0xf]  ;;  %v15060_v45 = vor.u32 %v16535_v36, %v15057_v19  ;;  %v16697_v24 = vld [vmem:[#allocation1 + $0x9] sm:$0xff] }
 0x510   : > { %10009 = vmatpush.bf16.msra.mxu2 %v14596_v47  ;;  %v15313_v32 = vld [vmem:[%s16889_s26 + $0x27f8] sm:$0xf0]  ;;  %v15188_v33 = vor.u32 %v16567_v51, %v15185_v39  ;;  %v16499_v6 = vld [vmem:[%s16889_s26 + $0x24cc] sm:$0xf] }
 0x511   : > { %10022 = vmatpush.bf16.msra.mxu3 %v14724_v62  ;;  %v14913_v9 = vld [vmem:[%s16889_s26 + $0x24d8] sm:$0xf0]  ;;  %v16531_v46 = vld [vmem:[%s16889_s26 + $0x25cc] sm:$0xf]  ;;  %v15316_v37 = vor.u32 %v16599_v8, %v15313_v32 }
 0x512   : > { %9984 = vmatpush.bf16.msra.mxu0 %v14324_v7  ;;  %v15041_v16 = vld [vmem:[%s16889_s26 + $0x25d8] sm:$0xf0]  ;;  %v16563_v17 = vld [vmem:[%s16889_s26 + $0x26cc] sm:$0xf]  ;;  %v14916_v18 = vor.u32 %v16499_v6, %v14913_v9 }
 0x513   : > { %9997 = vmatpush.bf16.msra.mxu1 %v14452_v29  ;;  %v15169_v20 = vld [vmem:[%s16889_s26 + $0x26d8] sm:$0xf0]  ;;  %v16595_v44 = vld [vmem:[%s16889_s26 + $0x27cc] sm:$0xf]  ;;  %v15044_v21 = vor.u32 %v16531_v46, %v15041_v16 }
 0x514   : > { %10010 = vmatpush.bf16.msra.mxu2 %v14580_v59  ;;  %v15297_v52 = vld [vmem:[%s16889_s26 + $0x27d8] sm:$0xf0]  ;;  %v15172_v55 = vor.u32 %v16563_v17, %v15169_v20  ;;  %v16495_v26 = vld [vmem:[%s16889_s26 + $0x24ac] sm:$0xf] }
 0x515   : > { %10023 = vmatpush.bf16.msra.mxu3 %v14708_v14  ;;  %v14897_v61 = vld [vmem:[%s16889_s26 + $0x24b8] sm:$0xf0]  ;;  %v16527_v53 = vld [vmem:[%s16889_s26 + $0x25ac] sm:$0xf]  ;;  %v15300_v22 = vor.u32 %v16595_v44, %v15297_v52 }
 0x516   : > { %9985 = vmatpush.bf16.msra.mxu0 %v14308_v31  ;;  %v16695_v58 = vld [vmem:[#allocation1] sm:$0xff]  ;;  %v16559_v2 = vld [vmem:[%s16889_s26 + $0x26ac] sm:$0xf]  ;;  %v14900_v23 = vor.u32 %v16495_v26, %v14897_v61  ;;  %v9779_v29 = vpop.f32.mrf.mxu0 }
 0x517   : > { %9998 = vmatpush.bf16.msra.mxu1 %v14436_v40  ;;  %v15025_v1 = vld [vmem:[%s16889_s26 + $0x25b8] sm:$0xf0]  ;;  %v16696_v57 = vld [vmem:[#allocation1 + $0x12] sm:$0xff]  ;;  %v9780_v38 = vadd.f32 %v9779_v29, %v19686_v54  ;;  %v9792_v14 = vpop.f32.mrf.mxu1 }
 0x518   : > { %10011 = vmatpush.bf16.msra.mxu2 %v14564_v5  ;;  %v15153_v11 = vld [vmem:[%s16889_s26 + $0x26b8] sm:$0xf0]  ;;  %v16591_v47 = vld [vmem:[%s16889_s26 + $0x27ac] sm:$0xf]  ;;  %v15028_v62 = vor.u32 %v16527_v53, %v15025_v1 }
 0x519   : > { %10024 = vmatpush.bf16.msra.mxu3 %v14692_v41  ;;  %9986 = vmatmul.bf16.vlgmr.msra.gmra.mxu0 %v16695_v58  ;;  %v15281_v25 = vld [vmem:[%s16889_s26 + $0x27b8] sm:$0xf0]  ;;  %v15156_v48 = vor.u32 %v16559_v2, %v15153_v11  ;;  %v16491_v49 = vld [vmem:[%s16889_s26 + $0x248c] sm:$0xf]  ;;  %v9793_v36 = vadd.f32 %v9792_v14, %v9780_v38 }
 0x51a   : > { %10030 = vmatpush.bf16.msrb.mxu0 %v14932_v13  ;;  %9999 = vmatmul.bf16.vlgmr.msra.gmra.mxu1 %v16697_v24  ;;  %v14881_v56 = vld [vmem:[%s16889_s26 + $0x2498] sm:$0xf0]  ;;  %v16523_v12 = vld [vmem:[%s16889_s26 + $0x258c] sm:$0xf]  ;;  %v15284_v50 = vor.u32 %v16591_v47, %v15281_v25 }
 0x51b   : > { %10043 = vmatpush.bf16.msrb.mxu1 %v15060_v45  ;;  %10012 = vmatmul.bf16.vlgmr.msra.gmra.mxu2 %v16696_v57  ;;  %v15009_v7 = vld [vmem:[%s16889_s26 + $0x2598] sm:$0xf0]  ;;  %v16555_v28 = vld [vmem:[%s16889_s26 + $0x268c] sm:$0xf]  ;;  %v14884_v35 = vor.u32 %v16491_v49, %v14881_v56 }
 0x51c   : > { %10056 = vmatpush.bf16.msrb.mxu2 %v15188_v33  ;;  %10025 = vmatmul.bf16.vlgmr.msra.gmra.mxu3 %v16698_v3  ;;  %v15137_v10 = vld [vmem:[%s16889_s26 + $0x2698] sm:$0xf0]  ;;  %v16587_v59 = vld [vmem:[%s16889_s26 + $0x278c] sm:$0xf]  ;;  %v15012_v60 = vor.u32 %v16523_v12, %v15009_v7 }
 0x51d   : > { %10069 = vmatpush.bf16.msrb.mxu3 %v15316_v37  ;;  %v15265_v30 = vld [vmem:[%s16889_s26 + $0x2798] sm:$0xf0]  ;;  %v15140_v63 = vor.u32 %v16555_v28, %v15137_v10  ;;  %v16487_v15 = vld [vmem:[%s16889_s26 + $0x246c] sm:$0xf] }
 0x51e   : > { %10031 = vmatpush.bf16.msrb.mxu0 %v14916_v18  ;;  %v14865_v34 = vld [vmem:[%s16889_s26 + $0x2478] sm:$0xf0]  ;;  %v16519_v4 = vld [vmem:[%s16889_s26 + $0x256c] sm:$0xf]  ;;  %v15268_v0 = vor.u32 %v16587_v59, %v15265_v30  ;;  %v9805_v45 = vpop.f32.mrf.mxu2  ;;  %v9781_v20 = vpop.f32.mrf.mxu0 }
 0x51f   : > { %10044 = vmatpush.bf16.msrb.mxu1 %v15044_v21  ;;  %v14993_v42 = vld [vmem:[%s16889_s26 + $0x2578] sm:$0xf0]  ;;  %v16551_v31 = vld [vmem:[%s16889_s26 + $0x266c] sm:$0xf]  ;;  %v14868_v39 = vor.u32 %v16487_v15, %v14865_v34  ;;  %v9806_v46 = vadd.f32 %v9805_v45, %v9793_v36  ;;  %v9818_v37 = vpop.f32.mrf.mxu3  ;;  %v9794_v52 = vpop.f32.mrf.mxu1 }
 0x520   : > { %10057 = vmatpush.bf16.msrb.mxu2 %v15172_v55  ;;  %v15121_v54 = vld [vmem:[%s16889_s26 + $0x2678] sm:$0xf0]  ;;  %v16583_v19 = vld [vmem:[%s16889_s26 + $0x276c] sm:$0xf]  ;;  %v14996_v40 = vor.u32 %v16519_v4, %v14993_v42 }
 0x521   : > { %10070 = vmatpush.bf16.msrb.mxu3 %v15300_v22  ;;  %v15249_v51 = vld [vmem:[%s16889_s26 + $0x2778] sm:$0xf0]  ;;  %v15124_v5 = vor.u32 %v16551_v31, %v15121_v54  ;;  %v16483_v8 = vld [vmem:[%s16889_s26 + $0x244c] sm:$0xf]  ;;  %v9819_v18 = vadd.f32 %v9818_v37, %v9806_v46 }
 0x522   : > { %10032 = vmatpush.bf16.msrb.mxu0 %v14900_v23  ;;  %v14849_v32 = vld [vmem:[%s16889_s26 + $0x2458] sm:$0xf0]  ;;  %v16515_v41 = vld [vmem:[%s16889_s26 + $0x254c] sm:$0xf]  ;;  %v15252_v13 = vor.u32 %v16583_v19, %v15249_v51 }
 0x523   : > { %10045 = vmatpush.bf16.msrb.mxu1 %v15028_v62  ;;  %v14977_v33 = vld [vmem:[%s16889_s26 + $0x2558] sm:$0xf0]  ;;  %v16547_v6 = vld [vmem:[%s16889_s26 + $0x264c] sm:$0xf]  ;;  %v14852_v44 = vor.u32 %v16483_v8, %v14849_v32 }
 0x524   : > { %10058 = vmatpush.bf16.msrb.mxu2 %v15156_v48  ;;  %v15105_v9 = vld [vmem:[%s16889_s26 + $0x2658] sm:$0xf0]  ;;  %v16579_v16 = vld [vmem:[%s16889_s26 + $0x274c] sm:$0xf]  ;;  %v14980_v21 = vor.u32 %v16515_v41, %v14977_v33 }
 0x525   : > { %10071 = vmatpush.bf16.msrb.mxu3 %v15284_v50  ;;  %v15233_v17 = vld [vmem:[%s16889_s26 + $0x2758] sm:$0xf0]  ;;  %v15108_v55 = vor.u32 %v16547_v6, %v15105_v9  ;;  %v16479_v26 = vld [vmem:[%s16889_s26 + $0x242c] sm:$0xf] }
 0x526   : > { %10033 = vmatpush.bf16.msrb.mxu0 %v14884_v35  ;;  %v14833_v61 = vld [vmem:[%s16889_s26 + $0x2438] sm:$0xf0]  ;;  %v16511_v53 = vld [vmem:[%s16889_s26 + $0x252c] sm:$0xf]  ;;  %v15236_v58 = vor.u32 %v16579_v16, %v15233_v17  ;;  %v9807_v50 = vpop.f32.mrf.mxu2 }
 0x527   : > { %10046 = vmatpush.bf16.msrb.mxu1 %v15012_v60  ;;  %v14961_v22 = vld [vmem:[%s16889_s26 + $0x2538] sm:$0xf0]  ;;  %v16543_v1 = vld [vmem:[%s16889_s26 + $0x262c] sm:$0xf]  ;;  %v14836_v24 = vor.u32 %v16479_v26, %v14833_v61  ;;  %v9820_v10 = vpop.f32.mrf.mxu3 }
 0x528   : > { %10059 = vmatpush.bf16.msrb.mxu2 %v15140_v63  ;;  %v15089_v2 = vld [vmem:[%s16889_s26 + $0x2638] sm:$0xf0]  ;;  %v16575_v11 = vld [vmem:[%s16889_s26 + $0x272c] sm:$0xf]  ;;  %v14964_v47 = vor.u32 %v16511_v53, %v14961_v22 }
 0x529   : > { %10072 = vmatpush.bf16.msrb.mxu3 %v15268_v0  ;;  %v15217_v57 = vld [vmem:[%s16889_s26 + $0x2738] sm:$0xf0]  ;;  %v15092_v25 = vor.u32 %v16543_v1, %v15089_v2  ;;  %v16475_v3 = vld [vmem:[%s16889_s26 + $0x240c] sm:$0xf] }
 0x52a   : > { %10034 = vmatpush.bf16.msrb.mxu0 %v14868_v39  ;;  %v14817_v23 = vld [vmem:[%s16889_s26 + $0x2418] sm:$0xf0]  ;;  %v16507_v62 = vld [vmem:[%s16889_s26 + $0x250c] sm:$0xf]  ;;  %v15220_v48 = vor.u32 %v16575_v11, %v15217_v57 }
 0x52b   : > { %10047 = vmatpush.bf16.msrb.mxu1 %v14996_v40  ;;  %v14945_v49 = vld [vmem:[%s16889_s26 + $0x2518] sm:$0xf0]  ;;  %v16539_v56 = vld [vmem:[%s16889_s26 + $0x260c] sm:$0xf]  ;;  %v14820_v29 = vor.u32 %v16475_v3, %v14817_v23 }
 0x52c   : > { %10060 = vmatpush.bf16.msrb.mxu2 %v15124_v5  ;;  %v15073_v12 = vld [vmem:[%s16889_s26 + $0x2618] sm:$0xf0]  ;;  %v16571_v7 = vld [vmem:[%s16889_s26 + $0x270c] sm:$0xf]  ;;  %v14948_v59 = vor.u32 %v16507_v62, %v14945_v49 }
 0x52d   : > { %10073 = vmatpush.bf16.msrb.mxu3 %v15252_v13  ;;  %v15201_v28 = vld [vmem:[%s16889_s26 + $0x2718] sm:$0xf0]  ;;  %v15076_v30 = vor.u32 %v16539_v56, %v15073_v12  ;;  %v16700_v14 = vld [vmem:[#allocation1 + $0x2d] sm:$0xff]  ;;  %v16701_v60 = vld [vmem:[#allocation1 + $0x36] sm:$0xff] }
 0x52e   : > { %10035 = vmatpush.bf16.msrb.mxu0 %v14852_v44  ;;  %v15204_v38 = vor.u32 %v16571_v7, %v15201_v28  ;;  %v16699_v35 = vld [vmem:[#allocation1 + $0x24] sm:$0xff] }
 0x52f   : > { %10048 = vmatpush.bf16.msrb.mxu1 %v14980_v21  ;;  %v16702_v63 = vld [vmem:[#allocation1 + $0x3f] sm:$0xff] }
 0x530   : > { %10061 = vmatpush.bf16.msrb.mxu2 %v15108_v55 }
 0x531   : > { %10074 = vmatpush.bf16.msrb.mxu3 %v15236_v58 }
 0x532   : > { %10036 = vmatpush.bf16.msrb.mxu0 %v14836_v24 }
 0x533   : > { %10049 = vmatpush.bf16.msrb.mxu1 %v14964_v47 }
 0x534   : > { %10062 = vmatpush.bf16.msrb.mxu2 %v15092_v25 }
 0x535   : > { %10075 = vmatpush.bf16.msrb.mxu3 %v15220_v48 }
 0x536   : > { %10037 = vmatpush.bf16.msrb.mxu0 %v14820_v29  ;;  %v9831_v15 = vpop.f32.mrf.mxu0 }
 0x537   : > { %10050 = vmatpush.bf16.msrb.mxu1 %v14948_v59  ;;  %v9832_v34 = vadd.f32 %v9831_v15, %v9819_v18  ;;  %v9844_v4 = vpop.f32.mrf.mxu1 }
 0x538   : > { %10063 = vmatpush.bf16.msrb.mxu2 %v15076_v30 }
 0x539   : > { %10076 = vmatpush.bf16.msrb.mxu3 %v15204_v38  ;;  %10038 = vmatmul.bf16.vlgmr.msrb.gmra.mxu0 %v16699_v35  ;;  %v9845_v0 = vadd.f32 %v9844_v4, %v9832_v34  ;;  %v10087_v35 = vrot.slane %v19403_v27, 4 }
 0x53a   : > { %10051 = vmatmul.bf16.vlgmr.msrb.gmra.mxu1 %v16700_v14 }
 0x53b   : > { %10064 = vmatmul.bf16.vlgmr.msrb.gmra.mxu2 %v16701_v60  ;;  %v226_v60 = vld [vmem:[%s16902_s5] sm:$0xff] }
 0x53c   : > { %10077 = vmatmul.bf16.vlgmr.msrb.gmra.mxu3 %v16702_v63 }
 0x53e   : > { %v9857_v36 = vpop.f32.mrf.mxu2  ;;  %v9833_v54 = vpop.f32.mrf.mxu0 }
 0x53f   : > { %v9858_v42 = vadd.f32 %v9857_v36, %v9845_v0  ;;  %v9870_v31 = vpop.f32.mrf.mxu3  ;;  %v9846_v19 = vpop.f32.mrf.mxu1 }
 0x541   : > { %v9871_v51 = vadd.f32 %v9870_v31, %v9858_v42 }
 0x546   : > { %v9859_v39 = vpop.f32.mrf.mxu2 }
 0x547   : > { %v9872_v40 = vpop.f32.mrf.mxu3 }
 0x556   : > { %v9883_v5 = vpop.f32.mrf.mxu0 }
 0x557   : > { %v9884_v8 = vadd.f32 %v9883_v5, %v9871_v51  ;;  %v9896_v32 = vpop.f32.mrf.mxu1 }
 0x559   : > { %v9897_v41 = vadd.f32 %v9896_v32, %v9884_v8 }
 0x55e   : > { %v9909_v13 = vpop.f32.mrf.mxu2  ;;  %v9885_v6 = vpop.f32.mrf.mxu0 }
 0x55f   : > { %v9910_v45 = vadd.f32 %v9909_v13, %v9897_v41  ;;  %v9922_v33 = vpop.f32.mrf.mxu3  ;;  %v9898_v9 = vpop.f32.mrf.mxu1 }
 0x561   : > { %v9923_v46 = vadd.f32 %v9922_v33, %v9910_v45 }
 0x566   : > { %v9911_v37 = vpop.f32.mrf.mxu2 }
 0x567   : > { %v9924_v16 = vpop.f32.mrf.mxu3 }
 0x576   : > { %v9935_v17 = vpop.f32.mrf.mxu0 }
 0x577   : > { %v9948_v20 = vpop.f32.mrf.mxu1  ;;  %v9936_v58 = vadd.f32 %v9935_v17, %v9923_v46 }
 0x579   : > { %v9949_v57 = vadd.f32 %v9948_v20, %v9936_v58 }
 0x57e   : > { %v9961_v44 = vpop.f32.mrf.mxu2  ;;  %v9937_v18 = vpop.f32.mrf.mxu0 }
 0x57f   : > { %v9974_v52 = vpop.f32.mrf.mxu3  ;;  %v9950_v21 = vpop.f32.mrf.mxu1  ;;  %v9962_v24 = vadd.f32 %v9961_v44, %v9949_v57 }
 0x581   : > { %v9975_v3 = vadd.f32 %v9974_v52, %v9962_v24 }
 0x586   : > { %v9963_v55 = vpop.f32.mrf.mxu2 }
 0x587   : > { %v9976_v26 = vpop.f32.mrf.mxu3 }
 0x596   : > { %v9987_v61 = vpop.f32.mrf.mxu0 }
 0x597   : > { %v10000_v53 = vpop.f32.mrf.mxu1  ;;  %v9988_v23 = vadd.f32 %v9987_v61, %v9975_v3 }
 0x599   : > { %v10001_v62 = vadd.f32 %v10000_v53, %v9988_v23 }
 0x59e   : > { %v10013_v22 = vpop.f32.mrf.mxu2  ;;  %v9989_v2 = vpop.f32.mrf.mxu0 }
 0x59f   : > { %v10026_v1 = vpop.f32.mrf.mxu3  ;;  %v10002_v11 = vpop.f32.mrf.mxu1  ;;  %v10014_v48 = vadd.f32 %v10013_v22, %v10001_v62 }
 0x5a1   : > { %v10027_v49 = vadd.f32 %v10026_v1, %v10014_v48 }
 0x5a6   : > { %v10015_v47 = vpop.f32.mrf.mxu2 }
 0x5a7   : > { %v10028_v25 = vpop.f32.mrf.mxu3 }
 0x5b6   : > { %v10039_v56 = vpop.f32.mrf.mxu0 }
 0x5b7   : > { %v10052_v12 = vpop.f32.mrf.mxu1  ;;  %v10040_v50 = vadd.f32 %v10039_v56, %v10027_v49 }
 0x5b9   : > { %v10053_v7 = vadd.f32 %v10052_v12, %v10040_v50 }
 0x5be   : > { %v10065_v28 = vpop.f32.mrf.mxu2  ;;  %v10041_v59 = vpop.f32.mrf.mxu0 }
 0x5bf   : > { %v10066_v10 = vadd.f32 %v10065_v28, %v10053_v7  ;;  %v10078_v29 = vpop.f32.mrf.mxu3  ;;  %v10054_v30 = vpop.f32.mrf.mxu1 }
 0x5c1   : > { %v10079_v38 = vadd.f32 %v10078_v29, %v10066_v10 }
 0x5c3   : > { %v10088_v14 = vrot.slane %v10079_v38, 2 }
 0x5c5   : > { %v10092_v63 = vsel %vm10091_vm1, %v10087_v35, %v10088_v14 }
 0x5c6   : > { %v10094_v15 = vsel %vm10093_vm2, %v18712_v43, %v10092_v63  ;;  %v10067_v34 = vpop.f32.mrf.mxu2 }
 0x5c7   : > { %v10096_v4 = vadd.f32 %v10094_v15, %v226_v60  ;;  %v10080_v0 = vpop.f32.mrf.mxu3 }
 0x5c9   : > { %10097 = vst [vmem:[%s16902_s5] sm:$0xff] %v10096_v4 }
 0x5ca PF: > { %s15_s16 = sadd.s32 1, %s16799_s16   ;;  %s19801_s9 = smov %s16775_s10 }
 0x5cb   : > { %p12_p3 = scmp.ge.s32.totalorder %s15_s16, 8   ;;  %s19802_s10 = smov %s16779_s11 }
 0x5cc   : > { %s19803_s11 = smov %s16881_s30  ;;  %s19804_s12 = smov %s16791_s14 }
 0x5cd   : > { %s19805_s13 = smov %s16795_s15  ;;  %s19806_s14 = smov %s19809_s18 }
 0x5ce   : > { %s19807_s15 = smov %s19813_s19  ;;  %14 = sbr.rel (!%p12_p3) target bundleno = 5 (0x5), region = 75 }
 0x5d3   :  { %10119 = vsyncpa [#allocation3], 1 }
 0x5d4   :  { %10121 = vsyncpa [#allocation3 + $0x1], 1 }

</bundles_post_ra>
